<compile_context>
chip_gen: v7x
topology: tpu7x:2x2x1
jax: 0.10.0
libtpu: 0.0.40
codegen_flags: <defaults>
</compile_context>

<pallas_src>
import functools

import jax
import jax.numpy as jnp
from jax.experimental import pallas as pl
from jax.experimental.pallas import tpu as pltpu

EPS = 1e-5
VMEM_LIMIT = 48 * 1024 * 1024  # > 32 MiB scoped default, < v7x 64 MiB physical.


def _round_up(x, m):
    return (x + m - 1) // m * m


def _pad2d(a, rows, cols):
    r, c = a.shape
    if r == rows and c == cols:
        return a
    return jnp.pad(a, ((0, rows - r), (0, cols - c)))


# ----------------------------------------------------------------------------
# Tiled matmul + folded BN (+ReLU)   (conv1 / conv3 as 1x1 convs)
# ----------------------------------------------------------------------------
def _mm_affine_kernel(x_ref, w_ref, s_ref, b_ref, o_ref, acc_ref, *, relu):
    @pl.when(pl.program_id(2) == 0)
    def _init():
        acc_ref[...] = jnp.zeros_like(acc_ref)

    acc_ref[...] += jnp.dot(x_ref[...], w_ref[...],
                            preferred_element_type=jnp.float32)

    @pl.when(pl.program_id(2) == pl.num_programs(2) - 1)
    def _store():
        y = acc_ref[...] * s_ref[...] + b_ref[...]
        if relu:
            y = jnp.maximum(y, 0.0)
        o_ref[...] = y.astype(o_ref.dtype)


def mm_affine(x, w, scale, bias, relu=False, out_dtype=jnp.bfloat16):
    """[relu]((x @ w) * scale + bias): tiled, pipelined, bf16 MXU, f32 accumulator."""
    M, K = x.shape
    N = w.shape[1]
    TM = 512 if M > 512 else _round_up(M, 8)
    TK = 512 if K > 512 else K
    TN = 256 if N > 256 else N
    Mp, Kp, Np = _round_up(M, TM), _round_up(K, TK), _round_up(N, TN)

    xb = _pad2d(x.astype(jnp.bfloat16), Mp, Kp)
    wb = _pad2d(w.astype(jnp.bfloat16), Kp, Np)
    sb = _pad2d(scale.reshape(1, N).astype(jnp.float32), 1, Np)
    bb = _pad2d(bias.reshape(1, N).astype(jnp.float32), 1, Np)

    grid = (Mp // TM, Np // TN, Kp // TK)
    out = pl.pallas_call(
        functools.partial(_mm_affine_kernel, relu=relu),
        out_shape=jax.ShapeDtypeStruct((Mp, Np), out_dtype),
        grid=grid,
        in_specs=[
            pl.BlockSpec((TM, TK), lambda i, j, k: (i, k)),
            pl.BlockSpec((TK, TN), lambda i, j, k: (k, j)),
            pl.BlockSpec((1, TN), lambda i, j, k: (0, j)),
            pl.BlockSpec((1, TN), lambda i, j, k: (0, j)),
        ],
        out_specs=pl.BlockSpec((TM, TN), lambda i, j, k: (i, j)),
        scratch_shapes=[pltpu.VMEM((TM, TN), jnp.float32)],
        compiler_params=pltpu.CompilerParams(
            dimension_semantics=("parallel", "parallel", "arbitrary"),
            vmem_limit_bytes=VMEM_LIMIT,
        ),
        cost_estimate=pl.CostEstimate(
            flops=2 * Mp * Np * Kp,
            transcendentals=0,
            bytes_accessed=2 * (Mp * Kp + Kp * Np)
            + Mp * Np * jnp.dtype(out_dtype).itemsize,
        ),
    )(xb, wb, sb, bb)
    if (Mp, Np) != (M, N):
        out = out[:M, :N]
    return out


# ----------------------------------------------------------------------------
# 3x3 (dilated) conv + folded BN (+ReLU), im2col fused in-kernel (9-tap accum)
# ----------------------------------------------------------------------------
def _conv3x3_bn_kernel(xp_ref, w_ref, s_ref, b_ref, o_ref, *, H, W, dil, relu):
    C = xp_ref.shape[-1]
    Cout = w_ref.shape[-1]
    xp = xp_ref[0]                                 # (Hp, Wp, C) resident in VMEM
    acc = jnp.zeros((H * W, Cout), jnp.float32)
    for t in range(9):                             # unrolled taps, no HBM im2col
        di, dj = divmod(t, 3)
        win = xp[di * dil:di * dil + H, dj * dil:dj * dil + W, :]
        acc = acc + jnp.dot(win.reshape(H * W, C), w_ref[t],
                            preferred_element_type=jnp.float32)
    y = acc * s_ref[...] + b_ref[...]
    if relu:
        y = jnp.maximum(y, 0.0)
    o_ref[...] = y.reshape(1, H, W, Cout).astype(o_ref.dtype)


def conv3x3_bn(x, w9, scale, bias, dil=1, relu=True, out_dtype=jnp.bfloat16):
    """'same' 3x3 (optionally dilated) conv + folded BN (+ReLU). w9: (9, Cin, Cout)."""
    N, H, W, C = x.shape
    Cout = w9.shape[-1]
    pad = dil
    xp = jnp.pad(x.astype(jnp.bfloat16), ((0, 0), (pad, pad), (pad, pad), (0, 0)))
    Hp, Wp = H + 2 * pad, W + 2 * pad
    return pl.pallas_call(
        functools.partial(_conv3x3_bn_kernel, H=H, W=W, dil=dil, relu=relu),
        out_shape=jax.ShapeDtypeStruct((N, H, W, Cout), out_dtype),
        grid=(N,),
        in_specs=[
            pl.BlockSpec((1, Hp, Wp, C), lambda n: (n, 0, 0, 0)),
            pl.BlockSpec((9, C, Cout), lambda n: (0, 0, 0)),
            pl.BlockSpec((1, Cout), lambda n: (0, 0)),
            pl.BlockSpec((1, Cout), lambda n: (0, 0)),
        ],
        out_specs=pl.BlockSpec((1, H, W, Cout), lambda n: (n, 0, 0, 0)),
        compiler_params=pltpu.CompilerParams(
            dimension_semantics=("parallel",), vmem_limit_bytes=VMEM_LIMIT),
        cost_estimate=pl.CostEstimate(
            flops=2 * N * H * W * 9 * C * Cout,
            transcendentals=0,
            bytes_accessed=2 * (N * Hp * Wp * C + 9 * C * Cout)
            + N * H * W * Cout * jnp.dtype(out_dtype).itemsize),
    )(xp, w9.astype(jnp.bfloat16), scale.reshape(1, Cout).astype(jnp.float32),
      bias.reshape(1, Cout).astype(jnp.float32))


# ----------------------------------------------------------------------------
# Fused feat consumers: global-avg-pool + spatial-gate 1x1 reduce (single pass)
# ----------------------------------------------------------------------------
def _feat_gap_ws1_kernel(f_ref, w_ref, s_ref, b_ref, pool_ref, hs_ref, *, H, W):
    C = f_ref.shape[-1]
    Cr = w_ref.shape[-1]
    f = f_ref[...].reshape(H * W, C)
    pool_ref[...] = jnp.mean(f.astype(jnp.float32), axis=0,
                             keepdims=True).reshape(1, 1, C)
    h = jnp.dot(f, w_ref[...], preferred_element_type=jnp.float32)
    h = jnp.maximum(h * s_ref[...] + b_ref[...], 0.0)
    hs_ref[...] = h.reshape(1, H, W, Cr).astype(hs_ref.dtype)


def feat_gap_ws1(feat, ws1, scale, bias):
    N, H, W, C = feat.shape
    Cr = ws1.shape[-1]
    return pl.pallas_call(
        functools.partial(_feat_gap_ws1_kernel, H=H, W=W),
        out_shape=(jax.ShapeDtypeStruct((N, 1, C), jnp.float32),
                   jax.ShapeDtypeStruct((N, H, W, Cr), jnp.bfloat16)),
        grid=(N,),
        in_specs=[
            pl.BlockSpec((1, H, W, C), lambda n: (n, 0, 0, 0)),
            pl.BlockSpec((C, Cr), lambda n: (0, 0)),
            pl.BlockSpec((1, Cr), lambda n: (0, 0)),
            pl.BlockSpec((1, Cr), lambda n: (0, 0)),
        ],
        out_specs=[
            pl.BlockSpec((1, 1, C), lambda n: (n, 0, 0)),
            pl.BlockSpec((1, H, W, Cr), lambda n: (n, 0, 0, 0)),
        ],
        compiler_params=pltpu.CompilerParams(
            dimension_semantics=("parallel",), vmem_limit_bytes=VMEM_LIMIT),
        cost_estimate=pl.CostEstimate(
            flops=2 * N * H * W * C * Cr + N * H * W * C,
            transcendentals=0,
            bytes_accessed=2 * N * H * W * (C + Cr) + 4 * N * C),
    )(feat, ws1.astype(jnp.bfloat16), scale.reshape(1, Cr).astype(jnp.float32),
      bias.reshape(1, Cr).astype(jnp.float32))


# ----------------------------------------------------------------------------
# BAM channel gate:  pooled -> fc1 -> BN -> ReLU -> fc2  (single tiny kernel)
# ----------------------------------------------------------------------------
def _channel_gate_kernel(p_ref, w1_ref, s_ref, b_ref, w2_ref, b2_ref, o_ref):
    Nb = p_ref.shape[0]
    C = p_ref.shape[-1]
    p = p_ref[...].reshape(Nb, C)
    h = jnp.dot(p, w1_ref[...], preferred_element_type=jnp.float32)
    h = jnp.maximum(h * s_ref[...] + b_ref[...], 0.0)
    c = jnp.dot(h, w2_ref[...], preferred_element_type=jnp.float32) + b2_ref[...]
    o_ref[...] = c.reshape(Nb, 1, C)


def channel_gate(pooled, fc1_w, scale, bias, fc2_w, fc2_b):
    N, _, C = pooled.shape
    Cr = fc1_w.shape[-1]
    return pl.pallas_call(
        _channel_gate_kernel,
        out_shape=jax.ShapeDtypeStruct((N, 1, C), jnp.float32),
        grid=(1,),
        in_specs=[
            pl.BlockSpec((N, 1, C), lambda i: (0, 0, 0)),
            pl.BlockSpec((C, Cr), lambda i: (0, 0)),
            pl.BlockSpec((1, Cr), lambda i: (0, 0)),
            pl.BlockSpec((1, Cr), lambda i: (0, 0)),
            pl.BlockSpec((Cr, C), lambda i: (0, 0)),
            pl.BlockSpec((1, C), lambda i: (0, 0)),
        ],
        out_specs=pl.BlockSpec((N, 1, C), lambda i: (0, 0, 0)),
        compiler_params=pltpu.CompilerParams(
            dimension_semantics=("arbitrary",), vmem_limit_bytes=VMEM_LIMIT),
        cost_estimate=pl.CostEstimate(
            flops=4 * N * C * Cr, transcendentals=0,
            bytes_accessed=4 * (N * C * 2 + 2 * C * Cr + 2 * Cr + C)),
    )(pooled, fc1_w.astype(jnp.float32),
      scale.reshape(1, Cr).astype(jnp.float32),
      bias.reshape(1, Cr).astype(jnp.float32),
      fc2_w.astype(jnp.float32), fc2_b.reshape(1, C).astype(jnp.float32))


# ----------------------------------------------------------------------------
# Last spatial-gate stage: dilated 3x3 conv + BN/ReLU + (Cr->1) lane reduction.
# Output is lane-dense (N, H, W) — no 1-lane-wide tensor ever stored.
# ----------------------------------------------------------------------------
def _spatial_final_kernel(xp_ref, w_ref, s_ref, b_ref, w4_ref, o_ref, *, H, W, dil):
    C = xp_ref.shape[-1]
    Cr = w_ref.shape[-1]
    xp = xp_ref[0]
    acc = jnp.zeros((H * W, Cr), jnp.float32)
    for t in range(9):
        di, dj = divmod(t, 3)
        win = xp[di * dil:di * dil + H, dj * dil:dj * dil + W, :]
        acc = acc + jnp.dot(win.reshape(H * W, C), w_ref[t],
                            preferred_element_type=jnp.float32)
    h = jnp.maximum(acc * s_ref[...] + b_ref[...], 0.0)
    spat = jnp.sum(h * w4_ref[...], axis=-1)       # ws4 1x1 conv as lane reduction
    o_ref[...] = spat.reshape(1, H, W)


def spatial_final(x, w9, scale, bias, w4, dil=4):
    N, H, W, C = x.shape
    Cr = w9.shape[-1]
    pad = dil
    xp = jnp.pad(x.astype(jnp.bfloat16), ((0, 0), (pad, pad), (pad, pad), (0, 0)))
    Hp, Wp = H + 2 * pad, W + 2 * pad
    return pl.pallas_call(
        functools.partial(_spatial_final_kernel, H=H, W=W, dil=dil),
        out_shape=jax.ShapeDtypeStruct((N, H, W), jnp.float32),
        grid=(N,),
        in_specs=[
            pl.BlockSpec((1, Hp, Wp, C), lambda n: (n, 0, 0, 0)),
            pl.BlockSpec((9, C, Cr), lambda n: (0, 0, 0)),
            pl.BlockSpec((1, Cr), lambda n: (0, 0)),
            pl.BlockSpec((1, Cr), lambda n: (0, 0)),
            pl.BlockSpec((1, Cr), lambda n: (0, 0)),
        ],
        out_specs=pl.BlockSpec((1, H, W), lambda n: (n, 0, 0)),
        compiler_params=pltpu.CompilerParams(
            dimension_semantics=("parallel",), vmem_limit_bytes=VMEM_LIMIT),
        cost_estimate=pl.CostEstimate(
            flops=2 * N * H * W * (9 * C * Cr + Cr),
            transcendentals=0,
            bytes_accessed=2 * N * Hp * Wp * C + 4 * N * H * W),
    )(xp, w9.astype(jnp.bfloat16), scale.reshape(1, Cr).astype(jnp.float32),
      bias.reshape(1, Cr).astype(jnp.float32),
      w4.reshape(1, Cr).astype(jnp.float32))


# ----------------------------------------------------------------------------
# BAM attention application + residual add + final ReLU
# ----------------------------------------------------------------------------
def _bam_residual_kernel(f_ref, c_ref, s_ref, id_ref, o_ref):
    _, H, W, C = f_ref.shape
    att = 1.0 + jax.nn.sigmoid(c_ref[...].reshape(1, 1, 1, C)
                               + s_ref[...].reshape(1, H, W, 1))
    o_ref[...] = jnp.maximum(f_ref[...].astype(jnp.float32) * att + id_ref[...], 0.0)


def bam_apply_residual(feat, chan, spat, identity):
    N, H, W, C = feat.shape
    return pl.pallas_call(
        _bam_residual_kernel,
        out_shape=jax.ShapeDtypeStruct((N, H, W, C), jnp.float32),
        grid=(N,),
        in_specs=[
            pl.BlockSpec((1, H, W, C), lambda n: (n, 0, 0, 0)),
            pl.BlockSpec((1, 1, C), lambda n: (n, 0, 0)),
            pl.BlockSpec((1, H, W), lambda n: (n, 0, 0)),
            pl.BlockSpec((1, H, W, C), lambda n: (n, 0, 0, 0)),
        ],
        out_specs=pl.BlockSpec((1, H, W, C), lambda n: (n, 0, 0, 0)),
        compiler_params=pltpu.CompilerParams(
            dimension_semantics=("parallel",), vmem_limit_bytes=VMEM_LIMIT),
        cost_estimate=pl.CostEstimate(
            flops=4 * N * H * W * C,
            transcendentals=N * H * W * C,
            bytes_accessed=N * H * W * C * (2 + 4 + 4) + N * H * W * 4 + N * C * 4),
    )(feat, chan, spat, identity)


# ----------------------------------------------------------------------------
# Parameters & forward pass
# ----------------------------------------------------------------------------
def bn_fold(gamma, beta, mean, var):
    s = gamma / jnp.sqrt(var + EPS)
    return s, beta - mean * s


def init_params(key, inplanes, planes, reduction=16):
    C4 = planes * 4
    Cr = max(C4 // reduction, 1)
    keys = list(jax.random.split(key, 64))
    it = iter(keys)

    def nrm(shape, std=0.1):
        return jax.random.normal(next(it), shape, jnp.float32) * std

    def bn(c):
        gamma = jax.random.uniform(next(it), (c,), jnp.float32, 0.5, 1.5)
        beta = nrm((c,))
        mean = nrm((c,))
        var = jax.random.uniform(next(it), (c,), jnp.float32, 0.5, 1.5)
        return (gamma, beta, mean, var)

    p = {}
    # main path
    p["w1"] = nrm((inplanes, planes))                                 # conv1 1x1
    p["bn1"] = bn(planes)
    p["w2"] = nrm((3, 3, planes, planes)).reshape(9, planes, planes)  # conv2 3x3 taps
    p["bn2"] = bn(planes)
    p["w3"] = nrm((planes, C4))                                       # conv3 1x1
    p["bn3"] = bn(C4)
    # BAM channel gate: Linear -> BN1d -> ReLU -> Linear
    p["fc1_w"] = nrm((C4, Cr))
    p["fc1_b"] = nrm((Cr,))
    p["bn_c"] = bn(Cr)
    p["fc2_w"] = nrm((Cr, C4))
    p["fc2_b"] = nrm((C4,))
    # BAM spatial gate: 1x1 reduce -> BN/ReLU -> (dilated 3x3 -> BN/ReLU) x2 -> 1x1 to 1ch
    p["ws1"] = nrm((C4, Cr))
    p["bn_s1"] = bn(Cr)
    p["ws2"] = nrm((3, 3, Cr, Cr)).reshape(9, Cr, Cr)
    p["bn_s2"] = bn(Cr)
    p["ws3"] = nrm((3, 3, Cr, Cr)).reshape(9, Cr, Cr)
    p["bn_s3"] = bn(Cr)
    p["ws4"] = nrm((Cr,))
    p["bs4"] = nrm(())
    return p


def bottleneck_forward(x_nchw, params):
    # NCHW (PyTorch) -> NHWC (kernel layout)
    x = jnp.transpose(x_nchw, (0, 2, 3, 1)).astype(jnp.float32)
    N, H, W, Cin = x.shape
    M = N * H * W

    identity = x  # downsample is None (stride=1, inplanes == planes*expansion)

    # conv1 (1x1) + bn1 + relu  -- tiled bf16 matmul
    s1, b1 = bn_fold(*params["bn1"])
    out = mm_affine(x.reshape(M, Cin), params["w1"], s1, b1, relu=True)
    P = out.shape[1]

    # conv2 (3x3, stride 1, pad 1) + bn2 + relu  -- im2col fused in-kernel
    s2, b2 = bn_fold(*params["bn2"])
    out = conv3x3_bn(out.reshape(N, H, W, P), params["w2"], s2, b2, dil=1, relu=True)

    # conv3 (1x1) + bn3
    s3, b3 = bn_fold(*params["bn3"])
    feat = mm_affine(out.reshape(M, P), params["w3"], s3, b3, relu=False)
    C4 = feat.shape[1]
    feat = feat.reshape(N, H, W, C4)

    # fused pass over feat: global-avg-pool + spatial-gate 1x1 reduce (ws1 + BN + ReLU)
    ss1, bs1 = bn_fold(*params["bn_s1"])
    pooled, hs = feat_gap_ws1(feat, params["ws1"], ss1, bs1)

    # BAM channel gate (fc1 bias folded into BN shift; ws4 bias folded in here since
    # it is a constant added before the sigmoid)
    sc, bc = bn_fold(*params["bn_c"])
    bc_eff = bc + params["fc1_b"] * sc
    fc2_b_eff = params["fc2_b"] + params["bs4"]
    chan = channel_gate(pooled, params["fc1_w"], sc, bc_eff,
                        params["fc2_w"], fc2_b_eff)                  # (N, 1, C4)

    # BAM spatial gate: dilated 3x3 + BN/ReLU, then dilated 3x3 + BN/ReLU + Cr->1
    ss2, bs2 = bn_fold(*params["bn_s2"])
    hs = conv3x3_bn(hs, params["ws2"], ss2, bs2, dil=4, relu=True)
    ss3, bs3 = bn_fold(*params["bn_s3"])
    spat = spatial_final(hs, params["ws3"], ss3, bs3, params["ws4"], dil=4)  # (N,H,W)

    # attention application + residual add + final ReLU (fused Pallas kernel)
    out_nhwc = bam_apply_residual(feat, chan, spat, identity)

    # NHWC -> NCHW to match PyTorch output convention
    return jnp.transpose(out_nhwc, (0, 3, 1, 2))


if __name__ == "__main__":
    key = jax.random.PRNGKey(0)
    kx, kp = jax.random.split(key)

    N, planes, H, W = 2, 16, 16, 16
    inplanes = planes * 4   # inplanes == planes*expansion -> identity skip, no downsample
    x = jax.random.normal(kx, (N, inplanes, H, W), jnp.float32)  # NCHW like PyTorch
    params = init_params(kp, inplanes, planes, reduction=16)

    fwd = jax.jit(functools.partial(bottleneck_forward, params=params))
    y = fwd(x)
    jax.block_until_ready(y)

    assert y.shape == (N, planes * 4, H, W), y.shape
    assert bool(jnp.all(jnp.isfinite(y)))
    assert bool(jnp.all(y >= 0.0))  # final ReLU
    print("KERNEL_OK")
</pallas_src>

<mosaic_0001>
module attributes {stable_mosaic.version = 11 : i64} {
  func.func @_conv3x3_bn_kernel(%arg0: i32, %arg1: memref<1x18x18x16xbf16, #tpu.memory_space<vmem>>, %arg2: memref<9x16x16xbf16, #tpu.memory_space<vmem>>, %arg3: memref<1x16xf32, #tpu.memory_space<vmem>>, %arg4: memref<1x16xf32, #tpu.memory_space<vmem>>, %arg5: memref<1x16x16x16xbf16, #tpu.memory_space<vmem>>) attributes {dimension_semantics = [#tpu.dimension_semantics<parallel>], iteration_bounds = array<i64: 2>, scalar_prefetch = 0 : i64, scratch_operands = 0 : i64, tpu.core_type = #tpu.core_type<tc>, window_params = [{transform_indices = @transform_0, window_bounds = array<i64: 1, 18, 18, 16>}, {pipeline_mode = #tpu.pipeline_mode<synchronous>, transform_indices = @transform_1, window_bounds = array<i64: 9, 16, 16>}, {pipeline_mode = #tpu.pipeline_mode<synchronous>, transform_indices = @transform_2, window_bounds = array<i64: 1, 16>}, {pipeline_mode = #tpu.pipeline_mode<synchronous>, transform_indices = @transform_3, window_bounds = array<i64: 1, 16>}, {transform_indices = @transform_4, window_bounds = array<i64: 1, 16, 16, 16>}]} {
    %c0 = arith.constant 0 : index
    %c0_0 = arith.constant 0 : index
    %c0_1 = arith.constant 0 : index
    %c0_2 = arith.constant 0 : index
    %0 = vector.load %arg1[%c0, %c0_0, %c0_1, %c0_2] : memref<1x18x18x16xbf16, #tpu.memory_space<vmem>>, vector<1x18x18x16xbf16>
    %1 = vector.shape_cast %0 : vector<1x18x18x16xbf16> to vector<18x18x16xbf16>
    %cst = arith.constant 0.000000e+00 : f32
    %2 = vector.broadcast %cst : f32 to vector<256x16xf32>
    %3 = vector.extract_strided_slice %1 {offsets = [0, 0, 0], sizes = [16, 16, 16], strides = [1, 1, 1]} : vector<18x18x16xbf16> to vector<16x16x16xbf16>
    %4 = vector.shape_cast %3 : vector<16x16x16xbf16> to vector<256x16xbf16>
    %c0_3 = arith.constant 0 : index
    %c0_4 = arith.constant 0 : index
    %c0_5 = arith.constant 0 : index
    %5 = vector.load %arg2[%c0_3, %c0_4, %c0_5] : memref<9x16x16xbf16, #tpu.memory_space<vmem>>, vector<1x16x16xbf16>
    %6 = vector.shape_cast %5 : vector<1x16x16xbf16> to vector<16x16xbf16>
    %cst_6 = arith.constant dense<0.000000e+00> : vector<256x16xf32>
    %7 = tpu.matmul %4, %6, %cst_6 {dimension_numbers = #tpu.dot_dimension_numbers<[1], [0], [0], [1], [0, 0, 1, 1], [], []>} : vector<256x16xbf16>, vector<16x16xbf16>, vector<256x16xf32> -> vector<256x16xf32>
    %8 = arith.addf %2, %7 : vector<256x16xf32>
    %9 = vector.extract_strided_slice %1 {offsets = [0, 1, 0], sizes = [16, 16, 16], strides = [1, 1, 1]} : vector<18x18x16xbf16> to vector<16x16x16xbf16>
    %10 = vector.shape_cast %9 : vector<16x16x16xbf16> to vector<256x16xbf16>
    %c1 = arith.constant 1 : index
    %c0_7 = arith.constant 0 : index
    %c0_8 = arith.constant 0 : index
    %11 = vector.load %arg2[%c1, %c0_7, %c0_8] : memref<9x16x16xbf16, #tpu.memory_space<vmem>>, vector<1x16x16xbf16>
    %12 = vector.shape_cast %11 : vector<1x16x16xbf16> to vector<16x16xbf16>
    %cst_9 = arith.constant dense<0.000000e+00> : vector<256x16xf32>
    %13 = tpu.matmul %10, %12, %cst_9 {dimension_numbers = #tpu.dot_dimension_numbers<[1], [0], [0], [1], [0, 0, 1, 1], [], []>} : vector<256x16xbf16>, vector<16x16xbf16>, vector<256x16xf32> -> vector<256x16xf32>
    %14 = arith.addf %8, %13 : vector<256x16xf32>
    %15 = vector.extract_strided_slice %1 {offsets = [0, 2, 0], sizes = [16, 16, 16], strides = [1, 1, 1]} : vector<18x18x16xbf16> to vector<16x16x16xbf16>
    %16 = vector.shape_cast %15 : vector<16x16x16xbf16> to vector<256x16xbf16>
    %c2 = arith.constant 2 : index
    %c0_10 = arith.constant 0 : index
    %c0_11 = arith.constant 0 : index
    %17 = vector.load %arg2[%c2, %c0_10, %c0_11] : memref<9x16x16xbf16, #tpu.memory_space<vmem>>, vector<1x16x16xbf16>
    %18 = vector.shape_cast %17 : vector<1x16x16xbf16> to vector<16x16xbf16>
    %cst_12 = arith.constant dense<0.000000e+00> : vector<256x16xf32>
    %19 = tpu.matmul %16, %18, %cst_12 {dimension_numbers = #tpu.dot_dimension_numbers<[1], [0], [0], [1], [0, 0, 1, 1], [], []>} : vector<256x16xbf16>, vector<16x16xbf16>, vector<256x16xf32> -> vector<256x16xf32>
    %20 = arith.addf %14, %19 : vector<256x16xf32>
    %21 = vector.extract_strided_slice %1 {offsets = [1, 0, 0], sizes = [16, 16, 16], strides = [1, 1, 1]} : vector<18x18x16xbf16> to vector<16x16x16xbf16>
    %22 = vector.shape_cast %21 : vector<16x16x16xbf16> to vector<256x16xbf16>
    %c3 = arith.constant 3 : index
    %c0_13 = arith.constant 0 : index
    %c0_14 = arith.constant 0 : index
    %23 = vector.load %arg2[%c3, %c0_13, %c0_14] : memref<9x16x16xbf16, #tpu.memory_space<vmem>>, vector<1x16x16xbf16>
    %24 = vector.shape_cast %23 : vector<1x16x16xbf16> to vector<16x16xbf16>
    %cst_15 = arith.constant dense<0.000000e+00> : vector<256x16xf32>
    %25 = tpu.matmul %22, %24, %cst_15 {dimension_numbers = #tpu.dot_dimension_numbers<[1], [0], [0], [1], [0, 0, 1, 1], [], []>} : vector<256x16xbf16>, vector<16x16xbf16>, vector<256x16xf32> -> vector<256x16xf32>
    %26 = arith.addf %20, %25 : vector<256x16xf32>
    %27 = vector.extract_strided_slice %1 {offsets = [1, 1, 0], sizes = [16, 16, 16], strides = [1, 1, 1]} : vector<18x18x16xbf16> to vector<16x16x16xbf16>
    %28 = vector.shape_cast %27 : vector<16x16x16xbf16> to vector<256x16xbf16>
    %c4 = arith.constant 4 : index
    %c0_16 = arith.constant 0 : index
    %c0_17 = arith.constant 0 : index
    %29 = vector.load %arg2[%c4, %c0_16, %c0_17] : memref<9x16x16xbf16, #tpu.memory_space<vmem>>, vector<1x16x16xbf16>
    %30 = vector.shape_cast %29 : vector<1x16x16xbf16> to vector<16x16xbf16>
    %cst_18 = arith.constant dense<0.000000e+00> : vector<256x16xf32>
    %31 = tpu.matmul %28, %30, %cst_18 {dimension_numbers = #tpu.dot_dimension_numbers<[1], [0], [0], [1], [0, 0, 1, 1], [], []>} : vector<256x16xbf16>, vector<16x16xbf16>, vector<256x16xf32> -> vector<256x16xf32>
    %32 = arith.addf %26, %31 : vector<256x16xf32>
    %33 = vector.extract_strided_slice %1 {offsets = [1, 2, 0], sizes = [16, 16, 16], strides = [1, 1, 1]} : vector<18x18x16xbf16> to vector<16x16x16xbf16>
    %34 = vector.shape_cast %33 : vector<16x16x16xbf16> to vector<256x16xbf16>
    %c5 = arith.constant 5 : index
    %c0_19 = arith.constant 0 : index
    %c0_20 = arith.constant 0 : index
    %35 = vector.load %arg2[%c5, %c0_19, %c0_20] : memref<9x16x16xbf16, #tpu.memory_space<vmem>>, vector<1x16x16xbf16>
    %36 = vector.shape_cast %35 : vector<1x16x16xbf16> to vector<16x16xbf16>
    %cst_21 = arith.constant dense<0.000000e+00> : vector<256x16xf32>
    %37 = tpu.matmul %34, %36, %cst_21 {dimension_numbers = #tpu.dot_dimension_numbers<[1], [0], [0], [1], [0, 0, 1, 1], [], []>} : vector<256x16xbf16>, vector<16x16xbf16>, vector<256x16xf32> -> vector<256x16xf32>
    %38 = arith.addf %32, %37 : vector<256x16xf32>
    %39 = vector.extract_strided_slice %1 {offsets = [2, 0, 0], sizes = [16, 16, 16], strides = [1, 1, 1]} : vector<18x18x16xbf16> to vector<16x16x16xbf16>
    %40 = vector.shape_cast %39 : vector<16x16x16xbf16> to vector<256x16xbf16>
    %c6 = arith.constant 6 : index
    %c0_22 = arith.constant 0 : index
    %c0_23 = arith.constant 0 : index
    %41 = vector.load %arg2[%c6, %c0_22, %c0_23] : memref<9x16x16xbf16, #tpu.memory_space<vmem>>, vector<1x16x16xbf16>
    %42 = vector.shape_cast %41 : vector<1x16x16xbf16> to vector<16x16xbf16>
    %cst_24 = arith.constant dense<0.000000e+00> : vector<256x16xf32>
    %43 = tpu.matmul %40, %42, %cst_24 {dimension_numbers = #tpu.dot_dimension_numbers<[1], [0], [0], [1], [0, 0, 1, 1], [], []>} : vector<256x16xbf16>, vector<16x16xbf16>, vector<256x16xf32> -> vector<256x16xf32>
    %44 = arith.addf %38, %43 : vector<256x16xf32>
    %45 = vector.extract_strided_slice %1 {offsets = [2, 1, 0], sizes = [16, 16, 16], strides = [1, 1, 1]} : vector<18x18x16xbf16> to vector<16x16x16xbf16>
    %46 = vector.shape_cast %45 : vector<16x16x16xbf16> to vector<256x16xbf16>
    %c7 = arith.constant 7 : index
    %c0_25 = arith.constant 0 : index
    %c0_26 = arith.constant 0 : index
    %47 = vector.load %arg2[%c7, %c0_25, %c0_26] : memref<9x16x16xbf16, #tpu.memory_space<vmem>>, vector<1x16x16xbf16>
    %48 = vector.shape_cast %47 : vector<1x16x16xbf16> to vector<16x16xbf16>
    %cst_27 = arith.constant dense<0.000000e+00> : vector<256x16xf32>
    %49 = tpu.matmul %46, %48, %cst_27 {dimension_numbers = #tpu.dot_dimension_numbers<[1], [0], [0], [1], [0, 0, 1, 1], [], []>} : vector<256x16xbf16>, vector<16x16xbf16>, vector<256x16xf32> -> vector<256x16xf32>
    %50 = arith.addf %44, %49 : vector<256x16xf32>
    %51 = vector.extract_strided_slice %1 {offsets = [2, 2, 0], sizes = [16, 16, 16], strides = [1, 1, 1]} : vector<18x18x16xbf16> to vector<16x16x16xbf16>
    %52 = vector.shape_cast %51 : vector<16x16x16xbf16> to vector<256x16xbf16>
    %c8 = arith.constant 8 : index
    %c0_28 = arith.constant 0 : index
    %c0_29 = arith.constant 0 : index
    %53 = vector.load %arg2[%c8, %c0_28, %c0_29] : memref<9x16x16xbf16, #tpu.memory_space<vmem>>, vector<1x16x16xbf16>
    %54 = vector.shape_cast %53 : vector<1x16x16xbf16> to vector<16x16xbf16>
    %cst_30 = arith.constant dense<0.000000e+00> : vector<256x16xf32>
    %55 = tpu.matmul %52, %54, %cst_30 {dimension_numbers = #tpu.dot_dimension_numbers<[1], [0], [0], [1], [0, 0, 1, 1], [], []>} : vector<256x16xbf16>, vector<16x16xbf16>, vector<256x16xf32> -> vector<256x16xf32>
    %56 = arith.addf %50, %55 : vector<256x16xf32>
    %c0_31 = arith.constant 0 : index
    %c0_32 = arith.constant 0 : index
    %57 = vector.load %arg3[%c0_31, %c0_32] : memref<1x16xf32, #tpu.memory_space<vmem>>, vector<1x16xf32>
    %58 = vector.broadcast %57 : vector<1x16xf32> to vector<256x16xf32>
    %59 = arith.mulf %56, %58 : vector<256x16xf32>
    %c0_33 = arith.constant 0 : index
    %c0_34 = arith.constant 0 : index
    %60 = vector.load %arg4[%c0_33, %c0_34] : memref<1x16xf32, #tpu.memory_space<vmem>>, vector<1x16xf32>
    %61 = vector.broadcast %60 : vector<1x16xf32> to vector<256x16xf32>
    %62 = arith.addf %59, %61 : vector<256x16xf32>
    %cst_35 = arith.constant 0.000000e+00 : f32
    %63 = vector.broadcast %cst_35 : f32 to vector<256x16xf32>
    %64 = arith.maximumf %62, %63 : vector<256x16xf32>
    %65 = vector.shape_cast %64 : vector<256x16xf32> to vector<1x16x16x16xf32>
    %66 = arith.truncf %65 : vector<1x16x16x16xf32> to vector<1x16x16x16xbf16>
    %c0_36 = arith.constant 0 : index
    %c0_37 = arith.constant 0 : index
    %c0_38 = arith.constant 0 : index
    %c0_39 = arith.constant 0 : index
    %67 = vector.load %arg5[%c0_36, %c0_37, %c0_38, %c0_39] : memref<1x16x16x16xbf16, #tpu.memory_space<vmem>>, vector<1x16x16x16xbf16>
    tpu.vector_store %arg5[%c0_36, %c0_37, %c0_38, %c0_39], %66 {strides = array<i32>} : memref<1x16x16x16xbf16, #tpu.memory_space<vmem>>, vector<1x16x16x16xbf16>,
    return
  }
  func.func @transform_0(%arg0: i32) -> (i32, i32, i32, i32) {
    %c0_i32 = arith.constant 0 : i32
    %c0_i32_0 = arith.constant 0 : i32
    %c0_i32_1 = arith.constant 0 : i32
    %c0_i32_2 = arith.constant 0 : i32
    return %arg0, %c0_i32, %c0_i32_0, %c0_i32_1 : i32, i32, i32, i32
  }
  func.func @transform_1(%arg0: i32) -> (i32, i32, i32) {
    %c0_i32 = arith.constant 0 : i32
    %c0_i32_0 = arith.constant 0 : i32
    %c0_i32_1 = arith.constant 0 : i32
    %c0_i32_2 = arith.constant 0 : i32
    return %c0_i32, %c0_i32_0, %c0_i32_1 : i32, i32, i32
  }
  func.func @transform_2(%arg0: i32) -> (i32, i32) {
    %c0_i32 = arith.constant 0 : i32
    %c0_i32_0 = arith.constant 0 : i32
    %c0_i32_1 = arith.constant 0 : i32
    return %c0_i32, %c0_i32_0 : i32, i32
  }
  func.func @transform_3(%arg0: i32) -> (i32, i32) {
    %c0_i32 = arith.constant 0 : i32
    %c0_i32_0 = arith.constant 0 : i32
    %c0_i32_1 = arith.constant 0 : i32
    return %c0_i32, %c0_i32_0 : i32, i32
  }
  func.func @transform_4(%arg0: i32) -> (i32, i32, i32, i32) {
    %c0_i32 = arith.constant 0 : i32
    %c0_i32_0 = arith.constant 0 : i32
    %c0_i32_1 = arith.constant 0 : i32
    %c0_i32_2 = arith.constant 0 : i32
    return %arg0, %c0_i32, %c0_i32_0, %c0_i32_1 : i32, i32, i32, i32
  }
}

module attributes {stable_mosaic.version = 11 : i64} {
  func.func @_mm_affine_kernel(%arg0: i32, %arg1: i32, %arg2: i32, %arg3: memref<512x64xbf16, #tpu.memory_space<vmem>>, %arg4: memref<64x16xbf16, #tpu.memory_space<vmem>>, %arg5: memref<1x16xf32, #tpu.memory_space<vmem>>, %arg6: memref<1x16xf32, #tpu.memory_space<vmem>>, %arg7: memref<512x16xbf16, #tpu.memory_space<vmem>>, %arg8: memref<512x16xf32, #tpu.memory_space<vmem>>) attributes {dimension_semantics = [#tpu.dimension_semantics<parallel>, #tpu.dimension_semantics<parallel>, #tpu.dimension_semantics<arbitrary>], iteration_bounds = array<i64: 1, 1, 1>, scalar_prefetch = 0 : i64, scratch_operands = 1 : i64, tpu.core_type = #tpu.core_type<tc>, window_params = [{transform_indices = @transform_0, window_bounds = array<i64: 512, 64>}, {transform_indices = @transform_1, window_bounds = array<i64: 64, 16>}, {transform_indices = @transform_2, window_bounds = array<i64: 1, 16>}, {transform_indices = @transform_3, window_bounds = array<i64: 1, 16>}, {transform_indices = @transform_4, window_bounds = array<i64: 512, 16>}]} {
    %c0_i32 = arith.constant 0 : i32
    %0 = arith.cmpi eq, %arg2, %c0_i32 : i32
    %1 = arith.extui %0 : i1 to i32
    %c0_i32_0 = arith.constant 0 : i32
    %2 = arith.cmpi ne, %1, %c0_i32_0 : i32
    scf.if %2 {
      %cst_10 = arith.constant 0.000000e+00 : f32
      %12 = vector.broadcast %cst_10 : f32 to vector<512x16xf32>
      %c0_11 = arith.constant 0 : index
      %c0_12 = arith.constant 0 : index
      %13 = vector.load %arg8[%c0_11, %c0_12] : memref<512x16xf32, #tpu.memory_space<vmem>>, vector<512x16xf32>
      tpu.vector_store %arg8[%c0_11, %c0_12], %12 {strides = array<i32>} : memref<512x16xf32, #tpu.memory_space<vmem>>, vector<512x16xf32>,
    } else {
    }
    %c0 = arith.constant 0 : index
    %c0_1 = arith.constant 0 : index
    %3 = vector.load %arg8[%c0, %c0_1] : memref<512x16xf32, #tpu.memory_space<vmem>>, vector<512x16xf32>
    %c0_2 = arith.constant 0 : index
    %c0_3 = arith.constant 0 : index
    %4 = vector.load %arg3[%c0_2, %c0_3] : memref<512x64xbf16, #tpu.memory_space<vmem>>, vector<512x64xbf16>
    %c0_4 = arith.constant 0 : index
    %c0_5 = arith.constant 0 : index
    %5 = vector.load %arg4[%c0_4, %c0_5] : memref<64x16xbf16, #tpu.memory_space<vmem>>, vector<64x16xbf16>
    %cst = arith.constant dense<0.000000e+00> : vector<512x16xf32>
    %6 = tpu.matmul %4, %5, %cst {dimension_numbers = #tpu.dot_dimension_numbers<[1], [0], [0], [1], [0, 0, 1, 1], [], []>} : vector<512x64xbf16>, vector<64x16xbf16>, vector<512x16xf32> -> vector<512x16xf32>
    %7 = arith.addf %3, %6 : vector<512x16xf32>
    %c0_6 = arith.constant 0 : index
    %c0_7 = arith.constant 0 : index
    %8 = vector.load %arg8[%c0_6, %c0_7] : memref<512x16xf32, #tpu.memory_space<vmem>>, vector<512x16xf32>
    tpu.vector_store %arg8[%c0_6, %c0_7], %7 {strides = array<i32>} : memref<512x16xf32, #tpu.memory_space<vmem>>, vector<512x16xf32>,
    %c0_i32_8 = arith.constant 0 : i32
    %9 = arith.cmpi eq, %arg2, %c0_i32_8 : i32
    %10 = arith.extui %9 : i1 to i32
    %c0_i32_9 = arith.constant 0 : i32
    %11 = arith.cmpi ne, %10, %c0_i32_9 : i32
    scf.if %11 {
      %c0_10 = arith.constant 0 : index
      %c0_11 = arith.constant 0 : index
      %12 = vector.load %arg8[%c0_10, %c0_11] : memref<512x16xf32, #tpu.memory_space<vmem>>, vector<512x16xf32>
      %c0_12 = arith.constant 0 : index
      %c0_13 = arith.constant 0 : index
      %13 = vector.load %arg5[%c0_12, %c0_13] : memref<1x16xf32, #tpu.memory_space<vmem>>, vector<1x16xf32>
      %14 = vector.broadcast %13 : vector<1x16xf32> to vector<512x16xf32>
      %15 = arith.mulf %12, %14 : vector<512x16xf32>
      %c0_14 = arith.constant 0 : index
      %c0_15 = arith.constant 0 : index
      %16 = vector.load %arg6[%c0_14, %c0_15] : memref<1x16xf32, #tpu.memory_space<vmem>>, vector<1x16xf32>
      %17 = vector.broadcast %16 : vector<1x16xf32> to vector<512x16xf32>
      %18 = arith.addf %15, %17 : vector<512x16xf32>
      %cst_16 = arith.constant 0.000000e+00 : f32
      %19 = vector.broadcast %cst_16 : f32 to vector<512x16xf32>
      %20 = arith.maximumf %18, %19 : vector<512x16xf32>
      %21 = arith.truncf %20 : vector<512x16xf32> to vector<512x16xbf16>
      %c0_17 = arith.constant 0 : index
      %c0_18 = arith.constant 0 : index
      %22 = vector.load %arg7[%c0_17, %c0_18] : memref<512x16xbf16, #tpu.memory_space<vmem>>, vector<512x16xbf16>
      tpu.vector_store %arg7[%c0_17, %c0_18], %21 {strides = array<i32>} : memref<512x16xbf16, #tpu.memory_space<vmem>>, vector<512x16xbf16>,
    } else {
    }
    return
  }
  func.func @transform_0(%arg0: i32, %arg1: i32, %arg2: i32) -> (i32, i32) {
    %c0_i32 = arith.constant 0 : i32
    return %arg0, %arg2 : i32, i32
  }
  func.func @transform_1(%arg0: i32, %arg1: i32, %arg2: i32) -> (i32, i32) {
    %c0_i32 = arith.constant 0 : i32
    return %arg2, %arg1 : i32, i32
  }
  func.func @transform_2(%arg0: i32, %arg1: i32, %arg2: i32) -> (i32, i32) {
    %c0_i32 = arith.constant 0 : i32
    %c0_i32_0 = arith.constant 0 : i32
    return %c0_i32, %arg1 : i32, i32
  }
  func.func @transform_3(%arg0: i32, %arg1: i32, %arg2: i32) -> (i32, i32) {
    %c0_i32 = arith.constant 0 : i32
    %c0_i32_0 = arith.constant 0 : i32
    return %c0_i32, %arg1 : i32, i32
  }
  func.func @transform_4(%arg0: i32, %arg1: i32, %arg2: i32) -> (i32, i32) {
    %c0_i32 = arith.constant 0 : i32
    return %arg0, %arg1 : i32, i32
  }
}

module attributes {stable_mosaic.version = 11 : i64} {
  func.func @_feat_gap_ws1_kernel(%arg0: i32, %arg1: memref<1x16x16x64xbf16, #tpu.memory_space<vmem>>, %arg2: memref<64x4xbf16, #tpu.memory_space<vmem>>, %arg3: memref<1x4xf32, #tpu.memory_space<vmem>>, %arg4: memref<1x4xf32, #tpu.memory_space<vmem>>, %arg5: memref<1x1x64xf32, #tpu.memory_space<vmem>>, %arg6: memref<1x16x16x4xbf16, #tpu.memory_space<vmem>>) attributes {dimension_semantics = [#tpu.dimension_semantics<parallel>], iteration_bounds = array<i64: 2>, scalar_prefetch = 0 : i64, scratch_operands = 0 : i64, tpu.core_type = #tpu.core_type<tc>, window_params = [{transform_indices = @transform_0, window_bounds = array<i64: 1, 16, 16, 64>}, {pipeline_mode = #tpu.pipeline_mode<synchronous>, transform_indices = @transform_1, window_bounds = array<i64: 64, 4>}, {pipeline_mode = #tpu.pipeline_mode<synchronous>, transform_indices = @transform_2, window_bounds = array<i64: 1, 4>}, {pipeline_mode = #tpu.pipeline_mode<synchronous>, transform_indices = @transform_3, window_bounds = array<i64: 1, 4>}, {transform_indices = @transform_4, window_bounds = array<i64: 1, 1, 64>}, {transform_indices = @transform_5, window_bounds = array<i64: 1, 16, 16, 4>}]} {
    %c0 = arith.constant 0 : index
    %c0_0 = arith.constant 0 : index
    %c0_1 = arith.constant 0 : index
    %c0_2 = arith.constant 0 : index
    %0 = vector.load %arg1[%c0, %c0_0, %c0_1, %c0_2] : memref<1x16x16x64xbf16, #tpu.memory_space<vmem>>, vector<1x16x16x64xbf16>
    %1 = vector.shape_cast %0 : vector<1x16x16x64xbf16> to vector<256x64xbf16>
    %2 = arith.extf %1 : vector<256x64xbf16> to vector<256x64xf32>
    %cst = arith.constant dense<0.000000e+00> : vector<64xf32>
    %3 = vector.multi_reduction <add>, %2, %cst [0] : vector<256x64xf32> to vector<64xf32>
    %4 = vector.shape_cast %3 : vector<64xf32> to vector<1x64xf32>
    %cst_3 = arith.constant 2.560000e+02 : f32
    %5 = vector.broadcast %cst_3 : f32 to vector<1x64xf32>
    %6 = arith.divf %4, %5 : vector<1x64xf32>
    %7 = vector.shape_cast %6 : vector<1x64xf32> to vector<1x1x64xf32>
    %c0_4 = arith.constant 0 : index
    %c0_5 = arith.constant 0 : index
    %c0_6 = arith.constant 0 : index
    %8 = vector.load %arg5[%c0_4, %c0_5, %c0_6] : memref<1x1x64xf32, #tpu.memory_space<vmem>>, vector<1x1x64xf32>
    tpu.vector_store %arg5[%c0_4, %c0_5, %c0_6], %7 {strides = array<i32>} : memref<1x1x64xf32, #tpu.memory_space<vmem>>, vector<1x1x64xf32>,
    %c0_7 = arith.constant 0 : index
    %c0_8 = arith.constant 0 : index
    %9 = vector.load %arg2[%c0_7, %c0_8] : memref<64x4xbf16, #tpu.memory_space<vmem>>, vector<64x4xbf16>
    %cst_9 = arith.constant dense<0.000000e+00> : vector<256x4xf32>
    %10 = tpu.matmul %1, %9, %cst_9 {dimension_numbers = #tpu.dot_dimension_numbers<[1], [0], [0], [1], [0, 0, 1, 1], [], []>} : vector<256x64xbf16>, vector<64x4xbf16>, vector<256x4xf32> -> vector<256x4xf32>
    %c0_10 = arith.constant 0 : index
    %c0_11 = arith.constant 0 : index
    %11 = vector.load %arg3[%c0_10, %c0_11] : memref<1x4xf32, #tpu.memory_space<vmem>>, vector<1x4xf32>
    %12 = vector.broadcast %11 : vector<1x4xf32> to vector<256x4xf32>
    %13 = arith.mulf %10, %12 : vector<256x4xf32>
    %c0_12 = arith.constant 0 : index
    %c0_13 = arith.constant 0 : index
    %14 = vector.load %arg4[%c0_12, %c0_13] : memref<1x4xf32, #tpu.memory_space<vmem>>, vector<1x4xf32>
    %15 = vector.broadcast %14 : vector<1x4xf32> to vector<256x4xf32>
    %16 = arith.addf %13, %15 : vector<256x4xf32>
    %cst_14 = arith.constant 0.000000e+00 : f32
    %17 = vector.broadcast %cst_14 : f32 to vector<256x4xf32>
    %18 = arith.maximumf %16, %17 : vector<256x4xf32>
    %19 = vector.shape_cast %18 : vector<256x4xf32> to vector<1x16x16x4xf32>
    %20 = arith.truncf %19 : vector<1x16x16x4xf32> to vector<1x16x16x4xbf16>
    %c0_15 = arith.constant 0 : index
    %c0_16 = arith.constant 0 : index
    %c0_17 = arith.constant 0 : index
    %c0_18 = arith.constant 0 : index
    %21 = vector.load %arg6[%c0_15, %c0_16, %c0_17, %c0_18] : memref<1x16x16x4xbf16, #tpu.memory_space<vmem>>, vector<1x16x16x4xbf16>
    tpu.vector_store %arg6[%c0_15, %c0_16, %c0_17, %c0_18], %20 {strides = array<i32>} : memref<1x16x16x4xbf16, #tpu.memory_space<vmem>>, vector<1x16x16x4xbf16>,
    return
  }
  func.func @transform_0(%arg0: i32) -> (i32, i32, i32, i32) {
    %c0_i32 = arith.constant 0 : i32
    %c0_i32_0 = arith.constant 0 : i32
    %c0_i32_1 = arith.constant 0 : i32
    %c0_i32_2 = arith.constant 0 : i32
    return %arg0, %c0_i32, %c0_i32_0, %c0_i32_1 : i32, i32, i32, i32
  }
  func.func @transform_1(%arg0: i32) -> (i32, i32) {
    %c0_i32 = arith.constant 0 : i32
    %c0_i32_0 = arith.constant 0 : i32
    %c0_i32_1 = arith.constant 0 : i32
    return %c0_i32, %c0_i32_0 : i32, i32
  }
  func.func @transform_2(%arg0: i32) -> (i32, i32) {
    %c0_i32 = arith.constant 0 : i32
    %c0_i32_0 = arith.constant 0 : i32
    %c0_i32_1 = arith.constant 0 : i32
    return %c0_i32, %c0_i32_0 : i32, i32
  }
  func.func @transform_3(%arg0: i32) -> (i32, i32) {
    %c0_i32 = arith.constant 0 : i32
    %c0_i32_0 = arith.constant 0 : i32
    %c0_i32_1 = arith.constant 0 : i32
    return %c0_i32, %c0_i32_0 : i32, i32
  }
  func.func @transform_4(%arg0: i32) -> (i32, i32, i32) {
    %c0_i32 = arith.constant 0 : i32
    %c0_i32_0 = arith.constant 0 : i32
    %c0_i32_1 = arith.constant 0 : i32
    return %arg0, %c0_i32, %c0_i32_0 : i32, i32, i32
  }
  func.func @transform_5(%arg0: i32) -> (i32, i32, i32, i32) {
    %c0_i32 = arith.constant 0 : i32
    %c0_i32_0 = arith.constant 0 : i32
    %c0_i32_1 = arith.constant 0 : i32
    %c0_i32_2 = arith.constant 0 : i32
    return %arg0, %c0_i32, %c0_i32_0, %c0_i32_1 : i32, i32, i32, i32
  }
}

module attributes {stable_mosaic.version = 11 : i64} {
  func.func @_mm_affine_kernel(%arg0: i32, %arg1: i32, %arg2: i32, %arg3: memref<512x16xbf16, #tpu.memory_space<vmem>>, %arg4: memref<16x64xbf16, #tpu.memory_space<vmem>>, %arg5: memref<1x64xf32, #tpu.memory_space<vmem>>, %arg6: memref<1x64xf32, #tpu.memory_space<vmem>>, %arg7: memref<512x64xbf16, #tpu.memory_space<vmem>>, %arg8: memref<512x64xf32, #tpu.memory_space<vmem>>) attributes {dimension_semantics = [#tpu.dimension_semantics<parallel>, #tpu.dimension_semantics<parallel>, #tpu.dimension_semantics<arbitrary>], iteration_bounds = array<i64: 1, 1, 1>, scalar_prefetch = 0 : i64, scratch_operands = 1 : i64, tpu.core_type = #tpu.core_type<tc>, window_params = [{transform_indices = @transform_0, window_bounds = array<i64: 512, 16>}, {transform_indices = @transform_1, window_bounds = array<i64: 16, 64>}, {transform_indices = @transform_2, window_bounds = array<i64: 1, 64>}, {transform_indices = @transform_3, window_bounds = array<i64: 1, 64>}, {transform_indices = @transform_4, window_bounds = array<i64: 512, 64>}]} {
    %c0_i32 = arith.constant 0 : i32
    %0 = arith.cmpi eq, %arg2, %c0_i32 : i32
    %1 = arith.extui %0 : i1 to i32
    %c0_i32_0 = arith.constant 0 : i32
    %2 = arith.cmpi ne, %1, %c0_i32_0 : i32
    scf.if %2 {
      %cst_10 = arith.constant 0.000000e+00 : f32
      %12 = vector.broadcast %cst_10 : f32 to vector<512x64xf32>
      %c0_11 = arith.constant 0 : index
      %c0_12 = arith.constant 0 : index
      %13 = vector.load %arg8[%c0_11, %c0_12] : memref<512x64xf32, #tpu.memory_space<vmem>>, vector<512x64xf32>
      tpu.vector_store %arg8[%c0_11, %c0_12], %12 {strides = array<i32>} : memref<512x64xf32, #tpu.memory_space<vmem>>, vector<512x64xf32>,
    } else {
    }
    %c0 = arith.constant 0 : index
    %c0_1 = arith.constant 0 : index
    %3 = vector.load %arg8[%c0, %c0_1] : memref<512x64xf32, #tpu.memory_space<vmem>>, vector<512x64xf32>
    %c0_2 = arith.constant 0 : index
    %c0_3 = arith.constant 0 : index
    %4 = vector.load %arg3[%c0_2, %c0_3] : memref<512x16xbf16, #tpu.memory_space<vmem>>, vector<512x16xbf16>
    %c0_4 = arith.constant 0 : index
    %c0_5 = arith.constant 0 : index
    %5 = vector.load %arg4[%c0_4, %c0_5] : memref<16x64xbf16, #tpu.memory_space<vmem>>, vector<16x64xbf16>
    %cst = arith.constant dense<0.000000e+00> : vector<512x64xf32>
    %6 = tpu.matmul %4, %5, %cst {dimension_numbers = #tpu.dot_dimension_numbers<[1], [0], [0], [1], [0, 0, 1, 1], [], []>} : vector<512x16xbf16>, vector<16x64xbf16>, vector<512x64xf32> -> vector<512x64xf32>
    %7 = arith.addf %3, %6 : vector<512x64xf32>
    %c0_6 = arith.constant 0 : index
    %c0_7 = arith.constant 0 : index
    %8 = vector.load %arg8[%c0_6, %c0_7] : memref<512x64xf32, #tpu.memory_space<vmem>>, vector<512x64xf32>
    tpu.vector_store %arg8[%c0_6, %c0_7], %7 {strides = array<i32>} : memref<512x64xf32, #tpu.memory_space<vmem>>, vector<512x64xf32>,
    %c0_i32_8 = arith.constant 0 : i32
    %9 = arith.cmpi eq, %arg2, %c0_i32_8 : i32
    %10 = arith.extui %9 : i1 to i32
    %c0_i32_9 = arith.constant 0 : i32
    %11 = arith.cmpi ne, %10, %c0_i32_9 : i32
    scf.if %11 {
      %c0_10 = arith.constant 0 : index
      %c0_11 = arith.constant 0 : index
      %12 = vector.load %arg8[%c0_10, %c0_11] : memref<512x64xf32, #tpu.memory_space<vmem>>, vector<512x64xf32>
      %c0_12 = arith.constant 0 : index
      %c0_13 = arith.constant 0 : index
      %13 = vector.load %arg5[%c0_12, %c0_13] : memref<1x64xf32, #tpu.memory_space<vmem>>, vector<1x64xf32>
      %14 = vector.broadcast %13 : vector<1x64xf32> to vector<512x64xf32>
      %15 = arith.mulf %12, %14 : vector<512x64xf32>
      %c0_14 = arith.constant 0 : index
      %c0_15 = arith.constant 0 : index
      %16 = vector.load %arg6[%c0_14, %c0_15] : memref<1x64xf32, #tpu.memory_space<vmem>>, vector<1x64xf32>
      %17 = vector.broadcast %16 : vector<1x64xf32> to vector<512x64xf32>
      %18 = arith.addf %15, %17 : vector<512x64xf32>
      %19 = arith.truncf %18 : vector<512x64xf32> to vector<512x64xbf16>
      %c0_16 = arith.constant 0 : index
      %c0_17 = arith.constant 0 : index
      %20 = vector.load %arg7[%c0_16, %c0_17] : memref<512x64xbf16, #tpu.memory_space<vmem>>, vector<512x64xbf16>
      tpu.vector_store %arg7[%c0_16, %c0_17], %19 {strides = array<i32>} : memref<512x64xbf16, #tpu.memory_space<vmem>>, vector<512x64xbf16>,
    } else {
    }
    return
  }
  func.func @transform_0(%arg0: i32, %arg1: i32, %arg2: i32) -> (i32, i32) {
    %c0_i32 = arith.constant 0 : i32
    return %arg0, %arg2 : i32, i32
  }
  func.func @transform_1(%arg0: i32, %arg1: i32, %arg2: i32) -> (i32, i32) {
    %c0_i32 = arith.constant 0 : i32
    return %arg2, %arg1 : i32, i32
  }
  func.func @transform_2(%arg0: i32, %arg1: i32, %arg2: i32) -> (i32, i32) {
    %c0_i32 = arith.constant 0 : i32
    %c0_i32_0 = arith.constant 0 : i32
    return %c0_i32, %arg1 : i32, i32
  }
  func.func @transform_3(%arg0: i32, %arg1: i32, %arg2: i32) -> (i32, i32) {
    %c0_i32 = arith.constant 0 : i32
    %c0_i32_0 = arith.constant 0 : i32
    return %c0_i32, %arg1 : i32, i32
  }
  func.func @transform_4(%arg0: i32, %arg1: i32, %arg2: i32) -> (i32, i32) {
    %c0_i32 = arith.constant 0 : i32
    return %arg0, %arg1 : i32, i32
  }
}

module attributes {stable_mosaic.version = 11 : i64} {
  func.func @_channel_gate_kernel(%arg0: i32, %arg1: memref<2x1x64xf32, #tpu.memory_space<vmem>>, %arg2: memref<64x4xf32, #tpu.memory_space<vmem>>, %arg3: memref<1x4xf32, #tpu.memory_space<vmem>>, %arg4: memref<1x4xf32, #tpu.memory_space<vmem>>, %arg5: memref<4x64xf32, #tpu.memory_space<vmem>>, %arg6: memref<1x64xf32, #tpu.memory_space<vmem>>, %arg7: memref<2x1x64xf32, #tpu.memory_space<vmem>>) attributes {dimension_semantics = [#tpu.dimension_semantics<arbitrary>], iteration_bounds = array<i64: 1>, scalar_prefetch = 0 : i64, scratch_operands = 0 : i64, tpu.core_type = #tpu.core_type<tc>, window_params = [{pipeline_mode = #tpu.pipeline_mode<synchronous>, transform_indices = @transform_0, window_bounds = array<i64: 2, 1, 64>}, {pipeline_mode = #tpu.pipeline_mode<synchronous>, transform_indices = @transform_1, window_bounds = array<i64: 64, 4>}, {pipeline_mode = #tpu.pipeline_mode<synchronous>, transform_indices = @transform_2, window_bounds = array<i64: 1, 4>}, {pipeline_mode = #tpu.pipeline_mode<synchronous>, transform_indices = @transform_3, window_bounds = array<i64: 1, 4>}, {pipeline_mode = #tpu.pipeline_mode<synchronous>, transform_indices = @transform_4, window_bounds = array<i64: 4, 64>}, {pipeline_mode = #tpu.pipeline_mode<synchronous>, transform_indices = @transform_5, window_bounds = array<i64: 1, 64>}, {pipeline_mode = #tpu.pipeline_mode<synchronous>, transform_indices = @transform_6, window_bounds = array<i64: 2, 1, 64>}]} {
    %c0 = arith.constant 0 : index
    %c0_0 = arith.constant 0 : index
    %c0_1 = arith.constant 0 : index
    %0 = vector.load %arg1[%c0, %c0_0, %c0_1] : memref<2x1x64xf32, #tpu.memory_space<vmem>>, vector<2x1x64xf32>
    %1 = vector.shape_cast %0 : vector<2x1x64xf32> to vector<2x64xf32>
    %c0_2 = arith.constant 0 : index
    %c0_3 = arith.constant 0 : index
    %2 = vector.load %arg2[%c0_2, %c0_3] : memref<64x4xf32, #tpu.memory_space<vmem>>, vector<64x4xf32>
    %cst = arith.constant dense<0.000000e+00> : vector<2x4xf32>
    %3 = tpu.matmul %1, %2, %cst {dimension_numbers = #tpu.dot_dimension_numbers<[1], [0], [0], [1], [0, 0, 1, 1], [], []>} : vector<2x64xf32>, vector<64x4xf32>, vector<2x4xf32> -> vector<2x4xf32>
    %c0_4 = arith.constant 0 : index
    %c0_5 = arith.constant 0 : index
    %4 = vector.load %arg3[%c0_4, %c0_5] : memref<1x4xf32, #tpu.memory_space<vmem>>, vector<1x4xf32>
    %5 = vector.broadcast %4 : vector<1x4xf32> to vector<2x4xf32>
    %6 = arith.mulf %3, %5 : vector<2x4xf32>
    %c0_6 = arith.constant 0 : index
    %c0_7 = arith.constant 0 : index
    %7 = vector.load %arg4[%c0_6, %c0_7] : memref<1x4xf32, #tpu.memory_space<vmem>>, vector<1x4xf32>
    %8 = vector.broadcast %7 : vector<1x4xf32> to vector<2x4xf32>
    %9 = arith.addf %6, %8 : vector<2x4xf32>
    %cst_8 = arith.constant 0.000000e+00 : f32
    %10 = vector.broadcast %cst_8 : f32 to vector<2x4xf32>
    %11 = arith.maximumf %9, %10 : vector<2x4xf32>
    %c0_9 = arith.constant 0 : index
    %c0_10 = arith.constant 0 : index
    %12 = vector.load %arg5[%c0_9, %c0_10] : memref<4x64xf32, #tpu.memory_space<vmem>>, vector<4x64xf32>
    %cst_11 = arith.constant dense<0.000000e+00> : vector<2x64xf32>
    %13 = tpu.matmul %11, %12, %cst_11 {dimension_numbers = #tpu.dot_dimension_numbers<[1], [0], [0], [1], [0, 0, 1, 1], [], []>} : vector<2x4xf32>, vector<4x64xf32>, vector<2x64xf32> -> vector<2x64xf32>
    %c0_12 = arith.constant 0 : index
    %c0_13 = arith.constant 0 : index
    %14 = vector.load %arg6[%c0_12, %c0_13] : memref<1x64xf32, #tpu.memory_space<vmem>>, vector<1x64xf32>
    %15 = vector.broadcast %14 : vector<1x64xf32> to vector<2x64xf32>
    %16 = arith.addf %13, %15 : vector<2x64xf32>
    %17 = vector.shape_cast %16 : vector<2x64xf32> to vector<2x1x64xf32>
    %c0_14 = arith.constant 0 : index
    %c0_15 = arith.constant 0 : index
    %c0_16 = arith.constant 0 : index
    %18 = vector.load %arg7[%c0_14, %c0_15, %c0_16] : memref<2x1x64xf32, #tpu.memory_space<vmem>>, vector<2x1x64xf32>
    tpu.vector_store %arg7[%c0_14, %c0_15, %c0_16], %17 {strides = array<i32>} : memref<2x1x64xf32, #tpu.memory_space<vmem>>, vector<2x1x64xf32>,
    return
  }
  func.func @transform_0(%arg0: i32) -> (i32, i32, i32) {
    %c0_i32 = arith.constant 0 : i32
    %c0_i32_0 = arith.constant 0 : i32
    %c0_i32_1 = arith.constant 0 : i32
    %c0_i32_2 = arith.constant 0 : i32
    return %c0_i32, %c0_i32_0, %c0_i32_1 : i32, i32, i32
  }
  func.func @transform_1(%arg0: i32) -> (i32, i32) {
    %c0_i32 = arith.constant 0 : i32
    %c0_i32_0 = arith.constant 0 : i32
    %c0_i32_1 = arith.constant 0 : i32
    return %c0_i32, %c0_i32_0 : i32, i32
  }
  func.func @transform_2(%arg0: i32) -> (i32, i32) {
    %c0_i32 = arith.constant 0 : i32
    %c0_i32_0 = arith.constant 0 : i32
    %c0_i32_1 = arith.constant 0 : i32
    return %c0_i32, %c0_i32_0 : i32, i32
  }
  func.func @transform_3(%arg0: i32) -> (i32, i32) {
    %c0_i32 = arith.constant 0 : i32
    %c0_i32_0 = arith.constant 0 : i32
    %c0_i32_1 = arith.constant 0 : i32
    return %c0_i32, %c0_i32_0 : i32, i32
  }
  func.func @transform_4(%arg0: i32) -> (i32, i32) {
    %c0_i32 = arith.constant 0 : i32
    %c0_i32_0 = arith.constant 0 : i32
    %c0_i32_1 = arith.constant 0 : i32
    return %c0_i32, %c0_i32_0 : i32, i32
  }
  func.func @transform_5(%arg0: i32) -> (i32, i32) {
    %c0_i32 = arith.constant 0 : i32
    %c0_i32_0 = arith.constant 0 : i32
    %c0_i32_1 = arith.constant 0 : i32
    return %c0_i32, %c0_i32_0 : i32, i32
  }
  func.func @transform_6(%arg0: i32) -> (i32, i32, i32) {
    %c0_i32 = arith.constant 0 : i32
    %c0_i32_0 = arith.constant 0 : i32
    %c0_i32_1 = arith.constant 0 : i32
    %c0_i32_2 = arith.constant 0 : i32
    return %c0_i32, %c0_i32_0, %c0_i32_1 : i32, i32, i32
  }
}

module attributes {stable_mosaic.version = 11 : i64} {
  func.func @_bam_residual_kernel(%arg0: i32, %arg1: memref<1x16x16x64xbf16, #tpu.memory_space<vmem>>, %arg2: memref<1x1x64xf32, #tpu.memory_space<vmem>>, %arg3: memref<1x16x16xf32, #tpu.memory_space<vmem>>, %arg4: memref<1x16x16x64xf32, #tpu.memory_space<vmem>>, %arg5: memref<1x16x16x64xf32, #tpu.memory_space<vmem>>) attributes {dimension_semantics = [#tpu.dimension_semantics<parallel>], iteration_bounds = array<i64: 2>, scalar_prefetch = 0 : i64, scratch_operands = 0 : i64, tpu.core_type = #tpu.core_type<tc>, window_params = [{transform_indices = @transform_0, window_bounds = array<i64: 1, 16, 16, 64>}, {transform_indices = @transform_1, window_bounds = array<i64: 1, 1, 64>}, {transform_indices = @transform_2, window_bounds = array<i64: 1, 16, 16>}, {transform_indices = @transform_3, window_bounds = array<i64: 1, 16, 16, 64>}, {transform_indices = @transform_4, window_bounds = array<i64: 1, 16, 16, 64>}]} {
    %c0 = arith.constant 0 : index
    %c0_0 = arith.constant 0 : index
    %c0_1 = arith.constant 0 : index
    %0 = vector.load %arg2[%c0, %c0_0, %c0_1] : memref<1x1x64xf32, #tpu.memory_space<vmem>>, vector<1x1x64xf32>
    %1 = vector.shape_cast %0 : vector<1x1x64xf32> to vector<1x1x1x64xf32>
    %c0_2 = arith.constant 0 : index
    %c0_3 = arith.constant 0 : index
    %c0_4 = arith.constant 0 : index
    %2 = vector.load %arg3[%c0_2, %c0_3, %c0_4] : memref<1x16x16xf32, #tpu.memory_space<vmem>>, vector<1x16x16xf32>
    %3 = vector.shape_cast %2 : vector<1x16x16xf32> to vector<1x16x16x1xf32>
    %4 = vector.broadcast %1 : vector<1x1x1x64xf32> to vector<1x16x16x64xf32>
    %5 = vector.broadcast %3 : vector<1x16x16x1xf32> to vector<1x16x16x64xf32>
    %6 = arith.addf %4, %5 : vector<1x16x16x64xf32>
    %7 = arith.negf %6 : vector<1x16x16x64xf32>
    %8 = math.exp %7 : vector<1x16x16x64xf32>
    %cst = arith.constant 1.000000e+00 : f32
    %9 = vector.broadcast %cst : f32 to vector<1x16x16x64xf32>
    %10 = arith.addf %9, %8 : vector<1x16x16x64xf32>
    %11 = arith.divf %9, %10 : vector<1x16x16x64xf32>
    %cst_5 = arith.constant 1.000000e+00 : f32
    %12 = vector.broadcast %cst_5 : f32 to vector<1x16x16x64xf32>
    %13 = arith.addf %12, %11 : vector<1x16x16x64xf32>
    %c0_6 = arith.constant 0 : index
    %c0_7 = arith.constant 0 : index
    %c0_8 = arith.constant 0 : index
    %c0_9 = arith.constant 0 : index
    %14 = vector.load %arg1[%c0_6, %c0_7, %c0_8, %c0_9] : memref<1x16x16x64xbf16, #tpu.memory_space<vmem>>, vector<1x16x16x64xbf16>
    %15 = arith.extf %14 : vector<1x16x16x64xbf16> to vector<1x16x16x64xf32>
    %16 = arith.mulf %15, %13 : vector<1x16x16x64xf32>
    %c0_10 = arith.constant 0 : index
    %c0_11 = arith.constant 0 : index
    %c0_12 = arith.constant 0 : index
    %c0_13 = arith.constant 0 : index
    %17 = vector.load %arg4[%c0_10, %c0_11, %c0_12, %c0_13] : memref<1x16x16x64xf32, #tpu.memory_space<vmem>>, vector<1x16x16x64xf32>
    %18 = arith.addf %16, %17 : vector<1x16x16x64xf32>
    %cst_14 = arith.constant 0.000000e+00 : f32
    %19 = vector.broadcast %cst_14 : f32 to vector<1x16x16x64xf32>
    %20 = arith.maximumf %18, %19 : vector<1x16x16x64xf32>
    %c0_15 = arith.constant 0 : index
    %c0_16 = arith.constant 0 : index
    %c0_17 = arith.constant 0 : index
    %c0_18 = arith.constant 0 : index
    %21 = vector.load %arg5[%c0_15, %c0_16, %c0_17, %c0_18] : memref<1x16x16x64xf32, #tpu.memory_space<vmem>>, vector<1x16x16x64xf32>
    tpu.vector_store %arg5[%c0_15, %c0_16, %c0_17, %c0_18], %20 {strides = array<i32>} : memref<1x16x16x64xf32, #tpu.memory_space<vmem>>, vector<1x16x16x64xf32>,
    return
  }
  func.func @transform_0(%arg0: i32) -> (i32, i32, i32, i32) {
    %c0_i32 = arith.constant 0 : i32
    %c0_i32_0 = arith.constant 0 : i32
    %c0_i32_1 = arith.constant 0 : i32
    %c0_i32_2 = arith.constant 0 : i32
    return %arg0, %c0_i32, %c0_i32_0, %c0_i32_1 : i32, i32, i32, i32
  }
  func.func @transform_1(%arg0: i32) -> (i32, i32, i32) {
    %c0_i32 = arith.constant 0 : i32
    %c0_i32_0 = arith.constant 0 : i32
    %c0_i32_1 = arith.constant 0 : i32
    return %arg0, %c0_i32, %c0_i32_0 : i32, i32, i32
  }
  func.func @transform_2(%arg0: i32) -> (i32, i32, i32) {
    %c0_i32 = arith.constant 0 : i32
    %c0_i32_0 = arith.constant 0 : i32
    %c0_i32_1 = arith.constant 0 : i32
    return %arg0, %c0_i32, %c0_i32_0 : i32, i32, i32
  }
  func.func @transform_3(%arg0: i32) -> (i32, i32, i32, i32) {
    %c0_i32 = arith.constant 0 : i32
    %c0_i32_0 = arith.constant 0 : i32
    %c0_i32_1 = arith.constant 0 : i32
    %c0_i32_2 = arith.constant 0 : i32
    return %arg0, %c0_i32, %c0_i32_0, %c0_i32_1 : i32, i32, i32, i32
  }
  func.func @transform_4(%arg0: i32) -> (i32, i32, i32, i32) {
    %c0_i32 = arith.constant 0 : i32
    %c0_i32_0 = arith.constant 0 : i32
    %c0_i32_1 = arith.constant 0 : i32
    %c0_i32_2 = arith.constant 0 : i32
    return %arg0, %c0_i32, %c0_i32_0, %c0_i32_1 : i32, i32, i32, i32
  }
}

module attributes {stable_mosaic.version = 11 : i64} {
  func.func @_conv3x3_bn_kernel(%arg0: i32, %arg1: memref<1x24x24x4xbf16, #tpu.memory_space<vmem>>, %arg2: memref<9x4x4xbf16, #tpu.memory_space<vmem>>, %arg3: memref<1x4xf32, #tpu.memory_space<vmem>>, %arg4: memref<1x4xf32, #tpu.memory_space<vmem>>, %arg5: memref<1x16x16x4xbf16, #tpu.memory_space<vmem>>) attributes {dimension_semantics = [#tpu.dimension_semantics<parallel>], iteration_bounds = array<i64: 2>, scalar_prefetch = 0 : i64, scratch_operands = 0 : i64, tpu.core_type = #tpu.core_type<tc>, window_params = [{transform_indices = @transform_0, window_bounds = array<i64: 1, 24, 24, 4>}, {pipeline_mode = #tpu.pipeline_mode<synchronous>, transform_indices = @transform_1, window_bounds = array<i64: 9, 4, 4>}, {pipeline_mode = #tpu.pipeline_mode<synchronous>, transform_indices = @transform_2, window_bounds = array<i64: 1, 4>}, {pipeline_mode = #tpu.pipeline_mode<synchronous>, transform_indices = @transform_3, window_bounds = array<i64: 1, 4>}, {transform_indices = @transform_4, window_bounds = array<i64: 1, 16, 16, 4>}]} {
    %c0 = arith.constant 0 : index
    %c0_0 = arith.constant 0 : index
    %c0_1 = arith.constant 0 : index
    %c0_2 = arith.constant 0 : index
    %0 = vector.load %arg1[%c0, %c0_0, %c0_1, %c0_2] : memref<1x24x24x4xbf16, #tpu.memory_space<vmem>>, vector<1x24x24x4xbf16>
    %1 = vector.shape_cast %0 : vector<1x24x24x4xbf16> to vector<24x24x4xbf16>
    %cst = arith.constant 0.000000e+00 : f32
    %2 = vector.broadcast %cst : f32 to vector<256x4xf32>
    %3 = vector.extract_strided_slice %1 {offsets = [0, 0, 0], sizes = [16, 16, 4], strides = [1, 1, 1]} : vector<24x24x4xbf16> to vector<16x16x4xbf16>
    %4 = vector.shape_cast %3 : vector<16x16x4xbf16> to vector<256x4xbf16>
    %c0_3 = arith.constant 0 : index
    %c0_4 = arith.constant 0 : index
    %c0_5 = arith.constant 0 : index
    %5 = vector.load %arg2[%c0_3, %c0_4, %c0_5] : memref<9x4x4xbf16, #tpu.memory_space<vmem>>, vector<1x4x4xbf16>
    %6 = vector.shape_cast %5 : vector<1x4x4xbf16> to vector<4x4xbf16>
    %cst_6 = arith.constant dense<0.000000e+00> : vector<256x4xf32>
    %7 = tpu.matmul %4, %6, %cst_6 {dimension_numbers = #tpu.dot_dimension_numbers<[1], [0], [0], [1], [0, 0, 1, 1], [], []>} : vector<256x4xbf16>, vector<4x4xbf16>, vector<256x4xf32> -> vector<256x4xf32>
    %8 = arith.addf %2, %7 : vector<256x4xf32>
    %9 = vector.extract_strided_slice %1 {offsets = [0, 4, 0], sizes = [16, 16, 4], strides = [1, 1, 1]} : vector<24x24x4xbf16> to vector<16x16x4xbf16>
    %10 = vector.shape_cast %9 : vector<16x16x4xbf16> to vector<256x4xbf16>
    %c1 = arith.constant 1 : index
    %c0_7 = arith.constant 0 : index
    %c0_8 = arith.constant 0 : index
    %11 = vector.load %arg2[%c1, %c0_7, %c0_8] : memref<9x4x4xbf16, #tpu.memory_space<vmem>>, vector<1x4x4xbf16>
    %12 = vector.shape_cast %11 : vector<1x4x4xbf16> to vector<4x4xbf16>
    %cst_9 = arith.constant dense<0.000000e+00> : vector<256x4xf32>
    %13 = tpu.matmul %10, %12, %cst_9 {dimension_numbers = #tpu.dot_dimension_numbers<[1], [0], [0], [1], [0, 0, 1, 1], [], []>} : vector<256x4xbf16>, vector<4x4xbf16>, vector<256x4xf32> -> vector<256x4xf32>
    %14 = arith.addf %8, %13 : vector<256x4xf32>
    %15 = vector.extract_strided_slice %1 {offsets = [0, 8, 0], sizes = [16, 16, 4], strides = [1, 1, 1]} : vector<24x24x4xbf16> to vector<16x16x4xbf16>
    %16 = vector.shape_cast %15 : vector<16x16x4xbf16> to vector<256x4xbf16>
    %c2 = arith.constant 2 : index
    %c0_10 = arith.constant 0 : index
    %c0_11 = arith.constant 0 : index
    %17 = vector.load %arg2[%c2, %c0_10, %c0_11] : memref<9x4x4xbf16, #tpu.memory_space<vmem>>, vector<1x4x4xbf16>
    %18 = vector.shape_cast %17 : vector<1x4x4xbf16> to vector<4x4xbf16>
    %cst_12 = arith.constant dense<0.000000e+00> : vector<256x4xf32>
    %19 = tpu.matmul %16, %18, %cst_12 {dimension_numbers = #tpu.dot_dimension_numbers<[1], [0], [0], [1], [0, 0, 1, 1], [], []>} : vector<256x4xbf16>, vector<4x4xbf16>, vector<256x4xf32> -> vector<256x4xf32>
    %20 = arith.addf %14, %19 : vector<256x4xf32>
    %21 = vector.extract_strided_slice %1 {offsets = [4, 0, 0], sizes = [16, 16, 4], strides = [1, 1, 1]} : vector<24x24x4xbf16> to vector<16x16x4xbf16>
    %22 = vector.shape_cast %21 : vector<16x16x4xbf16> to vector<256x4xbf16>
    %c3 = arith.constant 3 : index
    %c0_13 = arith.constant 0 : index
    %c0_14 = arith.constant 0 : index
    %23 = vector.load %arg2[%c3, %c0_13, %c0_14] : memref<9x4x4xbf16, #tpu.memory_space<vmem>>, vector<1x4x4xbf16>
    %24 = vector.shape_cast %23 : vector<1x4x4xbf16> to vector<4x4xbf16>
    %cst_15 = arith.constant dense<0.000000e+00> : vector<256x4xf32>
    %25 = tpu.matmul %22, %24, %cst_15 {dimension_numbers = #tpu.dot_dimension_numbers<[1], [0], [0], [1], [0, 0, 1, 1], [], []>} : vector<256x4xbf16>, vector<4x4xbf16>, vector<256x4xf32> -> vector<256x4xf32>
    %26 = arith.addf %20, %25 : vector<256x4xf32>
    %27 = vector.extract_strided_slice %1 {offsets = [4, 4, 0], sizes = [16, 16, 4], strides = [1, 1, 1]} : vector<24x24x4xbf16> to vector<16x16x4xbf16>
    %28 = vector.shape_cast %27 : vector<16x16x4xbf16> to vector<256x4xbf16>
    %c4 = arith.constant 4 : index
    %c0_16 = arith.constant 0 : index
    %c0_17 = arith.constant 0 : index
    %29 = vector.load %arg2[%c4, %c0_16, %c0_17] : memref<9x4x4xbf16, #tpu.memory_space<vmem>>, vector<1x4x4xbf16>
    %30 = vector.shape_cast %29 : vector<1x4x4xbf16> to vector<4x4xbf16>
    %cst_18 = arith.constant dense<0.000000e+00> : vector<256x4xf32>
    %31 = tpu.matmul %28, %30, %cst_18 {dimension_numbers = #tpu.dot_dimension_numbers<[1], [0], [0], [1], [0, 0, 1, 1], [], []>} : vector<256x4xbf16>, vector<4x4xbf16>, vector<256x4xf32> -> vector<256x4xf32>
    %32 = arith.addf %26, %31 : vector<256x4xf32>
    %33 = vector.extract_strided_slice %1 {offsets = [4, 8, 0], sizes = [16, 16, 4], strides = [1, 1, 1]} : vector<24x24x4xbf16> to vector<16x16x4xbf16>
    %34 = vector.shape_cast %33 : vector<16x16x4xbf16> to vector<256x4xbf16>
    %c5 = arith.constant 5 : index
    %c0_19 = arith.constant 0 : index
    %c0_20 = arith.constant 0 : index
    %35 = vector.load %arg2[%c5, %c0_19, %c0_20] : memref<9x4x4xbf16, #tpu.memory_space<vmem>>, vector<1x4x4xbf16>
    %36 = vector.shape_cast %35 : vector<1x4x4xbf16> to vector<4x4xbf16>
    %cst_21 = arith.constant dense<0.000000e+00> : vector<256x4xf32>
    %37 = tpu.matmul %34, %36, %cst_21 {dimension_numbers = #tpu.dot_dimension_numbers<[1], [0], [0], [1], [0, 0, 1, 1], [], []>} : vector<256x4xbf16>, vector<4x4xbf16>, vector<256x4xf32> -> vector<256x4xf32>
    %38 = arith.addf %32, %37 : vector<256x4xf32>
    %39 = vector.extract_strided_slice %1 {offsets = [8, 0, 0], sizes = [16, 16, 4], strides = [1, 1, 1]} : vector<24x24x4xbf16> to vector<16x16x4xbf16>
    %40 = vector.shape_cast %39 : vector<16x16x4xbf16> to vector<256x4xbf16>
    %c6 = arith.constant 6 : index
    %c0_22 = arith.constant 0 : index
    %c0_23 = arith.constant 0 : index
    %41 = vector.load %arg2[%c6, %c0_22, %c0_23] : memref<9x4x4xbf16, #tpu.memory_space<vmem>>, vector<1x4x4xbf16>
    %42 = vector.shape_cast %41 : vector<1x4x4xbf16> to vector<4x4xbf16>
    %cst_24 = arith.constant dense<0.000000e+00> : vector<256x4xf32>
    %43 = tpu.matmul %40, %42, %cst_24 {dimension_numbers = #tpu.dot_dimension_numbers<[1], [0], [0], [1], [0, 0, 1, 1], [], []>} : vector<256x4xbf16>, vector<4x4xbf16>, vector<256x4xf32> -> vector<256x4xf32>
    %44 = arith.addf %38, %43 : vector<256x4xf32>
    %45 = vector.extract_strided_slice %1 {offsets = [8, 4, 0], sizes = [16, 16, 4], strides = [1, 1, 1]} : vector<24x24x4xbf16> to vector<16x16x4xbf16>
    %46 = vector.shape_cast %45 : vector<16x16x4xbf16> to vector<256x4xbf16>
    %c7 = arith.constant 7 : index
    %c0_25 = arith.constant 0 : index
    %c0_26 = arith.constant 0 : index
    %47 = vector.load %arg2[%c7, %c0_25, %c0_26] : memref<9x4x4xbf16, #tpu.memory_space<vmem>>, vector<1x4x4xbf16>
    %48 = vector.shape_cast %47 : vector<1x4x4xbf16> to vector<4x4xbf16>
    %cst_27 = arith.constant dense<0.000000e+00> : vector<256x4xf32>
    %49 = tpu.matmul %46, %48, %cst_27 {dimension_numbers = #tpu.dot_dimension_numbers<[1], [0], [0], [1], [0, 0, 1, 1], [], []>} : vector<256x4xbf16>, vector<4x4xbf16>, vector<256x4xf32> -> vector<256x4xf32>
    %50 = arith.addf %44, %49 : vector<256x4xf32>
    %51 = vector.extract_strided_slice %1 {offsets = [8, 8, 0], sizes = [16, 16, 4], strides = [1, 1, 1]} : vector<24x24x4xbf16> to vector<16x16x4xbf16>
    %52 = vector.shape_cast %51 : vector<16x16x4xbf16> to vector<256x4xbf16>
    %c8 = arith.constant 8 : index
    %c0_28 = arith.constant 0 : index
    %c0_29 = arith.constant 0 : index
    %53 = vector.load %arg2[%c8, %c0_28, %c0_29] : memref<9x4x4xbf16, #tpu.memory_space<vmem>>, vector<1x4x4xbf16>
    %54 = vector.shape_cast %53 : vector<1x4x4xbf16> to vector<4x4xbf16>
    %cst_30 = arith.constant dense<0.000000e+00> : vector<256x4xf32>
    %55 = tpu.matmul %52, %54, %cst_30 {dimension_numbers = #tpu.dot_dimension_numbers<[1], [0], [0], [1], [0, 0, 1, 1], [], []>} : vector<256x4xbf16>, vector<4x4xbf16>, vector<256x4xf32> -> vector<256x4xf32>
    %56 = arith.addf %50, %55 : vector<256x4xf32>
    %c0_31 = arith.constant 0 : index
    %c0_32 = arith.constant 0 : index
    %57 = vector.load %arg3[%c0_31, %c0_32] : memref<1x4xf32, #tpu.memory_space<vmem>>, vector<1x4xf32>
    %58 = vector.broadcast %57 : vector<1x4xf32> to vector<256x4xf32>
    %59 = arith.mulf %56, %58 : vector<256x4xf32>
    %c0_33 = arith.constant 0 : index
    %c0_34 = arith.constant 0 : index
    %60 = vector.load %arg4[%c0_33, %c0_34] : memref<1x4xf32, #tpu.memory_space<vmem>>, vector<1x4xf32>
    %61 = vector.broadcast %60 : vector<1x4xf32> to vector<256x4xf32>
    %62 = arith.addf %59, %61 : vector<256x4xf32>
    %cst_35 = arith.constant 0.000000e+00 : f32
    %63 = vector.broadcast %cst_35 : f32 to vector<256x4xf32>
    %64 = arith.maximumf %62, %63 : vector<256x4xf32>
    %65 = vector.shape_cast %64 : vector<256x4xf32> to vector<1x16x16x4xf32>
    %66 = arith.truncf %65 : vector<1x16x16x4xf32> to vector<1x16x16x4xbf16>
    %c0_36 = arith.constant 0 : index
    %c0_37 = arith.constant 0 : index
    %c0_38 = arith.constant 0 : index
    %c0_39 = arith.constant 0 : index
    %67 = vector.load %arg5[%c0_36, %c0_37, %c0_38, %c0_39] : memref<1x16x16x4xbf16, #tpu.memory_space<vmem>>, vector<1x16x16x4xbf16>
    tpu.vector_store %arg5[%c0_36, %c0_37, %c0_38, %c0_39], %66 {strides = array<i32>} : memref<1x16x16x4xbf16, #tpu.memory_space<vmem>>, vector<1x16x16x4xbf16>,
    return
  }
  func.func @transform_0(%arg0: i32) -> (i32, i32, i32, i32) {
    %c0_i32 = arith.constant 0 : i32
    %c0_i32_0 = arith.constant 0 : i32
    %c0_i32_1 = arith.constant 0 : i32
    %c0_i32_2 = arith.constant 0 : i32
    return %arg0, %c0_i32, %c0_i32_0, %c0_i32_1 : i32, i32, i32, i32
  }
  func.func @transform_1(%arg0: i32) -> (i32, i32, i32) {
    %c0_i32 = arith.constant 0 : i32
    %c0_i32_0 = arith.constant 0 : i32
    %c0_i32_1 = arith.constant 0 : i32
    %c0_i32_2 = arith.constant 0 : i32
    return %c0_i32, %c0_i32_0, %c0_i32_1 : i32, i32, i32
  }
  func.func @transform_2(%arg0: i32) -> (i32, i32) {
    %c0_i32 = arith.constant 0 : i32
    %c0_i32_0 = arith.constant 0 : i32
    %c0_i32_1 = arith.constant 0 : i32
    return %c0_i32, %c0_i32_0 : i32, i32
  }
  func.func @transform_3(%arg0: i32) -> (i32, i32) {
    %c0_i32 = arith.constant 0 : i32
    %c0_i32_0 = arith.constant 0 : i32
    %c0_i32_1 = arith.constant 0 : i32
    return %c0_i32, %c0_i32_0 : i32, i32
  }
  func.func @transform_4(%arg0: i32) -> (i32, i32, i32, i32) {
    %c0_i32 = arith.constant 0 : i32
    %c0_i32_0 = arith.constant 0 : i32
    %c0_i32_1 = arith.constant 0 : i32
    %c0_i32_2 = arith.constant 0 : i32
    return %arg0, %c0_i32, %c0_i32_0, %c0_i32_1 : i32, i32, i32, i32
  }
}

module attributes {stable_mosaic.version = 11 : i64} {
  func.func @_spatial_final_kernel(%arg0: i32, %arg1: memref<1x24x24x4xbf16, #tpu.memory_space<vmem>>, %arg2: memref<9x4x4xbf16, #tpu.memory_space<vmem>>, %arg3: memref<1x4xf32, #tpu.memory_space<vmem>>, %arg4: memref<1x4xf32, #tpu.memory_space<vmem>>, %arg5: memref<1x4xf32, #tpu.memory_space<vmem>>, %arg6: memref<1x16x16xf32, #tpu.memory_space<vmem>>) attributes {dimension_semantics = [#tpu.dimension_semantics<parallel>], iteration_bounds = array<i64: 2>, scalar_prefetch = 0 : i64, scratch_operands = 0 : i64, tpu.core_type = #tpu.core_type<tc>, window_params = [{transform_indices = @transform_0, window_bounds = array<i64: 1, 24, 24, 4>}, {pipeline_mode = #tpu.pipeline_mode<synchronous>, transform_indices = @transform_1, window_bounds = array<i64: 9, 4, 4>}, {pipeline_mode = #tpu.pipeline_mode<synchronous>, transform_indices = @transform_2, window_bounds = array<i64: 1, 4>}, {pipeline_mode = #tpu.pipeline_mode<synchronous>, transform_indices = @transform_3, window_bounds = array<i64: 1, 4>}, {pipeline_mode = #tpu.pipeline_mode<synchronous>, transform_indices = @transform_4, window_bounds = array<i64: 1, 4>}, {transform_indices = @transform_5, window_bounds = array<i64: 1, 16, 16>}]} {
    %c0 = arith.constant 0 : index
    %c0_0 = arith.constant 0 : index
    %c0_1 = arith.constant 0 : index
    %c0_2 = arith.constant 0 : index
    %0 = vector.load %arg1[%c0, %c0_0, %c0_1, %c0_2] : memref<1x24x24x4xbf16, #tpu.memory_space<vmem>>, vector<1x24x24x4xbf16>
    %1 = vector.shape_cast %0 : vector<1x24x24x4xbf16> to vector<24x24x4xbf16>
    %cst = arith.constant 0.000000e+00 : f32
    %2 = vector.broadcast %cst : f32 to vector<256x4xf32>
    %3 = vector.extract_strided_slice %1 {offsets = [0, 0, 0], sizes = [16, 16, 4], strides = [1, 1, 1]} : vector<24x24x4xbf16> to vector<16x16x4xbf16>
    %4 = vector.shape_cast %3 : vector<16x16x4xbf16> to vector<256x4xbf16>
    %c0_3 = arith.constant 0 : index
    %c0_4 = arith.constant 0 : index
    %c0_5 = arith.constant 0 : index
    %5 = vector.load %arg2[%c0_3, %c0_4, %c0_5] : memref<9x4x4xbf16, #tpu.memory_space<vmem>>, vector<1x4x4xbf16>
    %6 = vector.shape_cast %5 : vector<1x4x4xbf16> to vector<4x4xbf16>
    %cst_6 = arith.constant dense<0.000000e+00> : vector<256x4xf32>
    %7 = tpu.matmul %4, %6, %cst_6 {dimension_numbers = #tpu.dot_dimension_numbers<[1], [0], [0], [1], [0, 0, 1, 1], [], []>} : vector<256x4xbf16>, vector<4x4xbf16>, vector<256x4xf32> -> vector<256x4xf32>
    %8 = arith.addf %2, %7 : vector<256x4xf32>
    %9 = vector.extract_strided_slice %1 {offsets = [0, 4, 0], sizes = [16, 16, 4], strides = [1, 1, 1]} : vector<24x24x4xbf16> to vector<16x16x4xbf16>
    %10 = vector.shape_cast %9 : vector<16x16x4xbf16> to vector<256x4xbf16>
    %c1 = arith.constant 1 : index
    %c0_7 = arith.constant 0 : index
    %c0_8 = arith.constant 0 : index
    %11 = vector.load %arg2[%c1, %c0_7, %c0_8] : memref<9x4x4xbf16, #tpu.memory_space<vmem>>, vector<1x4x4xbf16>
    %12 = vector.shape_cast %11 : vector<1x4x4xbf16> to vector<4x4xbf16>
    %cst_9 = arith.constant dense<0.000000e+00> : vector<256x4xf32>
    %13 = tpu.matmul %10, %12, %cst_9 {dimension_numbers = #tpu.dot_dimension_numbers<[1], [0], [0], [1], [0, 0, 1, 1], [], []>} : vector<256x4xbf16>, vector<4x4xbf16>, vector<256x4xf32> -> vector<256x4xf32>
    %14 = arith.addf %8, %13 : vector<256x4xf32>
    %15 = vector.extract_strided_slice %1 {offsets = [0, 8, 0], sizes = [16, 16, 4], strides = [1, 1, 1]} : vector<24x24x4xbf16> to vector<16x16x4xbf16>
    %16 = vector.shape_cast %15 : vector<16x16x4xbf16> to vector<256x4xbf16>
    %c2 = arith.constant 2 : index
    %c0_10 = arith.constant 0 : index
    %c0_11 = arith.constant 0 : index
    %17 = vector.load %arg2[%c2, %c0_10, %c0_11] : memref<9x4x4xbf16, #tpu.memory_space<vmem>>, vector<1x4x4xbf16>
    %18 = vector.shape_cast %17 : vector<1x4x4xbf16> to vector<4x4xbf16>
    %cst_12 = arith.constant dense<0.000000e+00> : vector<256x4xf32>
    %19 = tpu.matmul %16, %18, %cst_12 {dimension_numbers = #tpu.dot_dimension_numbers<[1], [0], [0], [1], [0, 0, 1, 1], [], []>} : vector<256x4xbf16>, vector<4x4xbf16>, vector<256x4xf32> -> vector<256x4xf32>
    %20 = arith.addf %14, %19 : vector<256x4xf32>
    %21 = vector.extract_strided_slice %1 {offsets = [4, 0, 0], sizes = [16, 16, 4], strides = [1, 1, 1]} : vector<24x24x4xbf16> to vector<16x16x4xbf16>
    %22 = vector.shape_cast %21 : vector<16x16x4xbf16> to vector<256x4xbf16>
    %c3 = arith.constant 3 : index
    %c0_13 = arith.constant 0 : index
    %c0_14 = arith.constant 0 : index
    %23 = vector.load %arg2[%c3, %c0_13, %c0_14] : memref<9x4x4xbf16, #tpu.memory_space<vmem>>, vector<1x4x4xbf16>
    %24 = vector.shape_cast %23 : vector<1x4x4xbf16> to vector<4x4xbf16>
    %cst_15 = arith.constant dense<0.000000e+00> : vector<256x4xf32>
    %25 = tpu.matmul %22, %24, %cst_15 {dimension_numbers = #tpu.dot_dimension_numbers<[1], [0], [0], [1], [0, 0, 1, 1], [], []>} : vector<256x4xbf16>, vector<4x4xbf16>, vector<256x4xf32> -> vector<256x4xf32>
    %26 = arith.addf %20, %25 : vector<256x4xf32>
    %27 = vector.extract_strided_slice %1 {offsets = [4, 4, 0], sizes = [16, 16, 4], strides = [1, 1, 1]} : vector<24x24x4xbf16> to vector<16x16x4xbf16>
    %28 = vector.shape_cast %27 : vector<16x16x4xbf16> to vector<256x4xbf16>
    %c4 = arith.constant 4 : index
    %c0_16 = arith.constant 0 : index
    %c0_17 = arith.constant 0 : index
    %29 = vector.load %arg2[%c4, %c0_16, %c0_17] : memref<9x4x4xbf16, #tpu.memory_space<vmem>>, vector<1x4x4xbf16>
    %30 = vector.shape_cast %29 : vector<1x4x4xbf16> to vector<4x4xbf16>
    %cst_18 = arith.constant dense<0.000000e+00> : vector<256x4xf32>
    %31 = tpu.matmul %28, %30, %cst_18 {dimension_numbers = #tpu.dot_dimension_numbers<[1], [0], [0], [1], [0, 0, 1, 1], [], []>} : vector<256x4xbf16>, vector<4x4xbf16>, vector<256x4xf32> -> vector<256x4xf32>
    %32 = arith.addf %26, %31 : vector<256x4xf32>
    %33 = vector.extract_strided_slice %1 {offsets = [4, 8, 0], sizes = [16, 16, 4], strides = [1, 1, 1]} : vector<24x24x4xbf16> to vector<16x16x4xbf16>
    %34 = vector.shape_cast %33 : vector<16x16x4xbf16> to vector<256x4xbf16>
    %c5 = arith.constant 5 : index
    %c0_19 = arith.constant 0 : index
    %c0_20 = arith.constant 0 : index
    %35 = vector.load %arg2[%c5, %c0_19, %c0_20] : memref<9x4x4xbf16, #tpu.memory_space<vmem>>, vector<1x4x4xbf16>
    %36 = vector.shape_cast %35 : vector<1x4x4xbf16> to vector<4x4xbf16>
    %cst_21 = arith.constant dense<0.000000e+00> : vector<256x4xf32>
    %37 = tpu.matmul %34, %36, %cst_21 {dimension_numbers = #tpu.dot_dimension_numbers<[1], [0], [0], [1], [0, 0, 1, 1], [], []>} : vector<256x4xbf16>, vector<4x4xbf16>, vector<256x4xf32> -> vector<256x4xf32>
    %38 = arith.addf %32, %37 : vector<256x4xf32>
    %39 = vector.extract_strided_slice %1 {offsets = [8, 0, 0], sizes = [16, 16, 4], strides = [1, 1, 1]} : vector<24x24x4xbf16> to vector<16x16x4xbf16>
    %40 = vector.shape_cast %39 : vector<16x16x4xbf16> to vector<256x4xbf16>
    %c6 = arith.constant 6 : index
    %c0_22 = arith.constant 0 : index
    %c0_23 = arith.constant 0 : index
    %41 = vector.load %arg2[%c6, %c0_22, %c0_23] : memref<9x4x4xbf16, #tpu.memory_space<vmem>>, vector<1x4x4xbf16>
    %42 = vector.shape_cast %41 : vector<1x4x4xbf16> to vector<4x4xbf16>
    %cst_24 = arith.constant dense<0.000000e+00> : vector<256x4xf32>
    %43 = tpu.matmul %40, %42, %cst_24 {dimension_numbers = #tpu.dot_dimension_numbers<[1], [0], [0], [1], [0, 0, 1, 1], [], []>} : vector<256x4xbf16>, vector<4x4xbf16>, vector<256x4xf32> -> vector<256x4xf32>
    %44 = arith.addf %38, %43 : vector<256x4xf32>
    %45 = vector.extract_strided_slice %1 {offsets = [8, 4, 0], sizes = [16, 16, 4], strides = [1, 1, 1]} : vector<24x24x4xbf16> to vector<16x16x4xbf16>
    %46 = vector.shape_cast %45 : vector<16x16x4xbf16> to vector<256x4xbf16>
    %c7 = arith.constant 7 : index
    %c0_25 = arith.constant 0 : index
    %c0_26 = arith.constant 0 : index
    %47 = vector.load %arg2[%c7, %c0_25, %c0_26] : memref<9x4x4xbf16, #tpu.memory_space<vmem>>, vector<1x4x4xbf16>
    %48 = vector.shape_cast %47 : vector<1x4x4xbf16> to vector<4x4xbf16>
    %cst_27 = arith.constant dense<0.000000e+00> : vector<256x4xf32>
    %49 = tpu.matmul %46, %48, %cst_27 {dimension_numbers = #tpu.dot_dimension_numbers<[1], [0], [0], [1], [0, 0, 1, 1], [], []>} : vector<256x4xbf16>, vector<4x4xbf16>, vector<256x4xf32> -> vector<256x4xf32>
    %50 = arith.addf %44, %49 : vector<256x4xf32>
    %51 = vector.extract_strided_slice %1 {offsets = [8, 8, 0], sizes = [16, 16, 4], strides = [1, 1, 1]} : vector<24x24x4xbf16> to vector<16x16x4xbf16>
    %52 = vector.shape_cast %51 : vector<16x16x4xbf16> to vector<256x4xbf16>
    %c8 = arith.constant 8 : index
    %c0_28 = arith.constant 0 : index
    %c0_29 = arith.constant 0 : index
    %53 = vector.load %arg2[%c8, %c0_28, %c0_29] : memref<9x4x4xbf16, #tpu.memory_space<vmem>>, vector<1x4x4xbf16>
    %54 = vector.shape_cast %53 : vector<1x4x4xbf16> to vector<4x4xbf16>
    %cst_30 = arith.constant dense<0.000000e+00> : vector<256x4xf32>
    %55 = tpu.matmul %52, %54, %cst_30 {dimension_numbers = #tpu.dot_dimension_numbers<[1], [0], [0], [1], [0, 0, 1, 1], [], []>} : vector<256x4xbf16>, vector<4x4xbf16>, vector<256x4xf32> -> vector<256x4xf32>
    %56 = arith.addf %50, %55 : vector<256x4xf32>
    %c0_31 = arith.constant 0 : index
    %c0_32 = arith.constant 0 : index
    %57 = vector.load %arg3[%c0_31, %c0_32] : memref<1x4xf32, #tpu.memory_space<vmem>>, vector<1x4xf32>
    %58 = vector.broadcast %57 : vector<1x4xf32> to vector<256x4xf32>
    %59 = arith.mulf %56, %58 : vector<256x4xf32>
    %c0_33 = arith.constant 0 : index
    %c0_34 = arith.constant 0 : index
    %60 = vector.load %arg4[%c0_33, %c0_34] : memref<1x4xf32, #tpu.memory_space<vmem>>, vector<1x4xf32>
    %61 = vector.broadcast %60 : vector<1x4xf32> to vector<256x4xf32>
    %62 = arith.addf %59, %61 : vector<256x4xf32>
    %cst_35 = arith.constant 0.000000e+00 : f32
    %63 = vector.broadcast %cst_35 : f32 to vector<256x4xf32>
    %64 = arith.maximumf %62, %63 : vector<256x4xf32>
    %c0_36 = arith.constant 0 : index
    %c0_37 = arith.constant 0 : index
    %65 = vector.load %arg5[%c0_36, %c0_37] : memref<1x4xf32, #tpu.memory_space<vmem>>, vector<1x4xf32>
    %66 = vector.broadcast %65 : vector<1x4xf32> to vector<256x4xf32>
    %67 = arith.mulf %64, %66 : vector<256x4xf32>
    %cst_38 = arith.constant dense<0.000000e+00> : vector<256xf32>
    %68 = vector.multi_reduction <add>, %67, %cst_38 [1] : vector<256x4xf32> to vector<256xf32>
    %69 = vector.shape_cast %68 : vector<256xf32> to vector<1x16x16xf32>
    %c0_39 = arith.constant 0 : index
    %c0_40 = arith.constant 0 : index
    %c0_41 = arith.constant 0 : index
    %70 = vector.load %arg6[%c0_39, %c0_40, %c0_41] : memref<1x16x16xf32, #tpu.memory_space<vmem>>, vector<1x16x16xf32>
    tpu.vector_store %arg6[%c0_39, %c0_40, %c0_41], %69 {strides = array<i32>} : memref<1x16x16xf32, #tpu.memory_space<vmem>>, vector<1x16x16xf32>,
    return
  }
  func.func @transform_0(%arg0: i32) -> (i32, i32, i32, i32) {
    %c0_i32 = arith.constant 0 : i32
    %c0_i32_0 = arith.constant 0 : i32
    %c0_i32_1 = arith.constant 0 : i32
    %c0_i32_2 = arith.constant 0 : i32
    return %arg0, %c0_i32, %c0_i32_0, %c0_i32_1 : i32, i32, i32, i32
  }
  func.func @transform_1(%arg0: i32) -> (i32, i32, i32) {
    %c0_i32 = arith.constant 0 : i32
    %c0_i32_0 = arith.constant 0 : i32
    %c0_i32_1 = arith.constant 0 : i32
    %c0_i32_2 = arith.constant 0 : i32
    return %c0_i32, %c0_i32_0, %c0_i32_1 : i32, i32, i32
  }
  func.func @transform_2(%arg0: i32) -> (i32, i32) {
    %c0_i32 = arith.constant 0 : i32
    %c0_i32_0 = arith.constant 0 : i32
    %c0_i32_1 = arith.constant 0 : i32
    return %c0_i32, %c0_i32_0 : i32, i32
  }
  func.func @transform_3(%arg0: i32) -> (i32, i32) {
    %c0_i32 = arith.constant 0 : i32
    %c0_i32_0 = arith.constant 0 : i32
    %c0_i32_1 = arith.constant 0 : i32
    return %c0_i32, %c0_i32_0 : i32, i32
  }
  func.func @transform_4(%arg0: i32) -> (i32, i32) {
    %c0_i32 = arith.constant 0 : i32
    %c0_i32_0 = arith.constant 0 : i32
    %c0_i32_1 = arith.constant 0 : i32
    return %c0_i32, %c0_i32_0 : i32, i32
  }
  func.func @transform_5(%arg0: i32) -> (i32, i32, i32) {
    %c0_i32 = arith.constant 0 : i32
    %c0_i32_0 = arith.constant 0 : i32
    %c0_i32_1 = arith.constant 0 : i32
    return %arg0, %c0_i32, %c0_i32_0 : i32, i32, i32
  }
}

</mosaic_0001>

<bundles_post_ra>
// kernel: bottleneck_forward.11
= control target key start
LH: loop header
LB: loop body
LE: loop exit
PB: predicated region body
PF: predicated region fallthrough
CT: control target
= control target key end

     0   :  { %s1309_s18 = smov 0   ;;  %s1575_s0 = inlined_call_operand.vmem [shape: bf16[2,16,16,64], index: 0, kind: input, shape index: {}]   ;;  %s1576_s1 = inlined_call_operand.vmem [shape: bf16[64,4], index: 1, kind: input, shape index: {}]   ;;  %s1577_s2 = inlined_call_operand.vmem [shape: f32[1,4], index: 2, kind: input, shape index: {}]   ;;  %s1578_s3 = inlined_call_operand.vmem [shape: f32[1,4], index: 3, kind: input, shape index: {}]   ;;  %s1579_s4 = inlined_call_operand.vmem [shape: f32[2,1,64], index: 4, kind: output, shape index: {0}]   ;;  %s1580_s5 = inlined_call_operand.vmem [shape: bf16[2,16,16,4], index: 5, kind: output, shape index: {1}]  }
   0x1 LB: > { %s1045_s19 = sadd.s32 4294967295, %s1277_s18   ;;  %p1049_p0 = scmp.ge.s32.totalorder %s1277_s18, 1  ;;  %s1277_s18 = sphi %s1309_s18, %s16_s18  }
   0x2   : > { %p190_p1 = scmp.lt.s32.totalorder %s1277_s18, 3 }
   0x4   : > { %p191_p2 = pnand %p1049_p0, %p190_p1 }
   0x5   : > { %v1236_v0 = vld [vmem:[%s1576_s1] sm:$0xff] (!%p191_p2)   ;;  %p221_p3 = scmp.lt.s32.totalorder (!%p191_p2), %s1045_s19, 1  ;;  %v1237_v1 = vld [vmem:[%s1576_s1 + $0x8] sm:$0xff] (!%p191_p2)   ;;  %v1238_v2 = vld [vmem:[%s1576_s1 + $0x10] sm:$0xff] (!%p191_p2)   ;;  %vm299_vm0 = vcmask (!%p191_p2), 523264   ;;  %vm371_vm1 = vcmask (!%p191_p2), 516096  }
   0x6   : > { %194 = sbr.rel (%p191_p2) target bundleno = 273 (0x111), region = 36  ;;  %1180 = vmatprep.subr.bf16.mxu0 (!%p191_p2), %v1236_v0  ;;  %1220 = vmatprep.subr.bf16.mxu1 (!%p191_p2), %v1236_v0  ;;  %v1239_v8 = vld [vmem:[%s1576_s1 + $0x18] sm:$0xff] (!%p191_p2)   ;;  %vm932_vm2 = vcmask (!%p191_p2), 27648  }
   0x7   : > { %1181 = vmatpush3.bf16.msra.mxu0 (!%p191_p2), %v1236_v0  ;;  %1224 = vmatpush3.bf16.msra.mxu1 (!%p191_p2), %v1236_v0 }
   0x8   : > { %1182 = vmatprep.subr.bf16.mxu0 (!%p191_p2), %v1237_v1  ;;  %1221 = vmatprep.subr.bf16.mxu1 (!%p191_p2), %v1237_v1 }
   0xb   : > { %1183 = vmatpush3.bf16.msra.mxu0 (!%p191_p2), %v1237_v1  ;;  %1225 = vmatpush3.bf16.msra.mxu1 (!%p191_p2), %v1237_v1 }
   0xc   : > { %1184 = vmatprep.subr.bf16.mxu0 (!%p191_p2), %v1238_v2  ;;  %1222 = vmatprep.subr.bf16.mxu1 (!%p191_p2), %v1238_v2 }
   0xd   : > { %s1582_s19 = smov (!%p221_p3, %s1045_s19), 1 }
   0xe   : > { %s1126_s26 = sshll.u32 %s1582_s19, 7  ;;  %s228_s9 = scalar_lea.vmem %s1579_s4, %s1582_s19 }
   0xf   : > { %s1334_s29 = scalar_lea.vmem %s1575_s0, %s1126_s26  ;;  %1185 = vmatpush3.bf16.msra.mxu0 %v1238_v2  ;;  %1226 = vmatpush3.bf16.msra.mxu1 %v1238_v2  ;;  %s1456_s16 = scalar_lea.vmem %s1580_s5, %s1126_s26 }
  0x10   : > { %v235_v3 = vld [vmem:[%s1334_s29] sm:$0xff]   ;;  %v237_v4 = vld [vmem:[%s1334_s29 + $0x8] sm:$0xff]   ;;  %v239_v9 = vld [vmem:[%s1334_s29 + $0x10] sm:$0xff]   ;;  %1186 = vmatprep.subr.bf16.mxu0 %v1239_v8  ;;  %1223 = vmatprep.subr.bf16.mxu1 %v1239_v8 }
  0x11   : > { %v267_v5 = vunpack.c.l.bf16 %v235_v3  ;;  %v268_v6 = vunpack.c.h.bf16 %v235_v3  ;;  %v269_v7 = vunpack.c.l.bf16 %v237_v4  ;;  %v270_v10 = vunpack.c.h.bf16 %v237_v4  ;;  %1188 = vmatprep.mubr.msk.bf16.mxu0 %vm299_vm0, %v235_v3  ;;  %v241_v18 = vld [vmem:[%s1334_s29 + $0x18] sm:$0xff]   ;;  %v1350_v22 = vld [vmem:[%s1334_s29 + $0x40] sm:$0xff]   ;;  %v1353_v24 = vld [vmem:[%s1334_s29 + $0x48] sm:$0xff]  }
  0x12   : > { %v271_v14 = vunpack.c.l.bf16 %v239_v9  ;;  %v272_v16 = vunpack.c.h.bf16 %v239_v9  ;;  %v273_v19 = vunpack.c.l.bf16 %v241_v18  ;;  %v274_v25 = vunpack.c.h.bf16 %v241_v18  ;;  %v243_v27 = vld [vmem:[%s1334_s29 + $0x20] sm:$0xff]   ;;  %v1358_v29 = vld [vmem:[%s1334_s29 + $0x50] sm:$0xff]   ;;  %1204 = vmatprep.mubr.msk.bf16.mxu1 %vm299_vm0, %v1350_v22  ;;  %v245_v35 = vld [vmem:[%s1334_s29 + $0x28] sm:$0xff]  }
  0x13   : > { %v300_v11 = vsel %vm299_vm0, %v267_v5, 0.0  ;;  %v301_v12 = vsel %vm299_vm0, %v268_v6, 0.0  ;;  %v303_v13 = vsel %vm299_vm0, %v269_v7, 0.0  ;;  %v305_v20 = vsel %vm299_vm0, %v270_v10, 0.0  ;;  %1187 = vmatpush3.bf16.msra.mxu0 %v1239_v8  ;;  %1227 = vmatpush3.bf16.msra.mxu1 %v1239_v8  ;;  %v257_v39 = vld [vmem:[%s1334_s29 + $0x58] sm:$0xff]   ;;  %v1374_v41 = vld [vmem:[%s1334_s29 + $0x60] sm:$0xff]  }
  0x14   : > { %v302_v15 = vadd.f32 %v301_v12, %v300_v11  ;;  %v307_v21 = vsel %vm299_vm0, %v271_v14, 0.0  ;;  %v309_v26 = vsel %vm299_vm0, %v272_v16, 0.0  ;;  %v275_v30 = vunpack.c.l.bf16 %v243_v27  ;;  %v247_v44 = vld [vmem:[%s1334_s29 + $0x30] sm:$0xff]   ;;  %v249_v51 = vld [vmem:[%s1334_s29 + $0x38] sm:$0xff]   ;;  %v261_v55 = vld [vmem:[%s1334_s29 + $0x68] sm:$0xff]  }
  0x15   : > { %v311_v31 = vsel %vm299_vm0, %v273_v19, 0.0  ;;  %v276_v33 = vunpack.c.h.bf16 %v243_v27  ;;  %v313_v34 = vsel %vm299_vm0, %v274_v25, 0.0  ;;  %v277_v37 = vunpack.c.l.bf16 %v245_v35  ;;  %v263_v57 = vld [vmem:[%s1334_s29 + $0x70] sm:$0xff]   ;;  %v265_v5 = vld [vmem:[%s1334_s29 + $0x78] sm:$0xff]  }
  0x16   : > { %v304_v17 = vadd.f32 %v303_v13, %v302_v15  ;;  %1189 = vmatmul.mubr.msk.bf16.vlgmr.msra.gmra.mrb[0].mxu0 %vm299_vm0, %v237_v4  ;;  %1205 = vmatmul.mubr.msk.bf16.vlgmr.msra.gmra.mrb[0].mxu1 %vm299_vm0, %v1353_v24  ;;  %v315_v38 = vsel %vm299_vm0, %v275_v30, 0.0  ;;  %v278_v42 = vunpack.c.h.bf16 %v245_v35  ;;  %v279_v46 = vunpack.c.l.bf16 %v247_v44 }
  0x17   : > { %1192 = vmatprep.mubr.msk.bf16.mxu0 %vm299_vm0, %v239_v9  ;;  %1208 = vmatprep.mubr.msk.bf16.mxu1 %vm299_vm0, %v1358_v29  ;;  %v317_v43 = vsel %vm299_vm0, %v276_v33, 0.0  ;;  %v319_v47 = vsel %vm299_vm0, %v277_v37, 0.0  ;;  %v280_v49 = vunpack.c.h.bf16 %v247_v44  ;;  %v281_v53 = vunpack.c.l.bf16 %v249_v51 }
  0x18   : > { %v306_v23 = vadd.f32 %v305_v20, %v304_v17  ;;  %v321_v50 = vsel %vm299_vm0, %v278_v42, 0.0  ;;  %v323_v54 = vsel %vm299_vm0, %v279_v46, 0.0  ;;  %v282_v58 = vunpack.c.h.bf16 %v249_v51 }
  0x19   : > { %v325_v59 = vsel %vm299_vm0, %v280_v49, 0.0  ;;  %v283_v61 = vunpack.c.l.bf16 %v1350_v22  ;;  %v327_v62 = vsel %vm299_vm0, %v281_v53, 0.0  ;;  %v284_v0 = vunpack.c.h.bf16 %v1350_v22 }
  0x1a   : > { %v308_v28 = vadd.f32 %v307_v21, %v306_v23  ;;  %v329_v1 = vsel %vm299_vm0, %v282_v58, 0.0  ;;  %v285_v3 = vunpack.c.l.bf16 %v1353_v24  ;;  %v286_v8 = vunpack.c.h.bf16 %v1353_v24  ;;  %v1430_v58 = vld [vmem:[%s1577_s2] ss:$0 sm:$0xff] }
  0x1b   : > { %v331_v4 = vsel %vm299_vm0, %v283_v61, 0.0  ;;  %v333_v7 = vsel %vm299_vm0, %v284_v0, 0.0  ;;  %v287_v11 = vunpack.c.l.bf16 %v1358_v29  ;;  %v288_v14 = vunpack.c.h.bf16 %v1358_v29 }
  0x1c   : > { %v310_v32 = vadd.f32 %v309_v26, %v308_v28  ;;  %v335_v10 = vsel %vm299_vm0, %v285_v3, 0.0  ;;  %v337_v13 = vsel %vm299_vm0, %v286_v8, 0.0  ;;  %v289_v17 = vunpack.c.l.bf16 %v257_v39 }
  0x1d   : > { %v339_v16 = vsel %vm299_vm0, %v287_v11, 0.0  ;;  %v341_v19 = vsel %vm299_vm0, %v288_v14, 0.0  ;;  %v290_v20 = vunpack.c.h.bf16 %v257_v39  ;;  %v291_v23 = vunpack.c.l.bf16 %v1374_v41 }
  0x1e   : > { %v312_v36 = vadd.f32 %v311_v31, %v310_v32  ;;  %1193 = vmatmul.mubr.msk.bf16.gmra.mrb[4].mxu0 %vm299_vm0, %v241_v18  ;;  %1209 = vmatmul.mubr.msk.bf16.gmra.mrb[4].mxu1 %vm299_vm0, %v257_v39  ;;  %v343_v22 = vsel %vm299_vm0, %v289_v17, 0.0  ;;  %v292_v26 = vunpack.c.h.bf16 %v1374_v41  ;;  %v293_v29 = vunpack.c.l.bf16 %v261_v55 }
  0x1f   : > { %1196 = vmatprep.mubr.msk.bf16.mxu0 %vm299_vm0, %v243_v27  ;;  %1212 = vmatprep.mubr.msk.bf16.mxu1 %vm299_vm0, %v1374_v41  ;;  %v345_v25 = vsel %vm299_vm0, %v290_v20, 0.0  ;;  %v347_v28 = vsel %vm299_vm0, %v291_v23, 0.0  ;;  %v294_v32 = vunpack.c.h.bf16 %v261_v55  ;;  %v297_v41 = vunpack.c.l.bf16 %v265_v5 }
  0x20   : > { %v314_v40 = vadd.f32 %v313_v34, %v312_v36  ;;  %v349_v31 = vsel %vm299_vm0, %v292_v26, 0.0  ;;  %v351_v34 = vsel %vm299_vm0, %v293_v29, 0.0 }
  0x21   : > { %v353_v37 = vsel %vm299_vm0, %v294_v32, 0.0  ;;  %v359_v46 = vsel %vm299_vm0, %v297_v41, 0.0 }
  0x22   : > { %v316_v45 = vadd.f32 %v315_v38, %v314_v40  ;;  %v296_v38 = vunpack.c.h.bf16 %v263_v57 }
  0x24   : > { %v318_v48 = vadd.f32 %v317_v43, %v316_v45  ;;  %v357_v43 = vsel %vm299_vm0, %v296_v38, 0.0 }
  0x26   : > { %v320_v52 = vadd.f32 %v319_v47, %v318_v48  ;;  %1197 = vmatmul.mubr.msk.bf16.gmra.mrb[8].mxu0 %vm299_vm0, %v245_v35  ;;  %1213 = vmatmul.mubr.msk.bf16.gmra.mrb[8].mxu1 %vm299_vm0, %v261_v55  ;;  %v295_v35 = vunpack.c.l.bf16 %v263_v57 }
  0x27   : > { %1200 = vmatprep.mubr.msk.bf16.mxu0 %vm299_vm0, %v247_v44  ;;  %1216 = vmatprep.mubr.msk.bf16.mxu1 %vm299_vm0, %v263_v57  ;;  %v298_v44 = vunpack.c.h.bf16 %v265_v5 }
  0x28   : > { %v322_v56 = vadd.f32 %v321_v50, %v320_v52  ;;  %v355_v40 = vsel %vm299_vm0, %v295_v35, 0.0 }
  0x29   : > { %v361_v48 = vsel %vm299_vm0, %v298_v44, 0.0 }
  0x2a   : > { %v324_v60 = vadd.f32 %v323_v54, %v322_v56 }
  0x2c   : > { %v326_v63 = vadd.f32 %v325_v59, %v324_v60  ;;  %v1435_v60 = vld [vmem:[%s1578_s3] ss:$0 sm:$0xff] }
  0x2e   : > { %v328_v2 = vadd.f32 %v327_v62, %v326_v63  ;;  %1201 = vmatmul.mubr.msk.bf16.gmra.mrb[12].mxu0 %vm299_vm0, %v249_v51  ;;  %1217 = vmatmul.mubr.msk.bf16.gmra.mrb[12].mxu1 %vm299_vm0, %v265_v5 }
  0x30   : > { %v330_v6 = vadd.f32 %v329_v1, %v328_v2 }
  0x32   : > { %v332_v9 = vadd.f32 %v331_v4, %v330_v6 }
  0x34   : > { %v334_v12 = vadd.f32 %v333_v7, %v332_v9 }
  0x36   : > { %v336_v15 = vadd.f32 %v335_v10, %v334_v12 }
  0x38   : > { %v338_v18 = vadd.f32 %v337_v13, %v336_v15 }
  0x3a   : > { %v340_v21 = vadd.f32 %v339_v16, %v338_v18 }
  0x3c   : > { %v342_v24 = vadd.f32 %v341_v19, %v340_v21 }
  0x3e   : > { %v344_v27 = vadd.f32 %v343_v22, %v342_v24 }
  0x40   : > { %v346_v30 = vadd.f32 %v345_v25, %v344_v27 }
  0x42   : > { %v348_v33 = vadd.f32 %v347_v28, %v346_v30 }
  0x44   : > { %v350_v36 = vadd.f32 %v349_v31, %v348_v33 }
  0x46   : > { %v352_v39 = vadd.f32 %v351_v34, %v350_v36 }
  0x48   : > { %v354_v42 = vadd.f32 %v353_v37, %v352_v39 }
  0x4a   : > { %v356_v45 = vadd.f32 %v355_v40, %v354_v42 }
  0x4c   : > { %v358_v47 = vadd.f32 %v357_v43, %v356_v45 }
  0x4e   : > { %v360_v49 = vadd.f32 %v359_v46, %v358_v47 }
  0x50   : > { %v362_v50 = vadd.f32 %v361_v48, %v360_v49 }
  0x52   : > { %v363_v51 = vrot.slane %v362_v50, 4 }
  0x54   : > { %v364_v52 = vadd.f32 %v363_v51, %v362_v50 }
  0x56   : > { %v365_v53 = vrot.slane %v364_v52, 2 }
  0x58   : > { %v366_v54 = vadd.f32 %v365_v53, %v364_v52 }
  0x5a   : > { %v367_v55 = vrot.slane %v366_v54, 1 }
  0x5c   : > { %v368_v56 = vadd.f32 %v367_v55, %v366_v54 }
  0x5e   : > { %v370_v57 = vmul.f32 0.00390625, %v368_v56 }
  0x60   : > { %372 = vst.msk [vmem:[%s228_s9] sm:$0x1] %vm371_vm1, %v370_v57 }
  0xe9   : > { %v1190_v59 = vpop.f32.mrb[0].mxu0  ;;  %v1206_v61 = vpop.f32.mrb[0].mxu1 }
  0xea   : > { %v703_v62 = vmul.f32 %v1190_v59, %v1430_v58  ;;  %v719_v63 = vmul.f32 %v1206_v61, %v1430_v58  ;;  %v567_v0 = vpop.f32.mrb[1].mxu0  ;;  %v631_v1 = vpop.f32.mrb[1].mxu1 }
  0xeb   : > { %v701_v2 = vmul.f32 %v1430_v58, %v567_v0  ;;  %v717_v3 = vmul.f32 %v1430_v58, %v631_v1  ;;  %v1191_v4 = vpop.f32.mrb[2].mxu0  ;;  %v1207_v5 = vpop.f32.mrb[2].mxu1 }
  0xec   : > { %v742_v6 = vadd.f32 %v1435_v60, %v703_v62  ;;  %v758_v7 = vadd.f32 %v1435_v60, %v719_v63  ;;  %v704_v8 = vmul.f32 %v1191_v4, %v1430_v58  ;;  %v720_v9 = vmul.f32 %v1207_v5, %v1430_v58  ;;  %v570_v10 = vpop.f32.mrb[3].mxu0  ;;  %v634_v11 = vpop.f32.mrb[3].mxu1 }
  0xed   : > { %v740_v12 = vadd.f32 %v1435_v60, %v701_v2  ;;  %v756_v13 = vadd.f32 %v1435_v60, %v717_v3  ;;  %v702_v14 = vmul.f32 %v1430_v58, %v570_v10  ;;  %v718_v15 = vmul.f32 %v1430_v58, %v634_v11 }
  0xee   : > { %v774_v16 = vmax.f32 %v742_v6, 0.0  ;;  %v790_v17 = vmax.f32 %v758_v7, 0.0  ;;  %v743_v18 = vadd.f32 %v1435_v60, %v704_v8  ;;  %v759_v19 = vadd.f32 %v1435_v60, %v720_v9 }
  0xef   : > { %v772_v20 = vmax.f32 %v740_v12, 0.0  ;;  %v788_v21 = vmax.f32 %v756_v13, 0.0  ;;  %v741_v22 = vadd.f32 %v1435_v60, %v702_v14  ;;  %v757_v23 = vadd.f32 %v1435_v60, %v718_v15 }
  0xf0   : > { %v1130_v24 = vpack.c.bf16 %v774_v16, %v774_v16  ;;  %v1146_v25 = vpack.c.bf16 %v790_v17, %v790_v17  ;;  %v775_v26 = vmax.f32 %v743_v18, 0.0  ;;  %v791_v27 = vmax.f32 %v759_v19, 0.0 }
  0xf1   : > { %v1128_v28 = vpack.c.bf16 %v772_v20, %v772_v20  ;;  %v1144_v29 = vpack.c.bf16 %v788_v21, %v788_v21  ;;  %v773_v30 = vmax.f32 %v741_v22, 0.0  ;;  %v789_v31 = vmax.f32 %v757_v23, 0.0  ;;  %v1194_v32 = vpop.f32.mrb[4].mxu0  ;;  %v1210_v33 = vpop.f32.mrb[4].mxu1 }
  0xf2   : > { %935 = vst.msk [vmem:[%s1456_s16 + $0x8] sm:$0xf] %vm932_vm2, %v1130_v24  ;;  %951 = vst.msk [vmem:[%s1456_s16 + $0x48] sm:$0xf] %vm932_vm2, %v1146_v25  ;;  %v1131_v34 = vpack.c.bf16 %v775_v26, %v775_v26  ;;  %v1147_v35 = vpack.c.bf16 %v791_v27, %v791_v27  ;;  %v707_v36 = vmul.f32 %v1194_v32, %v1430_v58  ;;  %v583_v38 = vpop.f32.mrb[5].mxu0  ;;  %v647_v39 = vpop.f32.mrb[5].mxu1 }
  0xf3   : > { %v723_v37 = vmul.f32 %v1210_v33, %v1430_v58  ;;  %933 = vst.msk [vmem:[%s1456_s16] sm:$0xf] %vm932_vm2, %v1128_v28  ;;  %949 = vst.msk [vmem:[%s1456_s16 + $0x40] sm:$0xf] %vm932_vm2, %v1144_v29  ;;  %v1129_v40 = vpack.c.bf16 %v773_v30, %v773_v30  ;;  %v1145_v41 = vpack.c.bf16 %v789_v31, %v789_v31  ;;  %v1195_v44 = vpop.f32.mrb[6].mxu0  ;;  %v1211_v45 = vpop.f32.mrb[6].mxu1 }
  0xf4   : > { %v705_v42 = vmul.f32 %v1430_v58, %v583_v38  ;;  %v721_v43 = vmul.f32 %v1430_v58, %v647_v39  ;;  %936 = vst.msk [vmem:[%s1456_s16 + $0xc] sm:$0xf] %vm932_vm2, %v1131_v34  ;;  %952 = vst.msk [vmem:[%s1456_s16 + $0x4c] sm:$0xf] %vm932_vm2, %v1147_v35  ;;  %v746_v46 = vadd.f32 %v1435_v60, %v707_v36  ;;  %v586_v50 = vpop.f32.mrb[7].mxu0  ;;  %v650_v51 = vpop.f32.mrb[7].mxu1 }
  0xf5   : > { %v762_v47 = vadd.f32 %v1435_v60, %v723_v37  ;;  %v708_v48 = vmul.f32 %v1195_v44, %v1430_v58  ;;  %v724_v49 = vmul.f32 %v1211_v45, %v1430_v58  ;;  %934 = vst.msk [vmem:[%s1456_s16 + $0x4] sm:$0xf] %vm932_vm2, %v1129_v40  ;;  %950 = vst.msk [vmem:[%s1456_s16 + $0x44] sm:$0xf] %vm932_vm2, %v1145_v41 }
  0xf6   : > { %v744_v52 = vadd.f32 %v1435_v60, %v705_v42  ;;  %v760_v53 = vadd.f32 %v1435_v60, %v721_v43  ;;  %v706_v54 = vmul.f32 %v1430_v58, %v586_v50  ;;  %v722_v55 = vmul.f32 %v1430_v58, %v650_v51 }
  0xf7   : > { %v778_v56 = vmax.f32 %v746_v46, 0.0  ;;  %v794_v57 = vmax.f32 %v762_v47, 0.0  ;;  %v747_v59 = vadd.f32 %v1435_v60, %v708_v48  ;;  %v763_v61 = vadd.f32 %v1435_v60, %v724_v49 }
  0xf8   : > { %v776_v62 = vmax.f32 %v744_v52, 0.0  ;;  %v792_v63 = vmax.f32 %v760_v53, 0.0  ;;  %v745_v0 = vadd.f32 %v1435_v60, %v706_v54  ;;  %v761_v1 = vadd.f32 %v1435_v60, %v722_v55 }
  0xf9   : > { %v1134_v2 = vpack.c.bf16 %v778_v56, %v778_v56  ;;  %v1150_v3 = vpack.c.bf16 %v794_v57, %v794_v57  ;;  %v779_v4 = vmax.f32 %v747_v59, 0.0  ;;  %v795_v5 = vmax.f32 %v763_v61, 0.0  ;;  %v1198_v10 = vpop.f32.mrb[8].mxu0  ;;  %v1214_v11 = vpop.f32.mrb[8].mxu1 }
  0xfa   : > { %v1132_v6 = vpack.c.bf16 %v776_v62, %v776_v62  ;;  %v1148_v7 = vpack.c.bf16 %v792_v63, %v792_v63  ;;  %v777_v8 = vmax.f32 %v745_v0, 0.0  ;;  %v793_v9 = vmax.f32 %v761_v1, 0.0  ;;  %v599_v16 = vpop.f32.mrb[9].mxu0  ;;  %v663_v17 = vpop.f32.mrb[9].mxu1 }
  0xfb   : > { %939 = vst.msk [vmem:[%s1456_s16 + $0x18] sm:$0xf] %vm932_vm2, %v1134_v2  ;;  %955 = vst.msk [vmem:[%s1456_s16 + $0x58] sm:$0xf] %vm932_vm2, %v1150_v3  ;;  %v1135_v12 = vpack.c.bf16 %v779_v4, %v779_v4  ;;  %v1151_v13 = vpack.c.bf16 %v795_v5, %v795_v5  ;;  %v711_v14 = vmul.f32 %v1198_v10, %v1430_v58  ;;  %v1199_v22 = vpop.f32.mrb[10].mxu0  ;;  %v1215_v23 = vpop.f32.mrb[10].mxu1 }
  0xfc   : > { %v727_v15 = vmul.f32 %v1214_v11, %v1430_v58  ;;  %937 = vst.msk [vmem:[%s1456_s16 + $0x10] sm:$0xf] %vm932_vm2, %v1132_v6  ;;  %953 = vst.msk [vmem:[%s1456_s16 + $0x50] sm:$0xf] %vm932_vm2, %v1148_v7  ;;  %v1133_v18 = vpack.c.bf16 %v777_v8, %v777_v8  ;;  %v1149_v19 = vpack.c.bf16 %v793_v9, %v793_v9  ;;  %v602_v28 = vpop.f32.mrb[11].mxu0  ;;  %v666_v29 = vpop.f32.mrb[11].mxu1 }
  0xfd   : > { %v709_v20 = vmul.f32 %v1430_v58, %v599_v16  ;;  %v725_v21 = vmul.f32 %v1430_v58, %v663_v17  ;;  %940 = vst.msk [vmem:[%s1456_s16 + $0x1c] sm:$0xf] %vm932_vm2, %v1135_v12  ;;  %956 = vst.msk [vmem:[%s1456_s16 + $0x5c] sm:$0xf] %vm932_vm2, %v1151_v13  ;;  %v750_v24 = vadd.f32 %v1435_v60, %v711_v14 }
  0xfe   : > { %v766_v25 = vadd.f32 %v1435_v60, %v727_v15  ;;  %v712_v26 = vmul.f32 %v1199_v22, %v1430_v58  ;;  %v728_v27 = vmul.f32 %v1215_v23, %v1430_v58  ;;  %938 = vst.msk [vmem:[%s1456_s16 + $0x14] sm:$0xf] %vm932_vm2, %v1133_v18  ;;  %954 = vst.msk [vmem:[%s1456_s16 + $0x54] sm:$0xf] %vm932_vm2, %v1149_v19 }
  0xff   : > { %v748_v30 = vadd.f32 %v1435_v60, %v709_v20  ;;  %v764_v31 = vadd.f32 %v1435_v60, %v725_v21  ;;  %v710_v32 = vmul.f32 %v1430_v58, %v602_v28  ;;  %v726_v33 = vmul.f32 %v1430_v58, %v666_v29 }
 0x100   : > { %v782_v34 = vmax.f32 %v750_v24, 0.0  ;;  %v798_v35 = vmax.f32 %v766_v25, 0.0  ;;  %v751_v36 = vadd.f32 %v1435_v60, %v712_v26  ;;  %v767_v37 = vadd.f32 %v1435_v60, %v728_v27 }
 0x101   : > { %v780_v38 = vmax.f32 %v748_v30, 0.0  ;;  %v796_v39 = vmax.f32 %v764_v31, 0.0  ;;  %v749_v40 = vadd.f32 %v1435_v60, %v710_v32  ;;  %v765_v41 = vadd.f32 %v1435_v60, %v726_v33  ;;  %v1202_v50 = vpop.f32.mrb[12].mxu0  ;;  %v1218_v51 = vpop.f32.mrb[12].mxu1 }
 0x102   : > { %v1138_v42 = vpack.c.bf16 %v782_v34, %v782_v34  ;;  %v1154_v43 = vpack.c.bf16 %v798_v35, %v798_v35  ;;  %v783_v44 = vmax.f32 %v751_v36, 0.0  ;;  %v799_v45 = vmax.f32 %v767_v37, 0.0  ;;  %v615_v56 = vpop.f32.mrb[13].mxu0  ;;  %v679_v57 = vpop.f32.mrb[13].mxu1 }
 0x103   : > { %v1136_v46 = vpack.c.bf16 %v780_v38, %v780_v38  ;;  %v1152_v47 = vpack.c.bf16 %v796_v39, %v796_v39  ;;  %v781_v48 = vmax.f32 %v749_v40, 0.0  ;;  %v797_v49 = vmax.f32 %v765_v41, 0.0  ;;  %v1203_v0 = vpop.f32.mrb[14].mxu0  ;;  %v1219_v1 = vpop.f32.mrb[14].mxu1 }
 0x104   : > { %943 = vst.msk [vmem:[%s1456_s16 + $0x28] sm:$0xf] %vm932_vm2, %v1138_v42  ;;  %959 = vst.msk [vmem:[%s1456_s16 + $0x68] sm:$0xf] %vm932_vm2, %v1154_v43  ;;  %v1139_v52 = vpack.c.bf16 %v783_v44, %v783_v44  ;;  %v1155_v53 = vpack.c.bf16 %v799_v45, %v799_v45  ;;  %v715_v54 = vmul.f32 %v1202_v50, %v1430_v58  ;;  %v618_v6 = vpop.f32.mrb[15].mxu0  ;;  %v682_v7 = vpop.f32.mrb[15].mxu1 }
 0x105   : > { %v731_v55 = vmul.f32 %v1218_v51, %v1430_v58  ;;  %941 = vst.msk [vmem:[%s1456_s16 + $0x20] sm:$0xf] %vm932_vm2, %v1136_v46  ;;  %957 = vst.msk [vmem:[%s1456_s16 + $0x60] sm:$0xf] %vm932_vm2, %v1152_v47  ;;  %v1137_v59 = vpack.c.bf16 %v781_v48, %v781_v48  ;;  %v1153_v61 = vpack.c.bf16 %v797_v49, %v797_v49 }
 0x106   : > { %v713_v62 = vmul.f32 %v1430_v58, %v615_v56  ;;  %v729_v63 = vmul.f32 %v1430_v58, %v679_v57  ;;  %944 = vst.msk [vmem:[%s1456_s16 + $0x2c] sm:$0xf] %vm932_vm2, %v1139_v52  ;;  %960 = vst.msk [vmem:[%s1456_s16 + $0x6c] sm:$0xf] %vm932_vm2, %v1155_v53  ;;  %v754_v2 = vadd.f32 %v1435_v60, %v715_v54 }
 0x107   : > { %v770_v3 = vadd.f32 %v1435_v60, %v731_v55  ;;  %v716_v4 = vmul.f32 %v1203_v0, %v1430_v58  ;;  %v732_v5 = vmul.f32 %v1219_v1, %v1430_v58  ;;  %942 = vst.msk [vmem:[%s1456_s16 + $0x24] sm:$0xf] %vm932_vm2, %v1137_v59  ;;  %958 = vst.msk [vmem:[%s1456_s16 + $0x64] sm:$0xf] %vm932_vm2, %v1153_v61 }
 0x108   : > { %v752_v8 = vadd.f32 %v1435_v60, %v713_v62  ;;  %v768_v9 = vadd.f32 %v1435_v60, %v729_v63  ;;  %v714_v10 = vmul.f32 %v1430_v58, %v618_v6  ;;  %v730_v11 = vmul.f32 %v1430_v58, %v682_v7 }
 0x109   : > { %v786_v12 = vmax.f32 %v754_v2, 0.0  ;;  %v802_v13 = vmax.f32 %v770_v3, 0.0  ;;  %v755_v14 = vadd.f32 %v1435_v60, %v716_v4  ;;  %v771_v15 = vadd.f32 %v1435_v60, %v732_v5 }
 0x10a   : > { %v784_v16 = vmax.f32 %v752_v8, 0.0  ;;  %v800_v17 = vmax.f32 %v768_v9, 0.0  ;;  %v753_v18 = vadd.f32 %v1435_v60, %v714_v10  ;;  %v769_v19 = vadd.f32 %v1435_v60, %v730_v11 }
 0x10b   : > { %v1142_v20 = vpack.c.bf16 %v786_v12, %v786_v12  ;;  %v1158_v21 = vpack.c.bf16 %v802_v13, %v802_v13  ;;  %v787_v58 = vmax.f32 %v755_v14, 0.0  ;;  %v803_v22 = vmax.f32 %v771_v15, 0.0 }
 0x10c   : > { %v1140_v23 = vpack.c.bf16 %v784_v16, %v784_v16  ;;  %v1156_v24 = vpack.c.bf16 %v800_v17, %v800_v17  ;;  %v785_v25 = vmax.f32 %v753_v18, 0.0  ;;  %v801_v26 = vmax.f32 %v769_v19, 0.0 }
 0x10d   : > { %947 = vst.msk [vmem:[%s1456_s16 + $0x38] sm:$0xf] %vm932_vm2, %v1142_v20  ;;  %963 = vst.msk [vmem:[%s1456_s16 + $0x78] sm:$0xf] %vm932_vm2, %v1158_v21  ;;  %v1143_v27 = vpack.c.bf16 %v787_v58, %v787_v58  ;;  %v1159_v28 = vpack.c.bf16 %v803_v22, %v803_v22 }
 0x10e   : > { %945 = vst.msk [vmem:[%s1456_s16 + $0x30] sm:$0xf] %vm932_vm2, %v1140_v23  ;;  %961 = vst.msk [vmem:[%s1456_s16 + $0x70] sm:$0xf] %vm932_vm2, %v1156_v24  ;;  %v1141_v60 = vpack.c.bf16 %v785_v25, %v785_v25  ;;  %v1157_v29 = vpack.c.bf16 %v801_v26, %v801_v26 }
 0x10f   : > { %948 = vst.msk [vmem:[%s1456_s16 + $0x3c] sm:$0xf] %vm932_vm2, %v1143_v27  ;;  %964 = vst.msk [vmem:[%s1456_s16 + $0x7c] sm:$0xf] %vm932_vm2, %v1159_v28 }
 0x110   : > { %946 = vst.msk [vmem:[%s1456_s16 + $0x34] sm:$0xf] %vm932_vm2, %v1141_v60  ;;  %962 = vst.msk [vmem:[%s1456_s16 + $0x74] sm:$0xf] %vm932_vm2, %v1157_v29 }
 0x111 PF: > { %s16_s18 = sadd.s32 1, %s1277_s18  }
 0x112   : > { %p13_p4 = scmp.ge.s32.totalorder %s16_s18, 4  }
 0x114   :  { %15 = sbr.rel (!%p13_p4) target bundleno = 1 (0x1), region = 78 }

// kernel: bottleneck_forward.8
= control target key start
LH: loop header
LB: loop body
LE: loop exit
PB: predicated region body
PF: predicated region fallthrough
CT: control target
= control target key end

     0   :  { %vm22_vm0 = vcmask 130048   ;;  %v1873_v1 = vmov 0.0   ;;  %vm407_vm1 = vcmask 523264   ;;  %vm1451_vm2 = vcmask 125952   ;;  %s2737_s1 = inlined_call_operand.vmem [shape: bf16[64,16], index: 1, kind: input, shape index: {}]   ;;  %s2738_s0 = inlined_call_operand.vmem [shape: bf16[512,64], index: 0, kind: input, shape index: {}]   ;;  %s2739_s2 = inlined_call_operand.vmem [shape: f32[1,16], index: 2, kind: input, shape index: {}]   ;;  %s2740_s3 = inlined_call_operand.vmem [shape: f32[1,16], index: 3, kind: input, shape index: {}]   ;;  %s2741_s4 = inlined_call_operand.vmem [shape: bf16[512,16], index: 4, kind: output, shape index: {}]  }
   0x1   :  { %v1902_v0 = vld [vmem:[%s2737_s1] sm:$0xff]   ;;  %25 = vst.msk [vmem:[#allocation2 + $0x10] sm:$0xff] %vm22_vm0, %v1873_v1  ;;  %23 = vst.msk [vmem:[#allocation2] sm:$0xff] %vm22_vm0, %v1873_v1  ;;  %v1836_v2 = vld [vmem:[%s2737_s1 + $0x8] sm:$0xff]  }
   0x2   :  { %24 = vst.msk [vmem:[#allocation2 + $0x8] sm:$0xff] %vm22_vm0, %v1873_v1  ;;  %26 = vst.msk [vmem:[#allocation2 + $0x18] sm:$0xff] %vm22_vm0, %v1873_v1  ;;  %1754 = vmatprep.subr.bf16.mxu0 %v1902_v0  ;;  %1826 = vmatprep.subr.bf16.mxu1 %v1902_v0  ;;  %v1837_v3 = vld [vmem:[%s2737_s1 + $0x10] sm:$0xff]   ;;  %v1839_v4 = vld [vmem:[%s2738_s0] sm:$0xff]  }
   0x3   :  { %27 = vst.msk [vmem:[#allocation2 + $0x20] sm:$0xff] %vm22_vm0, %v1873_v1  ;;  %28 = vst.msk [vmem:[#allocation2 + $0x28] sm:$0xff] %vm22_vm0, %v1873_v1  ;;  %1755 = vmatpush3.bf16.msra.mxu0 %v1902_v0  ;;  %1830 = vmatpush3.bf16.msra.mxu1 %v1902_v0  ;;  %v1840_v5 = vld [vmem:[%s2738_s0 + $0x80] sm:$0xff]   ;;  %v1838_v6 = vld [vmem:[%s2737_s1 + $0x18] sm:$0xff]  }
   0x4   :  { %29 = vst.msk [vmem:[#allocation2 + $0x30] sm:$0xff] %vm22_vm0, %v1873_v1  ;;  %30 = vst.msk [vmem:[#allocation2 + $0x38] sm:$0xff] %vm22_vm0, %v1873_v1  ;;  %1756 = vmatprep.subr.bf16.mxu0 %v1836_v2  ;;  %1827 = vmatprep.subr.bf16.mxu1 %v1836_v2  ;;  %v1841_v7 = vld [vmem:[%s2738_s0 + $0x8] sm:$0xff]   ;;  %v1843_v9 = vld [vmem:[%s2738_s0 + $0x10] sm:$0xff]  }
   0x5   :  { %31 = vst.msk [vmem:[#allocation2 + $0x40] sm:$0xff] %vm22_vm0, %v1873_v1  ;;  %32 = vst.msk [vmem:[#allocation2 + $0x48] sm:$0xff] %vm22_vm0, %v1873_v1  ;;  %1762 = vmatprep.mubr.msk.bf16.mxu0 %vm407_vm1, %v1839_v4  ;;  %1794 = vmatprep.mubr.msk.bf16.mxu1 %vm407_vm1, %v1840_v5  ;;  %v1842_v8 = vld [vmem:[%s2738_s0 + $0x88] sm:$0xff]   ;;  %v1844_v10 = vld [vmem:[%s2738_s0 + $0x90] sm:$0xff]  }
   0x6   :  { %33 = vst.msk [vmem:[#allocation2 + $0x50] sm:$0xff] %vm22_vm0, %v1873_v1  ;;  %34 = vst.msk [vmem:[#allocation2 + $0x58] sm:$0xff] %vm22_vm0, %v1873_v1  ;;  %v1845_v11 = vld [vmem:[%s2738_s0 + $0x18] sm:$0xff]   ;;  %v1847_v13 = vld [vmem:[%s2738_s0 + $0x20] sm:$0xff]  }
   0x7   :  { %35 = vst.msk [vmem:[#allocation2 + $0x60] sm:$0xff] %vm22_vm0, %v1873_v1  ;;  %36 = vst.msk [vmem:[#allocation2 + $0x68] sm:$0xff] %vm22_vm0, %v1873_v1  ;;  %1757 = vmatpush3.bf16.msra.mxu0 %v1836_v2  ;;  %1831 = vmatpush3.bf16.msra.mxu1 %v1836_v2  ;;  %v1846_v12 = vld [vmem:[%s2738_s0 + $0x98] sm:$0xff]   ;;  %v1848_v14 = vld [vmem:[%s2738_s0 + $0xa0] sm:$0xff]  }
   0x8   :  { %37 = vst.msk [vmem:[#allocation2 + $0x70] sm:$0xff] %vm22_vm0, %v1873_v1  ;;  %38 = vst.msk [vmem:[#allocation2 + $0x78] sm:$0xff] %vm22_vm0, %v1873_v1  ;;  %1758 = vmatprep.subr.bf16.mxu0 %v1837_v3  ;;  %1828 = vmatprep.subr.bf16.mxu1 %v1837_v3  ;;  %v1849_v15 = vld [vmem:[%s2738_s0 + $0x28] sm:$0xff]   ;;  %v1851_v17 = vld [vmem:[%s2738_s0 + $0x30] sm:$0xff]  }
   0x9   :  { %39 = vst.msk [vmem:[#allocation2 + $0x80] sm:$0xff] %vm22_vm0, %v1873_v1  ;;  %40 = vst.msk [vmem:[#allocation2 + $0x88] sm:$0xff] %vm22_vm0, %v1873_v1  ;;  %v1850_v16 = vld [vmem:[%s2738_s0 + $0xa8] sm:$0xff]   ;;  %v1852_v18 = vld [vmem:[%s2738_s0 + $0xb0] sm:$0xff]  }
   0xa   :  { %41 = vst.msk [vmem:[#allocation2 + $0x90] sm:$0xff] %vm22_vm0, %v1873_v1  ;;  %42 = vst.msk [vmem:[#allocation2 + $0x98] sm:$0xff] %vm22_vm0, %v1873_v1  ;;  %v1853_v19 = vld [vmem:[%s2738_s0 + $0x38] sm:$0xff]   ;;  %v1855_v21 = vld [vmem:[%s2738_s0 + $0x40] sm:$0xff]  }
   0xb   :  { %43 = vst.msk [vmem:[#allocation2 + $0xa0] sm:$0xff] %vm22_vm0, %v1873_v1  ;;  %44 = vst.msk [vmem:[#allocation2 + $0xa8] sm:$0xff] %vm22_vm0, %v1873_v1  ;;  %1759 = vmatpush3.bf16.msra.mxu0 %v1837_v3  ;;  %1832 = vmatpush3.bf16.msra.mxu1 %v1837_v3  ;;  %v1854_v20 = vld [vmem:[%s2738_s0 + $0xb8] sm:$0xff]   ;;  %v1856_v22 = vld [vmem:[%s2738_s0 + $0xc0] sm:$0xff]  }
   0xc   :  { %45 = vst.msk [vmem:[#allocation2 + $0xb0] sm:$0xff] %vm22_vm0, %v1873_v1  ;;  %46 = vst.msk [vmem:[#allocation2 + $0xb8] sm:$0xff] %vm22_vm0, %v1873_v1  ;;  %1760 = vmatprep.subr.bf16.mxu0 %v1838_v6  ;;  %1829 = vmatprep.subr.bf16.mxu1 %v1838_v6  ;;  %v1857_v23 = vld [vmem:[%s2738_s0 + $0x48] sm:$0xff]   ;;  %v1859_v25 = vld [vmem:[%s2738_s0 + $0x50] sm:$0xff]  }
   0xd   :  { %47 = vst.msk [vmem:[#allocation2 + $0xc0] sm:$0xff] %vm22_vm0, %v1873_v1  ;;  %48 = vst.msk [vmem:[#allocation2 + $0xc8] sm:$0xff] %vm22_vm0, %v1873_v1  ;;  %v1858_v24 = vld [vmem:[%s2738_s0 + $0xc8] sm:$0xff]   ;;  %v1860_v26 = vld [vmem:[%s2738_s0 + $0xd0] sm:$0xff]  }
   0xe   :  { %49 = vst.msk [vmem:[#allocation2 + $0xd0] sm:$0xff] %vm22_vm0, %v1873_v1  ;;  %50 = vst.msk [vmem:[#allocation2 + $0xd8] sm:$0xff] %vm22_vm0, %v1873_v1  ;;  %v1861_v27 = vld [vmem:[%s2738_s0 + $0x58] sm:$0xff]   ;;  %v1863_v29 = vld [vmem:[%s2738_s0 + $0x60] sm:$0xff]  }
   0xf   :  { %51 = vst.msk [vmem:[#allocation2 + $0xe0] sm:$0xff] %vm22_vm0, %v1873_v1  ;;  %52 = vst.msk [vmem:[#allocation2 + $0xe8] sm:$0xff] %vm22_vm0, %v1873_v1  ;;  %1761 = vmatpush3.bf16.msra.mxu0 %v1838_v6  ;;  %1833 = vmatpush3.bf16.msra.mxu1 %v1838_v6  ;;  %v1862_v28 = vld [vmem:[%s2738_s0 + $0xd8] sm:$0xff]   ;;  %v1864_v30 = vld [vmem:[%s2738_s0 + $0xe0] sm:$0xff]  }
  0x10   :  { %53 = vst.msk [vmem:[#allocation2 + $0xf0] sm:$0xff] %vm22_vm0, %v1873_v1  ;;  %54 = vst.msk [vmem:[#allocation2 + $0xf8] sm:$0xff] %vm22_vm0, %v1873_v1  ;;  %v1865_v31 = vld [vmem:[%s2738_s0 + $0x68] sm:$0xff]   ;;  %v1867_v33 = vld [vmem:[%s2738_s0 + $0x70] sm:$0xff]  }
  0x11   :  { %55 = vst.msk [vmem:[#allocation2 + $0x100] sm:$0xff] %vm22_vm0, %v1873_v1  ;;  %56 = vst.msk [vmem:[#allocation2 + $0x108] sm:$0xff] %vm22_vm0, %v1873_v1  ;;  %v1866_v32 = vld [vmem:[%s2738_s0 + $0xe8] sm:$0xff]   ;;  %v1868_v34 = vld [vmem:[%s2738_s0 + $0xf0] sm:$0xff]  }
  0x12   :  { %57 = vst.msk [vmem:[#allocation2 + $0x110] sm:$0xff] %vm22_vm0, %v1873_v1  ;;  %58 = vst.msk [vmem:[#allocation2 + $0x118] sm:$0xff] %vm22_vm0, %v1873_v1  ;;  %1763 = vmatmul.mubr.msk.bf16.vlgmr.msra.gmra.mrb[0].mxu0 %vm407_vm1, %v1841_v7  ;;  %1795 = vmatmul.mubr.msk.bf16.vlgmr.msra.gmra.mrb[0].mxu1 %vm407_vm1, %v1842_v8  ;;  %v1869_v35 = vld [vmem:[%s2738_s0 + $0x78] sm:$0xff]   ;;  %v89_v37 = vld [vmem:[#allocation2 + $0x10] sm:$0xff] }
  0x13   :  { %59 = vst.msk [vmem:[#allocation2 + $0x120] sm:$0xff] %vm22_vm0, %v1873_v1  ;;  %60 = vst.msk [vmem:[#allocation2 + $0x128] sm:$0xff] %vm22_vm0, %v1873_v1  ;;  %1766 = vmatprep.mubr.msk.bf16.mxu0 %vm407_vm1, %v1843_v9  ;;  %1798 = vmatprep.mubr.msk.bf16.mxu1 %vm407_vm1, %v1844_v10  ;;  %v1870_v36 = vld [vmem:[%s2738_s0 + $0xf8] sm:$0xff]   ;;  %v87_v39 = vld [vmem:[#allocation2] sm:$0xff] }
  0x14   :  { %61 = vst.msk [vmem:[#allocation2 + $0x130] sm:$0xff] %vm22_vm0, %v1873_v1  ;;  %62 = vst.msk [vmem:[#allocation2 + $0x138] sm:$0xff] %vm22_vm0, %v1873_v1  ;;  %v90_v43 = vld [vmem:[#allocation2 + $0x18] sm:$0xff]  ;;  %v88_v49 = vld [vmem:[#allocation2 + $0x8] sm:$0xff] }
  0x15   :  { %63 = vst.msk [vmem:[#allocation2 + $0x140] sm:$0xff] %vm22_vm0, %v1873_v1  ;;  %64 = vst.msk [vmem:[#allocation2 + $0x148] sm:$0xff] %vm22_vm0, %v1873_v1  ;;  %v93_v61 = vld [vmem:[#allocation2 + $0x30] sm:$0xff]  ;;  %v91_v63 = vld [vmem:[#allocation2 + $0x20] sm:$0xff] }
  0x16   :  { %65 = vst.msk [vmem:[#allocation2 + $0x150] sm:$0xff] %vm22_vm0, %v1873_v1  ;;  %66 = vst.msk [vmem:[#allocation2 + $0x158] sm:$0xff] %vm22_vm0, %v1873_v1  ;;  %v94_v4 = vld [vmem:[#allocation2 + $0x38] sm:$0xff]  ;;  %v2189_v6 = vld [vmem:[%s2740_s3] ss:$0 sm:$0xff] }
  0x17   :  { %67 = vst.msk [vmem:[#allocation2 + $0x160] sm:$0xff] %vm22_vm0, %v1873_v1  ;;  %68 = vst.msk [vmem:[#allocation2 + $0x168] sm:$0xff] %vm22_vm0, %v1873_v1 }
  0x18   :  { %69 = vst.msk [vmem:[#allocation2 + $0x170] sm:$0xff] %vm22_vm0, %v1873_v1  ;;  %70 = vst.msk [vmem:[#allocation2 + $0x178] sm:$0xff] %vm22_vm0, %v1873_v1  ;;  %v119_v40 = vld [vmem:[#allocation2 + $0x100] sm:$0xff]  ;;  %v120_v50 = vld [vmem:[#allocation2 + $0x108] sm:$0xff] }
  0x19   :  { %71 = vst.msk [vmem:[#allocation2 + $0x180] sm:$0xff] %vm22_vm0, %v1873_v1  ;;  %72 = vst.msk [vmem:[#allocation2 + $0x188] sm:$0xff] %vm22_vm0, %v1873_v1  ;;  %v121_v38 = vld [vmem:[#allocation2 + $0x110] sm:$0xff]  ;;  %v122_v44 = vld [vmem:[#allocation2 + $0x118] sm:$0xff] }
  0x1a   :  { %73 = vst.msk [vmem:[#allocation2 + $0x190] sm:$0xff] %vm22_vm0, %v1873_v1  ;;  %74 = vst.msk [vmem:[#allocation2 + $0x198] sm:$0xff] %vm22_vm0, %v1873_v1  ;;  %1767 = vmatmul.mubr.msk.bf16.gmra.mrb[4].mxu0 %vm407_vm1, %v1845_v11  ;;  %1799 = vmatmul.mubr.msk.bf16.gmra.mrb[4].mxu1 %vm407_vm1, %v1846_v12  ;;  %v123_v0 = vld [vmem:[#allocation2 + $0x120] sm:$0xff]  ;;  %v92_v11 = vld [vmem:[#allocation2 + $0x28] sm:$0xff] }
  0x1b   :  { %75 = vst.msk [vmem:[#allocation2 + $0x1a0] sm:$0xff] %vm22_vm0, %v1873_v1  ;;  %76 = vst.msk [vmem:[#allocation2 + $0x1a8] sm:$0xff] %vm22_vm0, %v1873_v1  ;;  %1770 = vmatprep.mubr.msk.bf16.mxu0 %vm407_vm1, %v1847_v13  ;;  %1802 = vmatprep.mubr.msk.bf16.mxu1 %vm407_vm1, %v1848_v14  ;;  %v125_v62 = vld [vmem:[#allocation2 + $0x130] sm:$0xff]  ;;  %v126_v5 = vld [vmem:[#allocation2 + $0x138] sm:$0xff] }
  0x1c   :  { %77 = vst.msk [vmem:[#allocation2 + $0x1b0] sm:$0xff] %vm22_vm0, %v1873_v1  ;;  %78 = vst.msk [vmem:[#allocation2 + $0x1b8] sm:$0xff] %vm22_vm0, %v1873_v1  ;;  %v124_v12 = vld [vmem:[#allocation2 + $0x128] sm:$0xff] }
  0x1d   :  { %79 = vst.msk [vmem:[#allocation2 + $0x1c0] sm:$0xff] %vm22_vm0, %v1873_v1  ;;  %80 = vst.msk [vmem:[#allocation2 + $0x1c8] sm:$0xff] %vm22_vm0, %v1873_v1 }
  0x1e   :  { %81 = vst.msk [vmem:[#allocation2 + $0x1d0] sm:$0xff] %vm22_vm0, %v1873_v1  ;;  %82 = vst.msk [vmem:[#allocation2 + $0x1d8] sm:$0xff] %vm22_vm0, %v1873_v1 }
  0x1f   :  { %83 = vst.msk [vmem:[#allocation2 + $0x1e0] sm:$0xff] %vm22_vm0, %v1873_v1  ;;  %84 = vst.msk [vmem:[#allocation2 + $0x1e8] sm:$0xff] %vm22_vm0, %v1873_v1 }
  0x20   :  { %85 = vst.msk [vmem:[#allocation2 + $0x1f0] sm:$0xff] %vm22_vm0, %v1873_v1  ;;  %86 = vst.msk [vmem:[#allocation2 + $0x1f8] sm:$0xff] %vm22_vm0, %v1873_v1  ;;  %v2184_v1 = vld [vmem:[%s2739_s2] ss:$0 sm:$0xff] }
  0x22   :  { %1771 = vmatmul.mubr.msk.bf16.gmra.mrb[8].mxu0 %vm407_vm1, %v1849_v15  ;;  %1803 = vmatmul.mubr.msk.bf16.gmra.mrb[8].mxu1 %vm407_vm1, %v1850_v16 }
  0x23   :  { %1774 = vmatprep.mubr.msk.bf16.mxu0 %vm407_vm1, %v1851_v17  ;;  %1806 = vmatprep.mubr.msk.bf16.mxu1 %vm407_vm1, %v1852_v18 }
  0x2a   :  { %1775 = vmatmul.mubr.msk.bf16.gmra.mrb[12].mxu0 %vm407_vm1, %v1853_v19  ;;  %1807 = vmatmul.mubr.msk.bf16.gmra.mrb[12].mxu1 %vm407_vm1, %v1854_v20 }
  0x2b   :  { %1778 = vmatprep.mubr.msk.bf16.mxu0 %vm407_vm1, %v1855_v21  ;;  %1810 = vmatprep.mubr.msk.bf16.mxu1 %vm407_vm1, %v1856_v22 }
  0x32   :  { %1779 = vmatmul.mubr.msk.bf16.gmra.mrb[16].mxu0 %vm407_vm1, %v1857_v23  ;;  %1811 = vmatmul.mubr.msk.bf16.gmra.mrb[16].mxu1 %vm407_vm1, %v1858_v24 }
  0x33   :  { %1782 = vmatprep.mubr.msk.bf16.mxu0 %vm407_vm1, %v1859_v25  ;;  %1814 = vmatprep.mubr.msk.bf16.mxu1 %vm407_vm1, %v1860_v26 }
  0x3a   :  { %1783 = vmatmul.mubr.msk.bf16.gmra.mrb[20].mxu0 %vm407_vm1, %v1861_v27  ;;  %1815 = vmatmul.mubr.msk.bf16.gmra.mrb[20].mxu1 %vm407_vm1, %v1862_v28 }
  0x3b   :  { %1786 = vmatprep.mubr.msk.bf16.mxu0 %vm407_vm1, %v1863_v29  ;;  %1818 = vmatprep.mubr.msk.bf16.mxu1 %vm407_vm1, %v1864_v30 }
  0x42   :  { %1787 = vmatmul.mubr.msk.bf16.gmra.mrb[24].mxu0 %vm407_vm1, %v1865_v31  ;;  %1819 = vmatmul.mubr.msk.bf16.gmra.mrb[24].mxu1 %vm407_vm1, %v1866_v32 }
  0x43   :  { %1790 = vmatprep.mubr.msk.bf16.mxu0 %vm407_vm1, %v1867_v33  ;;  %1822 = vmatprep.mubr.msk.bf16.mxu1 %vm407_vm1, %v1868_v34 }
  0x4a   :  { %1791 = vmatmul.mubr.msk.bf16.gmra.mrb[28].mxu0 %vm407_vm1, %v1869_v35  ;;  %1823 = vmatmul.mubr.msk.bf16.gmra.mrb[28].mxu1 %vm407_vm1, %v1870_v36 }
  0xe5   :  { %v1764_v41 = vpop.f32.mrb[0].mxu0  ;;  %v1796_v42 = vpop.f32.mrb[0].mxu1 }
  0xe6   :  { %v795_v45 = vadd.f32 %v1764_v41, %v89_v37  ;;  %v827_v46 = vadd.f32 %v1796_v42, %v121_v38  ;;  %v538_v47 = vpop.f32.mrb[1].mxu0  ;;  %v666_v48 = vpop.f32.mrb[1].mxu1 }
  0xe7   :  { %v793_v51 = vadd.f32 %v538_v47, %v87_v39  ;;  %v825_v52 = vadd.f32 %v666_v48, %v119_v40  ;;  %v1765_v53 = vpop.f32.mrb[2].mxu0  ;;  %v1797_v54 = vpop.f32.mrb[2].mxu1 }
  0xe8   :  { %860 = vst.msk [vmem:[#allocation2 + $0x10] sm:$0xff] %vm22_vm0, %v795_v45  ;;  %892 = vst.msk [vmem:[#allocation2 + $0x110] sm:$0xff] %vm22_vm0, %v827_v46  ;;  %v796_v55 = vadd.f32 %v1765_v53, %v90_v43  ;;  %v828_v56 = vadd.f32 %v1797_v54, %v122_v44  ;;  %v541_v57 = vpop.f32.mrb[3].mxu0  ;;  %v669_v58 = vpop.f32.mrb[3].mxu1 }
  0xe9   :  { %858 = vst.msk [vmem:[#allocation2] sm:$0xff] %vm22_vm0, %v793_v51  ;;  %890 = vst.msk [vmem:[#allocation2 + $0x100] sm:$0xff] %vm22_vm0, %v825_v52  ;;  %v794_v59 = vadd.f32 %v541_v57, %v88_v49  ;;  %v826_v60 = vadd.f32 %v669_v58, %v120_v50 }
  0xea   :  { %861 = vst.msk [vmem:[#allocation2 + $0x18] sm:$0xff] %vm22_vm0, %v796_v55  ;;  %893 = vst.msk [vmem:[#allocation2 + $0x118] sm:$0xff] %vm22_vm0, %v828_v56 }
  0xeb   :  { %859 = vst.msk [vmem:[#allocation2 + $0x8] sm:$0xff] %vm22_vm0, %v794_v59  ;;  %891 = vst.msk [vmem:[#allocation2 + $0x108] sm:$0xff] %vm22_vm0, %v826_v60 }
  0xed   :  { %v1768_v2 = vpop.f32.mrb[4].mxu0  ;;  %v1800_v3 = vpop.f32.mrb[4].mxu1 }
  0xee   :  { %v799_v7 = vadd.f32 %v1768_v2, %v93_v61  ;;  %v831_v8 = vadd.f32 %v1800_v3, %v125_v62  ;;  %v554_v9 = vpop.f32.mrb[5].mxu0  ;;  %v682_v10 = vpop.f32.mrb[5].mxu1 }
  0xef   :  { %v927_v13 = vld [vmem:[#allocation2 + $0x10] sm:$0xff]  ;;  %v797_v15 = vadd.f32 %v554_v9, %v91_v63  ;;  %v829_v16 = vadd.f32 %v682_v10, %v123_v0  ;;  %v1769_v17 = vpop.f32.mrb[6].mxu0  ;;  %v1801_v18 = vpop.f32.mrb[6].mxu1 }
  0xf0   :  { %v959_v14 = vld [vmem:[#allocation2 + $0x110] sm:$0xff]  ;;  %v998_v19 = vmul.f32 %v2184_v1, %v927_v13  ;;  %v925_v21 = vld [vmem:[#allocation2] sm:$0xff]  ;;  %864 = vst.msk [vmem:[#allocation2 + $0x30] sm:$0xff] %vm22_vm0, %v799_v7  ;;  %896 = vst.msk [vmem:[#allocation2 + $0x130] sm:$0xff] %vm22_vm0, %v831_v8  ;;  %v800_v23 = vadd.f32 %v1769_v17, %v94_v4  ;;  %v832_v24 = vadd.f32 %v1801_v18, %v126_v5  ;;  %v557_v25 = vpop.f32.mrb[7].mxu0  ;;  %v685_v26 = vpop.f32.mrb[7].mxu1 }
  0xf1   :  { %v1030_v20 = vmul.f32 %v2184_v1, %v959_v14  ;;  %v957_v22 = vld [vmem:[#allocation2 + $0x100] sm:$0xff]  ;;  %v996_v27 = vmul.f32 %v2184_v1, %v925_v21  ;;  %v928_v29 = vld [vmem:[#allocation2 + $0x18] sm:$0xff]  ;;  %862 = vst.msk [vmem:[#allocation2 + $0x20] sm:$0xff] %vm22_vm0, %v797_v15  ;;  %894 = vst.msk [vmem:[#allocation2 + $0x120] sm:$0xff] %vm22_vm0, %v829_v16  ;;  %v798_v31 = vadd.f32 %v557_v25, %v92_v11 }
  0xf2   :  { %v1028_v28 = vmul.f32 %v2184_v1, %v957_v22  ;;  %v960_v30 = vld [vmem:[#allocation2 + $0x118] sm:$0xff]  ;;  %v830_v32 = vadd.f32 %v685_v26, %v124_v12  ;;  %v1069_v33 = vadd.f32 %v2189_v6, %v998_v19  ;;  %v999_v35 = vmul.f32 %v2184_v1, %v928_v29  ;;  %v926_v37 = vld [vmem:[#allocation2 + $0x8] sm:$0xff]  ;;  %865 = vst.msk [vmem:[#allocation2 + $0x38] sm:$0xff] %vm22_vm0, %v800_v23  ;;  %v97_v29 = vld [vmem:[#allocation2 + $0x50] sm:$0xff] }
  0xf3   :  { %v1101_v34 = vadd.f32 %v2189_v6, %v1030_v20  ;;  %v1031_v36 = vmul.f32 %v2184_v1, %v960_v30  ;;  %v958_v38 = vld [vmem:[#allocation2 + $0x108] sm:$0xff]  ;;  %897 = vst.msk [vmem:[#allocation2 + $0x138] sm:$0xff] %vm22_vm0, %v832_v24  ;;  %v1067_v39 = vadd.f32 %v2189_v6, %v996_v27  ;;  %v997_v41 = vmul.f32 %v2184_v1, %v926_v37 }
  0xf4   :  { %v1099_v40 = vadd.f32 %v2189_v6, %v1028_v28  ;;  %v1029_v42 = vmul.f32 %v2184_v1, %v958_v38  ;;  %863 = vst.msk [vmem:[#allocation2 + $0x28] sm:$0xff] %vm22_vm0, %v798_v31  ;;  %895 = vst.msk [vmem:[#allocation2 + $0x128] sm:$0xff] %vm22_vm0, %v830_v32  ;;  %v1133_v43 = vmax.f32 %v1069_v33, 0.0  ;;  %v1070_v45 = vadd.f32 %v2189_v6, %v999_v35  ;;  %v95_v35 = vld [vmem:[#allocation2 + $0x40] sm:$0xff] }
  0xf5   :  { %v1165_v44 = vmax.f32 %v1101_v34, 0.0  ;;  %v1102_v46 = vadd.f32 %v2189_v6, %v1031_v36  ;;  %v1131_v47 = vmax.f32 %v1067_v39, 0.0  ;;  %v1068_v49 = vadd.f32 %v2189_v6, %v997_v41  ;;  %v2215_v51 = vpop.f32.mrb[8].mxu0  ;;  %v2217_v52 = vpop.f32.mrb[8].mxu1  ;;  %v129_v34 = vld [vmem:[#allocation2 + $0x150] sm:$0xff]  ;;  %v127_v36 = vld [vmem:[#allocation2 + $0x140] sm:$0xff] }
  0xf6   :  { %v1163_v48 = vmax.f32 %v1099_v40, 0.0  ;;  %v1100_v50 = vadd.f32 %v2189_v6, %v1029_v42  ;;  %v1656_v53 = vpack.c.bf16 %v1133_v43, %v1133_v43  ;;  %v1134_v55 = vmax.f32 %v1070_v45, 0.0  ;;  %v2219_v57 = vpop.f32.mrb[9].mxu0  ;;  %v2221_v58 = vpop.f32.mrb[9].mxu1  ;;  %v98_v41 = vld [vmem:[#allocation2 + $0x58] sm:$0xff] }
  0xf7   :  { %v1688_v54 = vpack.c.bf16 %v1165_v44, %v1165_v44  ;;  %v1166_v56 = vmax.f32 %v1102_v46, 0.0  ;;  %v1654_v59 = vpack.c.bf16 %v1131_v47, %v1131_v47  ;;  %v1132_v61 = vmax.f32 %v1068_v49, 0.0  ;;  %v931_v63 = vld [vmem:[#allocation2 + $0x30] sm:$0xff]  ;;  %v2223_v2 = vpop.f32.mrb[10].mxu0  ;;  %v2225_v3 = vpop.f32.mrb[10].mxu1  ;;  %v130_v42 = vld [vmem:[#allocation2 + $0x158] sm:$0xff] }
  0xf8   :  { %v1686_v60 = vpack.c.bf16 %v1163_v48, %v1163_v48  ;;  %v1164_v62 = vmax.f32 %v1100_v50, 0.0  ;;  %v963_v0 = vld [vmem:[#allocation2 + $0x130] sm:$0xff]  ;;  %1454 = vst.msk [vmem:[%s2741_s4 + $0x8] sm:$0xf] %vm1451_vm2, %v1656_v53  ;;  %v1657_v4 = vpack.c.bf16 %v1134_v55, %v1134_v55  ;;  %v1002_v7 = vmul.f32 %v2184_v1, %v931_v63  ;;  %v929_v9 = vld [vmem:[#allocation2 + $0x20] sm:$0xff]  ;;  %v2237_v11 = vpop.f32.mrb[11].mxu0 }
  0xf9   :  { %1486 = vst.msk [vmem:[%s2741_s4 + $0x88] sm:$0xf] %vm1451_vm2, %v1688_v54  ;;  %v1689_v5 = vpack.c.bf16 %v1166_v56, %v1166_v56  ;;  %v1034_v8 = vmul.f32 %v2184_v1, %v963_v0  ;;  %v961_v10 = vld [vmem:[#allocation2 + $0x120] sm:$0xff]  ;;  %v2239_v12 = vpop.f32.mrb[11].mxu1  ;;  %1452 = vst.msk [vmem:[%s2741_s4] sm:$0xf] %vm1451_vm2, %v1654_v59  ;;  %v1655_v13 = vpack.c.bf16 %v1132_v61, %v1132_v61 }
  0xfa   :  { %1484 = vst.msk [vmem:[%s2741_s4 + $0x80] sm:$0xf] %vm1451_vm2, %v1686_v60  ;;  %v1687_v14 = vpack.c.bf16 %v1164_v62, %v1164_v62  ;;  %v1000_v15 = vmul.f32 %v2184_v1, %v929_v9  ;;  %v1032_v16 = vmul.f32 %v2184_v1, %v961_v10  ;;  %v932_v17 = vld [vmem:[#allocation2 + $0x38] sm:$0xff]  ;;  %1455 = vst.msk [vmem:[%s2741_s4 + $0xc] sm:$0xf] %vm1451_vm2, %v1657_v4  ;;  %v96_v49 = vld [vmem:[#allocation2 + $0x48] sm:$0xff] }
  0xfb   :  { %v964_v18 = vld [vmem:[#allocation2 + $0x138] sm:$0xff]  ;;  %1487 = vst.msk [vmem:[%s2741_s4 + $0x8c] sm:$0xf] %vm1451_vm2, %v1689_v5  ;;  %v1073_v19 = vadd.f32 %v2189_v6, %v1002_v7  ;;  %v1105_v20 = vadd.f32 %v2189_v6, %v1034_v8  ;;  %v1003_v21 = vmul.f32 %v2184_v1, %v932_v17  ;;  %v930_v23 = vld [vmem:[#allocation2 + $0x28] sm:$0xff]  ;;  %1453 = vst.msk [vmem:[%s2741_s4 + $0x4] sm:$0xf] %vm1451_vm2, %v1655_v13 }
  0xfc   :  { %v1035_v22 = vmul.f32 %v2184_v1, %v964_v18  ;;  %v962_v24 = vld [vmem:[#allocation2 + $0x128] sm:$0xff]  ;;  %1485 = vst.msk [vmem:[%s2741_s4 + $0x84] sm:$0xf] %vm1451_vm2, %v1687_v14  ;;  %v1071_v25 = vadd.f32 %v2189_v6, %v1000_v15  ;;  %v1103_v26 = vadd.f32 %v2189_v6, %v1032_v16  ;;  %v1001_v27 = vmul.f32 %v2184_v1, %v930_v23  ;;  %v101_v61 = vld [vmem:[#allocation2 + $0x70] sm:$0xff]  ;;  %v99_v9 = vld [vmem:[#allocation2 + $0x60] sm:$0xff] }
  0xfd   :  { %v1033_v28 = vmul.f32 %v2184_v1, %v962_v24  ;;  %v1137_v30 = vmax.f32 %v1073_v19, 0.0  ;;  %v1169_v31 = vmax.f32 %v1105_v20, 0.0  ;;  %v1074_v32 = vadd.f32 %v2189_v6, %v1003_v21  ;;  %v1776_v43 = vpop.f32.mrb[12].mxu0  ;;  %v1808_v44 = vpop.f32.mrb[12].mxu1  ;;  %v128_v50 = vld [vmem:[#allocation2 + $0x148] sm:$0xff]  ;;  %v133_v62 = vld [vmem:[#allocation2 + $0x170] sm:$0xff] }
  0xfe   :  { %v1106_v33 = vadd.f32 %v2189_v6, %v1035_v22  ;;  %v1135_v37 = vmax.f32 %v1071_v25, 0.0  ;;  %v1167_v38 = vmax.f32 %v1103_v26, 0.0  ;;  %v1072_v39 = vadd.f32 %v2189_v6, %v1001_v27  ;;  %v586_v53 = vpop.f32.mrb[13].mxu0  ;;  %v714_v54 = vpop.f32.mrb[13].mxu1  ;;  %v131_v10 = vld [vmem:[#allocation2 + $0x160] sm:$0xff]  ;;  %v102_v13 = vld [vmem:[#allocation2 + $0x78] sm:$0xff] }
  0xff   :  { %v1104_v40 = vadd.f32 %v2189_v6, %v1033_v28  ;;  %v1660_v45 = vpack.c.bf16 %v1137_v30, %v1137_v30  ;;  %v1692_v46 = vpack.c.bf16 %v1169_v31, %v1169_v31  ;;  %v1138_v47 = vmax.f32 %v1074_v32, 0.0  ;;  %v1777_v63 = vpop.f32.mrb[14].mxu0  ;;  %v1809_v0 = vpop.f32.mrb[14].mxu1  ;;  %v134_v18 = vld [vmem:[#allocation2 + $0x178] sm:$0xff]  ;;  %v100_v19 = vld [vmem:[#allocation2 + $0x68] sm:$0xff]  ;;  %v105_v24 = vld [vmem:[#allocation2 + $0x90] sm:$0xff] }
 0x100   :  { %v1170_v48 = vmax.f32 %v1106_v33, 0.0  ;;  %v1658_v55 = vpack.c.bf16 %v1135_v37, %v1135_v37  ;;  %v1690_v56 = vpack.c.bf16 %v1167_v38, %v1167_v38  ;;  %v1136_v59 = vmax.f32 %v1072_v39, 0.0  ;;  %v589_v14 = vpop.f32.mrb[15].mxu0  ;;  %v717_v15 = vpop.f32.mrb[15].mxu1  ;;  %v132_v20 = vld [vmem:[#allocation2 + $0x168] sm:$0xff]  ;;  %v135_v30 = vld [vmem:[#allocation2 + $0x180] sm:$0xff] }
 0x101   :  { %v1168_v60 = vmax.f32 %v1104_v40, 0.0  ;;  %1458 = vst.msk [vmem:[%s2741_s4 + $0x18] sm:$0xf] %vm1451_vm2, %v1660_v45  ;;  %1490 = vst.msk [vmem:[%s2741_s4 + $0x98] sm:$0xf] %vm1451_vm2, %v1692_v46  ;;  %v1661_v4 = vpack.c.bf16 %v1138_v47, %v1138_v47  ;;  %v803_v7 = vadd.f32 %v2215_v51, %v97_v29  ;;  %v835_v8 = vadd.f32 %v2217_v52, %v129_v34  ;;  %v103_v29 = vld [vmem:[#allocation2 + $0x80] sm:$0xff] }
 0x102   :  { %v1693_v5 = vpack.c.bf16 %v1170_v48, %v1170_v48  ;;  %1456 = vst.msk [vmem:[%s2741_s4 + $0x10] sm:$0xf] %vm1451_vm2, %v1658_v55  ;;  %1488 = vst.msk [vmem:[%s2741_s4 + $0x90] sm:$0xf] %vm1451_vm2, %v1690_v56  ;;  %v1659_v16 = vpack.c.bf16 %v1136_v59, %v1136_v59  ;;  %v801_v51 = vadd.f32 %v2219_v57, %v95_v35  ;;  %v106_v33 = vld [vmem:[#allocation2 + $0x98] sm:$0xff]  ;;  %v104_v39 = vld [vmem:[#allocation2 + $0x88] sm:$0xff] }
 0x103   :  { %v1691_v17 = vpack.c.bf16 %v1168_v60, %v1168_v60  ;;  %v833_v52 = vadd.f32 %v2221_v58, %v127_v36  ;;  %1459 = vst.msk [vmem:[%s2741_s4 + $0x1c] sm:$0xf] %vm1451_vm2, %v1661_v4  ;;  %v804_v57 = vadd.f32 %v2223_v2, %v98_v41  ;;  %v836_v58 = vadd.f32 %v2225_v3, %v130_v42  ;;  %v138_v34 = vld [vmem:[#allocation2 + $0x198] sm:$0xff]  ;;  %v136_v40 = vld [vmem:[#allocation2 + $0x188] sm:$0xff] }
 0x104   :  { %1491 = vst.msk [vmem:[%s2741_s4 + $0x9c] sm:$0xf] %vm1451_vm2, %v1693_v5  ;;  %v802_v21 = vadd.f32 %v2237_v11, %v96_v49  ;;  %v834_v22 = vadd.f32 %v2239_v12, %v128_v50  ;;  %1457 = vst.msk [vmem:[%s2741_s4 + $0x14] sm:$0xf] %vm1451_vm2, %v1659_v16  ;;  %v807_v2 = vadd.f32 %v1776_v43, %v101_v61  ;;  %v137_v12 = vld [vmem:[#allocation2 + $0x190] sm:$0xff] }
 0x105   :  { %868 = vst.msk [vmem:[#allocation2 + $0x50] sm:$0xff] %vm22_vm0, %v803_v7  ;;  %900 = vst.msk [vmem:[#allocation2 + $0x150] sm:$0xff] %vm22_vm0, %v835_v8  ;;  %v839_v3 = vadd.f32 %v1808_v44, %v133_v62  ;;  %v805_v23 = vadd.f32 %v586_v53, %v99_v9  ;;  %v837_v11 = vadd.f32 %v714_v54, %v131_v10  ;;  %v1780_v31 = vpop.f32.mrb[16].mxu0  ;;  %v1812_v32 = vpop.f32.mrb[16].mxu1 }
 0x106   :  { %1489 = vst.msk [vmem:[%s2741_s4 + $0x94] sm:$0xf] %vm1451_vm2, %v1691_v17  ;;  %v808_v25 = vadd.f32 %v1777_v63, %v102_v13  ;;  %v840_v26 = vadd.f32 %v1809_v0, %v134_v18  ;;  %v806_v27 = vadd.f32 %v589_v14, %v100_v19  ;;  %v838_v28 = vadd.f32 %v717_v15, %v132_v20  ;;  %v602_v37 = vpop.f32.mrb[17].mxu0  ;;  %v730_v38 = vpop.f32.mrb[17].mxu1 }
 0x107   :  { %866 = vst.msk [vmem:[#allocation2 + $0x40] sm:$0xff] %vm22_vm0, %v801_v51  ;;  %898 = vst.msk [vmem:[#allocation2 + $0x140] sm:$0xff] %vm22_vm0, %v833_v52  ;;  %v811_v35 = vadd.f32 %v1780_v31, %v105_v24  ;;  %v843_v36 = vadd.f32 %v1812_v32, %v137_v12  ;;  %v809_v41 = vadd.f32 %v602_v37, %v103_v29  ;;  %v1781_v43 = vpop.f32.mrb[18].mxu0  ;;  %v1813_v44 = vpop.f32.mrb[18].mxu1 }
 0x108   :  { %869 = vst.msk [vmem:[#allocation2 + $0x58] sm:$0xff] %vm22_vm0, %v804_v57  ;;  %901 = vst.msk [vmem:[#allocation2 + $0x158] sm:$0xff] %vm22_vm0, %v836_v58  ;;  %v841_v42 = vadd.f32 %v730_v38, %v135_v30  ;;  %v812_v45 = vadd.f32 %v1781_v43, %v106_v33  ;;  %v844_v46 = vadd.f32 %v1813_v44, %v138_v34  ;;  %v605_v47 = vpop.f32.mrb[19].mxu0  ;;  %v733_v48 = vpop.f32.mrb[19].mxu1 }
 0x109   :  { %867 = vst.msk [vmem:[#allocation2 + $0x48] sm:$0xff] %vm22_vm0, %v802_v21  ;;  %899 = vst.msk [vmem:[#allocation2 + $0x148] sm:$0xff] %vm22_vm0, %v834_v22  ;;  %v810_v53 = vadd.f32 %v605_v47, %v104_v39  ;;  %v842_v54 = vadd.f32 %v733_v48, %v136_v40 }
 0x10a   :  { %872 = vst.msk [vmem:[#allocation2 + $0x70] sm:$0xff] %vm22_vm0, %v807_v2  ;;  %904 = vst.msk [vmem:[#allocation2 + $0x170] sm:$0xff] %vm22_vm0, %v839_v3 }
 0x10b   :  { %870 = vst.msk [vmem:[#allocation2 + $0x60] sm:$0xff] %vm22_vm0, %v805_v23  ;;  %902 = vst.msk [vmem:[#allocation2 + $0x160] sm:$0xff] %vm22_vm0, %v837_v11 }
 0x10c   :  { %873 = vst.msk [vmem:[#allocation2 + $0x78] sm:$0xff] %vm22_vm0, %v808_v25  ;;  %905 = vst.msk [vmem:[#allocation2 + $0x178] sm:$0xff] %vm22_vm0, %v840_v26  ;;  %v935_v49 = vld [vmem:[#allocation2 + $0x50] sm:$0xff] }
 0x10d   :  { %871 = vst.msk [vmem:[#allocation2 + $0x68] sm:$0xff] %vm22_vm0, %v806_v27  ;;  %903 = vst.msk [vmem:[#allocation2 + $0x168] sm:$0xff] %vm22_vm0, %v838_v28  ;;  %v967_v50 = vld [vmem:[#allocation2 + $0x150] sm:$0xff]  ;;  %v1006_v55 = vmul.f32 %v2184_v1, %v935_v49  ;;  %v2355_v17 = vpop.f32.mrb[20].mxu0  ;;  %v2357_v51 = vpop.f32.mrb[20].mxu1 }
 0x10e   :  { %876 = vst.msk [vmem:[#allocation2 + $0x90] sm:$0xff] %vm22_vm0, %v811_v35  ;;  %908 = vst.msk [vmem:[#allocation2 + $0x190] sm:$0xff] %vm22_vm0, %v843_v36  ;;  %v1038_v56 = vmul.f32 %v2184_v1, %v967_v50  ;;  %v933_v59 = vld [vmem:[#allocation2 + $0x40] sm:$0xff]  ;;  %v2361_v57 = vpop.f32.mrb[21].mxu0  ;;  %v2365_v11 = vpop.f32.mrb[21].mxu1 }
 0x10f   :  { %874 = vst.msk [vmem:[#allocation2 + $0x80] sm:$0xff] %vm22_vm0, %v809_v41  ;;  %906 = vst.msk [vmem:[#allocation2 + $0x180] sm:$0xff] %vm22_vm0, %v841_v42  ;;  %v965_v60 = vld [vmem:[#allocation2 + $0x140] sm:$0xff]  ;;  %v1004_v61 = vmul.f32 %v2184_v1, %v933_v59  ;;  %v936_v63 = vld [vmem:[#allocation2 + $0x58] sm:$0xff]  ;;  %v1077_v5 = vadd.f32 %v2189_v6, %v1006_v55  ;;  %v2367_v24 = vpop.f32.mrb[22].mxu0  ;;  %v2369_v30 = vpop.f32.mrb[22].mxu1 }
 0x110   :  { %877 = vst.msk [vmem:[#allocation2 + $0x98] sm:$0xff] %vm22_vm0, %v812_v45  ;;  %909 = vst.msk [vmem:[#allocation2 + $0x198] sm:$0xff] %vm22_vm0, %v844_v46  ;;  %v1036_v62 = vmul.f32 %v2184_v1, %v965_v60  ;;  %v968_v0 = vld [vmem:[#allocation2 + $0x158] sm:$0xff]  ;;  %v934_v4 = vld [vmem:[#allocation2 + $0x48] sm:$0xff]  ;;  %v1109_v7 = vadd.f32 %v2189_v6, %v1038_v56  ;;  %v1007_v8 = vmul.f32 %v2184_v1, %v936_v63  ;;  %v2371_v31 = vpop.f32.mrb[23].mxu0  ;;  %v2373_v38 = vpop.f32.mrb[23].mxu1 }
 0x111   :  { %875 = vst.msk [vmem:[#allocation2 + $0x88] sm:$0xff] %vm22_vm0, %v810_v53  ;;  %907 = vst.msk [vmem:[#allocation2 + $0x188] sm:$0xff] %vm22_vm0, %v842_v54  ;;  %v1039_v9 = vmul.f32 %v2184_v1, %v968_v0  ;;  %v966_v10 = vld [vmem:[#allocation2 + $0x148] sm:$0xff]  ;;  %v1075_v13 = vadd.f32 %v2189_v6, %v1004_v61  ;;  %v1005_v15 = vmul.f32 %v2184_v1, %v934_v4  ;;  %v1141_v52 = vmax.f32 %v1077_v5, 0.0  ;;  %v939_v3 = vld [vmem:[#allocation2 + $0x70] sm:$0xff] }
 0x112   :  { %v1107_v14 = vadd.f32 %v2189_v6, %v1036_v62  ;;  %v1037_v16 = vmul.f32 %v2184_v1, %v966_v10  ;;  %v1173_v18 = vmax.f32 %v1109_v7, 0.0  ;;  %v1078_v19 = vadd.f32 %v2189_v6, %v1007_v8  ;;  %v971_v23 = vld [vmem:[#allocation2 + $0x170] sm:$0xff]  ;;  %v937_v28 = vld [vmem:[#allocation2 + $0x60] sm:$0xff] }
 0x113   :  { %v1110_v20 = vadd.f32 %v2189_v6, %v1039_v9  ;;  %v1139_v58 = vmax.f32 %v1075_v13, 0.0  ;;  %v1076_v22 = vadd.f32 %v2189_v6, %v1005_v15  ;;  %v1664_v12 = vpack.c.bf16 %v1141_v52, %v1141_v52  ;;  %v969_v29 = vld [vmem:[#allocation2 + $0x160] sm:$0xff]  ;;  %v940_v36 = vld [vmem:[#allocation2 + $0x78] sm:$0xff] }
 0x114   :  { %v1171_v21 = vmax.f32 %v1107_v14, 0.0  ;;  %v1108_v2 = vadd.f32 %v2189_v6, %v1037_v16  ;;  %v1696_v25 = vpack.c.bf16 %v1173_v18, %v1173_v18  ;;  %v1142_v26 = vmax.f32 %v1078_v19, 0.0  ;;  %v972_v37 = vld [vmem:[#allocation2 + $0x178] sm:$0xff]  ;;  %v938_v43 = vld [vmem:[#allocation2 + $0x68] sm:$0xff] }
 0x115   :  { %v1174_v27 = vmax.f32 %v1110_v20, 0.0  ;;  %v1662_v32 = vpack.c.bf16 %v1139_v58, %v1139_v58  ;;  %v1140_v34 = vmax.f32 %v1076_v22, 0.0  ;;  %1462 = vst.msk [vmem:[%s2741_s4 + $0x28] sm:$0xf] %vm1451_vm2, %v1664_v12  ;;  %v1010_v41 = vmul.f32 %v2184_v1, %v939_v3  ;;  %v970_v44 = vld [vmem:[#allocation2 + $0x168] sm:$0xff]  ;;  %v2419_v61 = vpop.f32.mrb[24].mxu0 }
 0x116   :  { %v1694_v33 = vpack.c.bf16 %v1171_v21, %v1171_v21  ;;  %v1172_v35 = vmax.f32 %v1108_v2, 0.0  ;;  %1494 = vst.msk [vmem:[%s2741_s4 + $0xa8] sm:$0xf] %vm1451_vm2, %v1696_v25  ;;  %v1665_v39 = vpack.c.bf16 %v1142_v26, %v1142_v26  ;;  %v1042_v42 = vmul.f32 %v2184_v1, %v971_v23  ;;  %v2421_v62 = vpop.f32.mrb[24].mxu1  ;;  %v2425_v7 = vpop.f32.mrb[25].mxu0  ;;  %v943_v15 = vld [vmem:[#allocation2 + $0x90] sm:$0xff] }
 0x117   :  { %v1697_v40 = vpack.c.bf16 %v1174_v27, %v1174_v27  ;;  %1460 = vst.msk [vmem:[%s2741_s4 + $0x20] sm:$0xf] %vm1451_vm2, %v1662_v32  ;;  %v1663_v45 = vpack.c.bf16 %v1140_v34, %v1140_v34  ;;  %v1008_v47 = vmul.f32 %v2184_v1, %v937_v28  ;;  %v1040_v48 = vmul.f32 %v2184_v1, %v969_v29  ;;  %v2427_v8 = vpop.f32.mrb[25].mxu1  ;;  %v975_v16 = vld [vmem:[#allocation2 + $0x190] sm:$0xff]  ;;  %v2431_v52 = vpop.f32.mrb[26].mxu0  ;;  %v941_v22 = vld [vmem:[#allocation2 + $0x80] sm:$0xff] }
 0x118   :  { %1492 = vst.msk [vmem:[%s2741_s4 + $0xa0] sm:$0xf] %vm1451_vm2, %v1694_v33  ;;  %v1695_v46 = vpack.c.bf16 %v1172_v35, %v1172_v35  ;;  %1463 = vst.msk [vmem:[%s2741_s4 + $0x2c] sm:$0xf] %vm1451_vm2, %v1665_v39  ;;  %v1081_v49 = vadd.f32 %v2189_v6, %v1010_v41  ;;  %v1113_v50 = vadd.f32 %v2189_v6, %v1042_v42  ;;  %v2433_v18 = vpop.f32.mrb[26].mxu1  ;;  %v973_v2 = vld [vmem:[#allocation2 + $0x180] sm:$0xff] }
 0x119   :  { %1495 = vst.msk [vmem:[%s2741_s4 + $0xac] sm:$0xf] %vm1451_vm2, %v1697_v40  ;;  %v1011_v53 = vmul.f32 %v2184_v1, %v940_v36  ;;  %v1043_v54 = vmul.f32 %v2184_v1, %v972_v37  ;;  %1461 = vst.msk [vmem:[%s2741_s4 + $0x24] sm:$0xf] %vm1451_vm2, %v1663_v45  ;;  %v1079_v55 = vadd.f32 %v2189_v6, %v1008_v47  ;;  %v2435_v3 = vpop.f32.mrb[27].mxu0  ;;  %v2437_v23 = vpop.f32.mrb[27].mxu1 }
 0x11a   :  { %1493 = vst.msk [vmem:[%s2741_s4 + $0xa4] sm:$0xf] %vm1451_vm2, %v1695_v46  ;;  %v1111_v56 = vadd.f32 %v2189_v6, %v1040_v48  ;;  %v1009_v59 = vmul.f32 %v2184_v1, %v938_v43  ;;  %v1041_v60 = vmul.f32 %v2184_v1, %v970_v44  ;;  %v1145_v63 = vmax.f32 %v1081_v49, 0.0  ;;  %v944_v28 = vld [vmem:[#allocation2 + $0x98] sm:$0xff]  ;;  %v942_v36 = vld [vmem:[#allocation2 + $0x88] sm:$0xff] }
 0x11b   :  { %v1177_v0 = vmax.f32 %v1113_v50, 0.0  ;;  %v1082_v4 = vadd.f32 %v2189_v6, %v1011_v53  ;;  %v1114_v5 = vadd.f32 %v2189_v6, %v1043_v54  ;;  %v1143_v9 = vmax.f32 %v1079_v55, 0.0  ;;  %v976_v29 = vld [vmem:[#allocation2 + $0x198] sm:$0xff]  ;;  %v974_v37 = vld [vmem:[#allocation2 + $0x188] sm:$0xff]  ;;  %v109_v53 = vld [vmem:[#allocation2 + $0xb0] sm:$0xff] }
 0x11c   :  { %v1175_v10 = vmax.f32 %v1111_v56, 0.0  ;;  %v1080_v13 = vadd.f32 %v2189_v6, %v1009_v59  ;;  %v1112_v14 = vadd.f32 %v2189_v6, %v1041_v60  ;;  %v1668_v19 = vpack.c.bf16 %v1145_v63, %v1145_v63  ;;  %v141_v54 = vld [vmem:[#allocation2 + $0x1b0] sm:$0xff] }
 0x11d   :  { %v1700_v20 = vpack.c.bf16 %v1177_v0, %v1177_v0  ;;  %v1146_v58 = vmax.f32 %v1082_v4, 0.0  ;;  %v1178_v21 = vmax.f32 %v1114_v5, 0.0  ;;  %v1666_v12 = vpack.c.bf16 %v1143_v9, %v1143_v9  ;;  %v2483_v55 = vpop.f32.mrb[28].mxu0  ;;  %v2485_v56 = vpop.f32.mrb[28].mxu1  ;;  %v107_v4 = vld [vmem:[#allocation2 + $0xa0] sm:$0xff] }
 0x11e   :  { %v1698_v25 = vpack.c.bf16 %v1175_v10, %v1175_v10  ;;  %v1144_v26 = vmax.f32 %v1080_v13, 0.0  ;;  %v1176_v27 = vmax.f32 %v1112_v14, 0.0  ;;  %1466 = vst.msk [vmem:[%s2741_s4 + $0x38] sm:$0xf] %vm1451_vm2, %v1668_v19  ;;  %v1014_v34 = vmul.f32 %v2184_v1, %v943_v15  ;;  %v139_v5 = vld [vmem:[#allocation2 + $0x1a0] sm:$0xff]  ;;  %v2489_v9 = vpop.f32.mrb[29].mxu0 }
 0x11f   :  { %1498 = vst.msk [vmem:[%s2741_s4 + $0xb8] sm:$0xf] %vm1451_vm2, %v1700_v20  ;;  %v1669_v32 = vpack.c.bf16 %v1146_v58, %v1146_v58  ;;  %v1701_v33 = vpack.c.bf16 %v1178_v21, %v1178_v21  ;;  %v1046_v35 = vmul.f32 %v2184_v1, %v975_v16  ;;  %1464 = vst.msk [vmem:[%s2741_s4 + $0x30] sm:$0xf] %vm1451_vm2, %v1666_v12  ;;  %v2491_v10 = vpop.f32.mrb[29].mxu1  ;;  %v110_v19 = vld [vmem:[#allocation2 + $0xb8] sm:$0xff] }
 0x120   :  { %1496 = vst.msk [vmem:[%s2741_s4 + $0xb0] sm:$0xf] %vm1451_vm2, %v1698_v25  ;;  %v1667_v39 = vpack.c.bf16 %v1144_v26, %v1144_v26  ;;  %v1699_v40 = vpack.c.bf16 %v1176_v27, %v1176_v27  ;;  %v1012_v41 = vmul.f32 %v2184_v1, %v941_v22  ;;  %v1044_v42 = vmul.f32 %v2184_v1, %v973_v2  ;;  %v142_v20 = vld [vmem:[#allocation2 + $0x1b8] sm:$0xff]  ;;  %v108_v58 = vld [vmem:[#allocation2 + $0xa8] sm:$0xff]  ;;  %v2495_v21 = vpop.f32.mrb[30].mxu0  ;;  %v2497_v22 = vpop.f32.mrb[30].mxu1 }
 0x121   :  { %1467 = vst.msk [vmem:[%s2741_s4 + $0x3c] sm:$0xf] %vm1451_vm2, %v1669_v32  ;;  %1499 = vst.msk [vmem:[%s2741_s4 + $0xbc] sm:$0xf] %vm1451_vm2, %v1701_v33  ;;  %v1085_v43 = vadd.f32 %v2189_v6, %v1014_v34  ;;  %v1117_v44 = vadd.f32 %v2189_v6, %v1046_v35  ;;  %v1015_v45 = vmul.f32 %v2184_v1, %v944_v28  ;;  %v140_v27 = vld [vmem:[#allocation2 + $0x1a8] sm:$0xff]  ;;  %v113_v28 = vld [vmem:[#allocation2 + $0xd0] sm:$0xff] }
 0x122   :  { %v1047_v46 = vmul.f32 %v2184_v1, %v976_v29  ;;  %1465 = vst.msk [vmem:[%s2741_s4 + $0x34] sm:$0xf] %vm1451_vm2, %v1667_v39  ;;  %1497 = vst.msk [vmem:[%s2741_s4 + $0xb4] sm:$0xf] %vm1451_vm2, %v1699_v40  ;;  %v1083_v47 = vadd.f32 %v2189_v6, %v1012_v41  ;;  %v1115_v48 = vadd.f32 %v2189_v6, %v1044_v42  ;;  %v2499_v29 = vpop.f32.mrb[31].mxu0  ;;  %v2501_v32 = vpop.f32.mrb[31].mxu1 }
 0x123   :  { %v1013_v49 = vmul.f32 %v2184_v1, %v942_v36  ;;  %v1045_v50 = vmul.f32 %v2184_v1, %v974_v37  ;;  %v1149_v59 = vmax.f32 %v1085_v43, 0.0  ;;  %v1181_v60 = vmax.f32 %v1117_v44, 0.0  ;;  %v145_v37 = vld [vmem:[#allocation2 + $0x1d0] sm:$0xff]  ;;  %v111_v39 = vld [vmem:[#allocation2 + $0xc0] sm:$0xff] }
 0x124   :  { %v1086_v63 = vadd.f32 %v2189_v6, %v1015_v45  ;;  %v1118_v0 = vadd.f32 %v2189_v6, %v1047_v46  ;;  %v1147_v13 = vmax.f32 %v1083_v47, 0.0  ;;  %v1179_v14 = vmax.f32 %v1115_v48, 0.0  ;;  %v143_v40 = vld [vmem:[#allocation2 + $0x1c0] sm:$0xff]  ;;  %v114_v45 = vld [vmem:[#allocation2 + $0xd8] sm:$0xff]  ;;  %v112_v47 = vld [vmem:[#allocation2 + $0xc8] sm:$0xff] }
 0x125   :  { %v1084_v15 = vadd.f32 %v2189_v6, %v1013_v49  ;;  %v1116_v16 = vadd.f32 %v2189_v6, %v1045_v50  ;;  %v1672_v2 = vpack.c.bf16 %v1149_v59, %v1149_v59  ;;  %v1704_v12 = vpack.c.bf16 %v1181_v60, %v1181_v60  ;;  %v146_v46 = vld [vmem:[#allocation2 + $0x1d8] sm:$0xff] }
 0x126   :  { %v1150_v25 = vmax.f32 %v1086_v63, 0.0  ;;  %v1182_v26 = vmax.f32 %v1118_v0, 0.0  ;;  %v1670_v33 = vpack.c.bf16 %v1147_v13, %v1147_v13  ;;  %v1702_v34 = vpack.c.bf16 %v1179_v14, %v1179_v14  ;;  %v115_v63 = vld [vmem:[#allocation2 + $0xe0] sm:$0xff]  ;;  %v116_v13 = vld [vmem:[#allocation2 + $0xe8] sm:$0xff] }
 0x127   :  { %v1148_v35 = vmax.f32 %v1084_v15, 0.0  ;;  %v1180_v36 = vmax.f32 %v1116_v16, 0.0  ;;  %1470 = vst.msk [vmem:[%s2741_s4 + $0x48] sm:$0xf] %vm1451_vm2, %v1672_v2  ;;  %1502 = vst.msk [vmem:[%s2741_s4 + $0xc8] sm:$0xf] %vm1451_vm2, %v1704_v12  ;;  %v815_v43 = vadd.f32 %v2355_v17, %v109_v53  ;;  %v847_v44 = vadd.f32 %v2357_v51, %v141_v54 }
 0x128   :  { %v1673_v41 = vpack.c.bf16 %v1150_v25, %v1150_v25  ;;  %v1705_v42 = vpack.c.bf16 %v1182_v26, %v1182_v26  ;;  %1468 = vst.msk [vmem:[%s2741_s4 + $0x40] sm:$0xf] %vm1451_vm2, %v1670_v33  ;;  %1500 = vst.msk [vmem:[%s2741_s4 + $0xc0] sm:$0xf] %vm1451_vm2, %v1702_v34  ;;  %v813_v50 = vadd.f32 %v2361_v57, %v107_v4  ;;  %v144_v51 = vld [vmem:[#allocation2 + $0x1c8] sm:$0xff]  ;;  %v117_v53 = vld [vmem:[#allocation2 + $0xf0] sm:$0xff] }
 0x129   :  { %v1671_v48 = vpack.c.bf16 %v1148_v35, %v1148_v35  ;;  %v1703_v49 = vpack.c.bf16 %v1180_v36, %v1180_v36  ;;  %v845_v17 = vadd.f32 %v2365_v11, %v139_v5  ;;  %v149_v54 = vld [vmem:[#allocation2 + $0x1f0] sm:$0xff]  ;;  %880 = vst.msk [vmem:[#allocation2 + $0xb0] sm:$0xff] %vm22_vm0, %v815_v43  ;;  %912 = vst.msk [vmem:[#allocation2 + $0x1b0] sm:$0xff] %vm22_vm0, %v847_v44  ;;  %v147_v0 = vld [vmem:[#allocation2 + $0x1e0] sm:$0xff] }
 0x12a   :  { %1471 = vst.msk [vmem:[%s2741_s4 + $0x4c] sm:$0xf] %vm1451_vm2, %v1673_v41  ;;  %1503 = vst.msk [vmem:[%s2741_s4 + $0xcc] sm:$0xf] %vm1451_vm2, %v1705_v42  ;;  %v816_v57 = vadd.f32 %v2367_v24, %v110_v19  ;;  %v848_v11 = vadd.f32 %v2369_v30, %v142_v20  ;;  %v814_v59 = vadd.f32 %v2371_v31, %v108_v58  ;;  %v118_v4 = vld [vmem:[#allocation2 + $0xf8] sm:$0xff]  ;;  %v148_v14 = vld [vmem:[#allocation2 + $0x1e8] sm:$0xff] }
 0x12b   :  { %v846_v60 = vadd.f32 %v2373_v38, %v140_v27  ;;  %1469 = vst.msk [vmem:[%s2741_s4 + $0x44] sm:$0xf] %vm1451_vm2, %v1671_v48  ;;  %1501 = vst.msk [vmem:[%s2741_s4 + $0xc4] sm:$0xf] %vm1451_vm2, %v1703_v49  ;;  %v819_v24 = vadd.f32 %v2419_v61, %v113_v28  ;;  %v851_v30 = vadd.f32 %v2421_v62, %v145_v37  ;;  %v150_v5 = vld [vmem:[#allocation2 + $0x1f8] sm:$0xff] }
 0x12c   :  { %878 = vst.msk [vmem:[#allocation2 + $0xa0] sm:$0xff] %vm22_vm0, %v813_v50  ;;  %910 = vst.msk [vmem:[#allocation2 + $0x1a0] sm:$0xff] %vm22_vm0, %v845_v17  ;;  %v817_v31 = vadd.f32 %v2425_v7, %v111_v39  ;;  %v849_v38 = vadd.f32 %v2427_v8, %v143_v40  ;;  %v820_v15 = vadd.f32 %v2431_v52, %v114_v45 }
 0x12d   :  { %881 = vst.msk [vmem:[#allocation2 + $0xb8] sm:$0xff] %vm22_vm0, %v816_v57  ;;  %913 = vst.msk [vmem:[#allocation2 + $0x1b8] sm:$0xff] %vm22_vm0, %v848_v11  ;;  %v852_v61 = vadd.f32 %v2433_v18, %v146_v46  ;;  %v818_v62 = vadd.f32 %v2435_v3, %v112_v47  ;;  %v850_v7 = vadd.f32 %v2437_v23, %v144_v51 }
 0x12e   :  { %879 = vst.msk [vmem:[#allocation2 + $0xa8] sm:$0xff] %vm22_vm0, %v814_v59  ;;  %911 = vst.msk [vmem:[#allocation2 + $0x1a8] sm:$0xff] %vm22_vm0, %v846_v60  ;;  %v823_v8 = vadd.f32 %v2483_v55, %v117_v53  ;;  %v855_v16 = vadd.f32 %v2485_v56, %v149_v54  ;;  %v821_v52 = vadd.f32 %v2489_v9, %v115_v63 }
 0x12f   :  { %884 = vst.msk [vmem:[#allocation2 + $0xd0] sm:$0xff] %vm22_vm0, %v819_v24  ;;  %916 = vst.msk [vmem:[#allocation2 + $0x1d0] sm:$0xff] %vm22_vm0, %v851_v30  ;;  %v853_v18 = vadd.f32 %v2491_v10, %v147_v0  ;;  %v824_v3 = vadd.f32 %v2495_v21, %v118_v4  ;;  %v856_v23 = vadd.f32 %v2497_v22, %v150_v5 }
 0x130   :  { %882 = vst.msk [vmem:[#allocation2 + $0xc0] sm:$0xff] %vm22_vm0, %v817_v31  ;;  %914 = vst.msk [vmem:[#allocation2 + $0x1c0] sm:$0xff] %vm22_vm0, %v849_v38  ;;  %v822_v55 = vadd.f32 %v2499_v29, %v116_v13  ;;  %v854_v56 = vadd.f32 %v2501_v32, %v148_v14  ;;  %v947_v9 = vld [vmem:[#allocation2 + $0xb0] sm:$0xff]  ;;  %v2620_v14 = vld [vmem:[%s2739_s2] ss:$0 sm:$0xff] }
 0x131   :  { %885 = vst.msk [vmem:[#allocation2 + $0xd8] sm:$0xff] %vm22_vm0, %v820_v15  ;;  %917 = vst.msk [vmem:[#allocation2 + $0x1d8] sm:$0xff] %vm22_vm0, %v852_v61  ;;  %v979_v10 = vld [vmem:[#allocation2 + $0x1b0] sm:$0xff]  ;;  %v1018_v19 = vmul.f32 %v2184_v1, %v947_v9  ;;  %v2635_v61 = vld [vmem:[%s2740_s3] ss:$0 sm:$0xff] }
 0x132   :  { %883 = vst.msk [vmem:[#allocation2 + $0xc8] sm:$0xff] %vm22_vm0, %v818_v62  ;;  %915 = vst.msk [vmem:[#allocation2 + $0x1c8] sm:$0xff] %vm22_vm0, %v850_v7  ;;  %v1050_v20 = vmul.f32 %v2184_v1, %v979_v10 }
 0x133   :  { %888 = vst.msk [vmem:[#allocation2 + $0xf0] sm:$0xff] %vm22_vm0, %v823_v8  ;;  %920 = vst.msk [vmem:[#allocation2 + $0x1f0] sm:$0xff] %vm22_vm0, %v855_v16  ;;  %v945_v58 = vld [vmem:[#allocation2 + $0xa0] sm:$0xff]  ;;  %v1089_v27 = vadd.f32 %v2189_v6, %v1018_v19 }
 0x134   :  { %886 = vst.msk [vmem:[#allocation2 + $0xe0] sm:$0xff] %vm22_vm0, %v821_v52  ;;  %918 = vst.msk [vmem:[#allocation2 + $0x1e0] sm:$0xff] %vm22_vm0, %v853_v18  ;;  %v977_v21 = vld [vmem:[#allocation2 + $0x1a0] sm:$0xff]  ;;  %v1016_v22 = vmul.f32 %v2184_v1, %v945_v58  ;;  %v948_v12 = vld [vmem:[#allocation2 + $0xb8] sm:$0xff]  ;;  %v1121_v28 = vadd.f32 %v2189_v6, %v1050_v20 }
 0x135   :  { %889 = vst.msk [vmem:[#allocation2 + $0xf8] sm:$0xff] %vm22_vm0, %v824_v3  ;;  %921 = vst.msk [vmem:[#allocation2 + $0x1f8] sm:$0xff] %vm22_vm0, %v856_v23  ;;  %v1048_v2 = vmul.f32 %v2184_v1, %v977_v21  ;;  %v980_v25 = vld [vmem:[#allocation2 + $0x1b8] sm:$0xff]  ;;  %v946_v26 = vld [vmem:[#allocation2 + $0xa8] sm:$0xff]  ;;  %v1019_v29 = vmul.f32 %v2184_v1, %v948_v12  ;;  %v1153_v39 = vmax.f32 %v1089_v27, 0.0 }
 0x136   :  { %887 = vst.msk [vmem:[#allocation2 + $0xe8] sm:$0xff] %vm22_vm0, %v822_v55  ;;  %919 = vst.msk [vmem:[#allocation2 + $0x1e8] sm:$0xff] %vm22_vm0, %v854_v56  ;;  %v1051_v32 = vmul.f32 %v2184_v1, %v980_v25  ;;  %v978_v33 = vld [vmem:[#allocation2 + $0x1a8] sm:$0xff]  ;;  %v1087_v34 = vadd.f32 %v2189_v6, %v1016_v22  ;;  %v1017_v36 = vmul.f32 %v2184_v1, %v946_v26  ;;  %v1185_v40 = vmax.f32 %v1121_v28, 0.0  ;;  %v951_v47 = vld [vmem:[#allocation2 + $0xd0] sm:$0xff] }
 0x137   :  { %v1119_v35 = vadd.f32 %v2189_v6, %v1048_v2  ;;  %v1049_v37 = vmul.f32 %v2184_v1, %v978_v33  ;;  %v1090_v41 = vadd.f32 %v2189_v6, %v1019_v29  ;;  %v983_v48 = vld [vmem:[#allocation2 + $0x1d0] sm:$0xff]  ;;  %v1676_v49 = vpack.c.bf16 %v1153_v39, %v1153_v39  ;;  %v949_v53 = vld [vmem:[#allocation2 + $0xc0] sm:$0xff] }
 0x138   :  { %v1122_v42 = vadd.f32 %v2189_v6, %v1051_v32  ;;  %v1151_v43 = vmax.f32 %v1087_v34, 0.0  ;;  %v1088_v45 = vadd.f32 %v2189_v6, %v1017_v36  ;;  %v1708_v50 = vpack.c.bf16 %v1185_v40, %v1185_v40  ;;  %v981_v54 = vld [vmem:[#allocation2 + $0x1c0] sm:$0xff]  ;;  %v952_v63 = vld [vmem:[#allocation2 + $0xd8] sm:$0xff] }
 0x139   :  { %v1183_v44 = vmax.f32 %v1119_v35, 0.0  ;;  %v1120_v46 = vadd.f32 %v2189_v6, %v1049_v37  ;;  %v1154_v17 = vmax.f32 %v1090_v41, 0.0  ;;  %v984_v0 = vld [vmem:[#allocation2 + $0x1d8] sm:$0xff]  ;;  %1474 = vst.msk [vmem:[%s2741_s4 + $0x58] sm:$0xf] %vm1451_vm2, %v1676_v49  ;;  %v1022_v24 = vmul.f32 %v2184_v1, %v951_v47  ;;  %v950_v31 = vld [vmem:[#allocation2 + $0xc8] sm:$0xff] }
 0x13a   :  { %v1186_v51 = vmax.f32 %v1122_v42, 0.0  ;;  %v1674_v57 = vpack.c.bf16 %v1151_v43, %v1151_v43  ;;  %v1152_v59 = vmax.f32 %v1088_v45, 0.0  ;;  %1506 = vst.msk [vmem:[%s2741_s4 + $0xd8] sm:$0xf] %vm1451_vm2, %v1708_v50  ;;  %v1054_v30 = vmul.f32 %v2184_v1, %v983_v48  ;;  %v982_v38 = vld [vmem:[#allocation2 + $0x1c8] sm:$0xff]  ;;  %v955_v22 = vld [vmem:[#allocation2 + $0xf0] sm:$0xff] }
 0x13b   :  { %v1706_v11 = vpack.c.bf16 %v1183_v44, %v1183_v44  ;;  %v1184_v60 = vmax.f32 %v1120_v46, 0.0  ;;  %v1677_v6 = vpack.c.bf16 %v1154_v17, %v1154_v17  ;;  %v1020_v1 = vmul.f32 %v2620_v14, %v949_v53  ;;  %v987_v2 = vld [vmem:[#allocation2 + $0x1f0] sm:$0xff]  ;;  %v953_v28 = vld [vmem:[#allocation2 + $0xe0] sm:$0xff] }
 0x13c   :  { %v1709_v4 = vpack.c.bf16 %v1186_v51, %v1186_v51  ;;  %1472 = vst.msk [vmem:[%s2741_s4 + $0x50] sm:$0xf] %vm1451_vm2, %v1674_v57  ;;  %v1675_v5 = vpack.c.bf16 %v1152_v59, %v1152_v59  ;;  %v1052_v15 = vmul.f32 %v2620_v14, %v981_v54  ;;  %v1093_v62 = vadd.f32 %v2635_v61, %v1022_v24  ;;  %v985_v29 = vld [vmem:[#allocation2 + $0x1e0] sm:$0xff]  ;;  %v956_v36 = vld [vmem:[#allocation2 + $0xf8] sm:$0xff] }
 0x13d   :  { %1504 = vst.msk [vmem:[%s2741_s4 + $0xd0] sm:$0xf] %vm1451_vm2, %v1706_v11  ;;  %v1707_v13 = vpack.c.bf16 %v1184_v60, %v1184_v60  ;;  %1475 = vst.msk [vmem:[%s2741_s4 + $0x5c] sm:$0xf] %vm1451_vm2, %v1677_v6  ;;  %v1125_v7 = vadd.f32 %v2635_v61, %v1054_v30  ;;  %v1023_v8 = vmul.f32 %v2620_v14, %v952_v63  ;;  %v988_v37 = vld [vmem:[#allocation2 + $0x1f8] sm:$0xff]  ;;  %v954_v43 = vld [vmem:[#allocation2 + $0xe8] sm:$0xff] }
 0x13e   :  { %1507 = vst.msk [vmem:[%s2741_s4 + $0xdc] sm:$0xf] %vm1451_vm2, %v1709_v4  ;;  %v1055_v16 = vmul.f32 %v2620_v14, %v984_v0  ;;  %1473 = vst.msk [vmem:[%s2741_s4 + $0x54] sm:$0xf] %vm1451_vm2, %v1675_v5  ;;  %v1091_v52 = vadd.f32 %v2635_v61, %v1020_v1  ;;  %v1123_v18 = vadd.f32 %v2635_v61, %v1052_v15  ;;  %v1157_v55 = vmax.f32 %v1093_v62, 0.0  ;;  %v986_v44 = vld [vmem:[#allocation2 + $0x1e8] sm:$0xff] }
 0x13f   :  { %1505 = vst.msk [vmem:[%s2741_s4 + $0xd4] sm:$0xf] %vm1451_vm2, %v1707_v13  ;;  %v1021_v3 = vmul.f32 %v2620_v14, %v950_v31  ;;  %v1053_v23 = vmul.f32 %v2620_v14, %v982_v38  ;;  %v1189_v56 = vmax.f32 %v1125_v7, 0.0  ;;  %v1094_v9 = vadd.f32 %v2635_v61, %v1023_v8 }
 0x140   :  { %v1126_v10 = vadd.f32 %v2635_v61, %v1055_v16  ;;  %v1155_v19 = vmax.f32 %v1091_v52, 0.0  ;;  %v1187_v20 = vmax.f32 %v1123_v18, 0.0  ;;  %v1680_v12 = vpack.c.bf16 %v1157_v55, %v1157_v55 }
 0x141   :  { %v1092_v58 = vadd.f32 %v2635_v61, %v1021_v3  ;;  %v1124_v21 = vadd.f32 %v2635_v61, %v1053_v23  ;;  %v1712_v25 = vpack.c.bf16 %v1189_v56, %v1189_v56  ;;  %v1158_v26 = vmax.f32 %v1094_v9, 0.0 }
 0x142   :  { %v1190_v27 = vmax.f32 %v1126_v10, 0.0  ;;  %v1678_v32 = vpack.c.bf16 %v1155_v19, %v1155_v19  ;;  %v1710_v33 = vpack.c.bf16 %v1187_v20, %v1187_v20  ;;  %1478 = vst.msk [vmem:[%s2741_s4 + $0x68] sm:$0xf] %vm1451_vm2, %v1680_v12  ;;  %v1026_v41 = vmul.f32 %v2620_v14, %v955_v22 }
 0x143   :  { %v1156_v34 = vmax.f32 %v1092_v58, 0.0  ;;  %v1188_v35 = vmax.f32 %v1124_v21, 0.0  ;;  %1510 = vst.msk [vmem:[%s2741_s4 + $0xe8] sm:$0xf] %vm1451_vm2, %v1712_v25  ;;  %v1681_v39 = vpack.c.bf16 %v1158_v26, %v1158_v26  ;;  %v1058_v42 = vmul.f32 %v2620_v14, %v987_v2 }
 0x144   :  { %v1713_v40 = vpack.c.bf16 %v1190_v27, %v1190_v27  ;;  %1476 = vst.msk [vmem:[%s2741_s4 + $0x60] sm:$0xf] %vm1451_vm2, %v1678_v32  ;;  %1508 = vst.msk [vmem:[%s2741_s4 + $0xe0] sm:$0xf] %vm1451_vm2, %v1710_v33  ;;  %v1024_v47 = vmul.f32 %v2620_v14, %v953_v28  ;;  %v1056_v48 = vmul.f32 %v2620_v14, %v985_v29 }
 0x145   :  { %v1679_v45 = vpack.c.bf16 %v1156_v34, %v1156_v34  ;;  %v1711_v46 = vpack.c.bf16 %v1188_v35, %v1188_v35  ;;  %1479 = vst.msk [vmem:[%s2741_s4 + $0x6c] sm:$0xf] %vm1451_vm2, %v1681_v39  ;;  %v1097_v49 = vadd.f32 %v2635_v61, %v1026_v41  ;;  %v1129_v50 = vadd.f32 %v2635_v61, %v1058_v42 }
 0x146   :  { %1511 = vst.msk [vmem:[%s2741_s4 + $0xec] sm:$0xf] %vm1451_vm2, %v1713_v40  ;;  %v1027_v17 = vmul.f32 %v2620_v14, %v956_v36  ;;  %v1059_v51 = vmul.f32 %v2620_v14, %v988_v37  ;;  %v1095_v53 = vadd.f32 %v2635_v61, %v1024_v47  ;;  %v1127_v54 = vadd.f32 %v2635_v61, %v1056_v48 }
 0x147   :  { %1477 = vst.msk [vmem:[%s2741_s4 + $0x64] sm:$0xf] %vm1451_vm2, %v1679_v45  ;;  %1509 = vst.msk [vmem:[%s2741_s4 + $0xe4] sm:$0xf] %vm1451_vm2, %v1711_v46  ;;  %v1025_v57 = vmul.f32 %v2620_v14, %v954_v43  ;;  %v1057_v11 = vmul.f32 %v2620_v14, %v986_v44  ;;  %v1161_v59 = vmax.f32 %v1097_v49, 0.0  ;;  %v1193_v60 = vmax.f32 %v1129_v50, 0.0 }
 0x148   :  { %v1098_v63 = vadd.f32 %v2635_v61, %v1027_v17  ;;  %v1130_v0 = vadd.f32 %v2635_v61, %v1059_v51  ;;  %v1159_v6 = vmax.f32 %v1095_v53, 0.0  ;;  %v1191_v4 = vmax.f32 %v1127_v54, 0.0 }
 0x149   :  { %v1096_v24 = vadd.f32 %v2635_v61, %v1025_v57  ;;  %v1128_v30 = vadd.f32 %v2635_v61, %v1057_v11  ;;  %v1684_v31 = vpack.c.bf16 %v1161_v59, %v1161_v59  ;;  %v1716_v38 = vpack.c.bf16 %v1193_v60, %v1193_v60 }
 0x14a   :  { %v1162_v5 = vmax.f32 %v1098_v63, 0.0  ;;  %v1194_v13 = vmax.f32 %v1130_v0, 0.0  ;;  %v1682_v1 = vpack.c.bf16 %v1159_v6, %v1159_v6  ;;  %v1714_v15 = vpack.c.bf16 %v1191_v4, %v1191_v4 }
 0x14b   :  { %v1160_v62 = vmax.f32 %v1096_v24, 0.0  ;;  %v1192_v14 = vmax.f32 %v1128_v30, 0.0  ;;  %1482 = vst.msk [vmem:[%s2741_s4 + $0x78] sm:$0xf] %vm1451_vm2, %v1684_v31  ;;  %1514 = vst.msk [vmem:[%s2741_s4 + $0xf8] sm:$0xf] %vm1451_vm2, %v1716_v38 }
 0x14c   :  { %v1685_v7 = vpack.c.bf16 %v1162_v5, %v1162_v5  ;;  %v1717_v61 = vpack.c.bf16 %v1194_v13, %v1194_v13  ;;  %1480 = vst.msk [vmem:[%s2741_s4 + $0x70] sm:$0xf] %vm1451_vm2, %v1682_v1  ;;  %1512 = vst.msk [vmem:[%s2741_s4 + $0xf0] sm:$0xf] %vm1451_vm2, %v1714_v15 }
 0x14d   :  { %v1683_v8 = vpack.c.bf16 %v1160_v62, %v1160_v62  ;;  %v1715_v16 = vpack.c.bf16 %v1192_v14, %v1192_v14 }
 0x14e   :  { %1483 = vst.msk [vmem:[%s2741_s4 + $0x7c] sm:$0xf] %vm1451_vm2, %v1685_v7  ;;  %1515 = vst.msk [vmem:[%s2741_s4 + $0xfc] sm:$0xf] %vm1451_vm2, %v1717_v61 }
 0x14f   :  { %1481 = vst.msk [vmem:[%s2741_s4 + $0x74] sm:$0xf] %vm1451_vm2, %v1683_v8  ;;  %1513 = vst.msk [vmem:[%s2741_s4 + $0xf4] sm:$0xf] %vm1451_vm2, %v1715_v16 }

// kernel: bottleneck_forward.9
= control target key start
LH: loop header
LB: loop body
LE: loop exit
PB: predicated region body
PF: predicated region fallthrough
CT: control target
= control target key end

     0   :  { %s4383_s15 = smov 0   ;;  %s5490_s0 = inlined_call_operand.vmem [shape: bf16[2,18,18,16], index: 0, kind: input, shape index: {}]   ;;  %s5491_s1 = inlined_call_operand.vmem [shape: bf16[9,16,16], index: 1, kind: input, shape index: {}]   ;;  %s5492_s2 = inlined_call_operand.vmem [shape: f32[1,16], index: 2, kind: input, shape index: {}]   ;;  %s5493_s3 = inlined_call_operand.vmem [shape: f32[1,16], index: 3, kind: input, shape index: {}]   ;;  %s5494_s4 = inlined_call_operand.vmem [shape: bf16[2,16,16,16], index: 4, kind: output, shape index: {}]  }
   0x1 LB: > { %s3275_s16 = sadd.s32 4294967295, %s4356_s15   ;;  %p3279_p0 = scmp.ge.s32.totalorder %s4356_s15, 1  ;;  %s4356_s15 = sphi %s4383_s15, %s14_s15  }
   0x2   : > { %p162_p1 = scmp.lt.s32.totalorder %s4356_s15, 3 }
   0x4   : > { %p163_p2 = pnand %p3279_p0, %p162_p1 }
   0x6   : > { %166 = sbr.rel (%p163_p2) target bundleno = 557 (0x22d), region = 36 }
   0xd   : > { %v4319_v0 = vld [vmem:[%s5491_s1 + $0x8] sm:$0xff]   ;;  %p188_p3 = scmp.lt.s32.totalorder %s3275_s16, 1  ;;  %v4320_v1 = vld [vmem:[%s5491_s1 + $0x20] sm:$0xff]   ;;  %vm255_vm0 = vsmask.f32 3328  ;;  %vm699_vm2 = vcmask 130048  }
   0xe   : > { %3746 = vmatprep.subr.bf16.mxu1 %v4319_v0  ;;  %v4402_v2 = vld [vmem:[%s5491_s1] sm:$0xff]   ;;  %3882 = vmatprep.subr.bf16.mxu0 %v4320_v1  ;;  %v4409_v3 = vld [vmem:[%s5491_s1 + $0x28] sm:$0xff]   ;;  %vm256_vm1 = vsmask.f32 7440  ;;  %vm1220_vm4 = vcmask 1042432   ;;  %vm1221_vm5 = vcmask 1046532  }
   0xf   : > { %s5570_s16 = smov (!%p188_p3, %s3275_s16), 1  ;;  %3747 = vmatpush3.bf16.msra.mxu1 %v4319_v0  ;;  %3883 = vmatpush3.bf16.msra.mxu0 %v4320_v1  ;;  %vm4447_vm3 = vmor %vm255_vm0, %vm256_vm1  ;;  %vm3187_vm7 = vcmask 125952  }
  0x10   : > { %s4310_s23 = smul.u32 216, %s5570_s16  ;;  %3780 = vmatprep.subr.bf16.mxu1 %v4402_v2  ;;  %3916 = vmatprep.subr.bf16.mxu0 %v4409_v3  ;;  %vm4631_vm6 = vmor %vm1220_vm4, %vm1221_vm5  ;;  %s3560_s21 = sshll.u32 %s5570_s16, 7 }
  0x11   : > { %s5357_s24 = scalar_lea.vmem %s5494_s4, %s3560_s21 }
  0x12   : > { %s4414_s28 = scalar_lea.vmem %s5490_s0, %s4310_s23 }
  0x13   : > { %v4418_v4 = vld [vmem:[%s4414_s28] sm:$0xf]  ;;  %v4421_v5 = vld [vmem:[%s4414_s28 + $0x4] sm:$0xf]  ;;  %v201_v6 = vld [vmem:[%s4414_s28 + $0x8] sm:$0x1] }
  0x14   : > { %v259_v7 = vshrl.u32 %v4418_v4, 16  ;;  %v262_v8 = vshll.u32 %v4418_v4, 16  ;;  %v268_v9 = vshll.u32 %v4421_v5, 16  ;;  %v272_v10 = vshrl.u32 %v4421_v5, 16  ;;  %v4429_v11 = vld [vmem:[%s4414_s28 + $0xc] sm:$0xf] }
  0x15   : > { %v278_v12 = vshll.u32 %v201_v6, 16  ;;  %v4432_v13 = vld [vmem:[%s4414_s28 + $0x10] sm:$0xf]  ;;  %v4435_v14 = vld [vmem:[%s4414_s28 + $0x14] sm:$0x1]  ;;  %v283_v20 = vshrl.u32 %v4429_v11, 16 }
  0x16   : > { %v261_v15 = vrot.slane %v259_v7, 4  ;;  %v264_v16 = vrot.slane %v262_v8, 5  ;;  %v270_v17 = vrot.slane %v268_v9, 5  ;;  %v274_v18 = vrot.slane %v272_v10, 4  ;;  %v4443_v27 = vld [vmem:[%s4414_s28 + $0x18] sm:$0xf] }
  0x17   : > { %v280_v19 = vrot.slane %v278_v12, 5  ;;  %v286_v21 = vshll.u32 %v4429_v11, 16  ;;  %v292_v22 = vshll.u32 %v4432_v13, 16  ;;  %v296_v25 = vshrl.u32 %v4432_v13, 16  ;;  %v4456_v33 = vld [vmem:[%s4414_s28 + $0x1c] sm:$0xf] }
  0x18   : > { %v265_v23 = vor.u32 %v264_v16, %v261_v15  ;;  %v275_v24 = vor.u32 %v274_v18, %v270_v17  ;;  %v302_v26 = vshll.u32 %v4435_v14, 16  ;;  %v285_v29 = vrot.slane %v283_v20, 4  ;;  %v4460_v40 = vld [vmem:[%s4414_s28 + $0x20] sm:$0x1]  ;;  %v4470_v51 = vld [vmem:[%s4414_s28 + $0x24] sm:$0xf] }
  0x19   : > { %v288_v30 = vrot.slane %v286_v21, 5  ;;  %v294_v31 = vrot.slane %v292_v22, 5  ;;  %v4453_v32 = vcombine.low %v4429_v11, %v4432_v13  ;;  %v298_v36 = vrot.slane %v296_v25, 4  ;;  %v4475_v56 = vld [vmem:[%s4414_s28 + $0x28] sm:$0xf]  ;;  %v4496_v12 = vld [vmem:[%s5491_s1 + $0x10] sm:$0xff]  }
  0x1a   : > { %v266_v34 = vrot.slane %v265_v23, 4  ;;  %v276_v35 = vrot.slane %v275_v24, 4  ;;  %v304_v37 = vrot.slane %v302_v26, 5  ;;  %v1235_v39 = vrot.slane %v4435_v14, 5  ;;  %v4483_v61 = vld [vmem:[%s4414_s28 + $0x2c] sm:$0x1] }
  0x1b   : > { %v289_v38 = vor.u32 %v288_v30, %v285_v29  ;;  %v307_v41 = vshrl.u32 %v4443_v27, 16  ;;  %v310_v42 = vshll.u32 %v4443_v27, 16  ;;  %v299_v45 = vor.u32 %v298_v36, %v294_v31  ;;  %v4489_v6 = vld [vmem:[%s4414_s28 + $0x30] sm:$0xf]  ;;  %v4508_v23 = vld [vmem:[%s4414_s28 + $0x38] sm:$0x1] }
  0x1c   : > { %v271_v43 = vsel %vm4447_vm3, %v266_v34, %v270_v17  ;;  %v281_v44 = vsel %vm4447_vm3, %v276_v35, %v280_v19  ;;  %v316_v46 = vshll.u32 %v4456_v33, 16  ;;  %v320_v54 = vshrl.u32 %v4456_v33, 16  ;;  %v4501_v19 = vld [vmem:[%s4414_s28 + $0x34] sm:$0xf] }
  0x1d   : > { %v3285_v47 = vcombine.low %v271_v43, %v281_v44  ;;  %v290_v48 = vrot.slane %v289_v38, 4  ;;  %v309_v49 = vrot.slane %v307_v41, 4  ;;  %v312_v50 = vrot.slane %v310_v42, 5  ;;  %v4523_v43 = vld [vmem:[%s4414_s28 + $0x40] sm:$0xf] }
  0x1e   : > { %v300_v52 = vrot.slane %v299_v45, 4  ;;  %v318_v53 = vrot.slane %v316_v46, 5  ;;  %v326_v55 = vshll.u32 %v4460_v40, 16  ;;  %v1239_v59 = vrot.slane %v4456_v33, 5 }
  0x1f   : > { %3748 = vmatprep.mubr.msk.bf16.mxu1 %vm699_vm2, %v3285_v47  ;;  %v295_v57 = vsel %vm4447_vm3, %v290_v48, %v294_v31  ;;  %v313_v58 = vor.u32 %v312_v50, %v309_v49  ;;  %v1242_v60 = vrot.slane %v4460_v40, 5  ;;  %v322_v63 = vrot.slane %v320_v54, 4  ;;  %v4530_v48 = vld [vmem:[%s5491_s1 + $0x30] sm:$0xff]  }
  0x20   : > { %v305_v62 = vsel %vm4447_vm3, %v300_v52, %v304_v37  ;;  %v328_v0 = vrot.slane %v326_v55, 5  ;;  %v331_v1 = vshrl.u32 %v4470_v51, 16  ;;  %v334_v9 = vshll.u32 %v4470_v51, 16  ;;  %v4516_v37 = vld [vmem:[%s4414_s28 + $0x3c] sm:$0xf] }
  0x21   : > { %v3286_v7 = vcombine.low %v295_v57, %v305_v62  ;;  %v314_v8 = vrot.slane %v313_v58, 4  ;;  %v340_v10 = vshll.u32 %v4475_v56, 16  ;;  %v323_v15 = vor.u32 %v322_v63, %v318_v53  ;;  %v4540_v57 = vld [vmem:[%s4414_s28 + $0x44] sm:$0x1]  ;;  %v4545_v63 = vld [vmem:[%s4414_s28 + $0x48] sm:$0xf] }
  0x22   : > { %v333_v16 = vrot.slane %v331_v1, 4  ;;  %v344_v17 = vshrl.u32 %v4475_v56, 16  ;;  %v350_v18 = vshll.u32 %v4483_v61, 16  ;;  %v336_v21 = vrot.slane %v334_v9, 5  ;;  %v4552_v9 = vld [vmem:[%s4414_s28 + $0x4c] sm:$0xf] }
  0x23   : > { %3884 = vmatprep.mubr.msk.bf16.mxu0 %vm699_vm2, %v3286_v7  ;;  %3749 = vmatmul.mubr.msk.bf16.vlgmr.msra.gmra.mrb[0].mxu1 %vm699_vm2, %v3286_v7  ;;  %v319_v20 = vsel %vm4447_vm3, %v314_v8, %v318_v53  ;;  %v342_v22 = vrot.slane %v340_v10, 5  ;;  %v355_v24 = vshrl.u32 %v4489_v6, 16  ;;  %v324_v25 = vrot.slane %v323_v15, 4 }
  0x24   : > { %3781 = vmatpush3.bf16.msra.mxu1 %v4402_v2  ;;  %v346_v26 = vrot.slane %v344_v17, 4  ;;  %v352_v29 = vrot.slane %v350_v18, 5  ;;  %v358_v30 = vshll.u32 %v4489_v6, 16  ;;  %v337_v31 = vor.u32 %v336_v21, %v333_v16 }
  0x25   : > { %v357_v34 = vrot.slane %v355_v24, 4  ;;  %v364_v35 = vshll.u32 %v4501_v19, 16  ;;  %v368_v36 = vshrl.u32 %v4501_v19, 16  ;;  %3814 = vmatprep.subr.bf16.mxu1 %v4496_v12  ;;  %v329_v38 = vsel %vm4447_vm3, %v324_v25, %v328_v0  ;;  %v4568_v25 = vld [vmem:[%s4414_s28 + $0x50] sm:$0x1] }
  0x26   : > { %v347_v41 = vor.u32 %v346_v26, %v342_v22  ;;  %v360_v2 = vrot.slane %v358_v30, 5  ;;  %v374_v42 = vshll.u32 %v4508_v23, 16  ;;  %v4525_v44 = vcombine.low %v319_v20, %v329_v38  ;;  %v4573_v30 = vld [vmem:[%s4414_s28 + $0x54] sm:$0xf]  ;;  %v4578_v38 = vld [vmem:[%s4414_s28 + $0x58] sm:$0xf] }
  0x27   : > { %v338_v45 = vrot.slane %v337_v31, 4  ;;  %v366_v46 = vrot.slane %v364_v35, 5  ;;  %v370_v47 = vrot.slane %v368_v36, 4  ;;  %v379_v53 = vshrl.u32 %v4516_v37, 16  ;;  %5529 = vst [vmem:[#allocation4_spill] sm:$0xff] %v4573_v30 }
  0x28   : > { %5527 = vst [vmem:[#allocation2_spill] sm:$0xff] %v4525_v44  ;;  %v348_v49 = vrot.slane %v347_v41, 4  ;;  %v361_v50 = vor.u32 %v360_v2, %v357_v34  ;;  %v376_v52 = vrot.slane %v374_v42, 5  ;;  %3885 = vmatmul.mubr.msk.bf16.vlgmr.msra.gmra.mrb[0].mxu0 %vm699_vm2, %v4525_v44  ;;  %3752 = vmatprep.mubr.msk.bf16.mxu1 %vm699_vm2, %v4525_v44  ;;  %v382_v58 = vshll.u32 %v4516_v37, 16 }
  0x29   : > { %v343_v54 = vsel %vm4447_vm3, %v338_v45, %v342_v22  ;;  %v371_v55 = vor.u32 %v370_v47, %v366_v46  ;;  %v388_v62 = vshll.u32 %v4523_v43, 16  ;;  %3917 = vmatpush3.bf16.msra.mxu0 %v4409_v3  ;;  %v381_v7 = vrot.slane %v379_v53, 4 }
  0x2a   : > { %v353_v0 = vsel %vm4447_vm3, %v348_v49, %v352_v29  ;;  %v362_v1 = vrot.slane %v361_v50, 4  ;;  %v392_v8 = vshrl.u32 %v4523_v43, 16  ;;  %v384_v16 = vrot.slane %v382_v58, 5  ;;  %3950 = vmatprep.subr.bf16.mxu0 %v4530_v48 }
  0x2b   : > { %v4554_v10 = vcombine.low %v343_v54, %v353_v0  ;;  %v372_v15 = vrot.slane %v371_v55, 4  ;;  %v390_v17 = vrot.slane %v388_v62, 5  ;;  %v398_v20 = vshll.u32 %v4540_v57, 16  ;;  %v4591_v55 = vld [vmem:[%s4414_s28 + $0x5c] sm:$0x1] }
  0x2c   : > { %v367_v3 = vsel %vm4447_vm3, %v362_v1, %v366_v46  ;;  %v394_v18 = vrot.slane %v392_v8, 4  ;;  %v403_v21 = vshrl.u32 %v4545_v63, 16  ;;  %v385_v24 = vor.u32 %v384_v16, %v381_v7  ;;  %v4595_v62 = vld [vmem:[%s4414_s28 + $0x60] sm:$0xf] }
  0x2d   : > { %5528 = vst [vmem:[#allocation3_spill] sm:$0xff] %v4554_v10  ;;  %3888 = vmatprep.mubr.msk.bf16.mxu0 %vm699_vm2, %v4554_v10  ;;  %3753 = vmatmul.mubr.msk.bf16.gmra.mrb[4].mxu1 %vm699_vm2, %v4554_v10  ;;  %v377_v22 = vsel %vm4447_vm3, %v372_v15, %v376_v52  ;;  %v406_v26 = vshll.u32 %v4545_v63, 16  ;;  %v412_v29 = vshll.u32 %v4552_v9, 16  ;;  %v400_v35 = vrot.slane %v398_v20, 5  ;;  %v4600_v15 = vld [vmem:[%s4414_s28 + $0x64] sm:$0xf] }
  0x2e   : > { %v4575_v31 = vcombine.low %v367_v3, %v377_v22  ;;  %v395_v34 = vor.u32 %v394_v18, %v390_v17  ;;  %v405_v36 = vrot.slane %v403_v21, 4  ;;  %v386_v41 = vrot.slane %v385_v24, 4  ;;  %v4811_v10 = vld [vmem:[%s4414_s28 + $0xa8] sm:$0xf] }
  0x2f   : > { %v408_v2 = vrot.slane %v406_v26, 5  ;;  %v414_v42 = vrot.slane %v412_v29, 5  ;;  %v416_v45 = vshrl.u32 %v4552_v9, 16  ;;  %v422_v47 = vshll.u32 %v4568_v25, 16 }
  0x30   : > { %5530 = vst [vmem:[#allocation5_spill] sm:$0xff] %v4575_v31  ;;  %3756 = vmatprep.mubr.msk.bf16.mxu1 %vm699_vm2, %v4575_v31  ;;  %v396_v46 = vrot.slane %v395_v34, 4  ;;  %v427_v49 = vshrl.u32 %v4573_v30, 16  ;;  %v430_v50 = vshll.u32 %v4573_v30, 16  ;;  %3889 = vmatmul.mubr.msk.bf16.gmra.mrb[4].mxu0 %vm699_vm2, %v4575_v31  ;;  %v391_v52 = vsel %vm4447_vm3, %v386_v41, %v390_v17  ;;  %v4614_v34 = vld [vmem:[%s4414_s28 + $0x68] sm:$0x1] }
  0x31   : > { %v409_v53 = vor.u32 %v408_v2, %v405_v36  ;;  %v418_v54 = vrot.slane %v416_v45, 4  ;;  %v436_v58 = vshll.u32 %v4578_v38, 16  ;;  %v424_v1 = vrot.slane %v422_v47, 5 }
  0x32   : > { %v401_v0 = vsel %vm4447_vm3, %v396_v46, %v400_v35  ;;  %v429_v7 = vrot.slane %v427_v49, 4  ;;  %v432_v8 = vrot.slane %v430_v50, 5  ;;  %v440_v21 = vshrl.u32 %v4578_v38, 16 }
  0x33   : > { %v4602_v16 = vcombine.low %v391_v52, %v401_v0  ;;  %v410_v17 = vrot.slane %v409_v53, 4  ;;  %v419_v3 = vor.u32 %v418_v54, %v414_v42  ;;  %v438_v18 = vrot.slane %v436_v58, 5 }
  0x34   : > { %v433_v20 = vor.u32 %v432_v8, %v429_v7  ;;  %v446_v22 = vshll.u32 %v4591_v55, 16  ;;  %v451_v24 = vshrl.u32 %v4595_v62, 16  ;;  %v454_v35 = vshll.u32 %v4595_v62, 16 }
  0x35   : > { %5531 = vst [vmem:[#allocation6_spill] sm:$0xff] %v4602_v16  ;;  %3892 = vmatprep.mubr.msk.bf16.mxu0 %vm699_vm2, %v4602_v16  ;;  %3757 = vmatmul.mubr.msk.bf16.gmra.mrb[8].mxu1 %vm699_vm2, %v4602_v16  ;;  %v415_v26 = vsel %vm4447_vm3, %v410_v17, %v414_v42  ;;  %v420_v29 = vrot.slane %v419_v3, 4  ;;  %v460_v36 = vshll.u32 %v4600_v15, 16  ;;  %v442_v2 = vrot.slane %v440_v21, 4  ;;  %v4622_v42 = vld [vmem:[%s4414_s28 + $0x6c] sm:$0xf] }
  0x36   : > { %v434_v41 = vrot.slane %v433_v20, 4  ;;  %v448_v45 = vrot.slane %v446_v22, 5  ;;  %v453_v46 = vrot.slane %v451_v24, 4  ;;  %v456_v49 = vrot.slane %v454_v35, 5  ;;  %v4645_v22 = vld [vmem:[%s4414_s28 + $0x74] sm:$0x1] }
  0x37   : > { %v425_v47 = vsel %vm4447_vm3, %v420_v29, %v424_v1  ;;  %v462_v50 = vrot.slane %v460_v36, 5  ;;  %v464_v52 = vshrl.u32 %v4600_v15, 16  ;;  %v443_v58 = vor.u32 %v442_v2, %v438_v18  ;;  %v4636_v1 = vld [vmem:[%s4414_s28 + $0x70] sm:$0xf]  ;;  %v4788_v16 = vld [vmem:[%s4414_s28 + $0xa0] sm:$0xf] }
  0x38   : > { %v4624_v53 = vcombine.low %v415_v26, %v425_v47  ;;  %v439_v54 = vsel %vm4447_vm3, %v434_v41, %v438_v18  ;;  %v470_v0 = vshll.u32 %v4614_v34, 16  ;;  %v457_v8 = vor.u32 %v456_v49, %v453_v46 }
  0x39   : > { %v466_v17 = vrot.slane %v464_v52, 4  ;;  %v3352_v3 = vrot.slane %v4429_v11, 9  ;;  %v1232_v20 = vrot.slane %v4432_v13, 5  ;;  %v444_v18 = vrot.slane %v443_v58, 4 }
  0x3a   : > { %5532 = vst [vmem:[#allocation7_spill] sm:$0xff] %v4624_v53  ;;  %3893 = vmatmul.mubr.msk.bf16.gmra.mrb[8].mxu0 %vm699_vm2, %v4624_v53  ;;  %3760 = vmatprep.mubr.msk.bf16.mxu1 %vm699_vm2, %v4624_v53  ;;  %v472_v21 = vrot.slane %v470_v0, 5  ;;  %v475_v24 = vshrl.u32 %v4622_v42, 16  ;;  %v478_v26 = vshll.u32 %v4622_v42, 16  ;;  %v458_v29 = vrot.slane %v457_v8, 4 }
  0x3b   : > { %v467_v35 = vor.u32 %v466_v17, %v462_v50  ;;  %v1233_v11 = vsel %vm4631_vm6, %v3352_v3, %v1232_v20  ;;  %v1234_v13 = vrot.slane %v1232_v20, 4  ;;  %v449_v36 = vsel %vm4447_vm3, %v444_v18, %v448_v45  ;;  %v4663_v0 = vld [vmem:[%s4414_s28 + $0x78] sm:$0xf]  ;;  %v4679_v20 = vld [vmem:[%s4414_s28 + $0x7c] sm:$0xf] }
  0x3c   : > { %v477_v41 = vrot.slane %v475_v24, 4  ;;  %v480_v2 = vrot.slane %v478_v26, 5  ;;  %v484_v46 = vshll.u32 %v4636_v1, 16  ;;  %v4654_v47 = vcombine.low %v439_v54, %v449_v36 }
  0x3d   : > { %v463_v49 = vsel %vm4447_vm3, %v458_v29, %v462_v50  ;;  %v468_v52 = vrot.slane %v467_v35, 4  ;;  %v1236_v58 = vsel %vm4631_vm6, %v1234_v13, %v1235_v39  ;;  %v488_v3 = vshrl.u32 %v4636_v1, 16  ;;  %v4684_v29 = vld [vmem:[%s4414_s28 + $0x80] sm:$0x1] }
  0x3e   : > { %5535 = vst [vmem:[#allocation8_spill] sm:$0xff] %v4654_v47  ;;  %v4665_v45 = vcombine.low %v1233_v11, %v1236_v58  ;;  %v481_v8 = vor.u32 %v480_v2, %v477_v41  ;;  %v486_v17 = vrot.slane %v484_v46, 5  ;;  %3896 = vmatprep.mubr.msk.bf16.mxu0 %vm699_vm2, %v4654_v47  ;;  %3761 = vmatmul.mubr.msk.bf16.gmra.mrb[12].mxu1 %vm699_vm2, %v4654_v47  ;;  %v494_v39 = vshll.u32 %v4645_v22, 16  ;;  %v4710_v58 = vld [vmem:[%s4414_s28 + $0x84] sm:$0xf] }
  0x3f   : > { %v473_v14 = vsel %vm4447_vm3, %v468_v52, %v472_v21  ;;  %v3353_v50 = vrot.slane %v4443_v27, 9  ;;  %v1241_v54 = vrot.slane %v1239_v59, 4  ;;  %v490_v26 = vrot.slane %v488_v3, 4  ;;  %v4781_v47 = vld [vmem:[%s4414_s28 + $0x9c] sm:$0xf] }
  0x40   : > { %5536 = vst [vmem:[#allocation9_spill] sm:$0xff] %v4665_v45  ;;  %v4681_v18 = vcombine.low %v463_v49, %v473_v14  ;;  %v482_v24 = vrot.slane %v481_v8, 4  ;;  %v499_v35 = vshrl.u32 %v4663_v0, 16  ;;  %v496_v11 = vrot.slane %v494_v39, 5 }
  0x41   : > { %v1240_v21 = vsel %vm4631_vm6, %v3353_v50, %v1239_v59  ;;  %v1243_v13 = vsel %vm4631_vm6, %v1241_v54, %v1242_v60  ;;  %v502_v36 = vshll.u32 %v4663_v0, 16  ;;  %v491_v2 = vor.u32 %v490_v26, %v486_v17  ;;  %v4716_v26 = vld [vmem:[%s4414_s28 + $0x88] sm:$0xf] }
  0x42   : > { %5537 = vst [vmem:[#allocation10_spill] sm:$0xff] %v4681_v18  ;;  %3897 = vmatmul.mubr.msk.bf16.gmra.mrb[12].mxu0 %vm699_vm2, %v4681_v18  ;;  %3764 = vmatprep.mubr.msk.bf16.mxu1 %vm699_vm2, %v4681_v18  ;;  %v487_v41 = vsel %vm4447_vm3, %v482_v24, %v486_v17  ;;  %v4702_v46 = vcombine.low %v1240_v21, %v1243_v13  ;;  %v501_v59 = vrot.slane %v499_v35, 4  ;;  %v508_v60 = vshll.u32 %v4679_v20, 16 }
  0x43   : > { %3918 = vmatprep.mubr.msk.bf16.mxu0 %vm699_vm2, %v4665_v45  ;;  %v504_v40 = vrot.slane %v502_v36, 5  ;;  %v512_v49 = vshrl.u32 %v4679_v20, 16  ;;  %v518_v52 = vshll.u32 %v4684_v29, 16  ;;  %v492_v8 = vrot.slane %v491_v2, 4 }
  0x44   : > { %5538 = vst [vmem:[#allocation11_spill] sm:$0xff] %v4702_v46  ;;  %v3354_v17 = vrot.slane %v4470_v51, 9  ;;  %v1246_v3 = vrot.slane %v4475_v56, 5  ;;  %v1249_v14 = vrot.slane %v4483_v61, 5  ;;  %v510_v50 = vrot.slane %v508_v60, 5 }
  0x45   : > { %v505_v39 = vor.u32 %v504_v40, %v501_v59  ;;  %v514_v54 = vrot.slane %v512_v49, 4  ;;  %v520_v24 = vrot.slane %v518_v52, 5  ;;  %v497_v35 = vsel %vm4447_vm3, %v492_v8, %v496_v11  ;;  %v4726_v59 = vld [vmem:[%s4414_s28 + $0x8c] sm:$0x1]  ;;  %v4736_v8 = vld [vmem:[%s5491_s1 + $0x38] sm:$0xff]  }
  0x46   : > { %v1247_v21 = vsel %vm4631_vm6, %v3354_v17, %v1246_v3  ;;  %v1248_v13 = vrot.slane %v1246_v3, 4  ;;  %v523_v36 = vshrl.u32 %v4710_v58, 16  ;;  %v4723_v2 = vcombine.low %v487_v41, %v497_v35  ;;  %5540 = vst [vmem:[#allocation13_spill] sm:$0xff] %v4736_v8 }
  0x47   : > { %v506_v18 = vrot.slane %v505_v39, 4  ;;  %v515_v61 = vor.u32 %v514_v54, %v510_v50  ;;  %v526_v40 = vshll.u32 %v4710_v58, 16  ;;  %v532_v11 = vshll.u32 %v4716_v26, 16  ;;  %v4745_v39 = vld [vmem:[%s4414_s28 + $0x90] sm:$0xf] }
  0x48   : > { %5539 = vst [vmem:[#allocation12_spill] sm:$0xff] %v4723_v2  ;;  %v1250_v60 = vsel %vm4631_vm6, %v1248_v13, %v1249_v14  ;;  %v525_v49 = vrot.slane %v523_v36, 4  ;;  %v536_v52 = vshrl.u32 %v4716_v26, 16  ;;  %3765 = vmatmul.mubr.msk.bf16.gmra.mrb[16].mxu1 %vm699_vm2, %v4723_v2  ;;  %v542_v13 = vshll.u32 %v4726_v59, 16  ;;  %v4764_v2 = vld [vmem:[%s4414_s28 + $0x98] sm:$0x1] }
  0x49   : > { %v511_v41 = vsel %vm4447_vm3, %v506_v18, %v510_v50  ;;  %v516_v17 = vrot.slane %v515_v61, 4  ;;  %v4742_v3 = vcombine.low %v1247_v21, %v1250_v60  ;;  %v528_v14 = vrot.slane %v526_v40, 5  ;;  %v4759_v40 = vld [vmem:[%s4414_s28 + $0x94] sm:$0xf] }
  0x4a   : > { %3919 = vmatmul.mubr.msk.bf16.vlgmr.msra.gmra.mrb[0].mxu0 %vm699_vm2, %v4702_v46  ;;  %v534_v54 = vrot.slane %v532_v11, 5  ;;  %v538_v35 = vrot.slane %v536_v52, 4  ;;  %v3355_v36 = vrot.slane %v4489_v6, 9  ;;  %v1253_v21 = vrot.slane %v4501_v19, 5 }
  0x4b   : > { %5541 = vst [vmem:[#allocation14_spill] sm:$0xff] %v4742_v3  ;;  %3951 = vmatpush3.bf16.msra.mxu0 %v4530_v48  ;;  %v521_v18 = vsel %vm4447_vm3, %v516_v17, %v520_v24  ;;  %3922 = vmatprep.mubr.msk.bf16.mxu0 %vm699_vm2, %v4742_v3  ;;  %v529_v50 = vor.u32 %v528_v14, %v525_v49  ;;  %v1256_v61 = vrot.slane %v4508_v23, 5  ;;  %v544_v52 = vrot.slane %v542_v13, 5 }
  0x4c   : > { %v4761_v60 = vcombine.low %v511_v41, %v521_v18  ;;  %v539_v11 = vor.u32 %v538_v35, %v534_v54  ;;  %v547_v48 = vshrl.u32 %v4745_v39, 16  ;;  %3984 = vmatprep.subr.bf16.mxu0 %v4736_v8  ;;  %v1254_v49 = vsel %vm4631_vm6, %v3355_v36, %v1253_v21 }
  0x4d   : > { %v530_v24 = vrot.slane %v529_v50, 4  ;;  %v1255_v17 = vrot.slane %v1253_v21, 4  ;;  %v550_v23 = vshll.u32 %v4745_v39, 16  ;;  %v556_v35 = vshll.u32 %v4759_v40, 16 }
  0x4e   : > { %5542 = vst [vmem:[#allocation15_spill] sm:$0xff] %v4761_v60  ;;  %3768 = vmatprep.mubr.msk.bf16.mxu1 %vm699_vm2, %v4761_v60  ;;  %v540_v41 = vrot.slane %v539_v11, 4  ;;  %v549_v14 = vrot.slane %v547_v48, 4  ;;  %v560_v13 = vshrl.u32 %v4759_v40, 16  ;;  %v566_v21 = vshll.u32 %v4764_v2, 16 }
  0x4f   : > { %v535_v18 = vsel %vm4447_vm3, %v530_v24, %v534_v54  ;;  %v1257_v50 = vsel %vm4631_vm6, %v1255_v17, %v1256_v61  ;;  %v552_v36 = vrot.slane %v550_v23, 5  ;;  %v558_v48 = vrot.slane %v556_v35, 5 }
  0x50   : > { %v545_v60 = vsel %vm4447_vm3, %v540_v41, %v544_v52  ;;  %v4785_v11 = vcombine.low %v1254_v49, %v1257_v50  ;;  %v562_v53 = vrot.slane %v560_v13, 4  ;;  %v568_v24 = vrot.slane %v566_v21, 5  ;;  %v4801_v41 = vld [vmem:[%s4414_s28 + $0xa4] sm:$0x1] }
  0x51   : > { %v4790_v31 = vcombine.low %v535_v18, %v545_v60  ;;  %v553_v54 = vor.u32 %v552_v36, %v549_v14  ;;  %v3356_v61 = vrot.slane %v4516_v37, 9  ;;  %v1260_v23 = vrot.slane %v4523_v43, 5 }
  0x52   : > { %5543 = vst [vmem:[#allocation16_spill] sm:$0xff] %v4785_v11  ;;  %3923 = vmatmul.mubr.msk.bf16.gmra.mrb[4].mxu0 %vm699_vm2, %v4785_v11  ;;  %v563_v17 = vor.u32 %v562_v53, %v558_v48  ;;  %v1263_v52 = vrot.slane %v4540_v57, 5  ;;  %v571_v49 = vshrl.u32 %v4781_v47, 16  ;;  %v574_v14 = vshll.u32 %v4781_v47, 16 }
  0x53   : > { %5544 = vst [vmem:[#allocation17_spill] sm:$0xff] %v4790_v31  ;;  %3769 = vmatmul.mubr.msk.bf16.gmra.mrb[20].mxu1 %vm699_vm2, %v4790_v31  ;;  %v554_v60 = vrot.slane %v553_v54, 4  ;;  %v580_v35 = vshll.u32 %v4788_v16, 16  ;;  %v584_v53 = vshrl.u32 %v4788_v16, 16  ;;  %v1261_v57 = vsel %vm4631_vm6, %v3356_v61, %v1260_v23 }
  0x54   : > { %v564_v13 = vrot.slane %v563_v17, 4  ;;  %v1262_v18 = vrot.slane %v1260_v23, 4  ;;  %v573_v50 = vrot.slane %v571_v49, 4  ;;  %v576_v21 = vrot.slane %v574_v14, 5  ;;  %v4820_v23 = vld [vmem:[%s4414_s28 + $0xac] sm:$0xf] }
  0x55   : > { %v559_v36 = vsel %vm4447_vm3, %v554_v60, %v558_v48  ;;  %v582_v54 = vrot.slane %v580_v35, 5  ;;  %v586_v31 = vrot.slane %v584_v53, 4  ;;  %v590_v17 = vshll.u32 %v4801_v41, 16 }
  0x56   : > { %v569_v44 = vsel %vm4447_vm3, %v564_v13, %v568_v24  ;;  %v1264_v11 = vsel %vm4631_vm6, %v1262_v18, %v1263_v52  ;;  %v3357_v61 = vrot.slane %v4545_v63, 9  ;;  %v577_v60 = vor.u32 %v576_v21, %v573_v50 }
  0x57   : > { %v4822_v49 = vcombine.low %v559_v36, %v569_v44  ;;  %v4824_v48 = vcombine.low %v1261_v57, %v1264_v11  ;;  %v587_v14 = vor.u32 %v586_v31, %v582_v54  ;;  %v592_v35 = vrot.slane %v590_v17, 5  ;;  %v4834_v11 = vld [vmem:[%s4414_s28 + $0xb0] sm:$0x1] }
  0x58   : > { %v1267_v53 = vrot.slane %v4552_v9, 5  ;;  %v1270_v24 = vrot.slane %v4568_v25, 5  ;;  %v595_v52 = vshrl.u32 %v4811_v10, 16  ;;  %v578_v44 = vrot.slane %v577_v60, 4 }
  0x59   : > { %5545 = vst [vmem:[#allocation18_spill] sm:$0xff] %v4822_v49  ;;  %5546 = vst [vmem:[#allocation19_spill] sm:$0xff] %v4824_v48  ;;  %3772 = vmatprep.mubr.msk.bf16.mxu1 %vm699_vm2, %v4822_v49  ;;  %3926 = vmatprep.mubr.msk.bf16.mxu0 %vm699_vm2, %v4824_v48  ;;  %v588_v13 = vrot.slane %v587_v14, 4  ;;  %v598_v31 = vshll.u32 %v4811_v10, 16  ;;  %v604_v57 = vshll.u32 %v4820_v23, 16  ;;  %v608_v36 = vshrl.u32 %v4820_v23, 16 }
  0x5a   : > { %v1268_v25 = vsel %vm4631_vm6, %v3357_v61, %v1267_v53  ;;  %v1269_v18 = vrot.slane %v1267_v53, 4  ;;  %v597_v50 = vrot.slane %v595_v52, 4  ;;  %v583_v21 = vsel %vm4447_vm3, %v578_v44, %v582_v54  ;;  %v4846_v49 = vld [vmem:[%s4414_s28 + $0xb4] sm:$0xf]  ;;  %v4858_v44 = vld [vmem:[%s4414_s28 + $0xb8] sm:$0xf] }
  0x5b   : > { %v593_v17 = vsel %vm4447_vm3, %v588_v13, %v592_v35  ;;  %v600_v60 = vrot.slane %v598_v31, 5  ;;  %v606_v14 = vrot.slane %v604_v57, 5  ;;  %v610_v53 = vrot.slane %v608_v36, 4 }
  0x5c   : > { %v4848_v48 = vcombine.low %v583_v21, %v593_v17  ;;  %v1271_v61 = vsel %vm4631_vm6, %v1269_v18, %v1270_v24  ;;  %v614_v52 = vshll.u32 %v4834_v11, 16  ;;  %v3358_v54 = vrot.slane %v4573_v30, 9  ;;  %v4864_v24 = vld [vmem:[%s4414_s28 + $0xbc] sm:$0x1] }
  0x5d   : > { %v4853_v3 = vcombine.low %v1268_v25, %v1271_v61  ;;  %v601_v46 = vor.u32 %v600_v60, %v597_v50  ;;  %v1274_v35 = vrot.slane %v4578_v38, 5  ;;  %v611_v13 = vor.u32 %v610_v53, %v606_v14 }
  0x5e   : > { %5547 = vst [vmem:[#allocation20_spill] sm:$0xff] %v4848_v48  ;;  %3773 = vmatmul.mubr.msk.bf16.gmra.mrb[24].mxu1 %vm699_vm2, %v4848_v48  ;;  %v616_v31 = vrot.slane %v614_v52, 5  ;;  %v1277_v57 = vrot.slane %v4591_v55, 5  ;;  %v619_v18 = vshrl.u32 %v4846_v49, 16  ;;  %v622_v21 = vshll.u32 %v4846_v49, 16 }
  0x5f   : > { %5548 = vst [vmem:[#allocation21_spill] sm:$0xff] %v4853_v3  ;;  %3927 = vmatmul.mubr.msk.bf16.gmra.mrb[8].mxu0 %vm699_vm2, %v4853_v3  ;;  %v602_v25 = vrot.slane %v601_v46, 4  ;;  %v1275_v50 = vsel %vm4631_vm6, %v3358_v54, %v1274_v35  ;;  %v1276_v36 = vrot.slane %v1274_v35, 4  ;;  %v612_v17 = vrot.slane %v611_v13, 4 }
  0x60   : > { %v621_v60 = vrot.slane %v619_v18, 4  ;;  %v628_v61 = vshll.u32 %v4858_v44, 16  ;;  %v632_v55 = vshrl.u32 %v4858_v44, 16  ;;  %v624_v48 = vrot.slane %v622_v21, 5 }
  0x61   : > { %v607_v53 = vsel %vm4447_vm3, %v602_v25, %v606_v14  ;;  %v1278_v52 = vsel %vm4631_vm6, %v1276_v36, %v1277_v57  ;;  %v638_v46 = vshll.u32 %v4864_v24, 16  ;;  %v617_v54 = vsel %vm4447_vm3, %v612_v17, %v616_v31 }
  0x62   : > { %v4881_v35 = vcombine.low %v1275_v50, %v1278_v52  ;;  %v630_v13 = vrot.slane %v628_v61, 5  ;;  %v634_v18 = vrot.slane %v632_v55, 4  ;;  %v4883_v3 = vcombine.low %v607_v53, %v617_v54 }
  0x63   : > { %v625_v45 = vor.u32 %v624_v48, %v621_v60  ;;  %v640_v8 = vrot.slane %v638_v46, 5  ;;  %v3359_v30 = vrot.slane %v4595_v62, 9  ;;  %v1281_v57 = vrot.slane %v4600_v15, 5 }
  0x64   : > { %3930 = vmatprep.mubr.msk.bf16.mxu0 %vm699_vm2, %v4881_v35  ;;  %v635_v14 = vor.u32 %v634_v18, %v630_v13  ;;  %v1284_v25 = vrot.slane %v4614_v34, 5  ;;  %v3360_v31 = vrot.slane %v4622_v42, 9  ;;  %3776 = vmatprep.mubr.msk.bf16.mxu1 %vm699_vm2, %v4883_v3  ;;  %v3318_v48 = vcombine.low %v4418_v4, %v4421_v5 }
  0x65   : > { %v626_v50 = vrot.slane %v625_v45, 4  ;;  %v1288_v36 = vrot.slane %v4636_v1, 5  ;;  %v1291_v21 = vrot.slane %v4645_v22, 5  ;;  %v1282_v60 = vsel %vm4631_vm6, %v3359_v30, %v1281_v57 }
  0x66   : > { %v636_v17 = vrot.slane %v635_v14, 4  ;;  %v1283_v61 = vrot.slane %v1281_v57, 4  ;;  %v1295_v34 = vrot.slane %v4679_v20, 5  ;;  %v3361_v4 = vrot.slane %v4663_v0, 9 }
  0x67   : > { %v631_v55 = vsel %vm4447_vm3, %v626_v50, %v630_v13  ;;  %v1289_v45 = vsel %vm4631_vm6, %v3360_v31, %v1288_v36  ;;  %v1290_v53 = vrot.slane %v1288_v36, 4  ;;  %v1298_v30 = vrot.slane %v4684_v29, 5 }
  0x68   : > { %v641_v5 = vsel %vm4447_vm3, %v636_v17, %v640_v8  ;;  %v1285_v22 = vsel %vm4631_vm6, %v1283_v61, %v1284_v25  ;;  %v1297_v52 = vrot.slane %v1295_v34, 4  ;;  %v3362_v14 = vrot.slane %v4710_v58, 9 }
  0x69   : > { %v4910_v46 = vcombine.low %v631_v55, %v641_v5  ;;  %v4912_v54 = vcombine.low %v1282_v60, %v1285_v22  ;;  %v1292_v13 = vsel %vm4631_vm6, %v1290_v53, %v1291_v21  ;;  %v1302_v57 = vrot.slane %v4716_v26, 5  ;;  %v4954_v22 = vld [vmem:[%s5491_s1 + $0x18] sm:$0xff]  }
  0x6a   : > { %v4916_v18 = vcombine.low %v1289_v45, %v1292_v13  ;;  %v1305_v29 = vrot.slane %v4726_v59, 5  ;;  %v1296_v8 = vsel %vm4631_vm6, %v3361_v4, %v1295_v34  ;;  %v1299_v25 = vsel %vm4631_vm6, %v1297_v52, %v1298_v30 }
  0x6b   : > { %3777 = vmatmul.mubr.msk.bf16.gmra.mrb[28].mxu1 %vm699_vm2, %v4910_v46  ;;  %3931 = vmatmul.mubr.msk.bf16.gmra.mrb[12].mxu0 %vm699_vm2, %v4912_v54  ;;  %v1304_v31 = vrot.slane %v1302_v57, 4  ;;  %v1309_v50 = vrot.slane %v4759_v40, 5  ;;  %v1316_v36 = vrot.slane %v4788_v16, 5  ;;  %v1303_v21 = vsel %vm4631_vm6, %v3362_v14, %v1302_v57 }
  0x6c   : > { %3782 = vmatprep.mubr.msk.bf16.mxu1 %vm699_vm2, %v3318_v48  ;;  %3934 = vmatprep.mubr.msk.bf16.mxu0 %vm699_vm2, %v4916_v18  ;;  %v4938_v48 = vcombine.low %v1296_v8, %v1299_v25  ;;  %v3363_v17 = vrot.slane %v4745_v39, 9  ;;  %v1312_v61 = vrot.slane %v4764_v2, 5  ;;  %v4944_v34 = vcombine.low %v4443_v27, %v4456_v33 }
  0x6d   : > { %v1306_v59 = vsel %vm4631_vm6, %v1304_v31, %v1305_v29  ;;  %v1311_v60 = vrot.slane %v1309_v50, 4  ;;  %v3364_v55 = vrot.slane %v4781_v47, 9  ;;  %v1318_v53 = vrot.slane %v1316_v36, 4 }
  0x6e   : > { %v4947_v45 = vcombine.low %v1303_v21, %v1306_v59  ;;  %v1319_v4 = vrot.slane %v4801_v41, 5  ;;  %v1323_v5 = vrot.slane %v4820_v23, 5  ;;  %v1310_v27 = vsel %vm4631_vm6, %v3363_v17, %v1309_v50 }
  0x6f   : > { %v1313_v33 = vsel %vm4631_vm6, %v1311_v60, %v1312_v61  ;;  %v4969_v2 = vcombine.low %v4470_v51, %v4475_v56  ;;  %v1317_v41 = vsel %vm4631_vm6, %v3364_v55, %v1316_v36  ;;  %v3365_v52 = vrot.slane %v4811_v10, 9 }
  0x70   : > { %v4976_v30 = vcombine.low %v4595_v62, %v4600_v15  ;;  %v1330_v13 = vrot.slane %v4858_v44, 5  ;;  %v4985_v51 = vcombine.low %v4622_v42, %v4636_v1  ;;  %v4989_v56 = vcombine.low %v4663_v0, %v4679_v20 }
  0x71   : > { %v4991_v14 = vcombine.low %v1310_v27, %v1313_v33  ;;  %v1325_v62 = vrot.slane %v1323_v5, 4  ;;  %v1326_v15 = vrot.slane %v4834_v11, 5  ;;  %v4996_v57 = vcombine.low %v4710_v58, %v4716_v26  ;;  %v5044_v11 = vld [vmem:[%s4414_s28 + $0xc0] sm:$0xf] }
  0x72   : > { %v5001_v42 = vcombine.low %v4745_v39, %v4759_v40  ;;  %v5005_v1 = vcombine.low %v4781_v47, %v4788_v16  ;;  %v5009_v0 = vcombine.low %v4811_v10, %v4820_v23  ;;  %v5013_v20 = vcombine.low %v4846_v49, %v4858_v44  ;;  %v5024_v40 = vld [vmem:[%s4414_s28 + $0xc4] sm:$0xf]  ;;  %v249_v44 = vld [vmem:[%s4414_s28 + $0xc8] sm:$0x1] }
  0x73   : > { %3783 = vmatmul.mubr.msk.bf16.vlgmr.msra.gmra.mrb[0].mxu1 %vm699_vm2, %v4453_v32  ;;  %3935 = vmatmul.mubr.msk.bf16.gmra.mrb[16].mxu0 %vm699_vm2, %v4938_v48  ;;  %v5017_v58 = vcombine.low %v4489_v6, %v4501_v19  ;;  %v3366_v39 = vrot.slane %v4846_v49, 9  ;;  %v1332_v16 = vrot.slane %v1330_v13, 4  ;;  %v1333_v47 = vrot.slane %v4864_v24, 5 }
  0x74   : > { %3815 = vmatpush3.bf16.msra.mxu1 %v4496_v12  ;;  %3786 = vmatprep.mubr.msk.bf16.mxu1 %vm699_vm2, %v4944_v34  ;;  %v1320_v12 = vsel %vm4631_vm6, %v1318_v53, %v1319_v4  ;;  %v1324_v6 = vsel %vm4631_vm6, %v3365_v52, %v1323_v5  ;;  %v1327_v19 = vsel %vm4631_vm6, %v1325_v62, %v1326_v15  ;;  %v2078_v10 = vrot.slane %v5024_v40, 5  ;;  %v5549_v52 = vld [vmem:[#allocation4_spill] sm:$0xff] }
  0x75   : > { %3938 = vmatprep.mubr.msk.bf16.mxu0 %vm699_vm2, %v4947_v45  ;;  %3848 = vmatprep.subr.bf16.mxu1 %v4954_v22  ;;  %v5019_v26 = vcombine.low %v1317_v41, %v1320_v12  ;;  %v1331_v23 = vsel %vm4631_vm6, %v3366_v39, %v1330_v13  ;;  %v1334_v49 = vsel %vm4631_vm6, %v1332_v16, %v1333_v47  ;;  %v1844_v25 = vshrl.u32 %v5044_v11, 16  ;;  %v5550_v16 = vld [vmem:[#allocation13_spill] sm:$0xff]  ;;  %v4346_v47 = vld [vmem:[%s4414_s28 + $0x4] sm:$0xf] }
  0x76   : > { %v5049_v24 = vcombine.low %v4516_v37, %v4523_v43  ;;  %v5051_v29 = vcombine.low %v1324_v6, %v1327_v19  ;;  %v5055_v8 = vcombine.low %v4545_v63, %v4552_v9  ;;  %v1847_v31 = vshll.u32 %v5044_v11, 16  ;;  %v4347_v19 = vld [vmem:[%s4414_s28 + $0x8] sm:$0x1] }
  0x77   : > { %v1853_v50 = vshll.u32 %v5024_v40, 16  ;;  %v1857_v36 = vshrl.u32 %v5024_v40, 16  ;;  %v5061_v21 = vcombine.low %v1331_v23, %v1334_v49  ;;  %v3442_v59 = vrot.slane %v5044_v11, 9  ;;  %v4348_v23 = vld [vmem:[%s4414_s28] sm:$0xf] }
  0x78   : > { %v2080_v37 = vrot.slane %v2078_v10, 4  ;;  %v2081_v43 = vrot.slane %v249_v44, 5  ;;  %v1846_v17 = vrot.slane %v1844_v25, 4  ;;  %v1849_v60 = vrot.slane %v1847_v31, 5 }
  0x79   : > { %v1855_v61 = vrot.slane %v1853_v50, 5  ;;  %v1859_v55 = vrot.slane %v1857_v36, 4  ;;  %v1863_v53 = vshll.u32 %v249_v44, 16  ;;  %v2079_v4 = vsel %vm4631_vm6, %v3442_v59, %v2078_v10  ;;  %v5551_v36 = vld [vmem:[#allocation9_spill] sm:$0xff]  ;;  %v5552_v59 = vld [vmem:[#allocation11_spill] sm:$0xff] }
  0x7a   : > { %v1850_v63 = vor.u32 %v1849_v60, %v1846_v17  ;;  %v2082_v5 = vsel %vm4631_vm6, %v2080_v37, %v2081_v43  ;;  %v5078_v12 = vcombine.low %v5549_v52, %v4578_v38  ;;  %v4345_v38 = vld [vmem:[%s5491_s1 + $0x40] sm:$0xff]   ;;  %v1225_v6 = vrot.slane %v4346_v47, 5  ;;  %v5554_v17 = vld [vmem:[#allocation16_spill] sm:$0xff]  ;;  %v5555_v60 = vld [vmem:[#allocation19_spill] sm:$0xff] }
  0x7b   : > { %3787 = vmatmul.mubr.msk.bf16.gmra.mrb[4].mxu1 %vm699_vm2, %v4969_v2  ;;  %3939 = vmatmul.mubr.msk.bf16.gmra.mrb[20].mxu0 %vm699_vm2, %v4991_v14  ;;  %v1860_v9 = vor.u32 %v1859_v55, %v1855_v61  ;;  %v1865_v41 = vrot.slane %v1863_v53, 5  ;;  %v5080_v13 = vcombine.low %v2079_v4, %v2082_v5  ;;  %v1228_v10 = vrot.slane %v4347_v19, 5  ;;  %v4349_v37 = vld [vmem:[%s5491_s1 + $0x20] sm:$0xff]   ;;  %v5171_v55 = vld [vmem:[%s4414_s28 + $0xcc] sm:$0xf]  ;;  %v5559_v53 = vld [vmem:[#allocation5_spill] sm:$0xff] }
  0x7c   : > { %3790 = vmatprep.mubr.msk.bf16.mxu1 %vm699_vm2, %v5017_v58  ;;  %3942 = vmatprep.mubr.msk.bf16.mxu0 %vm699_vm2, %v5019_v26  ;;  %v1851_v27 = vrot.slane %v1850_v63, 4  ;;  %v3351_v49 = vrot.slane %v4348_v23, 9  ;;  %v1227_v44 = vrot.slane %v1225_v6, 4  ;;  %v5553_v43 = vld [vmem:[#allocation14_spill] sm:$0xff]  ;;  %v5174_v63 = vld [vmem:[%s4414_s28 + $0xd0] sm:$0xf] }
  0x7d   : > { %v1861_v33 = vrot.slane %v1860_v9, 4  ;;  %v5558_v9 = vld [vmem:[#allocation3_spill] sm:$0xff]  ;;  %v5560_v4 = vld [vmem:[#allocation6_spill] sm:$0xff]  ;;  %v252_v23 = vld [vmem:[%s4414_s28 + $0xd4] sm:$0x1]  ;;  %v2736_v28 = vrot.slane %v5174_v63, 5 }
  0x7e   : > { %v1856_v62 = vsel %vm4447_vm3, %v1851_v27, %v1855_v61  ;;  %v1226_v25 = vsel %vm4631_vm6, %v3351_v49, %v1225_v6  ;;  %v1229_v31 = vsel %vm4631_vm6, %v1227_v44, %v1228_v10  ;;  %v5556_v61 = vld [vmem:[#allocation21_spill] sm:$0xff]  ;;  %v5561_v5 = vld [vmem:[#allocation7_spill] sm:$0xff]  ;;  %v5562_v27 = vld [vmem:[#allocation8_spill] sm:$0xff] }
  0x7f   : > { %v1866_v15 = vsel %vm4447_vm3, %v1861_v33, %v1865_v41  ;;  %v3369_v50 = vcombine.low %v1226_v25, %v1229_v31  ;;  %v5563_v33 = vld [vmem:[#allocation10_spill] sm:$0xff]  ;;  %v5564_v41 = vld [vmem:[#allocation12_spill] sm:$0xff]  ;;  %v5565_v52 = vld [vmem:[#allocation15_spill] sm:$0xff]  ;;  %v2521_v25 = vshll.u32 %v252_v23, 16 }
  0x80   : > { %v5086_v39 = vcombine.low %v1856_v62, %v1866_v15  ;;  %v5566_v62 = vld [vmem:[#allocation17_spill] sm:$0xff]  ;;  %v2502_v15 = vshrl.u32 %v5171_v55, 16  ;;  %v5567_v47 = vld [vmem:[#allocation18_spill] sm:$0xff]  ;;  %v5568_v49 = vld [vmem:[#allocation20_spill] sm:$0xff] }
  0x82   : > { %v2504_v6 = vrot.slane %v2502_v15, 4 }
  0x83   : > { %3791 = vmatmul.mubr.msk.bf16.gmra.mrb[8].mxu1 %vm699_vm2, %v5049_v24  ;;  %3943 = vmatmul.mubr.msk.bf16.gmra.mrb[24].mxu0 %vm699_vm2, %v5051_v29 }
  0x84   : > { %3794 = vmatprep.mubr.msk.bf16.mxu1 %vm699_vm2, %v5055_v8  ;;  %3946 = vmatprep.mubr.msk.bf16.mxu0 %vm699_vm2, %v5061_v21 }
  0x8b   : > { %3795 = vmatmul.mubr.msk.bf16.gmra.mrb[12].mxu1 %vm699_vm2, %v5078_v12  ;;  %3947 = vmatmul.mubr.msk.bf16.gmra.mrb[28].mxu0 %vm699_vm2, %v5080_v13 }
  0x8c   : > { %3798 = vmatprep.mubr.msk.bf16.mxu1 %vm699_vm2, %v4976_v30  ;;  %3952 = vmatprep.mubr.msk.bf16.mxu0 %vm699_vm2, %v4944_v34 }
  0x93   : > { %3799 = vmatmul.mubr.msk.bf16.gmra.mrb[16].mxu1 %vm699_vm2, %v4985_v51  ;;  %3953 = vmatmul.mubr.msk.bf16.vlgmr.msra.gmra.mrb[0].mxu0 %vm699_vm2, %v4969_v2 }
  0x94   : > { %3985 = vmatpush3.bf16.msra.mxu0 %v5550_v16  ;;  %3802 = vmatprep.mubr.msk.bf16.mxu1 %vm699_vm2, %v4989_v56  ;;  %v2515_v16 = vshrl.u32 %v5174_v63, 16 }
  0x95   : > { %3956 = vmatprep.mubr.msk.bf16.mxu0 %vm699_vm2, %v5017_v58  ;;  %4018 = vmatprep.subr.bf16.mxu0 %v4345_v38 }
  0x96   : > { %v2517_v10 = vrot.slane %v2515_v16, 4 }
  0x9b   : > { %3803 = vmatmul.mubr.msk.bf16.gmra.mrb[20].mxu1 %vm699_vm2, %v4996_v57  ;;  %3957 = vmatmul.mubr.msk.bf16.gmra.mrb[4].mxu0 %vm699_vm2, %v5049_v24 }
  0x9c   : > { %3806 = vmatprep.mubr.msk.bf16.mxu1 %vm699_vm2, %v5001_v42  ;;  %3960 = vmatprep.mubr.msk.bf16.mxu0 %vm699_vm2, %v5055_v8 }
  0xa3   : > { %3807 = vmatmul.mubr.msk.bf16.gmra.mrb[24].mxu1 %vm699_vm2, %v5005_v1  ;;  %3961 = vmatmul.mubr.msk.bf16.gmra.mrb[8].mxu0 %vm699_vm2, %v5078_v12 }
  0xa4   : > { %3810 = vmatprep.mubr.msk.bf16.mxu1 %vm699_vm2, %v5009_v0  ;;  %3964 = vmatprep.mubr.msk.bf16.mxu0 %vm699_vm2, %v4976_v30 }
  0xab   : > { %3811 = vmatmul.mubr.msk.bf16.gmra.mrb[28].mxu1 %vm699_vm2, %v5013_v20  ;;  %3965 = vmatmul.mubr.msk.bf16.gmra.mrb[12].mxu0 %vm699_vm2, %v4985_v51 }
  0xac   : > { %3816 = vmatprep.mubr.msk.bf16.mxu1 %vm699_vm2, %v3369_v50  ;;  %3968 = vmatprep.mubr.msk.bf16.mxu0 %vm699_vm2, %v4989_v56 }
  0xb3   : > { %3817 = vmatmul.mubr.msk.bf16.vlgmr.msra.gmra.mrb[0].mxu1 %vm699_vm2, %v5551_v36  ;;  %3969 = vmatmul.mubr.msk.bf16.gmra.mrb[16].mxu0 %vm699_vm2, %v4996_v57  ;;  %v2523_v36 = vrot.slane %v2521_v25, 5 }
  0xb4   : > { %3849 = vmatpush3.bf16.msra.mxu1 %v4954_v22  ;;  %3820 = vmatprep.mubr.msk.bf16.mxu1 %vm699_vm2, %v5552_v59  ;;  %v5160_v22 = vcombine.low %v5044_v11, %v5024_v40  ;;  %v3465_v40 = vcombine.low %v5171_v55, %v5174_v63  ;;  %v5557_v11 = vld [vmem:[#allocation2_spill] sm:$0xff] }
  0xb5   : > { %3972 = vmatprep.mubr.msk.bf16.mxu0 %vm699_vm2, %v5001_v42  ;;  %4052 = vmatprep.subr.bf16.mxu1 %v4349_v37 }
  0xbb   : > { %3821 = vmatmul.mubr.msk.bf16.gmra.mrb[4].mxu1 %vm699_vm2, %v5553_v43  ;;  %3973 = vmatmul.mubr.msk.bf16.gmra.mrb[20].mxu0 %vm699_vm2, %v5005_v1 }
  0xbc   : > { %3824 = vmatprep.mubr.msk.bf16.mxu1 %vm699_vm2, %v5554_v17  ;;  %3976 = vmatprep.mubr.msk.bf16.mxu0 %vm699_vm2, %v5009_v0 }
  0xc3   : > { %3825 = vmatmul.mubr.msk.bf16.gmra.mrb[8].mxu1 %vm699_vm2, %v5555_v60  ;;  %3977 = vmatmul.mubr.msk.bf16.gmra.mrb[24].mxu0 %vm699_vm2, %v5013_v20 }
  0xc4   : > { %3828 = vmatprep.mubr.msk.bf16.mxu1 %vm699_vm2, %v5556_v61  ;;  %3980 = vmatprep.mubr.msk.bf16.mxu0 %vm699_vm2, %v5160_v22 }
  0xcb   : > { %3829 = vmatmul.mubr.msk.bf16.gmra.mrb[12].mxu1 %vm699_vm2, %v4881_v35  ;;  %3981 = vmatmul.mubr.msk.bf16.gmra.mrb[28].mxu0 %vm699_vm2, %v3465_v40 }
  0xcc   : > { %3832 = vmatprep.mubr.msk.bf16.mxu1 %vm699_vm2, %v4912_v54  ;;  %3986 = vmatprep.mubr.msk.bf16.mxu0 %vm699_vm2, %v5557_v11 }
  0xd3   : > { %3833 = vmatmul.mubr.msk.bf16.gmra.mrb[16].mxu1 %vm699_vm2, %v4916_v18  ;;  %3987 = vmatmul.mubr.msk.bf16.vlgmr.msra.gmra.mrb[0].mxu0 %vm699_vm2, %v5558_v9 }
  0xd4   : > { %4019 = vmatpush3.bf16.msra.mxu0 %v4345_v38  ;;  %3836 = vmatprep.mubr.msk.bf16.mxu1 %vm699_vm2, %v4938_v48  ;;  %v2505_v38 = vshll.u32 %v5171_v55, 16 }
  0xd5   : > { %3990 = vmatprep.mubr.msk.bf16.mxu0 %vm699_vm2, %v5559_v53 }
  0xdb   : > { %3837 = vmatmul.mubr.msk.bf16.gmra.mrb[20].mxu1 %vm699_vm2, %v4947_v45  ;;  %3991 = vmatmul.mubr.msk.bf16.gmra.mrb[4].mxu0 %vm699_vm2, %v5560_v4 }
  0xdc   : > { %3840 = vmatprep.mubr.msk.bf16.mxu1 %vm699_vm2, %v4991_v14  ;;  %3994 = vmatprep.mubr.msk.bf16.mxu0 %vm699_vm2, %v5561_v5 }
  0xe3   : > { %3841 = vmatmul.mubr.msk.bf16.gmra.mrb[24].mxu1 %vm699_vm2, %v5019_v26  ;;  %3995 = vmatmul.mubr.msk.bf16.gmra.mrb[8].mxu0 %vm699_vm2, %v5562_v27 }
  0xe4   : > { %3844 = vmatprep.mubr.msk.bf16.mxu1 %vm699_vm2, %v5051_v29  ;;  %3998 = vmatprep.mubr.msk.bf16.mxu0 %vm699_vm2, %v5563_v33 }
  0xeb   : > { %3845 = vmatmul.mubr.msk.bf16.gmra.mrb[28].mxu1 %vm699_vm2, %v5061_v21  ;;  %3999 = vmatmul.mubr.msk.bf16.gmra.mrb[12].mxu0 %vm699_vm2, %v5564_v41 }
  0xec   : > { %3850 = vmatprep.mubr.msk.bf16.mxu1 %vm699_vm2, %v4453_v32  ;;  %4002 = vmatprep.mubr.msk.bf16.mxu0 %vm699_vm2, %v5565_v52  ;;  %v2511_v32 = vshll.u32 %v5174_v63, 16 }
  0xee   : > { %v2513_v19 = vrot.slane %v2511_v32, 5 }
  0xf0   : > { %v2518_v44 = vor.u32 %v2517_v10, %v2513_v19 }
  0xf2   : > { %v2519_v50 = vrot.slane %v2518_v44, 4 }
  0xf3   : > { %3851 = vmatmul.mubr.msk.bf16.vlgmr.msra.gmra.mrb[0].mxu1 %vm699_vm2, %v4944_v34  ;;  %4003 = vmatmul.mubr.msk.bf16.gmra.mrb[16].mxu0 %vm699_vm2, %v5566_v62  ;;  %v2507_v34 = vrot.slane %v2505_v38, 5 }
  0xf4   : > { %4053 = vmatpush3.bf16.msra.mxu1 %v4349_v37  ;;  %3854 = vmatprep.mubr.msk.bf16.mxu1 %vm699_vm2, %v4969_v2 }
  0xf5   : > { %4006 = vmatprep.mubr.msk.bf16.mxu0 %vm699_vm2, %v5567_v47  ;;  %v2508_v2 = vor.u32 %v2507_v34, %v2504_v6 }
  0xf7   : > { %v2509_v31 = vrot.slane %v2508_v2, 4 }
  0xfb   : > { %3855 = vmatmul.mubr.msk.bf16.gmra.mrb[4].mxu1 %vm699_vm2, %v5017_v58  ;;  %4007 = vmatmul.mubr.msk.bf16.gmra.mrb[20].mxu0 %vm699_vm2, %v5568_v49  ;;  %v2514_v58 = vsel %vm4447_vm3, %v2509_v31, %v2513_v19 }
  0xfc   : > { %3858 = vmatprep.mubr.msk.bf16.mxu1 %vm699_vm2, %v5049_v24  ;;  %4010 = vmatprep.mubr.msk.bf16.mxu0 %vm699_vm2, %v4883_v3  ;;  %v2524_v24 = vsel %vm4447_vm3, %v2519_v50, %v2523_v36 }
  0xfd   : > { %v3485_v37 = vcombine.low %v2514_v58, %v2524_v24 }
 0x103   : > { %3859 = vmatmul.mubr.msk.bf16.gmra.mrb[8].mxu1 %vm699_vm2, %v5055_v8  ;;  %4011 = vmatmul.mubr.msk.bf16.gmra.mrb[24].mxu0 %vm699_vm2, %v4910_v46 }
 0x104   : > { %3862 = vmatprep.mubr.msk.bf16.mxu1 %vm699_vm2, %v5078_v12  ;;  %4014 = vmatprep.mubr.msk.bf16.mxu0 %vm699_vm2, %v5086_v39 }
 0x10b   : > { %3863 = vmatmul.mubr.msk.bf16.gmra.mrb[12].mxu1 %vm699_vm2, %v4976_v30  ;;  %4015 = vmatmul.mubr.msk.bf16.gmra.mrb[28].mxu0 %vm699_vm2, %v3485_v37 }
 0x10c   : > { %3866 = vmatprep.mubr.msk.bf16.mxu1 %vm699_vm2, %v4985_v51  ;;  %4020 = vmatprep.mubr.msk.bf16.mxu0 %vm699_vm2, %v5552_v59 }
 0x113   : > { %3867 = vmatmul.mubr.msk.bf16.gmra.mrb[16].mxu1 %vm699_vm2, %v4989_v56  ;;  %4021 = vmatmul.mubr.msk.bf16.vlgmr.msra.gmra.mrb[0].mxu0 %vm699_vm2, %v5553_v43 }
 0x114   : > { %3870 = vmatprep.mubr.msk.bf16.mxu1 %vm699_vm2, %v4996_v57  ;;  %4024 = vmatprep.mubr.msk.bf16.mxu0 %vm699_vm2, %v5554_v17  ;;  %v5344_v17 = vld [vmem:[%s5493_s3] ss:$0 sm:$0xff] }
 0x11b   : > { %3871 = vmatmul.mubr.msk.bf16.gmra.mrb[20].mxu1 %vm699_vm2, %v5001_v42  ;;  %4025 = vmatmul.mubr.msk.bf16.gmra.mrb[4].mxu0 %vm699_vm2, %v5555_v60 }
 0x11c   : > { %3874 = vmatprep.mubr.msk.bf16.mxu1 %vm699_vm2, %v5005_v1  ;;  %4028 = vmatprep.mubr.msk.bf16.mxu0 %vm699_vm2, %v5556_v61 }
 0x123   : > { %3875 = vmatmul.mubr.msk.bf16.gmra.mrb[24].mxu1 %vm699_vm2, %v5009_v0  ;;  %4029 = vmatmul.mubr.msk.bf16.gmra.mrb[8].mxu0 %vm699_vm2, %v4881_v35  ;;  %v3503_v35 = vrot.slane %v5171_v55, 9 }
 0x124   : > { %3878 = vmatprep.mubr.msk.bf16.mxu1 %vm699_vm2, %v5013_v20  ;;  %4032 = vmatprep.mubr.msk.bf16.mxu0 %vm699_vm2, %v4912_v54  ;;  %v2738_v54 = vrot.slane %v2736_v28, 4 }
 0x12b   : > { %3879 = vmatmul.mubr.msk.bf16.gmra.mrb[28].mxu1 %vm699_vm2, %v5160_v22  ;;  %4033 = vmatmul.mubr.msk.bf16.gmra.mrb[12].mxu0 %vm699_vm2, %v4916_v18  ;;  %v2739_v18 = vrot.slane %v252_v23, 5 }
 0x12c   : > { %3900 = vmatprep.mubr.msk.bf16.mxu1 %vm699_vm2, %v5564_v41  ;;  %4036 = vmatprep.mubr.msk.bf16.mxu0 %vm699_vm2, %v4938_v48  ;;  %v2737_v48 = vsel %vm4631_vm6, %v3503_v35, %v2736_v28 }
 0x133   : > { %3901 = vmatmul.mubr.msk.bf16.vlgmr.msra.gmra.mrb[16].mxu1 %vm699_vm2, %v5565_v52  ;;  %4037 = vmatmul.mubr.msk.bf16.gmra.mrb[16].mxu0 %vm699_vm2, %v4947_v45  ;;  %v2740_v45 = vsel %vm4631_vm6, %v2738_v54, %v2739_v18 }
 0x134   : > { %3904 = vmatprep.mubr.msk.bf16.mxu1 %vm699_vm2, %v5566_v62  ;;  %4040 = vmatprep.mubr.msk.bf16.mxu0 %vm699_vm2, %v4991_v14  ;;  %v3506_v30 = vcombine.low %v2737_v48, %v2740_v45 }
 0x13b   : > { %3905 = vmatmul.mubr.msk.bf16.gmra.mrb[20].mxu1 %vm699_vm2, %v5567_v47  ;;  %4041 = vmatmul.mubr.msk.bf16.gmra.mrb[20].mxu0 %vm699_vm2, %v5019_v26 }
 0x13c   : > { %3908 = vmatprep.mubr.msk.bf16.mxu1 %vm699_vm2, %v5568_v49  ;;  %4044 = vmatprep.mubr.msk.bf16.mxu0 %vm699_vm2, %v5051_v29 }
 0x143   : > { %3909 = vmatmul.mubr.msk.bf16.gmra.mrb[24].mxu1 %vm699_vm2, %v4883_v3  ;;  %4045 = vmatmul.mubr.msk.bf16.gmra.mrb[24].mxu0 %vm699_vm2, %v5061_v21 }
 0x144   : > { %3912 = vmatprep.mubr.msk.bf16.mxu1 %vm699_vm2, %v4910_v46  ;;  %4048 = vmatprep.mubr.msk.bf16.mxu0 %vm699_vm2, %v5080_v13 }
 0x14b   : > { %3913 = vmatmul.mubr.msk.bf16.gmra.mrb[28].mxu1 %vm699_vm2, %v5086_v39  ;;  %4049 = vmatmul.mubr.msk.bf16.gmra.mrb[28].mxu0 %vm699_vm2, %v3506_v30  ;;  %v5339_v39 = vld [vmem:[%s5492_s2] ss:$0 sm:$0xff] }
 0x1c6   : > { %v3852_v3 = vpop.f32.mrb[0].mxu1 }
 0x1c7   : > { %v1684_v51 = vpop.f32.mrb[1].mxu1 }
 0x1c8   : > { %v3853_v56 = vpop.f32.mrb[2].mxu1 }
 0x1c9   : > { %v1687_v14 = vpop.f32.mrb[3].mxu1 }
 0x1ce   : > { %v3856_v46 = vpop.f32.mrb[4].mxu1 }
 0x1cf   : > { %v1700_v57 = vpop.f32.mrb[5].mxu1 }
 0x1d0   : > { %v3857_v42 = vpop.f32.mrb[6].mxu1 }
 0x1d1   : > { %v1703_v1 = vpop.f32.mrb[7].mxu1 }
 0x1d6   : > { %v3860_v0 = vpop.f32.mrb[8].mxu1 }
 0x1d7   : > { %v5322_v20 = vpop.f32.mrb[9].mxu1 }
 0x1d8   : > { %v5324_v26 = vpop.f32.mrb[10].mxu1 }
 0x1d9   : > { %v5326_v7 = vpop.f32.mrb[11].mxu1 }
 0x1de   : > { %v5328_v29 = vpop.f32.mrb[12].mxu1 }
 0x1df   : > { %v5330_v8 = vpop.f32.mrb[13].mxu1 }
 0x1e0   : > { %v5332_v21 = vpop.f32.mrb[14].mxu1 }
 0x1e1   : > { %v5334_v12 = vpop.f32.mrb[15].mxu1 }
 0x1e6   : > { %v4022_v13 = vpop.f32.mrb[0].mxu0 }
 0x1e7   : > { %v4054_v59 = vadd.f32 %v4022_v13, %v3852_v3  ;;  %v2790_v43 = vpop.f32.mrb[1].mxu0 }
 0x1e8   : > { %v4055_v22 = vadd.f32 %v2790_v43, %v1684_v51  ;;  %v4023_v60 = vpop.f32.mrb[2].mxu0 }
 0x1e9   : > { %v2958_v61 = vmul.f32 %v4054_v59, %v5339_v39  ;;  %v4056_v55 = vadd.f32 %v4023_v60, %v3853_v56  ;;  %v2793_v63 = vpop.f32.mrb[3].mxu0 }
 0x1ea   : > { %v2956_v40 = vmul.f32 %v4055_v22, %v5339_v39  ;;  %v4057_v11 = vadd.f32 %v2793_v63, %v1687_v14 }
 0x1eb   : > { %v2997_v9 = vadd.f32 %v5344_v17, %v2958_v61  ;;  %v2959_v53 = vmul.f32 %v4056_v55, %v5339_v39 }
 0x1ec   : > { %v2995_v4 = vadd.f32 %v5344_v17, %v2956_v40  ;;  %v2957_v5 = vmul.f32 %v4057_v11, %v5339_v39 }
 0x1ed   : > { %v3029_v27 = vmax.f32 %v2997_v9, 0.0  ;;  %v2998_v33 = vadd.f32 %v5344_v17, %v2959_v53 }
 0x1ee   : > { %v3027_v41 = vmax.f32 %v2995_v4, 0.0  ;;  %v2996_v52 = vadd.f32 %v5344_v17, %v2957_v5  ;;  %v4026_v62 = vpop.f32.mrb[4].mxu0 }
 0x1ef   : > { %v3563_v15 = vpack.c.bf16 %v3029_v27, %v3029_v27  ;;  %v3030_v38 = vmax.f32 %v2998_v33, 0.0  ;;  %v4058_v16 = vadd.f32 %v4026_v62, %v3856_v46  ;;  %v2806_v32 = vpop.f32.mrb[5].mxu0 }
 0x1f0   : > { %v3561_v47 = vpack.c.bf16 %v3027_v41, %v3027_v41  ;;  %v3028_v6 = vmax.f32 %v2996_v52, 0.0  ;;  %v4059_v34 = vadd.f32 %v2806_v32, %v1700_v57  ;;  %v4027_v19 = vpop.f32.mrb[6].mxu0 }
 0x1f1   : > { %3190 = vst.msk [vmem:[%s5357_s24 + $0x8] sm:$0xf] %vm3187_vm7, %v3563_v15  ;;  %v3564_v10 = vpack.c.bf16 %v3030_v38, %v3030_v38  ;;  %v2962_v23 = vmul.f32 %v4058_v16, %v5339_v39  ;;  %v4060_v49 = vadd.f32 %v4027_v19, %v3857_v42  ;;  %v2809_v2 = vpop.f32.mrb[7].mxu0 }
 0x1f2   : > { %3188 = vst.msk [vmem:[%s5357_s24] sm:$0xf] %vm3187_vm7, %v3561_v47  ;;  %v3562_v44 = vpack.c.bf16 %v3028_v6, %v3028_v6  ;;  %v2960_v25 = vmul.f32 %v4059_v34, %v5339_v39  ;;  %v4061_v31 = vadd.f32 %v2809_v2, %v1703_v1 }
 0x1f3   : > { %3191 = vst.msk [vmem:[%s5357_s24 + $0xc] sm:$0xf] %vm3187_vm7, %v3564_v10  ;;  %v3001_v50 = vadd.f32 %v5344_v17, %v2962_v23  ;;  %v2963_v36 = vmul.f32 %v4060_v49, %v5339_v39 }
 0x1f4   : > { %3189 = vst.msk [vmem:[%s5357_s24 + $0x4] sm:$0xf] %vm3187_vm7, %v3562_v44  ;;  %v2999_v58 = vadd.f32 %v5344_v17, %v2960_v25  ;;  %v2961_v24 = vmul.f32 %v4061_v31, %v5339_v39 }
 0x1f5   : > { %v3033_v37 = vmax.f32 %v3001_v50, 0.0  ;;  %v3002_v28 = vadd.f32 %v5344_v17, %v2963_v36 }
 0x1f6   : > { %v3031_v35 = vmax.f32 %v2999_v58, 0.0  ;;  %v3000_v54 = vadd.f32 %v5344_v17, %v2961_v24  ;;  %v4030_v18 = vpop.f32.mrb[8].mxu0 }
 0x1f7   : > { %v3567_v48 = vpack.c.bf16 %v3033_v37, %v3033_v37  ;;  %v3034_v45 = vmax.f32 %v3002_v28, 0.0  ;;  %v4062_v30 = vadd.f32 %v4030_v18, %v3860_v0  ;;  %v2822_v3 = vpop.f32.mrb[9].mxu0 }
 0x1f8   : > { %v3565_v51 = vpack.c.bf16 %v3031_v35, %v3031_v35  ;;  %v3032_v56 = vmax.f32 %v3000_v54, 0.0  ;;  %v4063_v14 = vadd.f32 %v2822_v3, %v5322_v20  ;;  %v4031_v46 = vpop.f32.mrb[10].mxu0 }
 0x1f9   : > { %3194 = vst.msk [vmem:[%s5357_s24 + $0x18] sm:$0xf] %vm3187_vm7, %v3567_v48  ;;  %v3568_v57 = vpack.c.bf16 %v3034_v45, %v3034_v45  ;;  %v2966_v42 = vmul.f32 %v4062_v30, %v5339_v39  ;;  %v4064_v1 = vadd.f32 %v4031_v46, %v5324_v26  ;;  %v2825_v13 = vpop.f32.mrb[11].mxu0 }
 0x1fa   : > { %3192 = vst.msk [vmem:[%s5357_s24 + $0x10] sm:$0xf] %vm3187_vm7, %v3565_v51  ;;  %v3566_v59 = vpack.c.bf16 %v3032_v56, %v3032_v56  ;;  %v2964_v0 = vmul.f32 %v4063_v14, %v5339_v39  ;;  %v4065_v43 = vadd.f32 %v2825_v13, %v5326_v7 }
 0x1fb   : > { %3195 = vst.msk [vmem:[%s5357_s24 + $0x1c] sm:$0xf] %vm3187_vm7, %v3568_v57  ;;  %v3005_v20 = vadd.f32 %v5344_v17, %v2966_v42  ;;  %v2967_v22 = vmul.f32 %v4064_v1, %v5339_v39 }
 0x1fc   : > { %3193 = vst.msk [vmem:[%s5357_s24 + $0x14] sm:$0xf] %vm3187_vm7, %v3566_v59  ;;  %v3003_v60 = vadd.f32 %v5344_v17, %v2964_v0  ;;  %v2965_v26 = vmul.f32 %v4065_v43, %v5339_v39 }
 0x1fd   : > { %v3037_v61 = vmax.f32 %v3005_v20, 0.0  ;;  %v3006_v55 = vadd.f32 %v5344_v17, %v2967_v22 }
 0x1fe   : > { %v3035_v63 = vmax.f32 %v3003_v60, 0.0  ;;  %v3004_v7 = vadd.f32 %v5344_v17, %v2965_v26  ;;  %v4034_v40 = vpop.f32.mrb[12].mxu0 }
 0x1ff   : > { %v3571_v11 = vpack.c.bf16 %v3037_v61, %v3037_v61  ;;  %v3038_v9 = vmax.f32 %v3006_v55, 0.0  ;;  %v4066_v53 = vadd.f32 %v4034_v40, %v5328_v29  ;;  %v2838_v4 = vpop.f32.mrb[13].mxu0 }
 0x200   : > { %v3569_v5 = vpack.c.bf16 %v3035_v63, %v3035_v63  ;;  %v3036_v27 = vmax.f32 %v3004_v7, 0.0  ;;  %v4067_v33 = vadd.f32 %v2838_v4, %v5330_v8  ;;  %v4035_v41 = vpop.f32.mrb[14].mxu0 }
 0x201   : > { %3198 = vst.msk [vmem:[%s5357_s24 + $0x28] sm:$0xf] %vm3187_vm7, %v3571_v11  ;;  %v3572_v52 = vpack.c.bf16 %v3038_v9, %v3038_v9  ;;  %v2970_v62 = vmul.f32 %v4066_v53, %v5339_v39  ;;  %v4068_v15 = vadd.f32 %v4035_v41, %v5332_v21  ;;  %v2841_v38 = vpop.f32.mrb[15].mxu0 }
 0x202   : > { %3196 = vst.msk [vmem:[%s5357_s24 + $0x20] sm:$0xf] %vm3187_vm7, %v3569_v5  ;;  %v3570_v16 = vpack.c.bf16 %v3036_v27, %v3036_v27  ;;  %v2968_v29 = vmul.f32 %v4067_v33, %v5339_v39  ;;  %v4069_v32 = vadd.f32 %v2841_v38, %v5334_v12 }
 0x203   : > { %3199 = vst.msk [vmem:[%s5357_s24 + $0x2c] sm:$0xf] %vm3187_vm7, %v3572_v52  ;;  %v3009_v8 = vadd.f32 %v5344_v17, %v2970_v62  ;;  %v2971_v47 = vmul.f32 %v4068_v15, %v5339_v39 }
 0x204   : > { %3197 = vst.msk [vmem:[%s5357_s24 + $0x24] sm:$0xf] %vm3187_vm7, %v3570_v16  ;;  %v3007_v6 = vadd.f32 %v5344_v17, %v2968_v29  ;;  %v2969_v21 = vmul.f32 %v4069_v32, %v5339_v39 }
 0x205   : > { %v3041_v34 = vmax.f32 %v3009_v8, 0.0  ;;  %v3010_v19 = vadd.f32 %v5344_v17, %v2971_v47 }
 0x206   : > { %v3039_v10 = vmax.f32 %v3007_v6, 0.0  ;;  %v3008_v23 = vadd.f32 %v5344_v17, %v2969_v21  ;;  %v3902_v12 = vpop.f32.mrb[16].mxu1  ;;  %v4038_v49 = vpop.f32.mrb[16].mxu0 }
 0x207   : > { %v3575_v2 = vpack.c.bf16 %v3041_v34, %v3041_v34  ;;  %v3042_v44 = vmax.f32 %v3010_v19, 0.0  ;;  %v4070_v25 = vadd.f32 %v4038_v49, %v3902_v12  ;;  %v1980_v31 = vpop.f32.mrb[17].mxu1  ;;  %v2854_v50 = vpop.f32.mrb[17].mxu0 }
 0x208   : > { %v3573_v36 = vpack.c.bf16 %v3039_v10, %v3039_v10  ;;  %v3040_v58 = vmax.f32 %v3008_v23, 0.0  ;;  %v4071_v24 = vadd.f32 %v2854_v50, %v1980_v31  ;;  %v3903_v37 = vpop.f32.mrb[18].mxu1  ;;  %v4039_v28 = vpop.f32.mrb[18].mxu0 }
 0x209   : > { %3202 = vst.msk [vmem:[%s5357_s24 + $0x38] sm:$0xf] %vm3187_vm7, %v3575_v2  ;;  %v3576_v35 = vpack.c.bf16 %v3042_v44, %v3042_v44  ;;  %v2974_v54 = vmul.f32 %v4070_v25, %v5339_v39  ;;  %v4072_v18 = vadd.f32 %v4039_v28, %v3903_v37  ;;  %v1983_v48 = vpop.f32.mrb[19].mxu1  ;;  %v2857_v45 = vpop.f32.mrb[19].mxu0 }
 0x20a   : > { %3200 = vst.msk [vmem:[%s5357_s24 + $0x30] sm:$0xf] %vm3187_vm7, %v3573_v36  ;;  %v3574_v30 = vpack.c.bf16 %v3040_v58, %v3040_v58  ;;  %v2972_v3 = vmul.f32 %v4071_v24, %v5339_v39  ;;  %v4073_v51 = vadd.f32 %v2857_v45, %v1983_v48 }
 0x20b   : > { %3203 = vst.msk [vmem:[%s5357_s24 + $0x3c] sm:$0xf] %vm3187_vm7, %v3576_v35  ;;  %v3013_v56 = vadd.f32 %v5344_v17, %v2974_v54  ;;  %v2975_v14 = vmul.f32 %v4072_v18, %v5339_v39 }
 0x20c   : > { %3201 = vst.msk [vmem:[%s5357_s24 + $0x34] sm:$0xf] %vm3187_vm7, %v3574_v30  ;;  %v3011_v46 = vadd.f32 %v5344_v17, %v2972_v3  ;;  %v2973_v57 = vmul.f32 %v4073_v51, %v5339_v39 }
 0x20d   : > { %v3045_v42 = vmax.f32 %v3013_v56, 0.0  ;;  %v3014_v1 = vadd.f32 %v5344_v17, %v2975_v14 }
 0x20e   : > { %v3043_v13 = vmax.f32 %v3011_v46, 0.0  ;;  %v3012_v59 = vadd.f32 %v5344_v17, %v2973_v57  ;;  %v3906_v0 = vpop.f32.mrb[20].mxu1  ;;  %v4042_v43 = vpop.f32.mrb[20].mxu0 }
 0x20f   : > { %v3579_v20 = vpack.c.bf16 %v3045_v42, %v3045_v42  ;;  %v3046_v22 = vmax.f32 %v3014_v1, 0.0  ;;  %v4074_v60 = vadd.f32 %v4042_v43, %v3906_v0  ;;  %v1996_v26 = vpop.f32.mrb[21].mxu1  ;;  %v2870_v61 = vpop.f32.mrb[21].mxu0 }
 0x210   : > { %v3577_v55 = vpack.c.bf16 %v3043_v13, %v3043_v13  ;;  %v3044_v63 = vmax.f32 %v3012_v59, 0.0  ;;  %v4075_v7 = vadd.f32 %v2870_v61, %v1996_v26  ;;  %v3907_v40 = vpop.f32.mrb[22].mxu1  ;;  %v4043_v11 = vpop.f32.mrb[22].mxu0 }
 0x211   : > { %3206 = vst.msk [vmem:[%s5357_s24 + $0x48] sm:$0xf] %vm3187_vm7, %v3579_v20  ;;  %v3580_v9 = vpack.c.bf16 %v3046_v22, %v3046_v22  ;;  %v2978_v53 = vmul.f32 %v4074_v60, %v5339_v39  ;;  %v4076_v4 = vadd.f32 %v4043_v11, %v3907_v40  ;;  %v1999_v5 = vpop.f32.mrb[23].mxu1  ;;  %v2873_v27 = vpop.f32.mrb[23].mxu0 }
 0x212   : > { %3204 = vst.msk [vmem:[%s5357_s24 + $0x40] sm:$0xf] %vm3187_vm7, %v3577_v55  ;;  %v3578_v33 = vpack.c.bf16 %v3044_v63, %v3044_v63  ;;  %v2976_v41 = vmul.f32 %v4075_v7, %v5339_v39  ;;  %v4077_v52 = vadd.f32 %v2873_v27, %v1999_v5 }
 0x213   : > { %3207 = vst.msk [vmem:[%s5357_s24 + $0x4c] sm:$0xf] %vm3187_vm7, %v3580_v9  ;;  %v3017_v62 = vadd.f32 %v5344_v17, %v2978_v53  ;;  %v2979_v15 = vmul.f32 %v4076_v4, %v5339_v39 }
 0x214   : > { %3205 = vst.msk [vmem:[%s5357_s24 + $0x44] sm:$0xf] %vm3187_vm7, %v3578_v33  ;;  %v3015_v38 = vadd.f32 %v5344_v17, %v2976_v41  ;;  %v2977_v16 = vmul.f32 %v4077_v52, %v5339_v39 }
 0x215   : > { %v3049_v29 = vmax.f32 %v3017_v62, 0.0  ;;  %v3018_v32 = vadd.f32 %v5344_v17, %v2979_v15 }
 0x216   : > { %v3047_v8 = vmax.f32 %v3015_v38, 0.0  ;;  %v3016_v47 = vadd.f32 %v5344_v17, %v2977_v16  ;;  %v3910_v6 = vpop.f32.mrb[24].mxu1  ;;  %v4046_v21 = vpop.f32.mrb[24].mxu0 }
 0x217   : > { %v3583_v34 = vpack.c.bf16 %v3049_v29, %v3049_v29  ;;  %v3050_v19 = vmax.f32 %v3018_v32, 0.0  ;;  %v4078_v10 = vadd.f32 %v4046_v21, %v3910_v6  ;;  %v2012_v23 = vpop.f32.mrb[25].mxu1  ;;  %v2886_v12 = vpop.f32.mrb[25].mxu0 }
 0x218   : > { %v3581_v49 = vpack.c.bf16 %v3047_v8, %v3047_v8  ;;  %v3048_v2 = vmax.f32 %v3016_v47, 0.0  ;;  %v4079_v44 = vadd.f32 %v2886_v12, %v2012_v23  ;;  %v3911_v25 = vpop.f32.mrb[26].mxu1  ;;  %v4047_v31 = vpop.f32.mrb[26].mxu0 }
 0x219   : > { %3210 = vst.msk [vmem:[%s5357_s24 + $0x58] sm:$0xf] %vm3187_vm7, %v3583_v34  ;;  %v3584_v50 = vpack.c.bf16 %v3050_v19, %v3050_v19  ;;  %v2982_v36 = vmul.f32 %v4078_v10, %v5339_v39  ;;  %v4080_v58 = vadd.f32 %v4047_v31, %v3911_v25  ;;  %v2015_v24 = vpop.f32.mrb[27].mxu1  ;;  %v2889_v37 = vpop.f32.mrb[27].mxu0 }
 0x21a   : > { %3208 = vst.msk [vmem:[%s5357_s24 + $0x50] sm:$0xf] %vm3187_vm7, %v3581_v49  ;;  %v3582_v28 = vpack.c.bf16 %v3048_v2, %v3048_v2  ;;  %v2980_v35 = vmul.f32 %v4079_v44, %v5339_v39  ;;  %v4081_v54 = vadd.f32 %v2889_v37, %v2015_v24 }
 0x21b   : > { %3211 = vst.msk [vmem:[%s5357_s24 + $0x5c] sm:$0xf] %vm3187_vm7, %v3584_v50  ;;  %v3021_v18 = vadd.f32 %v5344_v17, %v2982_v36  ;;  %v2983_v48 = vmul.f32 %v4080_v58, %v5339_v39 }
 0x21c   : > { %3209 = vst.msk [vmem:[%s5357_s24 + $0x54] sm:$0xf] %vm3187_vm7, %v3582_v28  ;;  %v3019_v45 = vadd.f32 %v5344_v17, %v2980_v35  ;;  %v2981_v30 = vmul.f32 %v4081_v54, %v5339_v39 }
 0x21d   : > { %v3053_v3 = vmax.f32 %v3021_v18, 0.0  ;;  %v3022_v51 = vadd.f32 %v5344_v17, %v2983_v48 }
 0x21e   : > { %v3051_v56 = vmax.f32 %v3019_v45, 0.0  ;;  %v3020_v14 = vadd.f32 %v5344_v17, %v2981_v30  ;;  %v3914_v46 = vpop.f32.mrb[28].mxu1  ;;  %v4050_v57 = vpop.f32.mrb[28].mxu0 }
 0x21f   : > { %v3587_v42 = vpack.c.bf16 %v3053_v3, %v3053_v3  ;;  %v3054_v1 = vmax.f32 %v3022_v51, 0.0  ;;  %v4082_v13 = vadd.f32 %v4050_v57, %v3914_v46  ;;  %v2028_v59 = vpop.f32.mrb[29].mxu1  ;;  %v2902_v0 = vpop.f32.mrb[29].mxu0 }
 0x220   : > { %v3585_v43 = vpack.c.bf16 %v3051_v56, %v3051_v56  ;;  %v3052_v20 = vmax.f32 %v3020_v14, 0.0  ;;  %v4083_v22 = vadd.f32 %v2902_v0, %v2028_v59  ;;  %v3915_v60 = vpop.f32.mrb[30].mxu1  ;;  %v4051_v26 = vpop.f32.mrb[30].mxu0 }
 0x221   : > { %3214 = vst.msk [vmem:[%s5357_s24 + $0x68] sm:$0xf] %vm3187_vm7, %v3587_v42  ;;  %v3588_v61 = vpack.c.bf16 %v3054_v1, %v3054_v1  ;;  %v2986_v55 = vmul.f32 %v4082_v13, %v5339_v39  ;;  %v4084_v63 = vadd.f32 %v4051_v26, %v3915_v60  ;;  %v2031_v7 = vpop.f32.mrb[31].mxu1  ;;  %v2905_v40 = vpop.f32.mrb[31].mxu0 }
 0x222   : > { %3212 = vst.msk [vmem:[%s5357_s24 + $0x60] sm:$0xf] %vm3187_vm7, %v3585_v43  ;;  %v3586_v11 = vpack.c.bf16 %v3052_v20, %v3052_v20  ;;  %v2984_v9 = vmul.f32 %v4083_v22, %v5339_v39  ;;  %v4085_v53 = vadd.f32 %v2905_v40, %v2031_v7 }
 0x223   : > { %3215 = vst.msk [vmem:[%s5357_s24 + $0x6c] sm:$0xf] %vm3187_vm7, %v3588_v61  ;;  %v3025_v4 = vadd.f32 %v5344_v17, %v2986_v55  ;;  %v2987_v5 = vmul.f32 %v4084_v63, %v5339_v39 }
 0x224   : > { %3213 = vst.msk [vmem:[%s5357_s24 + $0x64] sm:$0xf] %vm3187_vm7, %v3586_v11  ;;  %v3023_v27 = vadd.f32 %v5344_v17, %v2984_v9  ;;  %v2985_v33 = vmul.f32 %v4085_v53, %v5339_v39 }
 0x225   : > { %v3057_v41 = vmax.f32 %v3025_v4, 0.0  ;;  %v3026_v52 = vadd.f32 %v5344_v17, %v2987_v5 }
 0x226   : > { %v3055_v62 = vmax.f32 %v3023_v27, 0.0  ;;  %v3024_v15 = vadd.f32 %v5344_v17, %v2985_v33 }
 0x227   : > { %v3591_v38 = vpack.c.bf16 %v3057_v41, %v3057_v41  ;;  %v3058_v16 = vmax.f32 %v3026_v52, 0.0 }
 0x228   : > { %v3589_v29 = vpack.c.bf16 %v3055_v62, %v3055_v62  ;;  %v3056_v32 = vmax.f32 %v3024_v15, 0.0 }
 0x229   : > { %3218 = vst.msk [vmem:[%s5357_s24 + $0x78] sm:$0xf] %vm3187_vm7, %v3591_v38  ;;  %v3592_v8 = vpack.c.bf16 %v3058_v16, %v3058_v16 }
 0x22a   : > { %3216 = vst.msk [vmem:[%s5357_s24 + $0x70] sm:$0xf] %vm3187_vm7, %v3589_v29  ;;  %v3590_v47 = vpack.c.bf16 %v3056_v32, %v3056_v32 }
 0x22b   : > { %3219 = vst.msk [vmem:[%s5357_s24 + $0x7c] sm:$0xf] %vm3187_vm7, %v3592_v8 }
 0x22c   : > { %3217 = vst.msk [vmem:[%s5357_s24 + $0x74] sm:$0xf] %vm3187_vm7, %v3590_v47 }
 0x22d PF: > { %s14_s15 = sadd.s32 1, %s4356_s15  }
 0x22e   : > { %p11_p4 = scmp.ge.s32.totalorder %s14_s15, 4  }
 0x230   :  { %13 = sbr.rel (!%p11_p4) target bundleno = 1 (0x1), region = 74 }

// kernel: bottleneck_forward.10
= control target key start
LH: loop header
LB: loop body
LE: loop exit
PB: predicated region body
PF: predicated region fallthrough
CT: control target
= control target key end

     0   :  { %vm22_vm0 = vcmask 523264   ;;  %v1764_v1 = vmov 0.0   ;;  %vm383_vm1 = vcmask 130048   ;;  %vm1363_vm2 = vcmask 519168   ;;  %s2509_s1 = inlined_call_operand.vmem [shape: bf16[16,64], index: 1, kind: input, shape index: {}]   ;;  %s2510_s0 = inlined_call_operand.vmem [shape: bf16[512,16], index: 0, kind: input, shape index: {}]   ;;  %s2511_s2 = inlined_call_operand.vmem [shape: f32[1,64], index: 2, kind: input, shape index: {}]   ;;  %s2512_s3 = inlined_call_operand.vmem [shape: f32[1,64], index: 3, kind: input, shape index: {}]   ;;  %s2513_s4 = inlined_call_operand.vmem [shape: bf16[512,64], index: 4, kind: output, shape index: {}]  }
   0x1   :  { %v1793_v0 = vld [vmem:[%s2509_s1] sm:$0xff]   ;;  %25 = vst.msk [vmem:[#allocation2 + $0x10] sm:$0xff] %vm22_vm0, %v1764_v1  ;;  %23 = vst.msk [vmem:[#allocation2] sm:$0xff] %vm22_vm0, %v1764_v1  ;;  %v1732_v4 = vld [vmem:[%s2510_s0 + $0x8] sm:$0xff]  }
   0x2   :  { %24 = vst.msk [vmem:[#allocation2 + $0x8] sm:$0xff] %vm22_vm0, %v1764_v1  ;;  %26 = vst.msk [vmem:[#allocation2 + $0x18] sm:$0xff] %vm22_vm0, %v1764_v1  ;;  %v1730_v2 = vld [vmem:[%s2510_s0] sm:$0xff]   ;;  %1660 = vmatprep.subr.bf16.mxu0 %v1793_v0  ;;  %1726 = vmatprep.subr.bf16.mxu1 %v1793_v0  ;;  %v1733_v5 = vld [vmem:[%s2510_s0 + $0x88] sm:$0xff]  }
   0x3   :  { %27 = vst.msk [vmem:[#allocation2 + $0x20] sm:$0xff] %vm22_vm0, %v1764_v1  ;;  %28 = vst.msk [vmem:[#allocation2 + $0x28] sm:$0xff] %vm22_vm0, %v1764_v1  ;;  %v1731_v3 = vld [vmem:[%s2510_s0 + $0x80] sm:$0xff]   ;;  %1661 = vmatpush3.bf16.msra.mxu0 %v1793_v0  ;;  %1727 = vmatpush3.bf16.msra.mxu1 %v1793_v0  ;;  %v1734_v6 = vld [vmem:[%s2510_s0 + $0x10] sm:$0xff]  }
   0x4   :  { %29 = vst.msk [vmem:[#allocation2 + $0x30] sm:$0xff] %vm22_vm0, %v1764_v1  ;;  %30 = vst.msk [vmem:[#allocation2 + $0x38] sm:$0xff] %vm22_vm0, %v1764_v1  ;;  %1662 = vmatprep.mubr.msk.bf16.mxu0 %vm383_vm1, %v1730_v2  ;;  %1694 = vmatprep.mubr.msk.bf16.mxu1 %vm383_vm1, %v1731_v3  ;;  %v1735_v7 = vld [vmem:[%s2510_s0 + $0x90] sm:$0xff]   ;;  %v1736_v8 = vld [vmem:[%s2510_s0 + $0x18] sm:$0xff]  }
   0x5   :  { %31 = vst.msk [vmem:[#allocation2 + $0x40] sm:$0xff] %vm22_vm0, %v1764_v1  ;;  %32 = vst.msk [vmem:[#allocation2 + $0x48] sm:$0xff] %vm22_vm0, %v1764_v1  ;;  %v1737_v9 = vld [vmem:[%s2510_s0 + $0x98] sm:$0xff]   ;;  %v1738_v10 = vld [vmem:[%s2510_s0 + $0x20] sm:$0xff]  }
   0x6   :  { %33 = vst.msk [vmem:[#allocation2 + $0x50] sm:$0xff] %vm22_vm0, %v1764_v1  ;;  %34 = vst.msk [vmem:[#allocation2 + $0x58] sm:$0xff] %vm22_vm0, %v1764_v1  ;;  %1663 = vmatmul.mubr.msk.bf16.vlgmr.msra.gmra.mrb[0].mxu0 %vm383_vm1, %v1732_v4  ;;  %1695 = vmatmul.mubr.msk.bf16.vlgmr.msra.gmra.mrb[0].mxu1 %vm383_vm1, %v1733_v5  ;;  %v1739_v11 = vld [vmem:[%s2510_s0 + $0xa0] sm:$0xff]   ;;  %v1740_v12 = vld [vmem:[%s2510_s0 + $0x28] sm:$0xff]  }
   0x7   :  { %35 = vst.msk [vmem:[#allocation2 + $0x60] sm:$0xff] %vm22_vm0, %v1764_v1  ;;  %36 = vst.msk [vmem:[#allocation2 + $0x68] sm:$0xff] %vm22_vm0, %v1764_v1  ;;  %1666 = vmatprep.mubr.msk.bf16.mxu0 %vm383_vm1, %v1734_v6  ;;  %1698 = vmatprep.mubr.msk.bf16.mxu1 %vm383_vm1, %v1735_v7  ;;  %v1741_v13 = vld [vmem:[%s2510_s0 + $0xa8] sm:$0xff]   ;;  %v1742_v14 = vld [vmem:[%s2510_s0 + $0x30] sm:$0xff]  }
   0x8   :  { %37 = vst.msk [vmem:[#allocation2 + $0x70] sm:$0xff] %vm22_vm0, %v1764_v1  ;;  %38 = vst.msk [vmem:[#allocation2 + $0x78] sm:$0xff] %vm22_vm0, %v1764_v1  ;;  %v1743_v15 = vld [vmem:[%s2510_s0 + $0xb0] sm:$0xff]   ;;  %v1744_v16 = vld [vmem:[%s2510_s0 + $0x38] sm:$0xff]  }
   0x9   :  { %39 = vst.msk [vmem:[#allocation2 + $0x80] sm:$0xff] %vm22_vm0, %v1764_v1  ;;  %40 = vst.msk [vmem:[#allocation2 + $0x88] sm:$0xff] %vm22_vm0, %v1764_v1  ;;  %v1745_v17 = vld [vmem:[%s2510_s0 + $0xb8] sm:$0xff]   ;;  %v1746_v18 = vld [vmem:[%s2510_s0 + $0x40] sm:$0xff]  }
   0xa   :  { %41 = vst.msk [vmem:[#allocation2 + $0x90] sm:$0xff] %vm22_vm0, %v1764_v1  ;;  %42 = vst.msk [vmem:[#allocation2 + $0x98] sm:$0xff] %vm22_vm0, %v1764_v1  ;;  %v1747_v19 = vld [vmem:[%s2510_s0 + $0xc0] sm:$0xff]   ;;  %v1748_v20 = vld [vmem:[%s2510_s0 + $0x48] sm:$0xff]  }
   0xb   :  { %43 = vst.msk [vmem:[#allocation2 + $0xa0] sm:$0xff] %vm22_vm0, %v1764_v1  ;;  %44 = vst.msk [vmem:[#allocation2 + $0xa8] sm:$0xff] %vm22_vm0, %v1764_v1  ;;  %v1749_v21 = vld [vmem:[%s2510_s0 + $0xc8] sm:$0xff]   ;;  %v1750_v22 = vld [vmem:[%s2510_s0 + $0x50] sm:$0xff]  }
   0xc   :  { %45 = vst.msk [vmem:[#allocation2 + $0xb0] sm:$0xff] %vm22_vm0, %v1764_v1  ;;  %46 = vst.msk [vmem:[#allocation2 + $0xb8] sm:$0xff] %vm22_vm0, %v1764_v1  ;;  %v1751_v23 = vld [vmem:[%s2510_s0 + $0xd0] sm:$0xff]   ;;  %v1752_v24 = vld [vmem:[%s2510_s0 + $0x58] sm:$0xff]  }
   0xd   :  { %47 = vst.msk [vmem:[#allocation2 + $0xc0] sm:$0xff] %vm22_vm0, %v1764_v1  ;;  %48 = vst.msk [vmem:[#allocation2 + $0xc8] sm:$0xff] %vm22_vm0, %v1764_v1  ;;  %v1753_v25 = vld [vmem:[%s2510_s0 + $0xd8] sm:$0xff]   ;;  %v1754_v26 = vld [vmem:[%s2510_s0 + $0x60] sm:$0xff]  }
   0xe   :  { %49 = vst.msk [vmem:[#allocation2 + $0xd0] sm:$0xff] %vm22_vm0, %v1764_v1  ;;  %50 = vst.msk [vmem:[#allocation2 + $0xd8] sm:$0xff] %vm22_vm0, %v1764_v1  ;;  %1667 = vmatmul.mubr.msk.bf16.gmra.mrb[4].mxu0 %vm383_vm1, %v1736_v8  ;;  %1699 = vmatmul.mubr.msk.bf16.gmra.mrb[4].mxu1 %vm383_vm1, %v1737_v9  ;;  %v1755_v27 = vld [vmem:[%s2510_s0 + $0xe0] sm:$0xff]   ;;  %v1756_v28 = vld [vmem:[%s2510_s0 + $0x68] sm:$0xff]  }
   0xf   :  { %51 = vst.msk [vmem:[#allocation2 + $0xe0] sm:$0xff] %vm22_vm0, %v1764_v1  ;;  %52 = vst.msk [vmem:[#allocation2 + $0xe8] sm:$0xff] %vm22_vm0, %v1764_v1  ;;  %1670 = vmatprep.mubr.msk.bf16.mxu0 %vm383_vm1, %v1738_v10  ;;  %1702 = vmatprep.mubr.msk.bf16.mxu1 %vm383_vm1, %v1739_v11  ;;  %v1757_v29 = vld [vmem:[%s2510_s0 + $0xe8] sm:$0xff]   ;;  %v1758_v30 = vld [vmem:[%s2510_s0 + $0x70] sm:$0xff]  }
  0x10   :  { %53 = vst.msk [vmem:[#allocation2 + $0xf0] sm:$0xff] %vm22_vm0, %v1764_v1  ;;  %54 = vst.msk [vmem:[#allocation2 + $0xf8] sm:$0xff] %vm22_vm0, %v1764_v1  ;;  %v1759_v31 = vld [vmem:[%s2510_s0 + $0xf0] sm:$0xff]   ;;  %v1760_v32 = vld [vmem:[%s2510_s0 + $0x78] sm:$0xff]  }
  0x11   :  { %55 = vst.msk [vmem:[#allocation2 + $0x100] sm:$0xff] %vm22_vm0, %v1764_v1  ;;  %56 = vst.msk [vmem:[#allocation2 + $0x108] sm:$0xff] %vm22_vm0, %v1764_v1  ;;  %v1761_v33 = vld [vmem:[%s2510_s0 + $0xf8] sm:$0xff]   ;;  %v89_v34 = vld [vmem:[#allocation2 + $0x10] sm:$0xff] }
  0x12   :  { %57 = vst.msk [vmem:[#allocation2 + $0x110] sm:$0xff] %vm22_vm0, %v1764_v1  ;;  %58 = vst.msk [vmem:[#allocation2 + $0x118] sm:$0xff] %vm22_vm0, %v1764_v1  ;;  %v87_v36 = vld [vmem:[#allocation2] sm:$0xff]  ;;  %v90_v40 = vld [vmem:[#allocation2 + $0x18] sm:$0xff] }
  0x13   :  { %59 = vst.msk [vmem:[#allocation2 + $0x120] sm:$0xff] %vm22_vm0, %v1764_v1  ;;  %60 = vst.msk [vmem:[#allocation2 + $0x128] sm:$0xff] %vm22_vm0, %v1764_v1  ;;  %v88_v46 = vld [vmem:[#allocation2 + $0x8] sm:$0xff]  ;;  %v93_v58 = vld [vmem:[#allocation2 + $0x30] sm:$0xff] }
  0x14   :  { %61 = vst.msk [vmem:[#allocation2 + $0x130] sm:$0xff] %vm22_vm0, %v1764_v1  ;;  %62 = vst.msk [vmem:[#allocation2 + $0x138] sm:$0xff] %vm22_vm0, %v1764_v1  ;;  %v91_v60 = vld [vmem:[#allocation2 + $0x20] sm:$0xff]  ;;  %v92_v8 = vld [vmem:[#allocation2 + $0x28] sm:$0xff] }
  0x15   :  { %63 = vst.msk [vmem:[#allocation2 + $0x140] sm:$0xff] %vm22_vm0, %v1764_v1  ;;  %64 = vst.msk [vmem:[#allocation2 + $0x148] sm:$0xff] %vm22_vm0, %v1764_v1  ;;  %v2066_v62 = vld [vmem:[%s2511_s2] ss:$0 sm:$0xff] }
  0x16   :  { %65 = vst.msk [vmem:[#allocation2 + $0x150] sm:$0xff] %vm22_vm0, %v1764_v1  ;;  %66 = vst.msk [vmem:[#allocation2 + $0x158] sm:$0xff] %vm22_vm0, %v1764_v1  ;;  %1671 = vmatmul.mubr.msk.bf16.gmra.mrb[8].mxu0 %vm383_vm1, %v1740_v12  ;;  %1703 = vmatmul.mubr.msk.bf16.gmra.mrb[8].mxu1 %vm383_vm1, %v1741_v13  ;;  %v2071_v3 = vld [vmem:[%s2512_s3] ss:$0 sm:$0xff] }
  0x17   :  { %67 = vst.msk [vmem:[#allocation2 + $0x160] sm:$0xff] %vm22_vm0, %v1764_v1  ;;  %68 = vst.msk [vmem:[#allocation2 + $0x168] sm:$0xff] %vm22_vm0, %v1764_v1  ;;  %1674 = vmatprep.mubr.msk.bf16.mxu0 %vm383_vm1, %v1742_v14  ;;  %1706 = vmatprep.mubr.msk.bf16.mxu1 %vm383_vm1, %v1743_v15 }
  0x18   :  { %69 = vst.msk [vmem:[#allocation2 + $0x170] sm:$0xff] %vm22_vm0, %v1764_v1  ;;  %70 = vst.msk [vmem:[#allocation2 + $0x178] sm:$0xff] %vm22_vm0, %v1764_v1  ;;  %v119_v37 = vld [vmem:[#allocation2 + $0x100] sm:$0xff]  ;;  %v120_v47 = vld [vmem:[#allocation2 + $0x108] sm:$0xff] }
  0x19   :  { %71 = vst.msk [vmem:[#allocation2 + $0x180] sm:$0xff] %vm22_vm0, %v1764_v1  ;;  %72 = vst.msk [vmem:[#allocation2 + $0x188] sm:$0xff] %vm22_vm0, %v1764_v1  ;;  %v121_v35 = vld [vmem:[#allocation2 + $0x110] sm:$0xff]  ;;  %v122_v41 = vld [vmem:[#allocation2 + $0x118] sm:$0xff] }
  0x1a   :  { %73 = vst.msk [vmem:[#allocation2 + $0x190] sm:$0xff] %vm22_vm0, %v1764_v1  ;;  %74 = vst.msk [vmem:[#allocation2 + $0x198] sm:$0xff] %vm22_vm0, %v1764_v1  ;;  %v123_v61 = vld [vmem:[#allocation2 + $0x120] sm:$0xff]  ;;  %v124_v9 = vld [vmem:[#allocation2 + $0x128] sm:$0xff] }
  0x1b   :  { %75 = vst.msk [vmem:[#allocation2 + $0x1a0] sm:$0xff] %vm22_vm0, %v1764_v1  ;;  %76 = vst.msk [vmem:[#allocation2 + $0x1a8] sm:$0xff] %vm22_vm0, %v1764_v1  ;;  %v125_v59 = vld [vmem:[#allocation2 + $0x130] sm:$0xff]  ;;  %v126_v2 = vld [vmem:[#allocation2 + $0x138] sm:$0xff] }
  0x1c   :  { %77 = vst.msk [vmem:[#allocation2 + $0x1b0] sm:$0xff] %vm22_vm0, %v1764_v1  ;;  %78 = vst.msk [vmem:[#allocation2 + $0x1b8] sm:$0xff] %vm22_vm0, %v1764_v1 }
  0x1d   :  { %79 = vst.msk [vmem:[#allocation2 + $0x1c0] sm:$0xff] %vm22_vm0, %v1764_v1  ;;  %80 = vst.msk [vmem:[#allocation2 + $0x1c8] sm:$0xff] %vm22_vm0, %v1764_v1 }
  0x1e   :  { %81 = vst.msk [vmem:[#allocation2 + $0x1d0] sm:$0xff] %vm22_vm0, %v1764_v1  ;;  %82 = vst.msk [vmem:[#allocation2 + $0x1d8] sm:$0xff] %vm22_vm0, %v1764_v1  ;;  %1675 = vmatmul.mubr.msk.bf16.gmra.mrb[12].mxu0 %vm383_vm1, %v1744_v16  ;;  %1707 = vmatmul.mubr.msk.bf16.gmra.mrb[12].mxu1 %vm383_vm1, %v1745_v17 }
  0x1f   :  { %83 = vst.msk [vmem:[#allocation2 + $0x1e0] sm:$0xff] %vm22_vm0, %v1764_v1  ;;  %84 = vst.msk [vmem:[#allocation2 + $0x1e8] sm:$0xff] %vm22_vm0, %v1764_v1  ;;  %1678 = vmatprep.mubr.msk.bf16.mxu0 %vm383_vm1, %v1746_v18  ;;  %1710 = vmatprep.mubr.msk.bf16.mxu1 %vm383_vm1, %v1747_v19 }
  0x20   :  { %85 = vst.msk [vmem:[#allocation2 + $0x1f0] sm:$0xff] %vm22_vm0, %v1764_v1  ;;  %86 = vst.msk [vmem:[#allocation2 + $0x1f8] sm:$0xff] %vm22_vm0, %v1764_v1  ;;  %v94_v1 = vld [vmem:[#allocation2 + $0x38] sm:$0xff] }
  0x26   :  { %1679 = vmatmul.mubr.msk.bf16.gmra.mrb[16].mxu0 %vm383_vm1, %v1748_v20  ;;  %1711 = vmatmul.mubr.msk.bf16.gmra.mrb[16].mxu1 %vm383_vm1, %v1749_v21 }
  0x27   :  { %1682 = vmatprep.mubr.msk.bf16.mxu0 %vm383_vm1, %v1750_v22  ;;  %1714 = vmatprep.mubr.msk.bf16.mxu1 %vm383_vm1, %v1751_v23 }
  0x2e   :  { %1683 = vmatmul.mubr.msk.bf16.gmra.mrb[20].mxu0 %vm383_vm1, %v1752_v24  ;;  %1715 = vmatmul.mubr.msk.bf16.gmra.mrb[20].mxu1 %vm383_vm1, %v1753_v25 }
  0x2f   :  { %1686 = vmatprep.mubr.msk.bf16.mxu0 %vm383_vm1, %v1754_v26  ;;  %1718 = vmatprep.mubr.msk.bf16.mxu1 %vm383_vm1, %v1755_v27 }
  0x36   :  { %1687 = vmatmul.mubr.msk.bf16.gmra.mrb[24].mxu0 %vm383_vm1, %v1756_v28  ;;  %1719 = vmatmul.mubr.msk.bf16.gmra.mrb[24].mxu1 %vm383_vm1, %v1757_v29 }
  0x37   :  { %1690 = vmatprep.mubr.msk.bf16.mxu0 %vm383_vm1, %v1758_v30  ;;  %1722 = vmatprep.mubr.msk.bf16.mxu1 %vm383_vm1, %v1759_v31 }
  0x3e   :  { %1691 = vmatmul.mubr.msk.bf16.gmra.mrb[28].mxu0 %vm383_vm1, %v1760_v32  ;;  %1723 = vmatmul.mubr.msk.bf16.gmra.mrb[28].mxu1 %vm383_vm1, %v1761_v33 }
  0xd9   :  { %v1664_v38 = vpop.f32.mrb[0].mxu0  ;;  %v1696_v39 = vpop.f32.mrb[0].mxu1 }
  0xda   :  { %v771_v42 = vadd.f32 %v1664_v38, %v89_v34  ;;  %v803_v43 = vadd.f32 %v1696_v39, %v121_v35  ;;  %v514_v44 = vpop.f32.mrb[1].mxu0  ;;  %v642_v45 = vpop.f32.mrb[1].mxu1 }
  0xdb   :  { %v769_v48 = vadd.f32 %v514_v44, %v87_v36  ;;  %v801_v49 = vadd.f32 %v642_v45, %v119_v37  ;;  %v1665_v50 = vpop.f32.mrb[2].mxu0  ;;  %v1697_v51 = vpop.f32.mrb[2].mxu1 }
  0xdc   :  { %836 = vst.msk [vmem:[#allocation2 + $0x10] sm:$0xff] %vm22_vm0, %v771_v42  ;;  %868 = vst.msk [vmem:[#allocation2 + $0x110] sm:$0xff] %vm22_vm0, %v803_v43  ;;  %v772_v52 = vadd.f32 %v1665_v50, %v90_v40  ;;  %v804_v53 = vadd.f32 %v1697_v51, %v122_v41  ;;  %v517_v54 = vpop.f32.mrb[3].mxu0  ;;  %v645_v55 = vpop.f32.mrb[3].mxu1  ;;  %v97_v40 = vld [vmem:[#allocation2 + $0x50] sm:$0xff] }
  0xdd   :  { %834 = vst.msk [vmem:[#allocation2] sm:$0xff] %vm22_vm0, %v769_v48  ;;  %866 = vst.msk [vmem:[#allocation2 + $0x100] sm:$0xff] %vm22_vm0, %v801_v49  ;;  %v770_v56 = vadd.f32 %v517_v54, %v88_v46  ;;  %v802_v57 = vadd.f32 %v645_v55, %v120_v47  ;;  %v129_v41 = vld [vmem:[#allocation2 + $0x150] sm:$0xff]  ;;  %v95_v46 = vld [vmem:[#allocation2 + $0x40] sm:$0xff] }
  0xde   :  { %837 = vst.msk [vmem:[#allocation2 + $0x18] sm:$0xff] %vm22_vm0, %v772_v52  ;;  %869 = vst.msk [vmem:[#allocation2 + $0x118] sm:$0xff] %vm22_vm0, %v804_v53  ;;  %v127_v47 = vld [vmem:[#allocation2 + $0x140] sm:$0xff]  ;;  %v98_v54 = vld [vmem:[#allocation2 + $0x58] sm:$0xff] }
  0xdf   :  { %835 = vst.msk [vmem:[#allocation2 + $0x8] sm:$0xff] %vm22_vm0, %v770_v56  ;;  %867 = vst.msk [vmem:[#allocation2 + $0x108] sm:$0xff] %vm22_vm0, %v802_v57  ;;  %v130_v55 = vld [vmem:[#allocation2 + $0x158] sm:$0xff] }
  0xe1   :  { %v1668_v63 = vpop.f32.mrb[4].mxu0  ;;  %v1700_v0 = vpop.f32.mrb[4].mxu1 }
  0xe2   :  { %v775_v4 = vadd.f32 %v1668_v63, %v93_v58  ;;  %v807_v5 = vadd.f32 %v1700_v0, %v125_v59  ;;  %v530_v6 = vpop.f32.mrb[5].mxu0  ;;  %v658_v7 = vpop.f32.mrb[5].mxu1  ;;  %v96_v63 = vld [vmem:[#allocation2 + $0x48] sm:$0xff] }
  0xe3   :  { %v903_v10 = vld [vmem:[#allocation2 + $0x10] sm:$0xff]  ;;  %v773_v12 = vadd.f32 %v530_v6, %v91_v60  ;;  %v805_v13 = vadd.f32 %v658_v7, %v123_v61  ;;  %v1669_v14 = vpop.f32.mrb[6].mxu0  ;;  %v1701_v15 = vpop.f32.mrb[6].mxu1  ;;  %v128_v0 = vld [vmem:[#allocation2 + $0x148] sm:$0xff] }
  0xe4   :  { %v935_v11 = vld [vmem:[#allocation2 + $0x110] sm:$0xff]  ;;  %v974_v16 = vmul.f32 %v2066_v62, %v903_v10  ;;  %v901_v18 = vld [vmem:[#allocation2] sm:$0xff]  ;;  %840 = vst.msk [vmem:[#allocation2 + $0x30] sm:$0xff] %vm22_vm0, %v775_v4  ;;  %872 = vst.msk [vmem:[#allocation2 + $0x130] sm:$0xff] %vm22_vm0, %v807_v5  ;;  %v776_v20 = vadd.f32 %v1669_v14, %v94_v1  ;;  %v808_v21 = vadd.f32 %v1701_v15, %v126_v2  ;;  %v533_v22 = vpop.f32.mrb[7].mxu0  ;;  %v661_v23 = vpop.f32.mrb[7].mxu1 }
  0xe5   :  { %v1006_v17 = vmul.f32 %v2066_v62, %v935_v11  ;;  %v933_v19 = vld [vmem:[#allocation2 + $0x100] sm:$0xff]  ;;  %v972_v24 = vmul.f32 %v2066_v62, %v901_v18  ;;  %v904_v26 = vld [vmem:[#allocation2 + $0x18] sm:$0xff]  ;;  %838 = vst.msk [vmem:[#allocation2 + $0x20] sm:$0xff] %vm22_vm0, %v773_v12  ;;  %870 = vst.msk [vmem:[#allocation2 + $0x120] sm:$0xff] %vm22_vm0, %v805_v13  ;;  %v774_v28 = vadd.f32 %v533_v22, %v92_v8 }
  0xe6   :  { %v1004_v25 = vmul.f32 %v2066_v62, %v933_v19  ;;  %v936_v27 = vld [vmem:[#allocation2 + $0x118] sm:$0xff]  ;;  %v806_v29 = vadd.f32 %v661_v23, %v124_v9  ;;  %v1045_v30 = vadd.f32 %v2071_v3, %v974_v16  ;;  %v975_v32 = vmul.f32 %v2066_v62, %v904_v26  ;;  %v902_v34 = vld [vmem:[#allocation2 + $0x8] sm:$0xff]  ;;  %841 = vst.msk [vmem:[#allocation2 + $0x38] sm:$0xff] %vm22_vm0, %v776_v20 }
  0xe7   :  { %v1077_v31 = vadd.f32 %v2071_v3, %v1006_v17  ;;  %v1007_v33 = vmul.f32 %v2066_v62, %v936_v27  ;;  %v934_v35 = vld [vmem:[#allocation2 + $0x108] sm:$0xff]  ;;  %873 = vst.msk [vmem:[#allocation2 + $0x138] sm:$0xff] %vm22_vm0, %v808_v21  ;;  %v1043_v36 = vadd.f32 %v2071_v3, %v972_v24  ;;  %v973_v38 = vmul.f32 %v2066_v62, %v902_v34  ;;  %v101_v34 = vld [vmem:[#allocation2 + $0x70] sm:$0xff] }
  0xe8   :  { %v1075_v37 = vadd.f32 %v2071_v3, %v1004_v25  ;;  %v1005_v39 = vmul.f32 %v2066_v62, %v934_v35  ;;  %839 = vst.msk [vmem:[#allocation2 + $0x28] sm:$0xff] %vm22_vm0, %v774_v28  ;;  %871 = vst.msk [vmem:[#allocation2 + $0x128] sm:$0xff] %vm22_vm0, %v806_v29  ;;  %v1565_v42 = vpack.c.bf16 %v1045_v30, %v1045_v30  ;;  %v133_v35 = vld [vmem:[#allocation2 + $0x170] sm:$0xff] }
  0xe9   :  { %v1597_v43 = vpack.c.bf16 %v1077_v31, %v1077_v31  ;;  %v1046_v44 = vadd.f32 %v2071_v3, %v975_v32  ;;  %v1078_v45 = vadd.f32 %v2071_v3, %v1007_v33  ;;  %v1563_v48 = vpack.c.bf16 %v1043_v36, %v1043_v36  ;;  %v1672_v52 = vpop.f32.mrb[8].mxu0  ;;  %v1704_v53 = vpop.f32.mrb[8].mxu1 }
  0xea   :  { %v1595_v49 = vpack.c.bf16 %v1075_v37, %v1075_v37  ;;  %v1044_v50 = vadd.f32 %v2071_v3, %v973_v38  ;;  %v1076_v51 = vadd.f32 %v2071_v3, %v1005_v39  ;;  %1366 = vst.msk [vmem:[%s2513_s4 + $0x8] sm:$0xf] %vm1363_vm2, %v1565_v42  ;;  %v779_v58 = vadd.f32 %v1672_v52, %v97_v40  ;;  %v546_v60 = vpop.f32.mrb[9].mxu0  ;;  %v674_v61 = vpop.f32.mrb[9].mxu1  ;;  %v99_v40 = vld [vmem:[#allocation2 + $0x60] sm:$0xff] }
  0xeb   :  { %1398 = vst.msk [vmem:[%s2513_s4 + $0x88] sm:$0xf] %vm1363_vm2, %v1597_v43  ;;  %v1566_v56 = vpack.c.bf16 %v1046_v44, %v1046_v44  ;;  %v1598_v57 = vpack.c.bf16 %v1078_v45, %v1078_v45  ;;  %v811_v59 = vadd.f32 %v1704_v53, %v129_v41  ;;  %1364 = vst.msk [vmem:[%s2513_s4] sm:$0xf] %vm1363_vm2, %v1563_v48  ;;  %v907_v4 = vld [vmem:[#allocation2 + $0x30] sm:$0xff]  ;;  %v1673_v8 = vpop.f32.mrb[10].mxu0 }
  0xec   :  { %1396 = vst.msk [vmem:[%s2513_s4 + $0x80] sm:$0xf] %vm1363_vm2, %v1595_v49  ;;  %v1564_v1 = vpack.c.bf16 %v1044_v50, %v1044_v50  ;;  %v1596_v2 = vpack.c.bf16 %v1076_v51, %v1076_v51  ;;  %v939_v5 = vld [vmem:[#allocation2 + $0x130] sm:$0xff]  ;;  %v777_v6 = vadd.f32 %v546_v60, %v95_v46  ;;  %v809_v7 = vadd.f32 %v674_v61, %v127_v47  ;;  %v1705_v9 = vpop.f32.mrb[10].mxu1  ;;  %v905_v12 = vld [vmem:[#allocation2 + $0x20] sm:$0xff]  ;;  %v549_v16 = vpop.f32.mrb[11].mxu0 }
  0xed   :  { %1367 = vst.msk [vmem:[%s2513_s4 + $0xc] sm:$0xf] %vm1363_vm2, %v1566_v56  ;;  %1399 = vst.msk [vmem:[%s2513_s4 + $0x8c] sm:$0xf] %vm1363_vm2, %v1598_v57  ;;  %v978_v10 = vmul.f32 %v2066_v62, %v907_v4  ;;  %v1010_v11 = vmul.f32 %v2066_v62, %v939_v5  ;;  %v937_v13 = vld [vmem:[#allocation2 + $0x120] sm:$0xff]  ;;  %v780_v14 = vadd.f32 %v1673_v8, %v98_v54  ;;  %v677_v17 = vpop.f32.mrb[11].mxu1 }
  0xee   :  { %844 = vst.msk [vmem:[#allocation2 + $0x50] sm:$0xff] %vm22_vm0, %v779_v58  ;;  %876 = vst.msk [vmem:[#allocation2 + $0x150] sm:$0xff] %vm22_vm0, %v811_v59  ;;  %v812_v15 = vadd.f32 %v1705_v9, %v130_v55  ;;  %v976_v18 = vmul.f32 %v2066_v62, %v905_v12  ;;  %v1008_v19 = vmul.f32 %v2066_v62, %v937_v13  ;;  %v908_v20 = vld [vmem:[#allocation2 + $0x38] sm:$0xff]  ;;  %v131_v41 = vld [vmem:[#allocation2 + $0x160] sm:$0xff] }
  0xef   :  { %1365 = vst.msk [vmem:[%s2513_s4 + $0x4] sm:$0xf] %vm1363_vm2, %v1564_v1  ;;  %1397 = vst.msk [vmem:[%s2513_s4 + $0x84] sm:$0xf] %vm1363_vm2, %v1596_v2  ;;  %v940_v21 = vld [vmem:[#allocation2 + $0x138] sm:$0xff]  ;;  %v778_v22 = vadd.f32 %v549_v16, %v96_v63  ;;  %v810_v23 = vadd.f32 %v677_v17, %v128_v0  ;;  %v1049_v24 = vadd.f32 %v2071_v3, %v978_v10  ;;  %v906_v28 = vld [vmem:[#allocation2 + $0x28] sm:$0xff] }
  0xf0   :  { %842 = vst.msk [vmem:[#allocation2 + $0x40] sm:$0xff] %vm22_vm0, %v777_v6  ;;  %874 = vst.msk [vmem:[#allocation2 + $0x140] sm:$0xff] %vm22_vm0, %v809_v7  ;;  %v1081_v25 = vadd.f32 %v2071_v3, %v1010_v11  ;;  %v979_v26 = vmul.f32 %v2066_v62, %v908_v20  ;;  %v1011_v27 = vmul.f32 %v2066_v62, %v940_v21  ;;  %v938_v29 = vld [vmem:[#allocation2 + $0x128] sm:$0xff]  ;;  %v102_v48 = vld [vmem:[#allocation2 + $0x78] sm:$0xff] }
  0xf1   :  { %845 = vst.msk [vmem:[#allocation2 + $0x58] sm:$0xff] %vm22_vm0, %v780_v14  ;;  %877 = vst.msk [vmem:[#allocation2 + $0x158] sm:$0xff] %vm22_vm0, %v812_v15  ;;  %v1047_v30 = vadd.f32 %v2071_v3, %v976_v18  ;;  %v1079_v31 = vadd.f32 %v2071_v3, %v1008_v19  ;;  %v977_v32 = vmul.f32 %v2066_v62, %v906_v28  ;;  %v1676_v46 = vpop.f32.mrb[12].mxu0  ;;  %v1708_v47 = vpop.f32.mrb[12].mxu1  ;;  %v134_v49 = vld [vmem:[#allocation2 + $0x178] sm:$0xff]  ;;  %v100_v56 = vld [vmem:[#allocation2 + $0x68] sm:$0xff] }
  0xf2   :  { %v1009_v33 = vmul.f32 %v2066_v62, %v938_v29  ;;  %843 = vst.msk [vmem:[#allocation2 + $0x48] sm:$0xff] %vm22_vm0, %v778_v22  ;;  %875 = vst.msk [vmem:[#allocation2 + $0x148] sm:$0xff] %vm22_vm0, %v810_v23  ;;  %v1569_v36 = vpack.c.bf16 %v1049_v24, %v1049_v24  ;;  %v1601_v37 = vpack.c.bf16 %v1081_v25, %v1081_v25  ;;  %v562_v54 = vpop.f32.mrb[13].mxu0  ;;  %v690_v55 = vpop.f32.mrb[13].mxu1  ;;  %v132_v57 = vld [vmem:[#allocation2 + $0x168] sm:$0xff]  ;;  %v105_v28 = vld [vmem:[#allocation2 + $0x90] sm:$0xff] }
  0xf3   :  { %v1050_v38 = vadd.f32 %v2071_v3, %v979_v26  ;;  %v1082_v39 = vadd.f32 %v2071_v3, %v1011_v27  ;;  %v1567_v42 = vpack.c.bf16 %v1047_v30, %v1047_v30  ;;  %v1599_v43 = vpack.c.bf16 %v1079_v31, %v1079_v31  ;;  %v1677_v1 = vpop.f32.mrb[14].mxu0  ;;  %v1709_v2 = vpop.f32.mrb[14].mxu1  ;;  %v137_v29 = vld [vmem:[#allocation2 + $0x190] sm:$0xff] }
  0xf4   :  { %v1048_v44 = vadd.f32 %v2071_v3, %v977_v32  ;;  %v1080_v45 = vadd.f32 %v2071_v3, %v1009_v33  ;;  %1370 = vst.msk [vmem:[%s2513_s4 + $0x18] sm:$0xf] %vm1363_vm2, %v1569_v36  ;;  %1402 = vst.msk [vmem:[%s2513_s4 + $0x98] sm:$0xf] %vm1363_vm2, %v1601_v37  ;;  %v783_v52 = vadd.f32 %v1676_v46, %v101_v34  ;;  %v565_v10 = vpop.f32.mrb[15].mxu0  ;;  %v693_v11 = vpop.f32.mrb[15].mxu1 }
  0xf5   :  { %v1570_v50 = vpack.c.bf16 %v1050_v38, %v1050_v38  ;;  %v1602_v51 = vpack.c.bf16 %v1082_v39, %v1082_v39  ;;  %v815_v53 = vadd.f32 %v1708_v47, %v133_v35  ;;  %1368 = vst.msk [vmem:[%s2513_s4 + $0x10] sm:$0xf] %vm1363_vm2, %v1567_v42  ;;  %1400 = vst.msk [vmem:[%s2513_s4 + $0x90] sm:$0xf] %vm1363_vm2, %v1599_v43  ;;  %v911_v60 = vld [vmem:[#allocation2 + $0x50] sm:$0xff]  ;;  %v103_v34 = vld [vmem:[#allocation2 + $0x80] sm:$0xff] }
  0xf6   :  { %v1568_v58 = vpack.c.bf16 %v1048_v44, %v1048_v44  ;;  %v1600_v59 = vpack.c.bf16 %v1080_v45, %v1080_v45  ;;  %v943_v61 = vld [vmem:[#allocation2 + $0x150] sm:$0xff]  ;;  %v781_v63 = vadd.f32 %v562_v54, %v99_v40  ;;  %v813_v0 = vadd.f32 %v690_v55, %v131_v41  ;;  %848 = vst.msk [vmem:[#allocation2 + $0x70] sm:$0xff] %vm22_vm0, %v783_v52  ;;  %v135_v35 = vld [vmem:[#allocation2 + $0x180] sm:$0xff]  ;;  %v106_v42 = vld [vmem:[#allocation2 + $0x98] sm:$0xff] }
  0xf7   :  { %1371 = vst.msk [vmem:[%s2513_s4 + $0x1c] sm:$0xf] %vm1363_vm2, %v1570_v50  ;;  %1403 = vst.msk [vmem:[%s2513_s4 + $0x9c] sm:$0xf] %vm1363_vm2, %v1602_v51  ;;  %v982_v4 = vmul.f32 %v2066_v62, %v911_v60  ;;  %v1014_v5 = vmul.f32 %v2066_v62, %v943_v61  ;;  %v909_v6 = vld [vmem:[#allocation2 + $0x40] sm:$0xff]  ;;  %v784_v8 = vadd.f32 %v1677_v1, %v102_v48  ;;  %v138_v43 = vld [vmem:[#allocation2 + $0x198] sm:$0xff] }
  0xf8   :  { %v941_v7 = vld [vmem:[#allocation2 + $0x140] sm:$0xff]  ;;  %880 = vst.msk [vmem:[#allocation2 + $0x170] sm:$0xff] %vm22_vm0, %v815_v53  ;;  %v816_v9 = vadd.f32 %v1709_v2, %v134_v49  ;;  %v980_v12 = vmul.f32 %v2066_v62, %v909_v6  ;;  %v912_v14 = vld [vmem:[#allocation2 + $0x58] sm:$0xff]  ;;  %846 = vst.msk [vmem:[#allocation2 + $0x60] sm:$0xff] %vm22_vm0, %v781_v63  ;;  %v782_v16 = vadd.f32 %v565_v10, %v100_v56 }
  0xf9   :  { %1369 = vst.msk [vmem:[%s2513_s4 + $0x14] sm:$0xf] %vm1363_vm2, %v1568_v58  ;;  %1401 = vst.msk [vmem:[%s2513_s4 + $0x94] sm:$0xf] %vm1363_vm2, %v1600_v59  ;;  %v1012_v13 = vmul.f32 %v2066_v62, %v941_v7  ;;  %v944_v15 = vld [vmem:[#allocation2 + $0x158] sm:$0xff]  ;;  %v814_v17 = vadd.f32 %v693_v11, %v132_v57  ;;  %v1053_v18 = vadd.f32 %v2071_v3, %v982_v4  ;;  %v910_v22 = vld [vmem:[#allocation2 + $0x48] sm:$0xff] }
  0xfa   :  { %878 = vst.msk [vmem:[#allocation2 + $0x160] sm:$0xff] %vm22_vm0, %v813_v0  ;;  %v1085_v19 = vadd.f32 %v2071_v3, %v1014_v5  ;;  %v983_v20 = vmul.f32 %v2066_v62, %v912_v14  ;;  %v1015_v21 = vmul.f32 %v2066_v62, %v944_v15  ;;  %v942_v23 = vld [vmem:[#allocation2 + $0x148] sm:$0xff]  ;;  %849 = vst.msk [vmem:[#allocation2 + $0x78] sm:$0xff] %vm22_vm0, %v784_v8  ;;  %v1680_v40 = vpop.f32.mrb[16].mxu0  ;;  %v1712_v41 = vpop.f32.mrb[16].mxu1 }
  0xfb   :  { %881 = vst.msk [vmem:[#allocation2 + $0x178] sm:$0xff] %vm22_vm0, %v816_v9  ;;  %v1051_v24 = vadd.f32 %v2071_v3, %v980_v12  ;;  %v1083_v25 = vadd.f32 %v2071_v3, %v1012_v13  ;;  %v981_v26 = vmul.f32 %v2066_v62, %v910_v22  ;;  %v1013_v27 = vmul.f32 %v2066_v62, %v942_v23  ;;  %v578_v48 = vpop.f32.mrb[17].mxu0  ;;  %v706_v49 = vpop.f32.mrb[17].mxu1  ;;  %v104_v50 = vld [vmem:[#allocation2 + $0x88] sm:$0xff]  ;;  %v109_v22 = vld [vmem:[#allocation2 + $0xb0] sm:$0xff] }
  0xfc   :  { %847 = vst.msk [vmem:[#allocation2 + $0x68] sm:$0xff] %vm22_vm0, %v782_v16  ;;  %879 = vst.msk [vmem:[#allocation2 + $0x168] sm:$0xff] %vm22_vm0, %v814_v17  ;;  %v1573_v30 = vpack.c.bf16 %v1053_v18, %v1053_v18  ;;  %v1605_v31 = vpack.c.bf16 %v1085_v19, %v1085_v19  ;;  %v1054_v32 = vadd.f32 %v2071_v3, %v983_v20  ;;  %v136_v51 = vld [vmem:[#allocation2 + $0x188] sm:$0xff]  ;;  %v1681_v58 = vpop.f32.mrb[18].mxu0  ;;  %v1713_v59 = vpop.f32.mrb[18].mxu1  ;;  %v141_v23 = vld [vmem:[#allocation2 + $0x1b0] sm:$0xff] }
  0xfd   :  { %v1086_v33 = vadd.f32 %v2071_v3, %v1015_v21  ;;  %v1571_v36 = vpack.c.bf16 %v1051_v24, %v1051_v24  ;;  %v1603_v37 = vpack.c.bf16 %v1083_v25, %v1083_v25  ;;  %v1052_v38 = vadd.f32 %v2071_v3, %v981_v26  ;;  %v915_v54 = vld [vmem:[#allocation2 + $0x70] sm:$0xff]  ;;  %v581_v4 = vpop.f32.mrb[19].mxu0  ;;  %v709_v5 = vpop.f32.mrb[19].mxu1 }
  0xfe   :  { %v1084_v39 = vadd.f32 %v2071_v3, %v1013_v27  ;;  %1374 = vst.msk [vmem:[%s2513_s4 + $0x28] sm:$0xf] %vm1363_vm2, %v1573_v30  ;;  %1406 = vst.msk [vmem:[%s2513_s4 + $0xa8] sm:$0xf] %vm1363_vm2, %v1605_v31  ;;  %v1574_v44 = vpack.c.bf16 %v1054_v32, %v1054_v32  ;;  %v787_v46 = vadd.f32 %v1680_v40, %v105_v28  ;;  %v107_v28 = vld [vmem:[#allocation2 + $0xa0] sm:$0xff] }
  0xff   :  { %v1606_v45 = vpack.c.bf16 %v1086_v33, %v1086_v33  ;;  %v819_v47 = vadd.f32 %v1712_v41, %v137_v29  ;;  %1372 = vst.msk [vmem:[%s2513_s4 + $0x20] sm:$0xf] %vm1363_vm2, %v1571_v36  ;;  %1404 = vst.msk [vmem:[%s2513_s4 + $0xa0] sm:$0xf] %vm1363_vm2, %v1603_v37  ;;  %v1572_v52 = vpack.c.bf16 %v1052_v38, %v1052_v38  ;;  %v947_v55 = vld [vmem:[#allocation2 + $0x170] sm:$0xff]  ;;  %v913_v63 = vld [vmem:[#allocation2 + $0x60] sm:$0xff] }
 0x100   :  { %v1604_v53 = vpack.c.bf16 %v1084_v39, %v1084_v39  ;;  %v785_v56 = vadd.f32 %v578_v48, %v103_v34  ;;  %v817_v57 = vadd.f32 %v706_v49, %v135_v35  ;;  %1375 = vst.msk [vmem:[%s2513_s4 + $0x2c] sm:$0xf] %vm1363_vm2, %v1574_v44  ;;  %v986_v60 = vmul.f32 %v2066_v62, %v915_v54  ;;  %v139_v29 = vld [vmem:[#allocation2 + $0x1a0] sm:$0xff]  ;;  %v110_v36 = vld [vmem:[#allocation2 + $0xb8] sm:$0xff]  ;;  %v108_v44 = vld [vmem:[#allocation2 + $0xa8] sm:$0xff] }
 0x101   :  { %1407 = vst.msk [vmem:[%s2513_s4 + $0xac] sm:$0xf] %vm1363_vm2, %v1606_v45  ;;  %v1018_v61 = vmul.f32 %v2066_v62, %v947_v55  ;;  %v945_v0 = vld [vmem:[#allocation2 + $0x160] sm:$0xff]  ;;  %v788_v1 = vadd.f32 %v1681_v58, %v106_v42  ;;  %v820_v2 = vadd.f32 %v1713_v59, %v138_v43  ;;  %1373 = vst.msk [vmem:[%s2513_s4 + $0x24] sm:$0xf] %vm1363_vm2, %v1572_v52  ;;  %v916_v8 = vld [vmem:[#allocation2 + $0x78] sm:$0xff] }
 0x102   :  { %852 = vst.msk [vmem:[#allocation2 + $0x90] sm:$0xff] %vm22_vm0, %v787_v46  ;;  %884 = vst.msk [vmem:[#allocation2 + $0x190] sm:$0xff] %vm22_vm0, %v819_v47  ;;  %v984_v6 = vmul.f32 %v2066_v62, %v913_v63  ;;  %v1016_v7 = vmul.f32 %v2066_v62, %v945_v0  ;;  %v948_v9 = vld [vmem:[#allocation2 + $0x178] sm:$0xff]  ;;  %v786_v10 = vadd.f32 %v581_v4, %v104_v50  ;;  %v1684_v34 = vpop.f32.mrb[20].mxu0  ;;  %v1716_v35 = vpop.f32.mrb[20].mxu1  ;;  %v140_v45 = vld [vmem:[#allocation2 + $0x1a8] sm:$0xff] }
 0x103   :  { %1405 = vst.msk [vmem:[%s2513_s4 + $0xa4] sm:$0xf] %vm1363_vm2, %v1604_v53  ;;  %v818_v11 = vadd.f32 %v709_v5, %v136_v51  ;;  %v1057_v12 = vadd.f32 %v2071_v3, %v986_v60  ;;  %v1089_v13 = vadd.f32 %v2071_v3, %v1018_v61  ;;  %v987_v14 = vmul.f32 %v2066_v62, %v916_v8  ;;  %v914_v16 = vld [vmem:[#allocation2 + $0x68] sm:$0xff]  ;;  %v142_v37 = vld [vmem:[#allocation2 + $0x1b8] sm:$0xff]  ;;  %v594_v42 = vpop.f32.mrb[21].mxu0  ;;  %v722_v43 = vpop.f32.mrb[21].mxu1 }
 0x104   :  { %850 = vst.msk [vmem:[#allocation2 + $0x80] sm:$0xff] %vm22_vm0, %v785_v56  ;;  %882 = vst.msk [vmem:[#allocation2 + $0x180] sm:$0xff] %vm22_vm0, %v817_v57  ;;  %v1019_v15 = vmul.f32 %v2066_v62, %v948_v9  ;;  %v946_v17 = vld [vmem:[#allocation2 + $0x168] sm:$0xff]  ;;  %v1055_v18 = vadd.f32 %v2071_v3, %v984_v6  ;;  %v1087_v19 = vadd.f32 %v2071_v3, %v1016_v7  ;;  %v1685_v52 = vpop.f32.mrb[22].mxu0  ;;  %v1717_v53 = vpop.f32.mrb[22].mxu1 }
 0x105   :  { %853 = vst.msk [vmem:[#allocation2 + $0x98] sm:$0xff] %vm22_vm0, %v788_v1  ;;  %885 = vst.msk [vmem:[#allocation2 + $0x198] sm:$0xff] %vm22_vm0, %v820_v2  ;;  %v985_v20 = vmul.f32 %v2066_v62, %v914_v16  ;;  %v1017_v21 = vmul.f32 %v2066_v62, %v946_v17  ;;  %v1577_v24 = vpack.c.bf16 %v1057_v12, %v1057_v12  ;;  %v597_v60 = vpop.f32.mrb[23].mxu0  ;;  %v725_v61 = vpop.f32.mrb[23].mxu1  ;;  %v113_v16 = vld [vmem:[#allocation2 + $0xd0] sm:$0xff] }
 0x106   :  { %851 = vst.msk [vmem:[#allocation2 + $0x88] sm:$0xff] %vm22_vm0, %v786_v10  ;;  %883 = vst.msk [vmem:[#allocation2 + $0x188] sm:$0xff] %vm22_vm0, %v818_v11  ;;  %v1609_v25 = vpack.c.bf16 %v1089_v13, %v1089_v13  ;;  %v1058_v26 = vadd.f32 %v2071_v3, %v987_v14  ;;  %v1090_v27 = vadd.f32 %v2071_v3, %v1019_v15  ;;  %v145_v17 = vld [vmem:[#allocation2 + $0x1d0] sm:$0xff] }
 0x107   :  { %v1575_v30 = vpack.c.bf16 %v1055_v18, %v1055_v18  ;;  %v1607_v31 = vpack.c.bf16 %v1087_v19, %v1087_v19  ;;  %v1056_v32 = vadd.f32 %v2071_v3, %v985_v20  ;;  %v1088_v33 = vadd.f32 %v2071_v3, %v1017_v21  ;;  %1378 = vst.msk [vmem:[%s2513_s4 + $0x38] sm:$0xf] %vm1363_vm2, %v1577_v24 }
 0x108   :  { %1410 = vst.msk [vmem:[%s2513_s4 + $0xb8] sm:$0xf] %vm1363_vm2, %v1609_v25  ;;  %v1578_v38 = vpack.c.bf16 %v1058_v26, %v1058_v26  ;;  %v1610_v39 = vpack.c.bf16 %v1090_v27, %v1090_v27  ;;  %v791_v40 = vadd.f32 %v1684_v34, %v109_v22  ;;  %v823_v41 = vadd.f32 %v1716_v35, %v141_v23  ;;  %v111_v22 = vld [vmem:[#allocation2 + $0xc0] sm:$0xff] }
 0x109   :  { %1376 = vst.msk [vmem:[%s2513_s4 + $0x30] sm:$0xf] %vm1363_vm2, %v1575_v30  ;;  %1408 = vst.msk [vmem:[%s2513_s4 + $0xb0] sm:$0xf] %vm1363_vm2, %v1607_v31  ;;  %v1576_v46 = vpack.c.bf16 %v1056_v32, %v1056_v32  ;;  %v1608_v47 = vpack.c.bf16 %v1088_v33, %v1088_v33  ;;  %v919_v48 = vld [vmem:[#allocation2 + $0x90] sm:$0xff]  ;;  %v789_v50 = vadd.f32 %v594_v42, %v107_v28  ;;  %v143_v23 = vld [vmem:[#allocation2 + $0x1c0] sm:$0xff] }
 0x10a   :  { %v951_v49 = vld [vmem:[#allocation2 + $0x190] sm:$0xff]  ;;  %v821_v51 = vadd.f32 %v722_v43, %v139_v29  ;;  %1379 = vst.msk [vmem:[%s2513_s4 + $0x3c] sm:$0xf] %vm1363_vm2, %v1578_v38  ;;  %1411 = vst.msk [vmem:[%s2513_s4 + $0xbc] sm:$0xf] %vm1363_vm2, %v1610_v39  ;;  %v990_v54 = vmul.f32 %v2066_v62, %v919_v48  ;;  %v792_v58 = vadd.f32 %v1685_v52, %v110_v36  ;;  %v1688_v28 = vpop.f32.mrb[24].mxu0 }
 0x10b   :  { %v1022_v55 = vmul.f32 %v2066_v62, %v951_v49  ;;  %v917_v56 = vld [vmem:[#allocation2 + $0x80] sm:$0xff]  ;;  %856 = vst.msk [vmem:[#allocation2 + $0xb0] sm:$0xff] %vm22_vm0, %v791_v40  ;;  %888 = vst.msk [vmem:[#allocation2 + $0x1b0] sm:$0xff] %vm22_vm0, %v823_v41  ;;  %v824_v59 = vadd.f32 %v1717_v53, %v142_v37  ;;  %v790_v4 = vadd.f32 %v597_v60, %v108_v44  ;;  %v1720_v29 = vpop.f32.mrb[24].mxu1  ;;  %v114_v30 = vld [vmem:[#allocation2 + $0xd8] sm:$0xff]  ;;  %v610_v36 = vpop.f32.mrb[25].mxu0 }
 0x10c   :  { %v949_v57 = vld [vmem:[#allocation2 + $0x180] sm:$0xff]  ;;  %1377 = vst.msk [vmem:[%s2513_s4 + $0x34] sm:$0xf] %vm1363_vm2, %v1576_v46  ;;  %1409 = vst.msk [vmem:[%s2513_s4 + $0xb4] sm:$0xf] %vm1363_vm2, %v1608_v47  ;;  %v988_v63 = vmul.f32 %v2066_v62, %v917_v56  ;;  %v920_v1 = vld [vmem:[#allocation2 + $0x98] sm:$0xff]  ;;  %v822_v5 = vadd.f32 %v725_v61, %v140_v45  ;;  %v1061_v6 = vadd.f32 %v2071_v3, %v990_v54 }
 0x10d   :  { %v1020_v0 = vmul.f32 %v2066_v62, %v949_v57  ;;  %v952_v2 = vld [vmem:[#allocation2 + $0x198] sm:$0xff]  ;;  %854 = vst.msk [vmem:[#allocation2 + $0xa0] sm:$0xff] %vm22_vm0, %v789_v50  ;;  %886 = vst.msk [vmem:[#allocation2 + $0x1a0] sm:$0xff] %vm22_vm0, %v821_v51  ;;  %v1093_v7 = vadd.f32 %v2071_v3, %v1022_v55  ;;  %v991_v8 = vmul.f32 %v2066_v62, %v920_v1  ;;  %v918_v10 = vld [vmem:[#allocation2 + $0x88] sm:$0xff]  ;;  %v738_v37 = vpop.f32.mrb[25].mxu1  ;;  %v1689_v46 = vpop.f32.mrb[26].mxu0 }
 0x10e   :  { %v1023_v9 = vmul.f32 %v2066_v62, %v952_v2  ;;  %v950_v11 = vld [vmem:[#allocation2 + $0x188] sm:$0xff]  ;;  %857 = vst.msk [vmem:[#allocation2 + $0xb8] sm:$0xff] %vm22_vm0, %v792_v58  ;;  %889 = vst.msk [vmem:[#allocation2 + $0x1b8] sm:$0xff] %vm22_vm0, %v824_v59  ;;  %v1059_v12 = vadd.f32 %v2071_v3, %v988_v63  ;;  %v989_v14 = vmul.f32 %v2066_v62, %v918_v10  ;;  %v146_v31 = vld [vmem:[#allocation2 + $0x1d8] sm:$0xff]  ;;  %v1721_v47 = vpop.f32.mrb[26].mxu1  ;;  %v613_v54 = vpop.f32.mrb[27].mxu0 }
 0x10f   :  { %v1091_v13 = vadd.f32 %v2071_v3, %v1020_v0  ;;  %v1021_v15 = vmul.f32 %v2066_v62, %v950_v11  ;;  %855 = vst.msk [vmem:[#allocation2 + $0xa8] sm:$0xff] %vm22_vm0, %v790_v4  ;;  %887 = vst.msk [vmem:[#allocation2 + $0x1a8] sm:$0xff] %vm22_vm0, %v822_v5  ;;  %v1581_v18 = vpack.c.bf16 %v1061_v6, %v1061_v6  ;;  %v112_v38 = vld [vmem:[#allocation2 + $0xc8] sm:$0xff]  ;;  %v741_v55 = vpop.f32.mrb[27].mxu1  ;;  %v117_v10 = vld [vmem:[#allocation2 + $0xf0] sm:$0xff] }
 0x110   :  { %v1613_v19 = vpack.c.bf16 %v1093_v7, %v1093_v7  ;;  %v1062_v20 = vadd.f32 %v2071_v3, %v991_v8  ;;  %v1094_v21 = vadd.f32 %v2071_v3, %v1023_v9  ;;  %v1579_v24 = vpack.c.bf16 %v1059_v12, %v1059_v12  ;;  %v144_v39 = vld [vmem:[#allocation2 + $0x1c8] sm:$0xff]  ;;  %v149_v11 = vld [vmem:[#allocation2 + $0x1f0] sm:$0xff] }
 0x111   :  { %v1611_v25 = vpack.c.bf16 %v1091_v13, %v1091_v13  ;;  %v1060_v26 = vadd.f32 %v2071_v3, %v989_v14  ;;  %v1092_v27 = vadd.f32 %v2071_v3, %v1021_v15  ;;  %1382 = vst.msk [vmem:[%s2513_s4 + $0x48] sm:$0xf] %vm1363_vm2, %v1581_v18  ;;  %v795_v34 = vadd.f32 %v1688_v28, %v113_v16  ;;  %v115_v16 = vld [vmem:[#allocation2 + $0xe0] sm:$0xff] }
 0x112   :  { %1414 = vst.msk [vmem:[%s2513_s4 + $0xc8] sm:$0xf] %vm1363_vm2, %v1613_v19  ;;  %v1582_v32 = vpack.c.bf16 %v1062_v20, %v1062_v20  ;;  %v1614_v33 = vpack.c.bf16 %v1094_v21, %v1094_v21  ;;  %v827_v35 = vadd.f32 %v1720_v29, %v145_v17  ;;  %1380 = vst.msk [vmem:[%s2513_s4 + $0x40] sm:$0xf] %vm1363_vm2, %v1579_v24  ;;  %v923_v42 = vld [vmem:[#allocation2 + $0xb0] sm:$0xff]  ;;  %v147_v17 = vld [vmem:[#allocation2 + $0x1e0] sm:$0xff] }
 0x113   :  { %1412 = vst.msk [vmem:[%s2513_s4 + $0xc0] sm:$0xf] %vm1363_vm2, %v1611_v25  ;;  %v1580_v40 = vpack.c.bf16 %v1060_v26, %v1060_v26  ;;  %v1612_v41 = vpack.c.bf16 %v1092_v27, %v1092_v27  ;;  %v955_v43 = vld [vmem:[#allocation2 + $0x1b0] sm:$0xff]  ;;  %v793_v44 = vadd.f32 %v610_v36, %v111_v22  ;;  %v825_v45 = vadd.f32 %v738_v37, %v143_v23  ;;  %v1692_v22 = vpop.f32.mrb[28].mxu0  ;;  %v1724_v23 = vpop.f32.mrb[28].mxu1  ;;  %v118_v24 = vld [vmem:[#allocation2 + $0xf8] sm:$0xff] }
 0x114   :  { %1383 = vst.msk [vmem:[%s2513_s4 + $0x4c] sm:$0xf] %vm1363_vm2, %v1582_v32  ;;  %1415 = vst.msk [vmem:[%s2513_s4 + $0xcc] sm:$0xf] %vm1363_vm2, %v1614_v33  ;;  %v994_v48 = vmul.f32 %v2066_v62, %v923_v42  ;;  %v1026_v49 = vmul.f32 %v2066_v62, %v955_v43  ;;  %v921_v50 = vld [vmem:[#allocation2 + $0xa0] sm:$0xff]  ;;  %v796_v52 = vadd.f32 %v1689_v46, %v114_v30  ;;  %v150_v25 = vld [vmem:[#allocation2 + $0x1f8] sm:$0xff] }
 0x115   :  { %v953_v51 = vld [vmem:[#allocation2 + $0x1a0] sm:$0xff]  ;;  %860 = vst.msk [vmem:[#allocation2 + $0xd0] sm:$0xff] %vm22_vm0, %v795_v34  ;;  %892 = vst.msk [vmem:[#allocation2 + $0x1d0] sm:$0xff] %vm22_vm0, %v827_v35  ;;  %v828_v53 = vadd.f32 %v1721_v47, %v146_v31  ;;  %v992_v56 = vmul.f32 %v2066_v62, %v921_v50  ;;  %v924_v58 = vld [vmem:[#allocation2 + $0xb8] sm:$0xff]  ;;  %v794_v60 = vadd.f32 %v613_v54, %v112_v38  ;;  %v626_v30 = vpop.f32.mrb[29].mxu0  ;;  %v754_v31 = vpop.f32.mrb[29].mxu1 }
 0x116   :  { %1381 = vst.msk [vmem:[%s2513_s4 + $0x44] sm:$0xf] %vm1363_vm2, %v1580_v40  ;;  %1413 = vst.msk [vmem:[%s2513_s4 + $0xc4] sm:$0xf] %vm1363_vm2, %v1612_v41  ;;  %v1024_v57 = vmul.f32 %v2066_v62, %v953_v51  ;;  %v956_v59 = vld [vmem:[#allocation2 + $0x1b8] sm:$0xff]  ;;  %v826_v61 = vadd.f32 %v741_v55, %v144_v39  ;;  %v1065_v63 = vadd.f32 %v2071_v3, %v994_v48  ;;  %v922_v4 = vld [vmem:[#allocation2 + $0xa8] sm:$0xff] }
 0x117   :  { %858 = vst.msk [vmem:[#allocation2 + $0xc0] sm:$0xff] %vm22_vm0, %v793_v44  ;;  %890 = vst.msk [vmem:[#allocation2 + $0x1c0] sm:$0xff] %vm22_vm0, %v825_v45  ;;  %v1097_v0 = vadd.f32 %v2071_v3, %v1026_v49  ;;  %v995_v1 = vmul.f32 %v2066_v62, %v924_v58  ;;  %v1027_v2 = vmul.f32 %v2066_v62, %v956_v59  ;;  %v954_v5 = vld [vmem:[#allocation2 + $0x1a8] sm:$0xff]  ;;  %v1693_v40 = vpop.f32.mrb[30].mxu0  ;;  %v1725_v41 = vpop.f32.mrb[30].mxu1 }
 0x118   :  { %861 = vst.msk [vmem:[#allocation2 + $0xd8] sm:$0xff] %vm22_vm0, %v796_v52  ;;  %893 = vst.msk [vmem:[#allocation2 + $0x1d8] sm:$0xff] %vm22_vm0, %v828_v53  ;;  %v1063_v6 = vadd.f32 %v2071_v3, %v992_v56  ;;  %v1095_v7 = vadd.f32 %v2071_v3, %v1024_v57  ;;  %v993_v8 = vmul.f32 %v2066_v62, %v922_v4  ;;  %v116_v32 = vld [vmem:[#allocation2 + $0xe8] sm:$0xff]  ;;  %v629_v48 = vpop.f32.mrb[31].mxu0  ;;  %v757_v49 = vpop.f32.mrb[31].mxu1 }
 0x119   :  { %v1025_v9 = vmul.f32 %v2066_v62, %v954_v5  ;;  %859 = vst.msk [vmem:[#allocation2 + $0xc8] sm:$0xff] %vm22_vm0, %v794_v60  ;;  %891 = vst.msk [vmem:[#allocation2 + $0x1c8] sm:$0xff] %vm22_vm0, %v826_v61  ;;  %v1585_v12 = vpack.c.bf16 %v1065_v63, %v1065_v63  ;;  %v1617_v13 = vpack.c.bf16 %v1097_v0, %v1097_v0  ;;  %v148_v33 = vld [vmem:[#allocation2 + $0x1e8] sm:$0xff] }
 0x11a   :  { %v1066_v14 = vadd.f32 %v2071_v3, %v995_v1  ;;  %v1098_v15 = vadd.f32 %v2071_v3, %v1027_v2  ;;  %v1583_v18 = vpack.c.bf16 %v1063_v6, %v1063_v6  ;;  %v1615_v19 = vpack.c.bf16 %v1095_v7, %v1095_v7 }
 0x11b   :  { %v1064_v20 = vadd.f32 %v2071_v3, %v993_v8  ;;  %v1096_v21 = vadd.f32 %v2071_v3, %v1025_v9  ;;  %1386 = vst.msk [vmem:[%s2513_s4 + $0x58] sm:$0xf] %vm1363_vm2, %v1585_v12  ;;  %1418 = vst.msk [vmem:[%s2513_s4 + $0xd8] sm:$0xf] %vm1363_vm2, %v1617_v13  ;;  %v799_v28 = vadd.f32 %v1692_v22, %v117_v10 }
 0x11c   :  { %v1586_v26 = vpack.c.bf16 %v1066_v14, %v1066_v14  ;;  %v1618_v27 = vpack.c.bf16 %v1098_v15, %v1098_v15  ;;  %v831_v29 = vadd.f32 %v1724_v23, %v149_v11  ;;  %1384 = vst.msk [vmem:[%s2513_s4 + $0x50] sm:$0xf] %vm1363_vm2, %v1583_v18  ;;  %1416 = vst.msk [vmem:[%s2513_s4 + $0xd0] sm:$0xf] %vm1363_vm2, %v1615_v19  ;;  %v927_v36 = vld [vmem:[#allocation2 + $0xd0] sm:$0xff] }
 0x11d   :  { %v1584_v34 = vpack.c.bf16 %v1064_v20, %v1064_v20  ;;  %v1616_v35 = vpack.c.bf16 %v1096_v21, %v1096_v21  ;;  %v959_v37 = vld [vmem:[#allocation2 + $0x1d0] sm:$0xff]  ;;  %v797_v38 = vadd.f32 %v626_v30, %v115_v16  ;;  %v829_v39 = vadd.f32 %v754_v31, %v147_v17  ;;  %864 = vst.msk [vmem:[#allocation2 + $0xf0] sm:$0xff] %vm22_vm0, %v799_v28  ;;  %v1762_v28 = vld [vmem:[%s2511_s2] ss:$0 sm:$0xff] }
 0x11e   :  { %1387 = vst.msk [vmem:[%s2513_s4 + $0x5c] sm:$0xf] %vm1363_vm2, %v1586_v26  ;;  %1419 = vst.msk [vmem:[%s2513_s4 + $0xdc] sm:$0xf] %vm1363_vm2, %v1618_v27  ;;  %v998_v42 = vmul.f32 %v2066_v62, %v927_v36  ;;  %v1030_v43 = vmul.f32 %v2066_v62, %v959_v37  ;;  %v925_v44 = vld [vmem:[#allocation2 + $0xc0] sm:$0xff]  ;;  %v800_v46 = vadd.f32 %v1693_v40, %v118_v24 }
 0x11f   :  { %v957_v45 = vld [vmem:[#allocation2 + $0x1c0] sm:$0xff]  ;;  %896 = vst.msk [vmem:[#allocation2 + $0x1f0] sm:$0xff] %vm22_vm0, %v831_v29  ;;  %v832_v47 = vadd.f32 %v1725_v41, %v150_v25  ;;  %v996_v50 = vmul.f32 %v2066_v62, %v925_v44  ;;  %v928_v52 = vld [vmem:[#allocation2 + $0xd8] sm:$0xff]  ;;  %862 = vst.msk [vmem:[#allocation2 + $0xe0] sm:$0xff] %vm22_vm0, %v797_v38  ;;  %v798_v54 = vadd.f32 %v629_v48, %v116_v32 }
 0x120   :  { %1385 = vst.msk [vmem:[%s2513_s4 + $0x54] sm:$0xf] %vm1363_vm2, %v1584_v34  ;;  %1417 = vst.msk [vmem:[%s2513_s4 + $0xd4] sm:$0xf] %vm1363_vm2, %v1616_v35  ;;  %v1028_v51 = vmul.f32 %v2066_v62, %v957_v45  ;;  %v960_v53 = vld [vmem:[#allocation2 + $0x1d8] sm:$0xff]  ;;  %v830_v55 = vadd.f32 %v757_v49, %v148_v33  ;;  %v1069_v56 = vadd.f32 %v2071_v3, %v998_v42  ;;  %v926_v60 = vld [vmem:[#allocation2 + $0xc8] sm:$0xff] }
 0x121   :  { %894 = vst.msk [vmem:[#allocation2 + $0x1e0] sm:$0xff] %vm22_vm0, %v829_v39  ;;  %v1101_v57 = vadd.f32 %v2071_v3, %v1030_v43  ;;  %v999_v58 = vmul.f32 %v2066_v62, %v928_v52  ;;  %v1031_v59 = vmul.f32 %v2066_v62, %v960_v53  ;;  %v958_v61 = vld [vmem:[#allocation2 + $0x1c8] sm:$0xff]  ;;  %865 = vst.msk [vmem:[#allocation2 + $0xf8] sm:$0xff] %vm22_vm0, %v800_v46  ;;  %v1763_v33 = vld [vmem:[%s2512_s3] ss:$0 sm:$0xff] }
 0x122   :  { %897 = vst.msk [vmem:[#allocation2 + $0x1f8] sm:$0xff] %vm22_vm0, %v832_v47  ;;  %v1067_v63 = vadd.f32 %v2071_v3, %v996_v50  ;;  %v1099_v0 = vadd.f32 %v2071_v3, %v1028_v51  ;;  %v997_v1 = vmul.f32 %v2066_v62, %v926_v60  ;;  %v1029_v2 = vmul.f32 %v2066_v62, %v958_v61 }
 0x123   :  { %863 = vst.msk [vmem:[#allocation2 + $0xe8] sm:$0xff] %vm22_vm0, %v798_v54  ;;  %895 = vst.msk [vmem:[#allocation2 + $0x1e8] sm:$0xff] %vm22_vm0, %v830_v55  ;;  %v1589_v4 = vpack.c.bf16 %v1069_v56, %v1069_v56  ;;  %v1621_v5 = vpack.c.bf16 %v1101_v57, %v1101_v57  ;;  %v1070_v6 = vadd.f32 %v2071_v3, %v999_v58 }
 0x124   :  { %v1102_v7 = vadd.f32 %v2071_v3, %v1031_v59  ;;  %v1587_v8 = vpack.c.bf16 %v1067_v63, %v1067_v63  ;;  %v1619_v9 = vpack.c.bf16 %v1099_v0, %v1099_v0  ;;  %v1068_v10 = vadd.f32 %v2071_v3, %v997_v1  ;;  %v931_v16 = vld [vmem:[#allocation2 + $0xf0] sm:$0xff] }
 0x125   :  { %v1100_v11 = vadd.f32 %v2071_v3, %v1029_v2  ;;  %1390 = vst.msk [vmem:[%s2513_s4 + $0x68] sm:$0xf] %vm1363_vm2, %v1589_v4  ;;  %1422 = vst.msk [vmem:[%s2513_s4 + $0xe8] sm:$0xf] %vm1363_vm2, %v1621_v5  ;;  %v1590_v12 = vpack.c.bf16 %v1070_v6, %v1070_v6  ;;  %v1002_v18 = vmul.f32 %v2066_v62, %v931_v16 }
 0x126   :  { %v1622_v13 = vpack.c.bf16 %v1102_v7, %v1102_v7  ;;  %1388 = vst.msk [vmem:[%s2513_s4 + $0x60] sm:$0xf] %vm1363_vm2, %v1587_v8  ;;  %1420 = vst.msk [vmem:[%s2513_s4 + $0xe0] sm:$0xf] %vm1363_vm2, %v1619_v9  ;;  %v1588_v14 = vpack.c.bf16 %v1068_v10, %v1068_v10  ;;  %v963_v17 = vld [vmem:[#allocation2 + $0x1f0] sm:$0xff]  ;;  %v929_v20 = vld [vmem:[#allocation2 + $0xe0] sm:$0xff] }
 0x127   :  { %v1620_v15 = vpack.c.bf16 %v1100_v11, %v1100_v11  ;;  %1391 = vst.msk [vmem:[%s2513_s4 + $0x6c] sm:$0xf] %vm1363_vm2, %v1590_v12  ;;  %v1034_v19 = vmul.f32 %v2066_v62, %v963_v17  ;;  %v1000_v22 = vmul.f32 %v2066_v62, %v929_v20  ;;  %v1073_v26 = vadd.f32 %v2071_v3, %v1002_v18 }
 0x128   :  { %1423 = vst.msk [vmem:[%s2513_s4 + $0xec] sm:$0xf] %vm1363_vm2, %v1622_v13  ;;  %v961_v21 = vld [vmem:[#allocation2 + $0x1e0] sm:$0xff]  ;;  %1389 = vst.msk [vmem:[%s2513_s4 + $0x64] sm:$0xf] %vm1363_vm2, %v1588_v14  ;;  %v932_v24 = vld [vmem:[#allocation2 + $0xf8] sm:$0xff] }
 0x129   :  { %1421 = vst.msk [vmem:[%s2513_s4 + $0xe4] sm:$0xf] %vm1363_vm2, %v1620_v15  ;;  %v1032_v23 = vmul.f32 %v2066_v62, %v961_v21  ;;  %v964_v25 = vld [vmem:[#allocation2 + $0x1f8] sm:$0xff]  ;;  %v1105_v27 = vadd.f32 %v2071_v3, %v1034_v19  ;;  %v1003_v29 = vmul.f32 %v1762_v28, %v932_v24  ;;  %v1071_v34 = vadd.f32 %v1763_v33, %v1000_v22 }
 0x12a   :  { %v1035_v30 = vmul.f32 %v1762_v28, %v964_v25  ;;  %v930_v31 = vld [vmem:[#allocation2 + $0xe8] sm:$0xff]  ;;  %v1593_v37 = vpack.c.bf16 %v1073_v26, %v1073_v26 }
 0x12b   :  { %v962_v32 = vld [vmem:[#allocation2 + $0x1e8] sm:$0xff]  ;;  %v1103_v62 = vadd.f32 %v1763_v33, %v1032_v23  ;;  %v1001_v35 = vmul.f32 %v1762_v28, %v930_v31  ;;  %v1625_v38 = vpack.c.bf16 %v1105_v27, %v1105_v27  ;;  %v1074_v39 = vadd.f32 %v1763_v33, %v1003_v29 }
 0x12c   :  { %v1033_v36 = vmul.f32 %v1762_v28, %v962_v32  ;;  %v1106_v3 = vadd.f32 %v1763_v33, %v1035_v30  ;;  %v1591_v40 = vpack.c.bf16 %v1071_v34, %v1071_v34  ;;  %1394 = vst.msk [vmem:[%s2513_s4 + $0x78] sm:$0xf] %vm1363_vm2, %v1593_v37 }
 0x12d   :  { %v1623_v41 = vpack.c.bf16 %v1103_v62, %v1103_v62  ;;  %v1072_v42 = vadd.f32 %v1763_v33, %v1001_v35  ;;  %1426 = vst.msk [vmem:[%s2513_s4 + $0xf8] sm:$0xf] %vm1363_vm2, %v1625_v38  ;;  %v1594_v44 = vpack.c.bf16 %v1074_v39, %v1074_v39 }
 0x12e   :  { %v1104_v43 = vadd.f32 %v1763_v33, %v1033_v36  ;;  %v1626_v45 = vpack.c.bf16 %v1106_v3, %v1106_v3  ;;  %1392 = vst.msk [vmem:[%s2513_s4 + $0x70] sm:$0xf] %vm1363_vm2, %v1591_v40 }
 0x12f   :  { %1424 = vst.msk [vmem:[%s2513_s4 + $0xf0] sm:$0xf] %vm1363_vm2, %v1623_v41  ;;  %v1592_v46 = vpack.c.bf16 %v1072_v42, %v1072_v42  ;;  %1395 = vst.msk [vmem:[%s2513_s4 + $0x7c] sm:$0xf] %vm1363_vm2, %v1594_v44 }
 0x130   :  { %v1624_v47 = vpack.c.bf16 %v1104_v43, %v1104_v43  ;;  %1427 = vst.msk [vmem:[%s2513_s4 + $0xfc] sm:$0xf] %vm1363_vm2, %v1626_v45 }
 0x131   :  { %1393 = vst.msk [vmem:[%s2513_s4 + $0x74] sm:$0xf] %vm1363_vm2, %v1592_v46 }
 0x132   :  { %1425 = vst.msk [vmem:[%s2513_s4 + $0xf4] sm:$0xf] %vm1363_vm2, %v1624_v47 }

// kernel: bottleneck_forward.12
= control target key start
LH: loop header
LB: loop body
LE: loop exit
PB: predicated region body
PF: predicated region fallthrough
CT: control target
= control target key end

     0   :  { %v315_v0 = vmov 0.0|0.0   ;;  %vm316_vm0 = vmmov 0   ;;  %v317_v4 = vmov 0.0   ;;  %v318_v5 = vmov 1966171168   ;;  %s402_s1 = inlined_call_operand.vmem [shape: f32[64,4], index: 1, kind: input, shape index: {}]   ;;  %s403_s0 = inlined_call_operand.vmem [shape: f32[2,1,64], index: 0, kind: input, shape index: {}]   ;;  %s404_s4 = inlined_call_operand.vmem [shape: f32[4,64], index: 4, kind: input, shape index: {}]   ;;  %s405_s2 = inlined_call_operand.vmem [shape: f32[1,4], index: 2, kind: input, shape index: {}]   ;;  %s406_s3 = inlined_call_operand.vmem [shape: f32[1,4], index: 3, kind: input, shape index: {}]   ;;  %s407_s5 = inlined_call_operand.vmem [shape: f32[1,64], index: 5, kind: input, shape index: {}]   ;;  %s408_s6 = inlined_call_operand.vmem [shape: f32[2,1,64], index: 6, kind: output, shape index: {}]  }
   0x1   :  { %299 = vmatprep.subr.bf16.mxu0 %v315_v0  ;;  %v25_v1 = vld [vmem:[%s402_s1] sm:$0xff]  ;;  %v26_v2 = vld [vmem:[%s402_s1 + $0x8] sm:$0xff]  ;;  %v27_v3 = vld [vmem:[%s402_s1 + $0x10] sm:$0xff]  ;;  %291 = vmatprep.mubr.msk.f32.mxu0 %vm316_vm0, %v317_v4  ;;  %v37_v6 = vunpack.c.l.s4 %v318_v5  ;;  %v39_v7 = vlaneseq  ;;  %vm50_vm1 = vcmask 523264   ;;  %vm152_vm2 = vcmask 1043456  }
   0x2   :  { %v300_v8 = vpack.c.bf16 %v26_v2, %v25_v1  ;;  %v28_v9 = vld [vmem:[%s402_s1 + $0x18] sm:$0xff]  ;;  %294 = vmatprep.subr.mxu1 %v317_v4  ;;  %296 = vmatprep.mubr.msk.f32.mxu1 %vm316_vm0, %v317_v4  ;;  %v23_v13 = vld [vmem:[%s403_s0] sm:$0x1]  ;;  %v24_v14 = vld [vmem:[%s403_s0 + $0x1] sm:$0x1]  ;;  %vm148_vm3 = vcmask 31744  }
   0x3   :  { %v38_v10 = vunpack.c.0.s8 %v37_v6  ;;  %v40_v11 = vshrl.u32 %v39_v7, 7  ;;  %v303_v12 = vpack.c.bf16 %v28_v9, %v27_v3  ;;  %v29_v15 = vld [vmem:[%s402_s1 + $0x20] sm:$0xff]  ;;  %v30_v16 = vld [vmem:[%s402_s1 + $0x28] sm:$0xff]  ;;  %v35_v17 = vcombine.low %v23_v13, %v24_v14  ;;  %v31_v20 = vld [vmem:[%s402_s1 + $0x30] sm:$0xff] }
   0x4   :  { %301 = vmatpush3.bf16.msra.mxu0 %v300_v8  ;;  %v306_v19 = vpack.c.bf16 %v30_v16, %v29_v15  ;;  %v32_v21 = vld [vmem:[%s402_s1 + $0x38] sm:$0xff]  ;;  %v140_v25 = vld [vmem:[%s404_s4] sm:$0xf]  ;;  %vm251_vm4 = vcmask 516096  }
   0x5   :  { %302 = vmatprep.subr.bf16.mxu0 %v315_v0  ;;  %v41_v18 = vsub.s32 %v38_v10, %v40_v11  ;;  %v309_v23 = vpack.c.bf16 %v32_v21, %v31_v20  ;;  %295 = vmatpush3.msk.msra.mxu1 %vm152_vm2, %v140_v25  ;;  %v259_v26 = vld [vmem:[%s405_s2] ss:$0 sm:$0xff] }
   0x6   :  { %v260_v28 = vld [vmem:[%s406_s3] ss:$0 sm:$0xff] }
   0x7   :  { %v42_v22 = vrot.slane %v35_v17, %v41_v18  ;;  %v261_v33 = vld [vmem:[%s407_s5] ss:$0 sm:$0xff] }
   0x8   :  { %304 = vmatpush3.bf16.msra.mxu0 %v303_v12 }
   0x9   :  { %305 = vmatprep.subr.bf16.mxu0 %v315_v0  ;;  %v49_v24 = vrot.slane %v42_v22, %v41_v18 }
   0xc   :  { %307 = vmatpush3.bf16.msra.mxu0 %v306_v19 }
   0xd   :  { %308 = vmatprep.subr.bf16.mxu0 %v315_v0 }
  0x10   :  { %310 = vmatpush3.bf16.msra.mxu0 %v309_v23 }
  0x13   :  { %292 = vmatmul.mubr.msk.f32.vlgmr.msra.gmra.mrb[0].mxu0 %vm50_vm1, %v49_v24 }
  0xe6   :  { %v119_v27 = vpop.f32.mrb[0].mxu0 }
  0xe7   :  { %v130_v29 = vmul.f32 %v259_v26, %v119_v27  ;;  %v293_v30 = vpop.f32.mrb[1].mxu0 }
  0xe9   :  { %v138_v31 = vadd.f32 %v260_v28, %v130_v29 }
  0xeb   :  { %v139_v32 = vmax.f32 %v138_v31, 0.0 }
  0xed   :  { %297 = vmatmul.mubr.msk.f32.vlgmr.msra.gmra.mrb[0].mxu1 %vm148_vm3, %v139_v32 }
 0x1c0   :  { %v222_v34 = vpop.f32.mrb[0].mxu1 }
 0x1c1   :  { %v223_v35 = vadd.f32 %v261_v33, %v222_v34  ;;  %v298_v36 = vpop.f32.mrb[1].mxu1 }
 0x1c3   :  { %v233_v37 = vrot.slane %v223_v35, %v41_v18 }
 0x1c5   :  { %v234_v38 = vcombine.high %v233_v37, %v233_v37  ;;  %v241_v39 = vrot.slane %v233_v37, %v41_v18 }
 0x1c7   :  { %v248_v40 = vrot.slane %v234_v38, %v41_v18  ;;  %252 = vst.msk [vmem:[%s408_s6] sm:$0x1] %vm251_vm4, %v241_v39 }
 0x1c9   :  { %253 = vst.msk [vmem:[%s408_s6 + $0x1] sm:$0x1] %vm251_vm4, %v248_v40 }

// kernel: bottleneck_forward.15
= control target key start
LH: loop header
LB: loop body
LE: loop exit
PB: predicated region body
PF: predicated region fallthrough
CT: control target
= control target key end

     0   :  { %9 = vsyncpa [#allocation3], 0  ;;  %s1782_s0 = inlined_call_operand.vmem [shape: bf16[2,16,16,64], index: 0, kind: input, shape index: {}]   ;;  %s1783_s1 = inlined_call_operand.vmem [shape: f32[2,1,64], index: 1, kind: input, shape index: {}]   ;;  %s1784_s2 = inlined_call_operand.vmem [shape: f32[2,16,16], index: 2, kind: input, shape index: {}]   ;;  %s1785_s3 = inlined_call_operand.vmem [shape: f32[2,16,16,64], index: 3, kind: input, shape index: {}]   ;;  %s1786_s4 = inlined_call_operand.hbm [shape: f32[2,16,16,64], index: 4, kind: output, shape index: {}]  }
   0x1   :  { %11 = vsyncpa [#allocation3 + $0x1], 0  ;;  %s1418_s15 = smov 0   ;;  %s1420_s16 = smov 0  }
   0x2   :  { %s1422_s17 = smov 0   ;;  %s1424_s18 = smov 0  }
   0x3 LB: > { %s1439_s19 = sadd.s32 4294967295, %s1388_s18   ;;  %s1025_s20 = sadd.s32 4294967294, %s1388_s18   ;;  %s1388_s18 = sphi %s1424_s18, %s1792_s18   ;;  %s1384_s17 = sphi %s1422_s17, %s1791_s17   ;;  %s1380_s16 = sphi %s1420_s16, %s1790_s16   ;;  %s1376_s15 = sphi %s1418_s15, %s1789_s15  }
   0x4   : > { %s1443_s21 = sadd.s32 1, %s1388_s18   ;;  %s128_s22 = sadd.s32 1, %s1384_s17 }
   0x5   : > { %s125_s23 = ssub.s32 %s1388_s18, %s1443_s21  ;;  %p138_p0 = scmp.ne.s32.totalorder %s1384_s17, %s1380_s16 }
   0x6   : > { %p126_p1 = scmp.eq.s32.totalorder %s125_s23, 0  ;;  %p139_p2 = scmp.eq.s32.totalorder %s1439_s19, 1 }
   0x7   : > { %p144_p3 = scmp.ne.s32.totalorder %s1380_s16, %s1376_s15  ;;  %p145_p4 = scmp.eq.s32.totalorder %s1025_s20, 1 }
   0x8   : > { %s1454_s24 = scalar_select %p126_p1, %s1384_s17, %s128_s22  }
   0x9   : > { %p1456_p5 = por %p139_p2, %p138_p0  ;;  %p1460_p6 = por %p145_p4, %p144_p3 }
   0xa   : > { %p1028_p7 = scmp.ge.s32.totalorder %s1388_s18, 1  ;;  %p193_p8 = scmp.lt.s32.totalorder %s1388_s18, 3 }
   0xc   : > { %p194_p9 = pnand %p1028_p7, %p193_p8 }
   0xd   : > { %p232_p10 = scmp.lt.s32.totalorder (!%p194_p9), %s1439_s19, 1  ;;  %v253_v0 = vlaneseq (!%p194_p9)  ;;  %vm883_vm0 = vcmask (!%p194_p9), 523264   ;;  %s229_s23 = sand.u32 (!%p194_p9), 1, %s1380_s16  }
   0xe   : > { %197 = sbr.rel (%p194_p9) target bundleno = 261 (0x105), region = 36  ;;  %s1077_s29 = sshll.u32 (!%p194_p9), %s1439_s19, 12 }
   0xf   : > { %v254_v1 = vshrl.u32 (!%p194_p9), %v253_v0, 7  ;;  %s1731_s7 = scalar_lea.hbm (!%p194_p9), %s1786_s4, %s1077_s29 }
  0x11   : > { %v266_v2 = vsub.s32 (!%p194_p9), 1, %v254_v1  ;;  %v255_v3 = vsub.s32 (!%p194_p9), 0, %v254_v1  ;;  %v277_v7 = vsub.s32 (!%p194_p9), 2, %v254_v1  ;;  %v288_v9 = vsub.s32 (!%p194_p9), 3, %v254_v1 }
  0x12   : > { %v299_v11 = vsub.s32 (!%p194_p9), 4, %v254_v1  ;;  %v310_v13 = vsub.s32 (!%p194_p9), 5, %v254_v1  ;;  %v321_v15 = vsub.s32 (!%p194_p9), 6, %v254_v1  ;;  %v332_v17 = vsub.s32 (!%p194_p9), 7, %v254_v1 }
  0x15   : > { %s1468_s27 = scalar_select %p232_p10, %s1439_s19, 1 }
  0x16   : > { %s1741_s19 = scalar_lea.sflag [#allocation3], %s229_s23 }
  0x17   : > { %s1075_s28 = sshll.u32 %s1468_s27, 4  ;;  %s239_s8 = scalar_lea.vmem %s1783_s1, %s1468_s27 }
  0x18   : > { %s244_s5 = scalar_lea.vmem %s1784_s2, %s1075_s28  ;;  %v1478_v28 = vld [vmem:[%s239_s8] ss:$0 sm:$0xff]  ;;  %s1074_s9 = sshll.u32 %s1468_s27, 7 }
  0x19   : > { %v251_v4 = vld [vmem:[%s244_s5] sm:$0xff]  ;;  %v252_v19 = vld [vmem:[%s244_s5 + $0x8] sm:$0xff]  ;;  %s1490_s12 = scalar_lea.vmem %s1782_s0, %s1074_s9  ;;  %s1076_s13 = sshll.u32 %s1468_s27, 8 }
  0x1a   : > { %v267_v5 = vrot.slane %v251_v4, %v266_v2  ;;  %v256_v6 = vrot.slane %v251_v4, %v255_v3  ;;  %v278_v8 = vrot.slane %v251_v4, %v277_v7  ;;  %v289_v10 = vrot.slane %v251_v4, %v288_v9  ;;  %v1495_v52 = vld [vmem:[%s1490_s12 + $0x8] sm:$0xff]   ;;  %v1498_v53 = vld [vmem:[%s1490_s12] sm:$0xff]   ;;  %v1501_v57 = vld [vmem:[%s1490_s12 + $0x10] sm:$0xff]   ;;  %s1546_s22 = scalar_lea.vmem %s1785_s3, %s1076_s13  ;;  %s1565_s27 = sshll.u32 %s229_s23, 8 }
  0x1b   : > { %v300_v12 = vrot.slane %v251_v4, %v299_v11  ;;  %v311_v14 = vrot.slane %v251_v4, %v310_v13  ;;  %v322_v16 = vrot.slane %v251_v4, %v321_v15  ;;  %v333_v18 = vrot.slane %v251_v4, %v332_v17  ;;  %s1582_s28 = scalar_lea.vmem [#allocation2], %s1565_s27  ;;  %s1390_s9 = smov [#allocation2]  }
  0x1c   : > { %269 = vbcast.lane.b32.xlu1 %v267_v5, 256  ;;  %258 = vbcast.lane.b32.xlu0 %v256_v6, 256  ;;  %v344_v20 = vrot.slane %v252_v19, %v255_v3  ;;  %v355_v21 = vrot.slane %v252_v19, %v266_v2  ;;  %v366_v22 = vrot.slane %v252_v19, %v277_v7  ;;  %v1084_v0 = vunpack.c.l.bf16 %v1495_v52  ;;  %s930_s30 = sshll.u32 %s1582_s28, 4  ;;  %s1330_s10 = sshll.u32 %s1390_s9, 4  ;;  %s1733_s30 = int_to_ptr.vmem [resolvable:$true] %s930_s30  ;;  %s1331_s10 = int_to_ptr.vmem [resolvable:$false] %s1330_s10 }
  0x1d   : > { %v377_v23 = vrot.slane %v252_v19, %v288_v9  ;;  %v388_v24 = vrot.slane %v252_v19, %v299_v11  ;;  %v399_v25 = vrot.slane %v252_v19, %v310_v13  ;;  %v410_v26 = vrot.slane %v252_v19, %v321_v15  ;;  %s1326_s8 = scalar_lea.vmem %s1733_s30, 4096  ;;  %s1332_s11 = scalar_lea.vmem %s1331_s10, 8192 }
  0x1e   : > { %v421_v27 = vrot.slane %v252_v19, %v332_v17  ;;  %v1080_v1 = vunpack.c.l.bf16 %v1498_v53  ;;  %v1085_v2 = vunpack.c.h.bf16 %v1495_v52  ;;  %v1081_v4 = vunpack.c.h.bf16 %v1498_v53  ;;  %p1327_p11 = scmp.ne.s32.totalorder %s1733_s30, %s1326_s8  ;;  %p1333_p0 = scmp.lt.s32.totalorder %s1733_s30, %s1331_s10 }
  0x1f   : > { %v1088_v11 = vunpack.c.l.bf16 %v1501_v57  ;;  %p1334_p1 = scmp.lt.s32.totalorder %s1332_s11, %s1326_s8 }
  0x20   : > { %273 = vbcast.lane.b32.xlu1 %v267_v5, 264  ;;  %262 = vbcast.lane.b32.xlu0 %v256_v6, 264  ;;  %v1089_v5 = vunpack.c.h.bf16 %v1501_v57  ;;  %v1511_v6 = vld [vmem:[%s1490_s12 + $0x18] sm:$0xff]   ;;  %p1328_p12 = pnand %p1327_p11, %p1456_p5 }
  0x21   : > { %v1093_v19 = vunpack.c.h.bf16 %v1511_v6  ;;  %p1335_p2 = por %p1334_p1, %p1333_p0 }
  0x22   : > { %p1329_p13 = pneg %p1328_p12 }
  0x24   : > { %284 = vbcast.lane.b32.xlu1 %v278_v8, 264  ;;  %280 = vbcast.lane.b32.xlu0 %v278_v8, 256  ;;  %v1514_v8 = vld [vmem:[%s1490_s12 + $0x20] sm:$0xff]   ;;  %p1336_p3 = pnand %p1335_p2, %p1329_p13 }
  0x28   : > { %295 = vbcast.lane.b32.xlu1 %v289_v10, 264  ;;  %291 = vbcast.lane.b32.xlu0 %v289_v10, 256 }
  0x2c   : > { %306 = vbcast.lane.b32.xlu1 %v300_v12, 264  ;;  %302 = vbcast.lane.b32.xlu0 %v300_v12, 256 }
  0x30   : > { %317 = vbcast.lane.b32.xlu1 %v311_v14, 264  ;;  %313 = vbcast.lane.b32.xlu0 %v311_v14, 256  ;;  %v1518_v14 = vld [vmem:[%s1490_s12 + $0x28] sm:$0xff]  }
  0x34   : > { %328 = vbcast.lane.b32.xlu1 %v322_v16, 264  ;;  %324 = vbcast.lane.b32.xlu0 %v322_v16, 256 }
  0x38   : > { %339 = vbcast.lane.b32.xlu1 %v333_v18, 264  ;;  %335 = vbcast.lane.b32.xlu0 %v333_v18, 256 }
  0x3c   : > { %350 = vbcast.lane.b32.xlu1 %v344_v20, 264  ;;  %346 = vbcast.lane.b32.xlu0 %v344_v20, 256  ;;  %v1092_v20 = vunpack.c.l.bf16 %v1511_v6 }
  0x40   : > { %361 = vbcast.lane.b32.xlu1 %v355_v21, 264  ;;  %357 = vbcast.lane.b32.xlu0 %v355_v21, 256  ;;  %v1097_v21 = vunpack.c.h.bf16 %v1514_v8 }
  0x44   : > { %372 = vbcast.lane.b32.xlu1 %v366_v22, 264  ;;  %368 = vbcast.lane.b32.xlu0 %v366_v22, 256 }
  0x48   : > { %383 = vbcast.lane.b32.xlu1 %v377_v23, 264  ;;  %379 = vbcast.lane.b32.xlu0 %v377_v23, 256  ;;  %v1096_v23 = vunpack.c.l.bf16 %v1514_v8 }
  0x4c   : > { %394 = vbcast.lane.b32.xlu1 %v388_v24, 264  ;;  %390 = vbcast.lane.b32.xlu0 %v388_v24, 256 }
  0x50   : > { %405 = vbcast.lane.b32.xlu1 %v399_v25, 264  ;;  %401 = vbcast.lane.b32.xlu0 %v399_v25, 256  ;;  %v1101_v25 = vunpack.c.h.bf16 %v1518_v14 }
  0x54   : > { %416 = vbcast.lane.b32.xlu1 %v410_v26, 264  ;;  %412 = vbcast.lane.b32.xlu0 %v410_v26, 256  ;;  %v1528_v26 = vld [vmem:[%s1490_s12 + $0x30] sm:$0xff]  }
  0x58   : > { %427 = vbcast.lane.b32.xlu1 %v421_v27, 264  ;;  %423 = vbcast.lane.b32.xlu0 %v421_v27, 256  ;;  %v1531_v27 = vld [vmem:[%s1490_s12 + $0x38] sm:$0xff]  }
  0x8e   : > { %v270_v29 = vpop.permute.xlu1 %269  ;;  %v259_v30 = vpop.permute.xlu0 %258 }
  0x8f   : > { %v437_v31 = vadd.f32 %v1478_v28, %v270_v29  ;;  %v435_v32 = vadd.f32 %v1478_v28, %v259_v30 }
  0x91   : > { %v1039_v33 = vmul.f32 -1.442695, %v437_v31  ;;  %v1037_v34 = vmul.f32 -1.442695, %v435_v32  ;;  %v1100_v32 = vunpack.c.l.bf16 %v1518_v14 }
  0x92   : > { %v274_v35 = vpop.permute.xlu1 %273  ;;  %v263_v36 = vpop.permute.xlu0 %262 }
  0x93   : > { %1198 = vpow2.f32 %v1039_v33  ;;  %v438_v37 = vadd.f32 %v1478_v28, %v274_v35  ;;  %v436_v38 = vadd.f32 %v1478_v28, %v263_v36 }
  0x94   : > { %1200 = vpow2.f32 %v1037_v34 }
  0x95   : > { %v1040_v39 = vmul.f32 -1.442695, %v438_v37  ;;  %v1038_v40 = vmul.f32 -1.442695, %v436_v38  ;;  %v1538_v38 = vld [vmem:[%s1490_s12 + $0x40] sm:$0xff]  }
  0x96   : > { %v285_v41 = vpop.permute.xlu1 %284  ;;  %v281_v42 = vpop.permute.xlu0 %280 }
  0x97   : > { %1202 = vpow2.f32 %v1040_v39  ;;  %v440_v43 = vadd.f32 %v1478_v28, %v285_v41  ;;  %v439_v44 = vadd.f32 %v1478_v28, %v281_v42  ;;  %v1105_v39 = vunpack.c.h.bf16 %v1528_v26 }
  0x98   : > { %1204 = vpow2.f32 %v1038_v40  ;;  %v1104_v40 = vunpack.c.l.bf16 %v1528_v26  ;;  %v1109_v41 = vunpack.c.h.bf16 %v1531_v27 }
  0x99   : > { %v1042_v45 = vmul.f32 -1.442695, %v440_v43  ;;  %v1041_v46 = vmul.f32 -1.442695, %v439_v44 }
  0x9a   : > { %v296_v47 = vpop.permute.xlu1 %295  ;;  %v292_v48 = vpop.permute.xlu0 %291 }
  0x9b   : > { %1206 = vpow2.f32 %v1042_v45  ;;  %v442_v49 = vadd.f32 %v1478_v28, %v296_v47  ;;  %v441_v50 = vadd.f32 %v1478_v28, %v292_v48  ;;  %v1108_v45 = vunpack.c.l.bf16 %v1531_v27 }
  0x9c   : > { %1208 = vpow2.f32 %v1041_v46  ;;  %v1550_v46 = vld [vmem:[%s1490_s12 + $0x48] sm:$0xff]  }
  0x9d   : > { %v1199_v51 = vpop.eup %1198  ;;  %v1044_v54 = vmul.f32 -1.442695, %v442_v49  ;;  %v1043_v58 = vmul.f32 -1.442695, %v441_v50 }
  0x9e   : > { %v1201_v55 = vpop.eup %1200  ;;  %v565_v56 = vadd.f32 1.0, %v1199_v51  ;;  %v307_v59 = vpop.permute.xlu1 %306  ;;  %v1113_v51 = vunpack.c.h.bf16 %v1538_v38 }
  0x9f   : > { %v303_v60 = vpop.permute.xlu0 %302  ;;  %v563_v61 = vadd.f32 1.0, %v1201_v55  ;;  %1210 = vpow2.f32 %v1044_v54  ;;  %v444_v62 = vadd.f32 %v1478_v28, %v307_v59  ;;  %v1112_v54 = vunpack.c.l.bf16 %v1538_v38 }
  0xa0   : > { %v443_v63 = vadd.f32 %v1478_v28, %v303_v60  ;;  %1212 = vrcp.f32 %v565_v56  ;;  %v1558_v60 = vld [vmem:[%s1490_s12 + $0x50] sm:$0xff]  }
  0xa1   : > { %v1203_v3 = vpop.eup %1202  ;;  %1214 = vrcp.f32 %v563_v61  ;;  %v1046_v7 = vmul.f32 -1.442695, %v444_v62  ;;  %v789_v62 = vld [vmem:[%s1546_s22 + $0x10] sm:$0xff] }
  0xa2   : > { %v1205_v9 = vpop.eup %1204  ;;  %v566_v10 = vadd.f32 1.0, %v1203_v3  ;;  %1216 = vpow2.f32 %v1043_v58  ;;  %v1045_v12 = vmul.f32 -1.442695, %v443_v63  ;;  %v318_v13 = vpop.permute.xlu1 %317  ;;  %v1117_v3 = vunpack.c.h.bf16 %v1550_v46 }
  0xa3   : > { %v314_v15 = vpop.permute.xlu0 %313  ;;  %v564_v16 = vadd.f32 1.0, %v1205_v9  ;;  %1218 = vpow2.f32 %v1046_v7  ;;  %v446_v17 = vadd.f32 %v1478_v28, %v318_v13  ;;  %v1116_v7 = vunpack.c.l.bf16 %v1550_v46 }
  0xa4   : > { %v445_v18 = vadd.f32 %v1478_v28, %v314_v15  ;;  %1220 = vrcp.f32 %v566_v10 }
  0xa5   : > { %v1207_v22 = vpop.eup %1206  ;;  %1222 = vrcp.f32 %v564_v16  ;;  %v1048_v24 = vmul.f32 -1.442695, %v446_v17 }
  0xa6   : > { %v1209_v29 = vpop.eup %1208  ;;  %v568_v30 = vadd.f32 1.0, %v1207_v22  ;;  %1224 = vpow2.f32 %v1045_v12  ;;  %v1047_v31 = vmul.f32 -1.442695, %v445_v18  ;;  %v329_v33 = vpop.permute.xlu1 %328  ;;  %v787_v12 = vld [vmem:[%s1546_s22] sm:$0xff] }
  0xa7   : > { %v325_v34 = vpop.permute.xlu0 %324  ;;  %v567_v35 = vadd.f32 1.0, %v1209_v29  ;;  %1226 = vpow2.f32 %v1048_v24  ;;  %v448_v36 = vadd.f32 %v1478_v28, %v329_v33 }
  0xa8   : > { %v447_v37 = vadd.f32 %v1478_v28, %v325_v34  ;;  %1228 = vrcp.f32 %v568_v30  ;;  %v1121_v30 = vunpack.c.h.bf16 %v1558_v60 }
  0xa9   : > { %v1211_v42 = vpop.eup %1210  ;;  %1230 = vrcp.f32 %v567_v35  ;;  %v1050_v43 = vmul.f32 -1.442695, %v448_v36 }
  0xaa   : > { %v1049_v44 = vmul.f32 -1.442695, %v447_v37  ;;  %v1213_v47 = vpop.eup %1212  ;;  %v570_v48 = vadd.f32 1.0, %v1211_v42  ;;  %1232 = vpow2.f32 %v1047_v31  ;;  %v340_v49 = vpop.permute.xlu1 %339  ;;  %v790_v37 = vld [vmem:[%s1546_s22 + $0x18] sm:$0xff] }
  0xab   : > { %v336_v50 = vpop.permute.xlu0 %335  ;;  %v1215_v55 = vpop.eup %1214  ;;  %v661_v56 = vadd.f32 1.0, %v1213_v47  ;;  %1234 = vpow2.f32 %v1050_v43  ;;  %v450_v58 = vadd.f32 %v1478_v28, %v340_v49 }
  0xac   : > { %v449_v59 = vadd.f32 %v1478_v28, %v336_v50  ;;  %v1217_v61 = vpop.eup %1216  ;;  %v659_v63 = vadd.f32 1.0, %v1215_v55  ;;  %1236 = vrcp.f32 %v570_v48  ;;  %v788_v48 = vld [vmem:[%s1546_s22 + $0x8] sm:$0xff] }
  0xad   : > { %v1219_v9 = vpop.eup %1218  ;;  %v757_v10 = vmul.f32 %v1084_v0, %v661_v56  ;;  %v569_v13 = vadd.f32 1.0, %v1217_v61  ;;  %1238 = vpow2.f32 %v1049_v44  ;;  %v1052_v15 = vmul.f32 -1.442695, %v450_v58 }
  0xae   : > { %v1221_v16 = vpop.eup %1220  ;;  %v755_v17 = vmul.f32 %v1080_v1, %v659_v63  ;;  %v572_v18 = vadd.f32 1.0, %v1219_v9  ;;  %v1051_v22 = vmul.f32 -1.442695, %v449_v59  ;;  %v351_v24 = vpop.permute.xlu1 %350 }
  0xaf   : > { %v347_v29 = vpop.permute.xlu0 %346  ;;  %v1223_v31 = vpop.eup %1222  ;;  %v821_v33 = vadd.f32 %v789_v62, %v757_v10  ;;  %v662_v34 = vadd.f32 1.0, %v1221_v16  ;;  %1240 = vrcp.f32 %v569_v13  ;;  %v452_v0 = vadd.f32 %v1478_v28, %v351_v24 }
  0xb0   : > { %v1225_v35 = vpop.eup %1224  ;;  %v819_v36 = vadd.f32 %v787_v12, %v755_v17  ;;  %v660_v42 = vadd.f32 1.0, %v1223_v31  ;;  %1242 = vrcp.f32 %v572_v18  ;;  %v451_v1 = vadd.f32 %v1478_v28, %v347_v29  ;;  %v791_v17 = vld [vmem:[%s1546_s22 + $0x20] sm:$0xff] }
  0xb1   : > { %v1227_v43 = vpop.eup %1226  ;;  %v853_v44 = vmax.f32 %v821_v33, 0.0  ;;  %v758_v47 = vmul.f32 %v1085_v2, %v662_v34  ;;  %v571_v49 = vadd.f32 1.0, %v1225_v35  ;;  %1244 = vpow2.f32 %v1052_v15 }
  0xb2   : > { %v1229_v50 = vpop.eup %1228  ;;  %v851_v55 = vmax.f32 %v819_v36, 0.0  ;;  %v756_v56 = vmul.f32 %v1081_v4, %v660_v42  ;;  %v574_v58 = vadd.f32 1.0, %v1227_v43  ;;  %1246 = vpow2.f32 %v1051_v22  ;;  %v362_v59 = vpop.permute.xlu1 %361  ;;  %v792_v4 = vld [vmem:[%s1546_s22 + $0x28] sm:$0xff]  ;;  %v794_v42 = vld [vmem:[%s1546_s22 + $0x38] sm:$0xff] }
  0xb3   : > { %v358_v61 = vpop.permute.xlu0 %357  ;;  %v1231_v62 = vpop.eup %1230  ;;  %886 = vst.msk [vmem:[%s1582_s28 + $0x10] sm:$0xff] %vm883_vm0, %v853_v44  ;;  %v822_v52 = vadd.f32 %v790_v37, %v758_v47  ;;  %v664_v2 = vadd.f32 1.0, %v1229_v50  ;;  %1248 = vrcp.f32 %v571_v49  ;;  %v1054_v63 = vmul.f32 -1.442695, %v452_v0 }
  0xb4   : > { %v1233_v9 = vpop.eup %1232  ;;  %884 = vst.msk [vmem:[%s1582_s28] sm:$0xff] %vm883_vm0, %v851_v55  ;;  %v820_v53 = vadd.f32 %v788_v48, %v756_v56  ;;  %v663_v10 = vadd.f32 1.0, %v1231_v62  ;;  %1250 = vrcp.f32 %v574_v58  ;;  %v1053_v12 = vmul.f32 -1.442695, %v451_v1 }
  0xb5   : > { %v1235_v13 = vpop.eup %1234  ;;  %v854_v15 = vmax.f32 %v822_v52, 0.0  ;;  %v760_v16 = vmul.f32 %v1089_v5, %v664_v2  ;;  %v573_v18 = vadd.f32 1.0, %v1233_v9  ;;  %1252 = vpow2.f32 %v1054_v63  ;;  %v793_v52 = vld [vmem:[%s1546_s22 + $0x30] sm:$0xff] }
  0xb6   : > { %v1237_v22 = vpop.eup %1236  ;;  %v852_v24 = vmax.f32 %v820_v53, 0.0  ;;  %v759_v29 = vmul.f32 %v1088_v11, %v663_v10  ;;  %v576_v31 = vadd.f32 1.0, %v1235_v13  ;;  %1254 = vpow2.f32 %v1053_v12  ;;  %v373_v33 = vpop.permute.xlu1 %372  ;;  %v796_v53 = vld [vmem:[%s1546_s22 + $0x48] sm:$0xff] }
  0xb7   : > { %v369_v34 = vpop.permute.xlu0 %368  ;;  %v1239_v0 = vpop.eup %1238  ;;  %887 = vst.msk [vmem:[%s1582_s28 + $0x18] sm:$0xff] %vm883_vm0, %v854_v15  ;;  %v824_v35 = vadd.f32 %v792_v4, %v760_v16  ;;  %v666_v36 = vadd.f32 1.0, %v1237_v22  ;;  %1256 = vrcp.f32 %v573_v18  ;;  %v454_v5 = vadd.f32 %v1478_v28, %v362_v59 }
  0xb8   : > { %885 = vst.msk [vmem:[%s1582_s28 + $0x8] sm:$0xff] %vm883_vm0, %v852_v24  ;;  %v823_v37 = vadd.f32 %v791_v17, %v759_v29  ;;  %1258 = vrcp.f32 %v576_v31  ;;  %v575_v57 = vadd.f32 1.0, %v1239_v0  ;;  %v453_v11 = vadd.f32 %v1478_v28, %v358_v61 }
  0xb9   : > { %v1241_v1 = vpop.eup %1240  ;;  %v856_v43 = vmax.f32 %v824_v35, 0.0  ;;  %v762_v44 = vmul.f32 %v1093_v19, %v666_v36  ;;  %v1056_v47 = vmul.f32 -1.442695, %v454_v5  ;;  %v456_v48 = vadd.f32 %v1478_v28, %v373_v33  ;;  %v795_v33 = vld [vmem:[%s1546_s22 + $0x40] sm:$0xff]  ;;  %v798_v5 = vld [vmem:[%s1546_s22 + $0x58] sm:$0xff] }
  0xba   : > { %v1243_v49 = vpop.eup %1242  ;;  %v855_v50 = vmax.f32 %v823_v37, 0.0  ;;  %v665_v55 = vadd.f32 1.0, %v1241_v1  ;;  %1260 = vrcp.f32 %v575_v57  ;;  %v1055_v56 = vmul.f32 -1.442695, %v453_v11  ;;  %v384_v58 = vpop.permute.xlu1 %383 }
  0xbb   : > { %v380_v59 = vpop.permute.xlu0 %379  ;;  %v1245_v62 = vpop.eup %1244  ;;  %889 = vst.msk [vmem:[%s1582_s28 + $0x28] sm:$0xff] %vm883_vm0, %v856_v43  ;;  %v826_v61 = vadd.f32 %v794_v42, %v762_v44  ;;  %v668_v2 = vadd.f32 1.0, %v1243_v49  ;;  %1262 = vpow2.f32 %v1056_v47  ;;  %v1058_v19 = vmul.f32 -1.442695, %v456_v48 }
  0xbc   : > { %v1247_v63 = vpop.eup %1246  ;;  %888 = vst.msk [vmem:[%s1582_s28 + $0x20] sm:$0xff] %vm883_vm0, %v855_v50  ;;  %v761_v9 = vmul.f32 %v1092_v20, %v665_v55  ;;  %v578_v4 = vadd.f32 1.0, %v1245_v62  ;;  %1264 = vpow2.f32 %v1055_v56  ;;  %v455_v10 = vadd.f32 %v1478_v28, %v369_v34  ;;  %v797_v50 = vld [vmem:[%s1546_s22 + $0x50] sm:$0xff] }
  0xbd   : > { %v1249_v12 = vpop.eup %1248  ;;  %v858_v13 = vmax.f32 %v826_v61, 0.0  ;;  %v764_v15 = vmul.f32 %v1097_v21, %v668_v2  ;;  %v577_v16 = vadd.f32 1.0, %v1247_v63  ;;  %1266 = vpow2.f32 %v1058_v19 }
  0xbe   : > { %v1251_v17 = vpop.eup %1250  ;;  %v825_v18 = vadd.f32 %v793_v52, %v761_v9  ;;  %v667_v22 = vadd.f32 1.0, %v1249_v12  ;;  %1268 = vrcp.f32 %v578_v4  ;;  %v1057_v6 = vmul.f32 -1.442695, %v455_v10  ;;  %v395_v20 = vpop.permute.xlu1 %394  ;;  %v800_v52 = vld [vmem:[%s1546_s22 + $0x68] sm:$0xff]  ;;  %v799_v12 = vld [vmem:[%s1546_s22 + $0x60] sm:$0xff] }
  0xbf   : > { %v391_v24 = vpop.permute.xlu0 %390  ;;  %v1253_v29 = vpop.eup %1252  ;;  %891 = vst.msk [vmem:[%s1582_s28 + $0x38] sm:$0xff] %vm883_vm0, %v858_v13  ;;  %v828_v31 = vadd.f32 %v796_v53, %v764_v15  ;;  %v670_v34 = vadd.f32 1.0, %v1251_v17  ;;  %1270 = vrcp.f32 %v577_v16  ;;  %v458_v21 = vadd.f32 %v1478_v28, %v384_v58 }
  0xc0   : > { %v1255_v0 = vpop.eup %1254  ;;  %v857_v35 = vmax.f32 %v825_v18, 0.0  ;;  %v763_v36 = vmul.f32 %v1096_v23, %v667_v22  ;;  %v580_v37 = vadd.f32 1.0, %v1253_v29  ;;  %1272 = vpow2.f32 %v1057_v6 }
  0xc1   : > { %v1257_v42 = vpop.eup %1256  ;;  %v860_v57 = vmax.f32 %v828_v31, 0.0  ;;  %v766_v11 = vmul.f32 %v1101_v25, %v670_v34  ;;  %v579_v1 = vadd.f32 1.0, %v1255_v0  ;;  %v1060_v43 = vmul.f32 -1.442695, %v458_v21 }
  0xc2   : > { %v1259_v44 = vpop.eup %1258  ;;  %890 = vst.msk [vmem:[%s1582_s28 + $0x30] sm:$0xff] %vm883_vm0, %v857_v35  ;;  %v827_v47 = vadd.f32 %v795_v33, %v763_v36  ;;  %v669_v48 = vadd.f32 1.0, %v1257_v42  ;;  %1274 = vrcp.f32 %v580_v37  ;;  %v457_v8 = vadd.f32 %v1478_v28, %v380_v59  ;;  %v406_v23 = vpop.permute.xlu1 %405  ;;  %v801_v37 = vld [vmem:[%s1546_s22 + $0x70] sm:$0xff] }
  0xc3   : > { %893 = vst.msk [vmem:[%s1582_s28 + $0x48] sm:$0xff] %vm883_vm0, %v860_v57  ;;  %v830_v49 = vadd.f32 %v798_v5, %v766_v11  ;;  %v672_v55 = vadd.f32 1.0, %v1259_v44  ;;  %1276 = vrcp.f32 %v579_v1  ;;  %v460_v25 = vadd.f32 %v1478_v28, %v395_v20  ;;  %v402_v56 = vpop.permute.xlu0 %401 }
  0xc4   : > { %v1261_v58 = vpop.eup %1260  ;;  %v859_v62 = vmax.f32 %v827_v47, 0.0  ;;  %v765_v61 = vmul.f32 %v1100_v32, %v669_v48  ;;  %1278 = vpow2.f32 %v1060_v43  ;;  %v1059_v59 = vmul.f32 -1.442695, %v457_v8 }
  0xc5   : > { %v1263_v2 = vpop.eup %1262  ;;  %v862_v19 = vmax.f32 %v830_v49, 0.0  ;;  %v768_v63 = vmul.f32 %v1105_v39, %v672_v55  ;;  %v671_v9 = vadd.f32 1.0, %v1261_v58  ;;  %v1062_v53 = vmul.f32 -1.442695, %v460_v25  ;;  %v803_v58 = vld [vmem:[%s1546_s22 + $0x80] sm:$0xff] }
  0xc6   : > { %v1265_v4 = vpop.eup %1264  ;;  %892 = vst.msk [vmem:[%s1582_s28 + $0x40] sm:$0xff] %vm883_vm0, %v859_v62  ;;  %v829_v10 = vadd.f32 %v797_v50, %v765_v61  ;;  %v582_v13 = vadd.f32 1.0, %v1263_v2  ;;  %1280 = vpow2.f32 %v1059_v59  ;;  %v459_v14 = vadd.f32 %v1478_v28, %v391_v24  ;;  %v417_v20 = vpop.permute.xlu1 %416  ;;  %v804_v50 = vld [vmem:[%s1546_s22 + $0x88] sm:$0xff] }
  0xc7   : > { %v1267_v32 = vpop.eup %1266  ;;  %895 = vst.msk [vmem:[%s1582_s28 + $0x58] sm:$0xff] %vm883_vm0, %v862_v19  ;;  %v832_v15 = vadd.f32 %v800_v52, %v768_v63  ;;  %v767_v16 = vmul.f32 %v1104_v40, %v671_v9  ;;  %v581_v39 = vadd.f32 1.0, %v1265_v4  ;;  %1282 = vpow2.f32 %v1062_v53  ;;  %v413_v34 = vpop.permute.xlu0 %412  ;;  %v802_v40 = vld [vmem:[%s1546_s22 + $0x78] sm:$0xff] }
  0xc8   : > { %v1269_v17 = vpop.eup %1268  ;;  %v861_v18 = vmax.f32 %v829_v10, 0.0  ;;  %1284 = vrcp.f32 %v582_v13  ;;  %v584_v22 = vadd.f32 1.0, %v1267_v32  ;;  %v1061_v6 = vmul.f32 -1.442695, %v459_v14 }
  0xc9   : > { %v1271_v29 = vpop.eup %1270  ;;  %v864_v24 = vmax.f32 %v832_v15, 0.0  ;;  %v831_v31 = vadd.f32 %v799_v12, %v767_v16  ;;  %v674_v33 = vadd.f32 1.0, %v1269_v17  ;;  %1286 = vrcp.f32 %v581_v39  ;;  %v806_v39 = vld [vmem:[%s1546_s22 + $0x98] sm:$0xff] }
  0xca   : > { %v1273_v26 = vpop.eup %1272  ;;  %894 = vst.msk [vmem:[%s1582_s28 + $0x50] sm:$0xff] %vm883_vm0, %v861_v18  ;;  %v673_v21 = vadd.f32 1.0, %v1271_v29  ;;  %1288 = vrcp.f32 %v584_v22  ;;  %v462_v0 = vadd.f32 %v1478_v28, %v406_v23  ;;  %v461_v35 = vadd.f32 %v1478_v28, %v402_v56 }
  0xcb   : > { %897 = vst.msk [vmem:[%s1582_s28 + $0x68] sm:$0xff] %vm883_vm0, %v864_v24  ;;  %v863_v36 = vmax.f32 %v831_v31, 0.0  ;;  %v770_v5 = vmul.f32 %v1109_v41, %v674_v33  ;;  %v583_v42 = vadd.f32 1.0, %v1273_v26  ;;  %1290 = vpow2.f32 %v1061_v6  ;;  %v424_v61 = vpop.permute.xlu0 %423  ;;  %v805_v6 = vld [vmem:[%s1546_s22 + $0x90] sm:$0xff]  ;;  %v808_v24 = vld [vmem:[%s1546_s22 + $0xa8] sm:$0xff] }
  0xcc   : > { %v1275_v57 = vpop.eup %1274  ;;  %v769_v11 = vmul.f32 %v1108_v45, %v673_v21  ;;  %v1064_v1 = vmul.f32 -1.442695, %v462_v0  ;;  %v1063_v43 = vmul.f32 -1.442695, %v461_v35  ;;  %v464_v44 = vadd.f32 %v1478_v28, %v417_v20  ;;  %v428_v45 = vpop.permute.xlu1 %427 }
  0xcd   : > { %v1277_v47 = vpop.eup %1276  ;;  %896 = vst.msk [vmem:[%s1582_s28 + $0x60] sm:$0xff] %vm883_vm0, %v863_v36  ;;  %v834_v48 = vadd.f32 %v802_v40, %v770_v5  ;;  %v676_v8 = vadd.f32 1.0, %v1275_v57  ;;  %1292 = vrcp.f32 %v583_v42  ;;  %v463_v41 = vadd.f32 %v1478_v28, %v413_v34  ;;  %v1152_v40 = vld [vmem:[%s1490_s12 + $0x58] sm:$0xff]   ;;  %v807_v5 = vld [vmem:[%s1546_s22 + $0xa0] sm:$0xff] }
  0xce   : > { %v1279_v23 = vpop.eup %1278  ;;  %v833_v49 = vadd.f32 %v801_v37, %v769_v11  ;;  %v675_v55 = vadd.f32 1.0, %v1277_v47  ;;  %1294 = vpow2.f32 %v1064_v1  ;;  %v1066_v27 = vmul.f32 -1.442695, %v464_v44 }
  0xcf   : > { %v866_v25 = vmax.f32 %v834_v48, 0.0  ;;  %v772_v56 = vmul.f32 %v1113_v51, %v676_v8  ;;  %v586_v62 = vadd.f32 1.0, %v1279_v23  ;;  %1296 = vpow2.f32 %v1063_v43 }
  0xd0   : > { %v1281_v52 = vpop.eup %1280  ;;  %v865_v59 = vmax.f32 %v833_v49, 0.0  ;;  %v771_v2 = vmul.f32 %v1112_v54, %v675_v55  ;;  %1298 = vpow2.f32 %v1066_v27  ;;  %v1065_v19 = vmul.f32 -1.442695, %v463_v41 }
  0xd1   : > { %v1283_v63 = vpop.eup %1282  ;;  %899 = vst.msk [vmem:[%s1582_s28 + $0x78] sm:$0xff] %vm883_vm0, %v866_v25  ;;  %v836_v9 = vadd.f32 %v804_v50, %v772_v56  ;;  %1300 = vrcp.f32 %v586_v62  ;;  %v585_v53 = vadd.f32 1.0, %v1281_v52  ;;  %v466_v51 = vadd.f32 %v1478_v28, %v428_v45  ;;  %v810_v50 = vld [vmem:[%s1546_s22 + $0xb8] sm:$0xff] }
  0xd2   : > { %v1285_v4 = vpop.eup %1284  ;;  %898 = vst.msk [vmem:[%s1582_s28 + $0x70] sm:$0xff] %vm883_vm0, %v865_v59  ;;  %v835_v10 = vadd.f32 %v803_v58, %v771_v2  ;;  %v588_v12 = vadd.f32 1.0, %v1283_v63  ;;  %1302 = vpow2.f32 %v1065_v19  ;;  %v465_v38 = vadd.f32 %v1478_v28, %v424_v61  ;;  %v809_v61 = vld [vmem:[%s1546_s22 + $0xb0] sm:$0xff]  ;;  %v812_v63 = vld [vmem:[%s1546_s22 + $0xc8] sm:$0xff] }
  0xd3   : > { %v1287_v54 = vpop.eup %1286  ;;  %v868_v13 = vmax.f32 %v836_v9, 0.0  ;;  %v678_v14 = vadd.f32 1.0, %v1285_v4  ;;  %1304 = vrcp.f32 %v585_v53  ;;  %v1068_v32 = vmul.f32 -1.442695, %v466_v51  ;;  %v1154_v4 = vld [vmem:[%s1490_s12 + $0x68] sm:$0xff]  }
  0xd4   : > { %v1289_v15 = vpop.eup %1288  ;;  %v867_v16 = vmax.f32 %v835_v10, 0.0  ;;  %v677_v17 = vadd.f32 1.0, %v1287_v54  ;;  %1306 = vrcp.f32 %v588_v12  ;;  %v1067_v18 = vmul.f32 -1.442695, %v465_v38 }
  0xd5   : > { %v1291_v22 = vpop.eup %1290  ;;  %901 = vst.msk [vmem:[%s1582_s28 + $0x88] sm:$0xff] %vm883_vm0, %v868_v13  ;;  %v774_v28 = vmul.f32 %v1117_v3, %v678_v14  ;;  %v680_v20 = vadd.f32 1.0, %v1289_v15  ;;  %1308 = vpow2.f32 %v1068_v32  ;;  %v1120_v31 = vunpack.c.l.bf16 %v1558_v60  ;;  %v1153_v60 = vld [vmem:[%s1490_s12 + $0x60] sm:$0xff]   ;;  %v1155_v32 = vld [vmem:[%s1490_s12 + $0x70] sm:$0xff]  }
  0xd6   : > { %900 = vst.msk [vmem:[%s1582_s28 + $0x80] sm:$0xff] %vm883_vm0, %v867_v16  ;;  %v773_v29 = vmul.f32 %v1116_v7, %v677_v17  ;;  %v587_v33 = vadd.f32 1.0, %v1291_v22  ;;  %1310 = vpow2.f32 %v1067_v18  ;;  %v1125_v1 = vunpack.c.h.bf16 %v1152_v40  ;;  %v811_v16 = vld [vmem:[%s1546_s22 + $0xc0] sm:$0xff] }
  0xd7   : > { %v1293_v34 = vpop.eup %1292  ;;  %v838_v26 = vadd.f32 %v806_v39, %v774_v28  ;;  %v776_v3 = vmul.f32 %v1121_v30, %v680_v20  ;;  %v1124_v23 = vunpack.c.l.bf16 %v1152_v40  ;;  %v1129_v55 = vunpack.c.h.bf16 %v1153_v60 }
  0xd8   : > { %v1295_v21 = vpop.eup %1294  ;;  %v837_v0 = vadd.f32 %v805_v6, %v773_v29  ;;  %v679_v35 = vadd.f32 1.0, %v1293_v34  ;;  %1312 = vrcp.f32 %v587_v33  ;;  %v1128_v51 = vunpack.c.l.bf16 %v1153_v60  ;;  %v814_v33 = vld [vmem:[%s1546_s22 + $0xd8] sm:$0xff] }
  0xd9   : > { %v1297_v46 = vpop.eup %1296  ;;  %v870_v7 = vmax.f32 %v838_v26, 0.0  ;;  %v840_v36 = vadd.f32 %v808_v24, %v776_v3  ;;  %v590_v37 = vadd.f32 1.0, %v1295_v21  ;;  %v1133_v39 = vunpack.c.h.bf16 %v1154_v4  ;;  %v813_v3 = vld [vmem:[%s1546_s22 + $0xd0] sm:$0xff] }
  0xda   : > { %v1299_v42 = vpop.eup %1298  ;;  %v869_v57 = vmax.f32 %v837_v0, 0.0  ;;  %v775_v11 = vmul.f32 %v1120_v31, %v679_v35  ;;  %v589_v30 = vadd.f32 1.0, %v1297_v46  ;;  %v1132_v28 = vunpack.c.l.bf16 %v1154_v4  ;;  %v1156_v0 = vld [vmem:[%s1490_s12 + $0x78] sm:$0xff]  }
  0xdb   : > { %v1301_v43 = vpop.eup %1300  ;;  %903 = vst.msk [vmem:[%s1582_s28 + $0x98] sm:$0xff] %vm883_vm0, %v870_v7  ;;  %v872_v44 = vmax.f32 %v840_v36, 0.0  ;;  %1314 = vrcp.f32 %v590_v37  ;;  %v592_v47 = vadd.f32 1.0, %v1299_v42  ;;  %v1137_v29 = vunpack.c.h.bf16 %v1155_v32  ;;  %v816_v36 = vld [vmem:[%s1546_s22 + $0xe8] sm:$0xff] }
  0xdc   : > { %v1303_v48 = vpop.eup %1302  ;;  %902 = vst.msk [vmem:[%s1582_s28 + $0x90] sm:$0xff] %vm883_vm0, %v869_v57  ;;  %v839_v8 = vadd.f32 %v807_v5, %v775_v11  ;;  %v682_v41 = vadd.f32 1.0, %v1301_v43  ;;  %1316 = vrcp.f32 %v589_v30  ;;  %v1136_v21 = vunpack.c.l.bf16 %v1155_v32  ;;  %v815_v11 = vld [vmem:[%s1546_s22 + $0xe0] sm:$0xff] }
  0xdd   : > { %v1305_v49 = vpop.eup %1304  ;;  %905 = vst.msk [vmem:[%s1582_s28 + $0xa8] sm:$0xff] %vm883_vm0, %v872_v44  ;;  %1318 = vrcp.f32 %v592_v47  ;;  %v591_v27 = vadd.f32 1.0, %v1303_v48  ;;  %v1140_v47 = vunpack.c.l.bf16 %v1156_v0 }
  0xde   : > { %v1307_v45 = vpop.eup %1306  ;;  %v871_v25 = vmax.f32 %v839_v8, 0.0  ;;  %v778_v56 = vmul.f32 %v1125_v1, %v682_v41  ;;  %v681_v58 = vadd.f32 1.0, %v1305_v49  ;;  %v1141_v1 = vunpack.c.h.bf16 %v1156_v0 }
  0xdf   : > { %v1309_v62 = vpop.eup %1308  ;;  %v684_v52 = vadd.f32 1.0, %v1307_v45  ;;  %1320 = vrcp.f32 %v591_v27  ;;  %v817_v45 = vld [vmem:[%s1546_s22 + $0xf0] sm:$0xff] }
  0xe0   : > { %v1311_v59 = vpop.eup %1310  ;;  %904 = vst.msk [vmem:[%s1582_s28 + $0xa0] sm:$0xff] %vm883_vm0, %v871_v25  ;;  %v842_v2 = vadd.f32 %v810_v50, %v778_v56  ;;  %v777_v19 = vmul.f32 %v1124_v23, %v681_v58  ;;  %v594_v9 = vadd.f32 1.0, %v1309_v62  ;;  %v818_v50 = vld [vmem:[%s1546_s22 + $0xf8] sm:$0xff] }
  0xe1   : > { %v780_v53 = vmul.f32 %v1129_v55, %v684_v52  ;;  %v593_v10 = vadd.f32 1.0, %v1311_v59 }
  0xe2   : > { %v1313_v12 = vpop.eup %1312  ;;  %v874_v38 = vmax.f32 %v842_v2, 0.0  ;;  %v841_v54 = vadd.f32 %v809_v61, %v777_v19  ;;  %1322 = vrcp.f32 %v594_v9 }
  0xe3   : > { %v844_v13 = vadd.f32 %v812_v63, %v780_v53  ;;  %v683_v14 = vadd.f32 1.0, %v1313_v12  ;;  %1324 = vrcp.f32 %v593_v10 }
  0xe4   : > { %907 = vst.msk [vmem:[%s1582_s28 + $0xb8] sm:$0xff] %vm883_vm0, %v874_v38  ;;  %v873_v15 = vmax.f32 %v841_v54, 0.0 }
  0xe5   : > { %v1315_v17 = vpop.eup %1314  ;;  %v876_v18 = vmax.f32 %v844_v13, 0.0  ;;  %v779_v22 = vmul.f32 %v1128_v51, %v683_v14 }
  0xe6   : > { %v1317_v6 = vpop.eup %1316  ;;  %906 = vst.msk [vmem:[%s1582_s28 + $0xb0] sm:$0xff] %vm883_vm0, %v873_v15  ;;  %v686_v20 = vadd.f32 1.0, %v1315_v17 }
  0xe7   : > { %v1319_v24 = vpop.eup %1318  ;;  %909 = vst.msk [vmem:[%s1582_s28 + $0xc8] sm:$0xff] %vm883_vm0, %v876_v18  ;;  %v843_v31 = vadd.f32 %v811_v16, %v779_v22  ;;  %v685_v34 = vadd.f32 1.0, %v1317_v6 }
  0xe8   : > { %v782_v26 = vmul.f32 %v1133_v39, %v686_v20  ;;  %v688_v40 = vadd.f32 1.0, %v1319_v24 }
  0xe9   : > { %v1321_v35 = vpop.eup %1320  ;;  %v875_v46 = vmax.f32 %v843_v31, 0.0  ;;  %v781_v7 = vmul.f32 %v1132_v28, %v685_v34 }
  0xea   : > { %v846_v5 = vadd.f32 %v814_v33, %v782_v26  ;;  %v784_v37 = vmul.f32 %v1137_v29, %v688_v40  ;;  %v687_v42 = vadd.f32 1.0, %v1321_v35 }
  0xeb   : > { %908 = vst.msk [vmem:[%s1582_s28 + $0xc0] sm:$0xff] %vm883_vm0, %v875_v46  ;;  %v845_v57 = vadd.f32 %v813_v3, %v781_v7 }
  0xec   : > { %v1323_v60 = vpop.eup %1322  ;;  %v878_v30 = vmax.f32 %v846_v5, 0.0  ;;  %v848_v43 = vadd.f32 %v816_v36, %v784_v37  ;;  %v783_v44 = vmul.f32 %v1136_v21, %v687_v42 }
  0xed   : > { %v1325_v48 = vpop.eup %1324  ;;  %v877_v8 = vmax.f32 %v845_v57, 0.0  ;;  %v690_v41 = vadd.f32 1.0, %v1323_v60 }
  0xee   : > { %911 = vst.msk [vmem:[%s1582_s28 + $0xd8] sm:$0xff] %vm883_vm0, %v878_v30  ;;  %v880_v23 = vmax.f32 %v848_v43, 0.0  ;;  %v847_v49 = vadd.f32 %v815_v11, %v783_v44  ;;  %v689_v55 = vadd.f32 1.0, %v1325_v48 }
  0xef   : > { %910 = vst.msk [vmem:[%s1582_s28 + $0xd0] sm:$0xff] %vm883_vm0, %v877_v8  ;;  %v786_v27 = vmul.f32 %v1141_v1, %v690_v41 }
  0xf0   : > { %913 = vst.msk [vmem:[%s1582_s28 + $0xe8] sm:$0xff] %vm883_vm0, %v880_v23  ;;  %v879_v25 = vmax.f32 %v847_v49, 0.0  ;;  %v785_v56 = vmul.f32 %v1140_v47, %v689_v55 }
  0xf1   : > { %v850_v58 = vadd.f32 %v818_v50, %v786_v27 }
  0xf2   : > { %912 = vst.msk [vmem:[%s1582_s28 + $0xe0] sm:$0xff] %vm883_vm0, %v879_v25  ;;  %v849_v62 = vadd.f32 %v817_v45, %v785_v56 }
  0xf3   : > { %v882_v61 = vmax.f32 %v850_v58, 0.0 }
  0xf4   : > { %v881_v52 = vmax.f32 %v849_v62, 0.0 }
  0xf5   : > { %915 = vst.msk [vmem:[%s1582_s28 + $0xf8] sm:$0xff] %vm883_vm0, %v882_v61 }
  0xf6   : > { %914 = vst.msk [vmem:[%s1582_s28 + $0xf0] sm:$0xff] %vm883_vm0, %v881_v52 }
  0xf7   : > { %1339 = shalt.err (!%p1336_p3)
}
  0xf8   : > { %s1340_s12 = scalar_lea.hbm %s1731_s7, 4096  ;;  %s1344_s20 = scalar_lea.hbm %s1786_s4, 8192 }
  0xf9   : > { %p1341_p4 = scmp.ne.s32.totalorder %s1731_s7, %s1340_s12  ;;  %p1345_p9 = scmp.lt.u32.totalorder %s1731_s7, %s1786_s4 }
  0xfa   : > { %p1346_p10 = scmp.lt.u32.totalorder %s1344_s20, %s1340_s12  ;;  %p1348_p12 = scmp.lt.u32.totalorder %s1340_s12, %s1731_s7 }
  0xfb   : > { %p1342_p7 = pnand %p1341_p4, %p1456_p5 }
  0xfc   : > { %p1347_p11 = por %p1346_p10, %p1345_p9 }
  0xfd   : > { %p1343_p8 = pneg %p1342_p7 }
  0xfe   : > { %p1349_p13 = por %p1348_p12, %p1347_p11 }
 0x100   : > { %p1350_p0 = pnand %p1349_p13, %p1343_p8 }
 0x102   : > { %1353 = shalt.err (!%p1350_p0)
}
 0x103   : > { %s1391_s27 = smov 128   ;;  %s1392_s28 = smov 8  }
 0x104   : > { %1157 = dma.vmem_to_hbm [thread:$0]  (%p1456_p5), %s1733_s30, 4096, %s1731_s7, %s1741_s19, %s1391_s27, %s1391_s27, %s1392_s28  }
 0x105 PF: > { %p1163_p1 = scmp.ge.s32.totalorder %s1388_s18, 2  ;;  %s945_s29 = sand.u32 1, %s1376_s15  }
 0x106   : > { %s946_s5 = scalar_lea.sflag [#allocation3], %s945_s29 }
 0x107   : > { %p1160_p2 = pnand %p1163_p1, %p1460_p6 }
 0x109   : > { %1371 = dma.done.wait (!%p1160_p2), %s946_s5, 4096  }
 0x10a   : > { %1373 = vsyncadd (!%p1160_p2), %s946_s5, 4294963200  ;;  %p14_p3 = scmp.ge.s32.totalorder %s1443_s21, 4   ;;  %s1789_s15 = smov %s1380_s16 }
 0x10b   : > { %s1790_s16 = smov %s1384_s17  ;;  %s1791_s17 = smov %s1454_s24 }
 0x10c   : > { %s1792_s18 = smov %s1443_s21  ;;  %16 = sbr.rel (!%p14_p3) target bundleno = 3 (0x3), region = 80 }
 0x113   :  { %951 = vsyncpa [#allocation3], 1 }
 0x114   :  { %953 = vsyncpa [#allocation3 + $0x1], 1 }

// kernel: bottleneck_forward.14
= control target key start
LH: loop header
LB: loop body
LE: loop exit
PB: predicated region body
PF: predicated region fallthrough
CT: control target
= control target key end

     0   :  { %s4258_s18 = smov 0   ;;  %s5396_s0 = inlined_call_operand.vmem [shape: bf16[2,24,24,4], index: 0, kind: input, shape index: {}]   ;;  %s5397_s1 = inlined_call_operand.vmem [shape: bf16[9,4,4], index: 1, kind: input, shape index: {}]   ;;  %s5398_s2 = inlined_call_operand.vmem [shape: f32[1,4], index: 2, kind: input, shape index: {}]   ;;  %s5399_s3 = inlined_call_operand.vmem [shape: f32[1,4], index: 3, kind: input, shape index: {}]   ;;  %s5400_s4 = inlined_call_operand.vmem [shape: f32[1,4], index: 4, kind: input, shape index: {}]   ;;  %s5401_s5 = inlined_call_operand.vmem [shape: f32[2,16,16], index: 5, kind: output, shape index: {}]  }
   0x1 LB: > { %s3174_s19 = sadd.s32 4294967295, %s4226_s18   ;;  %p3178_p0 = scmp.ge.s32.totalorder %s4226_s18, 1  ;;  %s4226_s18 = sphi %s4258_s18, %s15_s18  }
   0x2   : > { %p187_p1 = scmp.lt.s32.totalorder %s4226_s18, 3 }
   0x4   : > { %p188_p2 = pnand %p3178_p0, %p187_p1 }
   0x6   : > { %191 = sbr.rel (%p188_p2) target bundleno = 691 (0x2b3), region = 40 }
   0xd   : > { %vm347_vm0 = vcmask 1041408   ;;  %v3198_v0 = vld [vmem:[%s5397_s1 + $0x2] sm:$0x3]  ;;  %v4272_v1 = vld [vmem:[%s5397_s1 + $0x8] sm:$0x3]  ;;  %p215_p3 = scmp.lt.s32.totalorder %s3174_s19, 1 }
   0xe   : > { %4153 = vmatprep.subr.msk.bf16.mxu1 %vm347_vm0, %v3198_v0  ;;  %4157 = vmatprep.subr.msk.bf16.mxu0 %vm347_vm0, %v4272_v1  ;;  %v563_v2 = vsel %vm347_vm0, %v3198_v0, 0  ;;  %v4280_v3 = vsel %vm347_vm0, %v4272_v1, 0  ;;  %v298_v4 = vld [vmem:[%s5397_s1] sm:$0x3]  ;;  %v3342_v5 = vld [vmem:[%s5397_s1 + $0xa] sm:$0x3] }
   0xf   : > { %5415 = vst [vmem:[#allocation2_spill] sm:$0xff] %v4280_v3  ;;  %3590 = vmatpush3.bf16.msra.mxu1 %v563_v2  ;;  %3726 = vmatpush3.bf16.msra.mxu0 %v4280_v3  ;;  %s5446_s19 = smov (!%p215_p3, %s3174_s19), 1  ;;  %vm348_vm1 = vcmask 1045508   ;;  %vm512_vm3 = vcmask 31744   ;;  %v823_v18 = vsel %vm347_vm0, %v298_v4, 0  ;;  %v4341_v27 = vsel %vm347_vm0, %v3342_v5, 0 }
  0x10   : > { %4154 = vmatprep.subr.msk.bf16.mxu1 %vm347_vm0, %v298_v4  ;;  %4159 = vmatprep.subr.msk.bf16.mxu0 %vm347_vm0, %v3342_v5  ;;  %s4163_s28 = smul.u32 288, %s5446_s19  ;;  %vm4295_vm2 = vmor %vm347_vm0, %vm348_vm1  ;;  %v4401_v57 = vld [vmem:[%s5397_s1 + $0x4] sm:$0x3]  ;;  %vm2956_vm4 = vcmask 130112   ;;  %vm3093_vm5 = vcmask 1041409   ;;  %vm3095_vm6 = vcmask 1042434  }
  0x11   : > { %vm3097_vm7 = vcmask 1043459   ;;  %vm3099_vm8 = vcmask 1044484   ;;  %vm3101_vm9 = vcmask 1045509   ;;  %s3435_s25 = sshll.u32 %s5446_s19, 4  ;;  %vm3103_vm10 = vcmask 1046534  }
  0x12   : > { %s4302_s6 = scalar_lea.vmem %s5396_s0, %s4163_s28  ;;  %vm3105_vm11 = vcmask 1047559   ;;  %s5351_s28 = scalar_lea.vmem %s5401_s5, %s3435_s25  ;;  %vm3116_vm12 = vcmask 130048  }
  0x13   : > { %v4305_v7 = vld [vmem:[%s4302_s6] sm:$0xf]  ;;  %v4308_v8 = vld [vmem:[%s4302_s6 + $0x4] sm:$0xf]  ;;  %v4311_v9 = vld [vmem:[%s4302_s6 + $0x8] sm:$0xf] }
  0x14   : > { %v3182_v10 = vrot.slane %v4305_v7, 10  ;;  %v352_v11 = vrot.slane %v4308_v8, 6  ;;  %v355_v12 = vrot.slane %v4311_v9, 6  ;;  %v238_v13 = vld [vmem:[%s4302_s6 + $0x30] sm:$0xf] }
  0x15   : > { %v4320_v15 = vld [vmem:[%s4302_s6 + $0x34] sm:$0xf]  ;;  %v4323_v16 = vld [vmem:[%s4302_s6 + $0x38] sm:$0xf]  ;;  %v3186_v17 = vrot.slane %v238_v13, 10 }
  0x16   : > { %v353_v19 = vsel %vm4295_vm2, %v3182_v10, %v352_v11  ;;  %v354_v20 = vrot.slane %v352_v11, 4  ;;  %v380_v21 = vrot.slane %v4320_v15, 6  ;;  %v383_v22 = vrot.slane %v4323_v16, 6  ;;  %v4331_v23 = vld [vmem:[%s4302_s6 + $0xc] sm:$0xf] }
  0x17   : > { %v4334_v24 = vld [vmem:[%s4302_s6 + $0x10] sm:$0xf]  ;;  %v4337_v25 = vld [vmem:[%s4302_s6 + $0x14] sm:$0xf]  ;;  %v3183_v26 = vrot.slane %v4331_v23, 10  ;;  %v4344_v28 = vcombine.low %v238_v13, %v4320_v15 }
  0x18   : > { %v356_v29 = vsel %vm4295_vm2, %v354_v20, %v355_v12  ;;  %v381_v30 = vsel %vm4295_vm2, %v3186_v17, %v380_v21  ;;  %v382_v31 = vrot.slane %v380_v21, 4  ;;  %v359_v32 = vrot.slane %v4334_v24, 6  ;;  %v4352_v33 = vld [vmem:[%s4302_s6 + $0x3c] sm:$0xf]  ;;  %v4355_v34 = vld [vmem:[%s4302_s6 + $0x40] sm:$0xf] }
  0x19   : > { %v3199_v35 = vcombine.low %v353_v19, %v356_v29  ;;  %v362_v36 = vrot.slane %v4337_v25, 6  ;;  %v4363_v39 = vld [vmem:[%s4302_s6 + $0x44] sm:$0xf]  ;;  %v4366_v40 = vld [vmem:[%s4302_s6 + $0x18] sm:$0xf]  ;;  %v3187_v44 = vrot.slane %v4352_v33, 10 }
  0x1a   : > { %v384_v41 = vsel %vm4295_vm2, %v382_v31, %v383_v22  ;;  %v360_v42 = vsel %vm4295_vm2, %v3183_v26, %v359_v32  ;;  %v361_v43 = vrot.slane %v359_v32, 4  ;;  %v4374_v45 = vld [vmem:[%s4302_s6 + $0x1c] sm:$0xf]  ;;  %v4377_v46 = vld [vmem:[%s4302_s6 + $0x20] sm:$0xf]  ;;  %v387_v48 = vrot.slane %v4355_v34, 6 }
  0x1b   : > { %3591 = vmatprep.mubr.msk.bf16.mxu1 %vm512_vm3, %v3199_v35  ;;  %v4380_v47 = vcombine.low %v381_v30, %v384_v41  ;;  %v390_v49 = vrot.slane %v4363_v39, 6  ;;  %v4385_v50 = vld [vmem:[%s4302_s6 + $0x48] sm:$0xf]  ;;  %v4388_v51 = vld [vmem:[%s4302_s6 + $0x4c] sm:$0xf]  ;;  %v3184_v53 = vrot.slane %v4366_v40, 10  ;;  %v4630_v3 = vcombine.low %v4355_v34, %v4363_v39 }
  0x1c   : > { %v363_v52 = vsel %vm4295_vm2, %v361_v43, %v362_v36  ;;  %v366_v54 = vrot.slane %v4374_v45, 6  ;;  %v369_v55 = vrot.slane %v4377_v46, 6  ;;  %v4396_v56 = vld [vmem:[%s4302_s6 + $0x50] sm:$0xf]  ;;  %v388_v59 = vsel %vm4295_vm2, %v3187_v44, %v387_v48  ;;  %v4409_v62 = vld [vmem:[%s4302_s6 + $0x24] sm:$0xf] }
  0x1d   : > { %3727 = vmatprep.mubr.msk.bf16.mxu0 %vm512_vm3, %v4380_v47  ;;  %v3200_v58 = vcombine.low %v360_v42, %v363_v52  ;;  %v389_v60 = vrot.slane %v387_v48, 4  ;;  %v3188_v61 = vrot.slane %v4385_v50, 10  ;;  %v4412_v63 = vld [vmem:[%s4302_s6 + $0x28] sm:$0xf]  ;;  %v394_v4 = vrot.slane %v4388_v51, 6 }
  0x1e   : > { %v367_v0 = vsel %vm4295_vm2, %v3184_v53, %v366_v54  ;;  %v368_v2 = vrot.slane %v366_v54, 4  ;;  %v397_v5 = vrot.slane %v4396_v56, 6  ;;  %v4419_v10 = vld [vmem:[%s4302_s6 + $0x2c] sm:$0xf]  ;;  %v3185_v12 = vrot.slane %v4409_v62, 10 }
  0x1f   : > { %3592 = vmatmul.mubr.msk.bf16.vlgmr.msra.gmra.mrb[0].mxu1 %vm512_vm3, %v3200_v58  ;;  %v391_v11 = vsel %vm4295_vm2, %v389_v60, %v390_v49  ;;  %v373_v13 = vrot.slane %v4412_v63, 6  ;;  %v376_v17 = vrot.slane %v4419_v10, 6  ;;  %v4428_v19 = vld [vmem:[%s4302_s6 + $0x54] sm:$0xf]  ;;  %v4433_v20 = vld [vmem:[%s5397_s1 + $0xc] sm:$0x3]  ;;  %v395_v26 = vsel %vm4295_vm2, %v3188_v61, %v394_v4 }
  0x20   : > { %3624 = vmatpush3.bf16.msra.mxu1 %v823_v18  ;;  %v4435_v21 = vcombine.low %v388_v59, %v391_v11  ;;  %v370_v22 = vsel %vm4295_vm2, %v368_v2, %v369_v55  ;;  %v396_v29 = vrot.slane %v394_v4, 4  ;;  %v4442_v30 = vld [vmem:[%s4302_s6 + $0x58] sm:$0xf]  ;;  %v4445_v31 = vld [vmem:[%s4302_s6 + $0x5c] sm:$0xf]  ;;  %v3189_v18 = vrot.slane %v4428_v19, 10 }
  0x21   : > { %v3201_v32 = vcombine.low %v367_v0, %v370_v22  ;;  %v374_v35 = vsel %vm4295_vm2, %v3185_v12, %v373_v13  ;;  %v375_v36 = vrot.slane %v373_v13, 4  ;;  %v4451_v41 = vld [vmem:[%s4302_s6 + $0x60] sm:$0xf]  ;;  %v4454_v42 = vld [vmem:[%s4302_s6 + $0x64] sm:$0xf]  ;;  %4155 = vmatprep.subr.msk.bf16.mxu1 %vm347_vm0, %v4401_v57  ;;  %v401_v44 = vrot.slane %v4442_v30, 6 }
  0x22   : > { %3728 = vmatmul.mubr.msk.bf16.vlgmr.msra.gmra.mrb[0].mxu0 %vm512_vm3, %v4435_v21  ;;  %v398_v43 = vsel %vm4295_vm2, %v396_v29, %v397_v5  ;;  %v404_v48 = vrot.slane %v4445_v31, 6  ;;  %v4465_v49 = vld [vmem:[%s4302_s6 + $0x68] sm:$0xf]  ;;  %v3190_v52 = vrot.slane %v4451_v41, 10  ;;  %v408_v55 = vrot.slane %v4454_v42, 6 }
  0x23   : > { %3760 = vmatpush3.bf16.msra.mxu0 %v4341_v27  ;;  %3595 = vmatprep.mubr.msk.bf16.mxu1 %vm512_vm3, %v3201_v32  ;;  %v3205_v53 = vcombine.low %v395_v26, %v398_v43  ;;  %v377_v54 = vsel %vm4295_vm2, %v375_v36, %v376_v17  ;;  %v411_v58 = vrot.slane %v4465_v49, 6  ;;  %v4475_v59 = vld [vmem:[%s4302_s6 + $0x6c] sm:$0xf]  ;;  %v4478_v60 = vld [vmem:[%s4302_s6 + $0x70] sm:$0xf]  ;;  %v402_v27 = vsel %vm4295_vm2, %v3189_v18, %v401_v44 }
  0x24   : > { %v3202_v61 = vcombine.low %v374_v35, %v377_v54  ;;  %v403_v0 = vrot.slane %v401_v44, 4  ;;  %v4483_v2 = vld [vmem:[%s4302_s6 + $0x74] sm:$0xf]  ;;  %4160 = vmatprep.subr.msk.bf16.mxu0 %vm347_vm0, %v4433_v20  ;;  %v409_v4 = vsel %vm4295_vm2, %v3190_v52, %v408_v55  ;;  %v410_v5 = vrot.slane %v408_v55, 4  ;;  %v256_v12 = vld [vmem:[%s4302_s6 + $0x78] sm:$0xf] }
  0x25   : > { %3731 = vmatprep.mubr.msk.bf16.mxu0 %vm512_vm3, %v3205_v53  ;;  %v415_v11 = vrot.slane %v4478_v60, 6  ;;  %v4493_v13 = vld [vmem:[%s4302_s6 + $0x7c] sm:$0xf]  ;;  %v3191_v22 = vrot.slane %v4475_v59, 10  ;;  %v4499_v26 = vld [vmem:[%s4302_s6 + $0x80] sm:$0xf] }
  0x26   : > { %v405_v17 = vsel %vm4295_vm2, %v403_v0, %v404_v48  ;;  %v422_v29 = vrot.slane %v4493_v13, 6  ;;  %v412_v35 = vsel %vm4295_vm2, %v410_v5, %v411_v58  ;;  %v418_v18 = vrot.slane %v4483_v2, 6  ;;  %v4512_v54 = vld [vmem:[%s4302_s6 + $0x88] sm:$0xf]  ;;  %v259_v0 = vld [vmem:[%s4302_s6 + $0x84] sm:$0xf] }
  0x27   : > { %3596 = vmatmul.mubr.msk.bf16.gmra.mrb[4].mxu1 %vm512_vm3, %v3202_v61  ;;  %v3206_v32 = vcombine.low %v402_v27, %v405_v17  ;;  %v417_v36 = vrot.slane %v415_v11, 4  ;;  %v4508_v43 = vcombine.low %v409_v4, %v412_v35  ;;  %v3192_v44 = vrot.slane %v256_v12, 10  ;;  %v4528_v4 = vld [vmem:[%s4302_s6 + $0x8c] sm:$0xf]  ;;  %v4648_v39 = vld [vmem:[%s4302_s6 + $0xa4] sm:$0xf] }
  0x28   : > { %3599 = vmatprep.mubr.msk.bf16.mxu1 %vm512_vm3, %v4380_v47  ;;  %v424_v48 = vrot.slane %v422_v29, 4  ;;  %v425_v52 = vrot.slane %v4499_v26, 6  ;;  %v416_v55 = vsel %vm4295_vm2, %v3191_v22, %v415_v11  ;;  %v429_v47 = vrot.slane %v4512_v54, 6 }
  0x29   : > { %5418 = vst [vmem:[#allocation3_spill] sm:$0xff] %v4508_v43  ;;  %v419_v58 = vsel %vm4295_vm2, %v417_v36, %v418_v18  ;;  %v423_v61 = vsel %vm4295_vm2, %v3192_v44, %v422_v29  ;;  %v3193_v17 = vrot.slane %v259_v0, 10  ;;  %v432_v35 = vrot.slane %v4528_v4, 6  ;;  %v4553_v44 = vld [vmem:[%s4302_s6 + $0x94] sm:$0xf] }
  0x2a   : > { %3732 = vmatmul.mubr.msk.bf16.gmra.mrb[4].mxu0 %vm512_vm3, %v3206_v32  ;;  %v426_v27 = vsel %vm4295_vm2, %v424_v48, %v425_v52  ;;  %v4530_v5 = vcombine.low %v416_v55, %v419_v58  ;;  %v431_v22 = vrot.slane %v429_v47, 4  ;;  %v4557_v48 = vcombine.low %v4352_v33, %v4355_v34  ;;  %v262_v58 = vld [vmem:[%s4302_s6 + $0x90] sm:$0xf]  ;;  %v4573_v33 = vld [vmem:[%s4302_s6 + $0xa0] sm:$0xf] }
  0x2b   : > { %3735 = vmatprep.mubr.msk.bf16.mxu0 %vm512_vm3, %v4508_v43  ;;  %v4534_v11 = vcombine.low %v423_v61, %v426_v27  ;;  %v4562_v52 = vcombine.low %v4320_v15, %v4323_v16  ;;  %v4566_v55 = vcombine.low %v4385_v50, %v4388_v51  ;;  %v436_v61 = vrot.slane %v4553_v44, 6  ;;  %v268_v15 = vld [vmem:[%s4302_s6 + $0xa8] sm:$0xf]  ;;  %v4582_v16 = vld [vmem:[%s4302_s6 + $0xac] sm:$0xf] }
  0x2c   : > { %5419 = vst [vmem:[#allocation4_spill] sm:$0xff] %v4530_v5  ;;  %v433_v29 = vsel %vm4295_vm2, %v431_v22, %v432_v35  ;;  %v4586_v50 = vcombine.low %v4451_v41, %v4454_v42  ;;  %v4590_v27 = vcombine.low %v4475_v59, %v4478_v60  ;;  %v271_v22 = vld [vmem:[%s4302_s6 + $0xb4] sm:$0xf]  ;;  %v4602_v35 = vld [vmem:[%s4302_s6 + $0xb8] sm:$0xf]  ;;  %v4608_v41 = vcombine.low %v262_v58, %v4553_v44 }
  0x2d   : > { %5420 = vst [vmem:[#allocation5_spill] sm:$0xff] %v4534_v11  ;;  %v438_v36 = vrot.slane %v436_v61, 4  ;;  %v443_v38 = vrot.slane %v4573_v33, 6 }
  0x2f   : > { %3600 = vmatmul.mubr.msk.bf16.gmra.mrb[8].mxu1 %vm512_vm3, %v4435_v21  ;;  %v430_v21 = vsel %vm4295_vm2, %v3193_v17, %v429_v47  ;;  %v265_v47 = vld [vmem:[%s4302_s6 + $0x9c] sm:$0xf]  ;;  %v4593_v17 = vcombine.low %v256_v12, %v4493_v13  ;;  %v4614_v12 = vcombine.low %v268_v15, %v4582_v16 }
  0x30   : > { %3603 = vmatprep.mubr.msk.bf16.mxu1 %vm512_vm3, %v3205_v53  ;;  %v4550_v18 = vcombine.low %v430_v21, %v433_v29  ;;  %v4605_v21 = vcombine.low %v259_v0, %v4512_v54  ;;  %v4611_v59 = vcombine.low %v265_v47, %v4573_v33  ;;  %v4619_v29 = vcombine.low %v271_v22, %v4602_v35 }
  0x31   : > { %v3194_v53 = vrot.slane %v262_v58, 10  ;;  %v4636_v0 = vcombine.low %v4388_v51, %v4396_v56  ;;  %v2001_v58 = vsel %vm347_vm0, %v4433_v20, 0  ;;  %v4654_v51 = vld [vmem:[%s5397_s1 + $0xe] sm:$0x3]  ;;  %v4659_v56 = vld [vmem:[%s4302_s6 + $0xb0] sm:$0xf] }
  0x32   : > { %3736 = vmatmul.mubr.msk.bf16.gmra.mrb[8].mxu0 %vm512_vm3, %v4530_v5  ;;  %5421 = vst [vmem:[#allocation6_spill] sm:$0xff] %v4550_v18 }
  0x33   : > { %3739 = vmatprep.mubr.msk.bf16.mxu0 %vm512_vm3, %v4534_v11  ;;  %v437_v14 = vsel %vm4295_vm2, %v3194_v53, %v436_v61  ;;  %v446_v53 = vrot.slane %v4648_v39, 6  ;;  %v3196_v61 = vrot.slane %v268_v15, 10 }
  0x37   : > { %3604 = vmatmul.mubr.msk.bf16.gmra.mrb[12].mxu1 %vm512_vm3, %v3206_v32  ;;  %v4577_v32 = vcombine.low %v4428_v19, %v4442_v30  ;;  %v4598_v19 = vld [vmem:[%s4302_s6 + $0x98] sm:$0xf] }
  0x38   : > { %3607 = vmatprep.mubr.msk.bf16.mxu1 %vm512_vm3, %v4508_v43  ;;  %v439_v37 = vrot.slane %v4598_v19, 6  ;;  %v453_v43 = vrot.slane %v4659_v56, 6 }
  0x3a   : > { %3740 = vmatmul.mubr.msk.bf16.gmra.mrb[12].mxu0 %vm512_vm3, %v4550_v18  ;;  %v440_v34 = vsel %vm4295_vm2, %v438_v36, %v439_v37  ;;  %v3195_v37 = vrot.slane %v265_v47, 10  ;;  %v445_v36 = vrot.slane %v443_v38, 4 }
  0x3b   : > { %3761 = vmatprep.mubr.msk.bf16.mxu0 %vm512_vm3, %v4562_v52  ;;  %v4663_v20 = vcombine.low %v437_v14, %v440_v34  ;;  %v4677_v14 = vcombine.low %v4454_v42, %v4465_v49  ;;  %v457_v34 = vrot.slane %v4602_v35, 6  ;;  %v3197_v49 = vrot.slane %v271_v22, 10 }
  0x3c   : > { %v444_v47 = vsel %vm4295_vm2, %v3195_v37, %v443_v38  ;;  %v447_v15 = vsel %vm4295_vm2, %v445_v36, %v446_v53 }
  0x3d   : > { %v4697_v38 = vcombine.low %v444_v47, %v447_v15  ;;  %v459_v37 = vrot.slane %v457_v34, 4  ;;  %v458_v22 = vsel %vm4295_vm2, %v3197_v49, %v457_v34  ;;  %v4740_v47 = vcombine.low %v4553_v44, %v4598_v19  ;;  %v276_v15 = vld [vmem:[%s4302_s6 + $0xc8] sm:$0xf]  ;;  %v4755_v49 = vld [vmem:[%s4302_s6 + $0xcc] sm:$0xf] }
  0x3e   : > { %v5425_v34 = vcombine.low %v4305_v7, %v4308_v8 }
  0x3f   : > { %3608 = vmatmul.mubr.msk.bf16.gmra.mrb[16].mxu1 %vm512_vm3, %v4530_v5  ;;  %v450_v5 = vrot.slane %v4582_v16, 6  ;;  %5422 = vst [vmem:[#allocation7_spill] sm:$0xff] %v4697_v38 }
  0x40   : > { %3611 = vmatprep.mubr.msk.bf16.mxu1 %vm512_vm3, %v4534_v11 }
  0x41   : > { %v452_v11 = vrot.slane %v450_v5, 4 }
  0x42   : > { %3762 = vmatmul.mubr.msk.bf16.vlgmr.msra.gmra.mrb[0].mxu0 %vm512_vm3, %v4630_v3 }
  0x43   : > { %3794 = vmatpush3.bf16.msra.mxu0 %v2001_v58  ;;  %3765 = vmatprep.mubr.msk.bf16.mxu0 %vm512_vm3, %v4636_v0  ;;  %v4671_v58 = vcombine.low %v4442_v30, %v4445_v31  ;;  %v451_v30 = vsel %vm4295_vm2, %v3196_v61, %v450_v5  ;;  %v454_v31 = vsel %vm4295_vm2, %v452_v11, %v453_v43 }
  0x44   : > { %4161 = vmatprep.subr.msk.bf16.mxu0 %vm347_vm0, %v4654_v51  ;;  %v4699_v42 = vcombine.low %v451_v30, %v454_v31  ;;  %v4704_v43 = vcombine.low %v4478_v60, %v4483_v2  ;;  %v4710_v11 = vcombine.low %v4493_v13, %v4499_v26  ;;  %v4725_v2 = vld [vmem:[%s4302_s6 + $0xc4] sm:$0xf]  ;;  %v4728_v13 = vld [vmem:[%s4302_s6 + $0xc0] sm:$0xf]  ;;  %v4732_v26 = vcombine.low %v4512_v54, %v4528_v4  ;;  %v4748_v4 = vld [vmem:[%s4302_s6 + $0xd0] sm:$0xf] }
  0x45   : > { %v1500_v53 = vrot.slane %v4725_v2, 6  ;;  %v3317_v61 = vrot.slane %v4728_v13, 10  ;;  %v1503_v54 = vrot.slane %v276_v15, 6  ;;  %v1507_v30 = vrot.slane %v4748_v4, 6  ;;  %v279_v31 = vld [vmem:[%s4302_s6 + $0xd4] sm:$0xf] }
  0x46   : > { %5423 = vst [vmem:[#allocation8_spill] sm:$0xff] %v4699_v42  ;;  %v1510_v7 = vrot.slane %v279_v31, 6 }
  0x47   : > { %3612 = vmatmul.mubr.msk.bf16.gmra.mrb[20].mxu1 %vm512_vm3, %v4550_v18  ;;  %v4691_v18 = vld [vmem:[%s4302_s6 + $0xbc] sm:$0xf]  ;;  %v1501_v44 = vsel %vm4295_vm2, %v3317_v61, %v1500_v53  ;;  %v1502_v19 = vrot.slane %v1500_v53, 4  ;;  %v1509_v53 = vrot.slane %v1507_v30, 4 }
  0x48   : > { %3615 = vmatprep.mubr.msk.bf16.mxu1 %vm512_vm3, %v4663_v20  ;;  %v460_v5 = vrot.slane %v4691_v18, 6 }
  0x4a   : > { %3766 = vmatmul.mubr.msk.bf16.gmra.mrb[4].mxu0 %vm512_vm3, %v4671_v58  ;;  %v461_v36 = vsel %vm4295_vm2, %v459_v37, %v460_v5  ;;  %v3318_v37 = vrot.slane %v4755_v49, 10  ;;  %v1504_v5 = vsel %vm4295_vm2, %v1502_v19, %v1503_v54  ;;  %v4782_v54 = vld [vmem:[%s5397_s1 + $0x6] sm:$0x3] }
  0x4b   : > { %3769 = vmatprep.mubr.msk.bf16.mxu0 %vm512_vm3, %v4677_v14  ;;  %v4722_v60 = vcombine.low %v458_v22, %v461_v36  ;;  %v1069_v22 = vsel %vm347_vm0, %v4401_v57, 0  ;;  %v4767_v36 = vld [vmem:[%s4302_s6 + $0xdc] sm:$0xf]  ;;  %v4772_v61 = vcombine.low %v1501_v44, %v1504_v5  ;;  %v5427_v44 = vcombine.low %v4331_v23, %v4334_v24 }
  0x4c   : > { %v1508_v19 = vsel %vm4295_vm2, %v3318_v37, %v1507_v30  ;;  %v1511_v5 = vsel %vm4295_vm2, %v1509_v53, %v1510_v7  ;;  %v283_v30 = vld [vmem:[%s4302_s6 + $0xe4] sm:$0xf] }
  0x4d   : > { %5424 = vst [vmem:[#allocation9_spill] sm:$0xff] %v4722_v60  ;;  %5426 = vst [vmem:[#allocation10_spill] sm:$0xff] %v4772_v61  ;;  %v5428_v61 = vcombine.low %v4366_v40, %v4374_v45 }
  0x4f   : > { %3616 = vmatmul.mubr.msk.bf16.gmra.mrb[24].mxu1 %vm512_vm3, %v4697_v38  ;;  %v4803_v38 = vld [vmem:[%s4302_s6 + $0xe8] sm:$0xf] }
  0x50   : > { %3619 = vmatprep.mubr.msk.bf16.mxu1 %vm512_vm3, %v4699_v42  ;;  %v1514_v42 = vrot.slane %v4767_v36, 6 }
  0x52   : > { %3770 = vmatmul.mubr.msk.bf16.gmra.mrb[8].mxu0 %vm512_vm3, %v4704_v43  ;;  %v1516_v7 = vrot.slane %v1514_v42, 4 }
  0x53   : > { %3773 = vmatprep.mubr.msk.bf16.mxu0 %vm512_vm3, %v4710_v11 }
  0x57   : > { %3620 = vmatmul.mubr.msk.bf16.gmra.mrb[28].mxu1 %vm512_vm3, %v4722_v60  ;;  %v4776_v60 = vcombine.low %v4573_v33, %v4648_v39  ;;  %v4791_v33 = vcombine.low %v4582_v16, %v4659_v56  ;;  %v282_v39 = vld [vmem:[%s4302_s6 + $0xe0] sm:$0xf]  ;;  %v1521_v16 = vrot.slane %v4803_v38, 6  ;;  %v285_v56 = vld [vmem:[%s4302_s6 + $0xec] sm:$0xf] }
  0x58   : > { %3625 = vmatprep.mubr.msk.bf16.mxu1 %vm512_vm3, %v5425_v34  ;;  %v4770_v34 = vld [vmem:[%s4302_s6 + $0xd8] sm:$0xf]  ;;  %v1517_v23 = vrot.slane %v282_v39, 6  ;;  %v1524_v37 = vrot.slane %v285_v56, 6 }
  0x59   : > { %v3319_v57 = vrot.slane %v4770_v34, 10 }
  0x5a   : > { %3774 = vmatmul.mubr.msk.bf16.gmra.mrb[12].mxu0 %vm512_vm3, %v4732_v26 }
  0x5b   : > { %3777 = vmatprep.mubr.msk.bf16.mxu0 %vm512_vm3, %v4740_v47  ;;  %v1515_v40 = vsel %vm4295_vm2, %v3319_v57, %v1514_v42  ;;  %v4831_v42 = vcombine.low %v4725_v2, %v276_v15  ;;  %v2255_v15 = vsel %vm347_vm0, %v4654_v51, 0  ;;  %v4904_v51 = vcombine.low %v4728_v13, %v4725_v2 }
  0x5c   : > { %v5432_v2 = vcombine.low %v4334_v24, %v4337_v25  ;;  %v286_v24 = vld [vmem:[%s4302_s6 + $0xf0] sm:$0xf]  ;;  %v4940_v25 = vld [vmem:[%s4302_s6 + $0xf4] sm:$0xf]  ;;  %v4943_v13 = vcombine.low %v283_v30, %v4803_v38 }
  0x5f   : > { %3626 = vmatmul.mubr.msk.bf16.vlgmr.msra.gmra.mrb[0].mxu1 %vm512_vm3, %v5427_v44  ;;  %v4805_v44 = vcombine.low %v1508_v19, %v1511_v5  ;;  %v1523_v19 = vrot.slane %v1521_v16, 4  ;;  %v4824_v5 = vcombine.low %v4602_v35, %v4691_v18  ;;  %v4851_v18 = vcombine.low %v4767_v36, %v282_v39 }
  0x60   : > { %3658 = vmatpush3.bf16.msra.mxu1 %v1069_v22  ;;  %3629 = vmatprep.mubr.msk.bf16.mxu1 %vm512_vm3, %v5428_v61  ;;  %v3320_v22 = vrot.slane %v283_v30, 10  ;;  %v1518_v61 = vsel %vm4295_vm2, %v1516_v7, %v1517_v23  ;;  %v4860_v35 = vcombine.low %v4803_v38, %v285_v56  ;;  %v5431_v39 = vcombine.low %v4308_v8, %v4311_v9  ;;  %v4959_v38 = vld [vmem:[%s4302_s6 + $0x100] sm:$0xf]  ;;  %v5439_v30 = vld [vmem:[#allocation7_spill] sm:$0xff]  ;;  %v5440_v7 = vld [vmem:[#allocation8_spill] sm:$0xff] }
  0x61   : > { %5429 = vst [vmem:[#allocation11_spill] sm:$0xff] %v4805_v44  ;;  %4156 = vmatprep.subr.msk.bf16.mxu1 %vm347_vm0, %v4782_v54  ;;  %v4820_v53 = vcombine.low %v1515_v40, %v1518_v61  ;;  %v5430_v44 = vcombine.low %v4409_v62, %v4412_v63  ;;  %v1525_v23 = vsel %vm4295_vm2, %v1523_v19, %v1524_v37  ;;  %v5438_v56 = vld [vmem:[#allocation6_spill] sm:$0xff]  ;;  %v5441_v37 = vld [vmem:[#allocation9_spill] sm:$0xff]  ;;  %v2202_v61 = vrot.slane %v4940_v25, 6 }
  0x62   : > { %3778 = vmatmul.mubr.msk.bf16.gmra.mrb[16].mxu0 %vm512_vm3, %v4776_v60  ;;  %v1522_v57 = vsel %vm4295_vm2, %v3320_v22, %v1521_v16  ;;  %v4846_v62 = vcombine.low %v4748_v4, %v279_v31  ;;  %v3409_v31 = vld [vmem:[%s5397_s1 + $0x10] sm:$0x3]  ;;  %v4918_v16 = vcombine.low %v4755_v49, %v4748_v4  ;;  %v4926_v8 = vcombine.low %v4770_v34, %v4767_v36  ;;  %v4962_v4 = vld [vmem:[%s4302_s6 + $0x108] sm:$0xf]  ;;  %v4978_v49 = vld [vmem:[%s4302_s6 + $0x114] sm:$0xf] }
  0x63   : > { %3781 = vmatprep.mubr.msk.bf16.mxu0 %vm512_vm3, %v4791_v33  ;;  %v4839_v40 = vcombine.low %v1522_v57, %v1525_v23  ;;  %v5433_v9 = vcombine.low %v4374_v45, %v4377_v46  ;;  %v5434_v45 = vcombine.low %v4412_v63, %v4419_v10  ;;  %v4956_v46 = vld [vmem:[%s4302_s6 + $0xfc] sm:$0xf]  ;;  %v4965_v63 = vld [vmem:[%s4302_s6 + $0x10c] sm:$0xf]  ;;  %v4981_v36 = vld [vmem:[%s4302_s6 + $0x118] sm:$0xf] }
  0x64   : > { %v3365_v10 = vcombine.low %v4956_v46, %v4959_v38  ;;  %v3367_v34 = vcombine.low %v4978_v49, %v4981_v36  ;;  %v5442_v22 = vld [vmem:[#allocation10_spill] sm:$0xff]  ;;  %v5027_v19 = vld [vmem:[%s4302_s6 + $0xf8] sm:$0xf]  ;;  %v3384_v57 = vrot.slane %v286_v24, 10 }
  0x65   : > { %v5443_v23 = vld [vmem:[#allocation2_spill] sm:$0xff]  ;;  %v3410_v6 = vcombine.low %v4940_v25, %v5027_v19 }
  0x67   : > { %3630 = vmatmul.mubr.msk.bf16.gmra.mrb[4].mxu1 %vm512_vm3, %v5430_v44  ;;  %v1299_v44 = vsel %vm347_vm0, %v4782_v54, 0  ;;  %v5436_v54 = vld [vmem:[#allocation4_spill] sm:$0xff] }
  0x68   : > { %3633 = vmatprep.mubr.msk.bf16.mxu1 %vm512_vm3, %v4344_v28 }
  0x6a   : > { %3782 = vmatmul.mubr.msk.bf16.gmra.mrb[20].mxu0 %vm512_vm3, %v4824_v5 }
  0x6b   : > { %3785 = vmatprep.mubr.msk.bf16.mxu0 %vm512_vm3, %v4831_v42 }
  0x6f   : > { %3634 = vmatmul.mubr.msk.bf16.gmra.mrb[8].mxu1 %vm512_vm3, %v4557_v48 }
  0x70   : > { %3637 = vmatprep.mubr.msk.bf16.mxu1 %vm512_vm3, %v4566_v55 }
  0x72   : > { %3786 = vmatmul.mubr.msk.bf16.gmra.mrb[24].mxu0 %vm512_vm3, %v4846_v62 }
  0x73   : > { %3789 = vmatprep.mubr.msk.bf16.mxu0 %vm512_vm3, %v4851_v18 }
  0x77   : > { %3638 = vmatmul.mubr.msk.bf16.gmra.mrb[12].mxu1 %vm512_vm3, %v4577_v32 }
  0x78   : > { %3641 = vmatprep.mubr.msk.bf16.mxu1 %vm512_vm3, %v4586_v50 }
  0x7a   : > { %3790 = vmatmul.mubr.msk.bf16.gmra.mrb[28].mxu0 %vm512_vm3, %v4860_v35 }
  0x7b   : > { %3795 = vmatprep.mubr.msk.bf16.mxu0 %vm512_vm3, %v4586_v50 }
  0x7f   : > { %3642 = vmatmul.mubr.msk.bf16.gmra.mrb[16].mxu1 %vm512_vm3, %v4590_v27 }
  0x80   : > { %3645 = vmatprep.mubr.msk.bf16.mxu1 %vm512_vm3, %v4593_v17 }
  0x82   : > { %3796 = vmatmul.mubr.msk.bf16.vlgmr.msra.gmra.mrb[0].mxu0 %vm512_vm3, %v4590_v27 }
  0x83   : > { %3828 = vmatpush3.bf16.msra.mxu0 %v2255_v15  ;;  %3799 = vmatprep.mubr.msk.bf16.mxu0 %vm512_vm3, %v4593_v17  ;;  %v2205_v15 = vrot.slane %v5027_v19, 6  ;;  %v5185_v19 = vld [vmem:[%s5400_s4] ss:$0 sm:$0xff] }
  0x84   : > { %4162 = vmatprep.subr.msk.bf16.mxu0 %vm347_vm0, %v3409_v31 }
  0x87   : > { %3646 = vmatmul.mubr.msk.bf16.gmra.mrb[20].mxu1 %vm512_vm3, %v4605_v21 }
  0x88   : > { %3649 = vmatprep.mubr.msk.bf16.mxu1 %vm512_vm3, %v4608_v41 }
  0x8a   : > { %3800 = vmatmul.mubr.msk.bf16.gmra.mrb[4].mxu0 %vm512_vm3, %v4605_v21 }
  0x8b   : > { %3803 = vmatprep.mubr.msk.bf16.mxu0 %vm512_vm3, %v4608_v41 }
  0x8f   : > { %3650 = vmatmul.mubr.msk.bf16.gmra.mrb[24].mxu1 %vm512_vm3, %v4611_v59 }
  0x90   : > { %3653 = vmatprep.mubr.msk.bf16.mxu1 %vm512_vm3, %v4614_v12 }
  0x92   : > { %3804 = vmatmul.mubr.msk.bf16.gmra.mrb[8].mxu0 %vm512_vm3, %v4611_v59 }
  0x93   : > { %3807 = vmatprep.mubr.msk.bf16.mxu0 %vm512_vm3, %v4614_v12 }
  0x97   : > { %3654 = vmatmul.mubr.msk.bf16.gmra.mrb[28].mxu1 %vm512_vm3, %v4619_v29 }
  0x98   : > { %3659 = vmatprep.mubr.msk.bf16.mxu1 %vm512_vm3, %v5431_v39  ;;  %v2209_v39 = vrot.slane %v4959_v38, 6 }
  0x9a   : > { %3808 = vmatmul.mubr.msk.bf16.gmra.mrb[12].mxu0 %vm512_vm3, %v4619_v29 }
  0x9b   : > { %3811 = vmatprep.mubr.msk.bf16.mxu0 %vm512_vm3, %v4904_v51 }
  0x9f   : > { %3660 = vmatmul.mubr.msk.bf16.vlgmr.msra.gmra.mrb[0].mxu1 %vm512_vm3, %v5432_v2 }
  0xa0   : > { %3692 = vmatpush3.bf16.msra.mxu1 %v1299_v44  ;;  %3663 = vmatprep.mubr.msk.bf16.mxu1 %vm512_vm3, %v5433_v9  ;;  %v2216_v44 = vrot.slane %v4965_v63, 6  ;;  %v5049_v9 = vld [vmem:[%s4302_s6 + $0x110] sm:$0xf] }
  0xa1   : > { %4158 = vmatprep.subr.msk.bf16.mxu1 %vm347_vm0, %v4272_v1  ;;  %v3364_v1 = vcombine.low %v286_v24, %v4940_v25  ;;  %v3385_v24 = vrot.slane %v4956_v46, 10  ;;  %v2223_v46 = vrot.slane %v4981_v36, 6  ;;  %v5175_v25 = vld [vmem:[%s5399_s3] ss:$0 sm:$0xff] }
  0xa2   : > { %3812 = vmatmul.mubr.msk.bf16.gmra.mrb[16].mxu0 %vm512_vm3, %v4918_v16 }
  0xa3   : > { %3815 = vmatprep.mubr.msk.bf16.mxu0 %vm512_vm3, %v4926_v8 }
  0xa7   : > { %3664 = vmatmul.mubr.msk.bf16.gmra.mrb[4].mxu1 %vm512_vm3, %v5434_v45 }
  0xa8   : > { %3667 = vmatprep.mubr.msk.bf16.mxu1 %vm512_vm3, %v4562_v52  ;;  %v3366_v52 = vcombine.low %v4962_v4, %v4965_v63 }
  0xaa   : > { %3816 = vmatmul.mubr.msk.bf16.gmra.mrb[20].mxu0 %vm512_vm3, %v4943_v13 }
  0xab   : > { %3819 = vmatprep.mubr.msk.bf16.mxu0 %vm512_vm3, %v3364_v1  ;;  %v2211_v1 = vrot.slane %v2209_v39, 4 }
  0xaf   : > { %3668 = vmatmul.mubr.msk.bf16.gmra.mrb[8].mxu1 %vm512_vm3, %v4630_v3  ;;  %v5435_v3 = vld [vmem:[#allocation3_spill] sm:$0xff] }
  0xb0   : > { %3671 = vmatprep.mubr.msk.bf16.mxu1 %vm512_vm3, %v4636_v0  ;;  %v2473_v0 = vsel %vm347_vm0, %v3409_v31, 0  ;;  %v5444_v31 = vld [vmem:[#allocation11_spill] sm:$0xff] }
  0xb2   : > { %3820 = vmatmul.mubr.msk.bf16.gmra.mrb[24].mxu0 %vm512_vm3, %v3365_v10 }
  0xb3   : > { %3823 = vmatprep.mubr.msk.bf16.mxu0 %vm512_vm3, %v3366_v52  ;;  %v3386_v52 = vrot.slane %v4962_v4, 10 }
  0xb5   : > { %v2217_v4 = vsel %vm4295_vm2, %v3386_v52, %v2216_v44 }
  0xb7   : > { %3672 = vmatmul.mubr.msk.bf16.gmra.mrb[12].mxu1 %vm512_vm3, %v4671_v58  ;;  %v5437_v58 = vld [vmem:[#allocation5_spill] sm:$0xff] }
  0xb8   : > { %3675 = vmatprep.mubr.msk.bf16.mxu1 %vm512_vm3, %v4677_v14 }
  0xba   : > { %3824 = vmatmul.mubr.msk.bf16.gmra.mrb[28].mxu0 %vm512_vm3, %v3367_v34  ;;  %v2218_v34 = vrot.slane %v2216_v44, 4 }
  0xbb   : > { %3829 = vmatprep.mubr.msk.bf16.mxu0 %vm512_vm3, %v5435_v3  ;;  %v2219_v3 = vrot.slane %v5049_v9, 6 }
  0xbf   : > { %3676 = vmatmul.mubr.msk.bf16.gmra.mrb[16].mxu1 %vm512_vm3, %v4704_v43 }
  0xc0   : > { %3679 = vmatprep.mubr.msk.bf16.mxu1 %vm512_vm3, %v4710_v11 }
  0xc2   : > { %3830 = vmatmul.mubr.msk.bf16.vlgmr.msra.gmra.mrb[0].mxu0 %vm512_vm3, %v5436_v54  ;;  %v297_v54 = vld [vmem:[%s4302_s6 + $0x11c] sm:$0xf] }
  0xc3   : > { %3862 = vmatpush3.bf16.msra.mxu0 %v2473_v0  ;;  %3833 = vmatprep.mubr.msk.bf16.mxu0 %vm512_vm3, %v5437_v58 }
  0xc7   : > { %3680 = vmatmul.mubr.msk.bf16.gmra.mrb[20].mxu1 %vm512_vm3, %v4732_v26 }
  0xc8   : > { %3683 = vmatprep.mubr.msk.bf16.mxu1 %vm512_vm3, %v4740_v47 }
  0xca   : > { %3834 = vmatmul.mubr.msk.bf16.gmra.mrb[4].mxu0 %vm512_vm3, %v5438_v56  ;;  %v3387_v56 = vrot.slane %v4978_v49, 10 }
  0xcb   : > { %3837 = vmatprep.mubr.msk.bf16.mxu0 %vm512_vm3, %v4663_v20 }
  0xcf   : > { %3684 = vmatmul.mubr.msk.bf16.gmra.mrb[24].mxu1 %vm512_vm3, %v4776_v60 }
  0xd0   : > { %3687 = vmatprep.mubr.msk.bf16.mxu1 %vm512_vm3, %v4791_v33 }
  0xd2   : > { %3838 = vmatmul.mubr.msk.bf16.gmra.mrb[8].mxu0 %vm512_vm3, %v5439_v30 }
  0xd3   : > { %3841 = vmatprep.mubr.msk.bf16.mxu0 %vm512_vm3, %v5440_v7 }
  0xd7   : > { %3688 = vmatmul.mubr.msk.bf16.gmra.mrb[28].mxu1 %vm512_vm3, %v4824_v5 }
  0xd8   : > { %3693 = vmatprep.mubr.msk.bf16.mxu1 %vm512_vm3, %v4344_v28  ;;  %v2204_v28 = vrot.slane %v2202_v61, 4 }
  0xda   : > { %3842 = vmatmul.mubr.msk.bf16.gmra.mrb[12].mxu0 %vm512_vm3, %v5441_v37  ;;  %v2206_v2 = vsel %vm4295_vm2, %v2204_v28, %v2205_v15  ;;  %v2224_v28 = vsel %vm4295_vm2, %v3387_v56, %v2223_v46 }
  0xdb   : > { %3845 = vmatprep.mubr.msk.bf16.mxu0 %vm512_vm3, %v5442_v22 }
  0xdf   : > { %3694 = vmatmul.mubr.msk.bf16.vlgmr.msra.gmra.mrb[0].mxu1 %vm512_vm3, %v4557_v48  ;;  %v2203_v48 = vsel %vm4295_vm2, %v3384_v57, %v2202_v61  ;;  %v2225_v57 = vrot.slane %v2223_v46, 4 }
  0xe0   : > { %3896 = vmatpush3.bf16.msra.mxu1 %v5443_v23  ;;  %3697 = vmatprep.mubr.msk.bf16.mxu1 %vm512_vm3, %v4566_v55  ;;  %v5046_v55 = vld [vmem:[%s4302_s6 + $0x104] sm:$0xf]  ;;  %v3389_v45 = vcombine.low %v2203_v48, %v2206_v2  ;;  %v2226_v23 = vrot.slane %v297_v54, 6 }
  0xe1   : > { %v2212_v10 = vrot.slane %v5046_v55, 6 }
  0xe2   : > { %3846 = vmatmul.mubr.msk.bf16.gmra.mrb[16].mxu0 %vm512_vm3, %v5444_v31  ;;  %v2227_v15 = vsel %vm4295_vm2, %v2225_v57, %v2226_v23 }
  0xe3   : > { %3849 = vmatprep.mubr.msk.bf16.mxu0 %vm512_vm3, %v4820_v53  ;;  %v2213_v0 = vsel %vm4295_vm2, %v2211_v1, %v2212_v10  ;;  %v3392_v49 = vcombine.low %v2224_v28, %v2227_v15 }
  0xe7   : > { %3698 = vmatmul.mubr.msk.bf16.gmra.mrb[4].mxu1 %vm512_vm3, %v4577_v32  ;;  %v2210_v32 = vsel %vm4295_vm2, %v3385_v24, %v2209_v39 }
  0xe8   : > { %3701 = vmatprep.mubr.msk.bf16.mxu1 %vm512_vm3, %v4586_v50  ;;  %v2220_v50 = vsel %vm4295_vm2, %v2218_v34, %v2219_v3  ;;  %v3390_v58 = vcombine.low %v2210_v32, %v2213_v0 }
  0xe9   : > { %v3391_v61 = vcombine.low %v2217_v4, %v2220_v50 }
  0xea   : > { %3850 = vmatmul.mubr.msk.bf16.gmra.mrb[20].mxu0 %vm512_vm3, %v4839_v40 }
  0xeb   : > { %3853 = vmatprep.mubr.msk.bf16.mxu0 %vm512_vm3, %v3389_v45 }
  0xef   : > { %3702 = vmatmul.mubr.msk.bf16.gmra.mrb[8].mxu1 %vm512_vm3, %v4590_v27  ;;  %v3411_v27 = vcombine.low %v4959_v38, %v5046_v55 }
  0xf0   : > { %3705 = vmatprep.mubr.msk.bf16.mxu1 %vm512_vm3, %v4593_v17  ;;  %v3412_v17 = vcombine.low %v4965_v63, %v5049_v9 }
  0xf2   : > { %3854 = vmatmul.mubr.msk.bf16.gmra.mrb[24].mxu0 %vm512_vm3, %v3390_v58 }
  0xf3   : > { %3857 = vmatprep.mubr.msk.bf16.mxu0 %vm512_vm3, %v3391_v61 }
  0xf7   : > { %3706 = vmatmul.mubr.msk.bf16.gmra.mrb[12].mxu1 %vm512_vm3, %v4605_v21  ;;  %v3413_v21 = vcombine.low %v4981_v36, %v297_v54 }
  0xf8   : > { %3709 = vmatprep.mubr.msk.bf16.mxu1 %vm512_vm3, %v4608_v41 }
  0xfa   : > { %3858 = vmatmul.mubr.msk.bf16.gmra.mrb[28].mxu0 %vm512_vm3, %v3392_v49 }
  0xfb   : > { %3863 = vmatprep.mubr.msk.bf16.mxu0 %vm512_vm3, %v4677_v14 }
  0xff   : > { %3710 = vmatmul.mubr.msk.bf16.gmra.mrb[16].mxu1 %vm512_vm3, %v4611_v59 }
 0x100   : > { %3713 = vmatprep.mubr.msk.bf16.mxu1 %vm512_vm3, %v4614_v12 }
 0x102   : > { %3864 = vmatmul.mubr.msk.bf16.vlgmr.msra.gmra.mrb[0].mxu0 %vm512_vm3, %v4704_v43 }
 0x103   : > { %3867 = vmatprep.mubr.msk.bf16.mxu0 %vm512_vm3, %v4710_v11 }
 0x107   : > { %3714 = vmatmul.mubr.msk.bf16.gmra.mrb[20].mxu1 %vm512_vm3, %v4619_v29 }
 0x108   : > { %3717 = vmatprep.mubr.msk.bf16.mxu1 %vm512_vm3, %v4904_v51 }
 0x10a   : > { %3868 = vmatmul.mubr.msk.bf16.gmra.mrb[4].mxu0 %vm512_vm3, %v4732_v26 }
 0x10b   : > { %3871 = vmatprep.mubr.msk.bf16.mxu0 %vm512_vm3, %v4740_v47 }
 0x10f   : > { %3718 = vmatmul.mubr.msk.bf16.gmra.mrb[24].mxu1 %vm512_vm3, %v4918_v16 }
 0x110   : > { %3721 = vmatprep.mubr.msk.bf16.mxu1 %vm512_vm3, %v4926_v8 }
 0x112   : > { %3872 = vmatmul.mubr.msk.bf16.gmra.mrb[8].mxu0 %vm512_vm3, %v4776_v60 }
 0x113   : > { %3875 = vmatprep.mubr.msk.bf16.mxu0 %vm512_vm3, %v4791_v33 }
 0x117   : > { %3722 = vmatmul.mubr.msk.bf16.gmra.mrb[28].mxu1 %vm512_vm3, %v4943_v13 }
 0x118   : > { %3743 = vmatprep.mubr.msk.bf16.mxu1 %vm512_vm3, %v4663_v20 }
 0x11a   : > { %3876 = vmatmul.mubr.msk.bf16.gmra.mrb[12].mxu0 %vm512_vm3, %v4824_v5 }
 0x11b   : > { %3879 = vmatprep.mubr.msk.bf16.mxu0 %vm512_vm3, %v4831_v42 }
 0x11f   : > { %3744 = vmatmul.mubr.msk.bf16.vlgmr.msra.gmra.mrb[16].mxu1 %vm512_vm3, %v5439_v30 }
 0x120   : > { %3747 = vmatprep.mubr.msk.bf16.mxu1 %vm512_vm3, %v5440_v7 }
 0x122   : > { %3880 = vmatmul.mubr.msk.bf16.gmra.mrb[16].mxu0 %vm512_vm3, %v4846_v62 }
 0x123   : > { %3883 = vmatprep.mubr.msk.bf16.mxu0 %vm512_vm3, %v4851_v18  ;;  %v5170_v18 = vld [vmem:[%s5398_s2] ss:$0 sm:$0xff] }
 0x127   : > { %3748 = vmatmul.mubr.msk.bf16.gmra.mrb[20].mxu1 %vm512_vm3, %v5441_v37 }
 0x128   : > { %3751 = vmatprep.mubr.msk.bf16.mxu1 %vm512_vm3, %v5442_v22 }
 0x12a   : > { %3884 = vmatmul.mubr.msk.bf16.gmra.mrb[20].mxu0 %vm512_vm3, %v4860_v35 }
 0x12b   : > { %3887 = vmatprep.mubr.msk.bf16.mxu0 %vm512_vm3, %v3410_v6 }
 0x12f   : > { %3752 = vmatmul.mubr.msk.bf16.gmra.mrb[24].mxu1 %vm512_vm3, %v5444_v31 }
 0x130   : > { %3755 = vmatprep.mubr.msk.bf16.mxu1 %vm512_vm3, %v4820_v53 }
 0x132   : > { %3888 = vmatmul.mubr.msk.bf16.gmra.mrb[24].mxu0 %vm512_vm3, %v3411_v27 }
 0x133   : > { %3891 = vmatprep.mubr.msk.bf16.mxu0 %vm512_vm3, %v3412_v17 }
 0x137   : > { %3756 = vmatmul.mubr.msk.bf16.gmra.mrb[28].mxu1 %vm512_vm3, %v4839_v40 }
 0x13a   : > { %3892 = vmatmul.mubr.msk.bf16.gmra.mrb[28].mxu0 %vm512_vm3, %v3413_v21 }
 0x1b2   : > { %v3695_v41 = vpop.f32.mrb[0].mxu1 }
 0x1b3   : > { %v1335_v59 = vpop.f32.mrb[1].mxu1 }
 0x1b4   : > { %v3696_v12 = vpop.f32.mrb[2].mxu1 }
 0x1b5   : > { %v1338_v29 = vpop.f32.mrb[3].mxu1 }
 0x1ba   : > { %v3699_v20 = vpop.f32.mrb[4].mxu1 }
 0x1bb   : > { %v1351_v14 = vpop.f32.mrb[5].mxu1 }
 0x1bc   : > { %v3700_v43 = vpop.f32.mrb[6].mxu1 }
 0x1bd   : > { %v1354_v11 = vpop.f32.mrb[7].mxu1 }
 0x1c2   : > { %v3703_v60 = vpop.f32.mrb[8].mxu1 }
 0x1c3   : > { %v5153_v26 = vpop.f32.mrb[9].mxu1 }
 0x1c4   : > { %v5155_v47 = vpop.f32.mrb[10].mxu1 }
 0x1c5   : > { %v5157_v33 = vpop.f32.mrb[11].mxu1 }
 0x1ca   : > { %v5159_v53 = vpop.f32.mrb[12].mxu1 }
 0x1cb   : > { %v5161_v5 = vpop.f32.mrb[13].mxu1 }
 0x1cc   : > { %v5163_v42 = vpop.f32.mrb[14].mxu1 }
 0x1cd   : > { %v5165_v40 = vpop.f32.mrb[15].mxu1 }
 0x1d5   : > { %v3865_v62 = vpop.f32.mrb[0].mxu0 }
 0x1d6   : > { %v3897_v35 = vadd.f32 %v3865_v62, %v3695_v41  ;;  %v2509_v51 = vpop.f32.mrb[1].mxu0 }
 0x1d7   : > { %v3898_v16 = vadd.f32 %v2509_v51, %v1335_v59  ;;  %v3866_v8 = vpop.f32.mrb[2].mxu0 }
 0x1d8   : > { %v2677_v13 = vmul.f32 %v3897_v35, %v5170_v18  ;;  %v3899_v38 = vadd.f32 %v3866_v8, %v3696_v12  ;;  %v2512_v63 = vpop.f32.mrb[3].mxu0 }
 0x1d9   : > { %v2675_v36 = vmul.f32 %v3898_v16, %v5170_v18  ;;  %v3900_v30 = vadd.f32 %v2512_v63, %v1338_v29 }
 0x1da   : > { %v2678_v7 = vmul.f32 %v3899_v38, %v5170_v18  ;;  %v2716_v37 = vadd.f32 %v5175_v25, %v2677_v13 }
 0x1db   : > { %v2676_v22 = vmul.f32 %v3900_v30, %v5170_v18  ;;  %v2714_v31 = vadd.f32 %v5175_v25, %v2675_v36 }
 0x1dc   : > { %v2717_v39 = vadd.f32 %v5175_v25, %v2678_v7  ;;  %v2748_v44 = vmax.f32 %v2716_v37, 0.0 }
 0x1dd   : > { %v2715_v48 = vadd.f32 %v5175_v25, %v2676_v22  ;;  %v3869_v2 = vpop.f32.mrb[4].mxu0  ;;  %v2746_v55 = vmax.f32 %v2714_v31, 0.0 }
 0x1de   : > { %v3901_v9 = vadd.f32 %v3869_v2, %v3699_v20  ;;  %v2525_v24 = vpop.f32.mrb[5].mxu0  ;;  %v2787_v45 = vmul.f32 %v5185_v19, %v2748_v44  ;;  %v2749_v1 = vmax.f32 %v2717_v39, 0.0 }
 0x1df   : > { %v3902_v10 = vadd.f32 %v2525_v24, %v1351_v14  ;;  %v3870_v52 = vpop.f32.mrb[6].mxu0  ;;  %v2785_v34 = vmul.f32 %v5185_v19, %v2746_v55  ;;  %v2747_v3 = vmax.f32 %v2715_v48, 0.0 }
 0x1e0   : > { %v2681_v46 = vmul.f32 %v3901_v9, %v5170_v18  ;;  %v3903_v32 = vadd.f32 %v3870_v52, %v3700_v43  ;;  %v2528_v0 = vpop.f32.mrb[7].mxu0  ;;  %v2823_v4 = vsel %vm512_vm3, %v2787_v45, 0.0  ;;  %v2788_v50 = vmul.f32 %v5185_v19, %v2749_v1 }
 0x1e1   : > { %v2679_v54 = vmul.f32 %v3902_v10, %v5170_v18  ;;  %v3904_v58 = vadd.f32 %v2528_v0, %v1354_v11  ;;  %2824 = vadd.xlane.f32.xlu1 %v2823_v4  ;;  %v2817_v56 = vsel %vm512_vm3, %v2785_v34, 0.0  ;;  %v2786_v61 = vmul.f32 %v5185_v19, %v2747_v3 }
 0x1e2   : > { %v2720_v57 = vadd.f32 %v5175_v25, %v2681_v46  ;;  %v2682_v23 = vmul.f32 %v3903_v32, %v5170_v18  ;;  %2818 = vadd.xlane.f32.xlu0 %v2817_v56  ;;  %v2826_v6 = vsel %vm512_vm3, %v2788_v50, 0.0 }
 0x1e3   : > { %v2718_v28 = vadd.f32 %v5175_v25, %v2679_v54  ;;  %v2680_v15 = vmul.f32 %v3904_v58, %v5170_v18  ;;  %v2820_v41 = vsel %vm512_vm3, %v2786_v61, 0.0 }
 0x1e4   : > { %v2721_v49 = vadd.f32 %v5175_v25, %v2682_v23  ;;  %v2752_v27 = vmax.f32 %v2720_v57, 0.0 }
 0x1e5   : > { %v2719_v17 = vadd.f32 %v5175_v25, %v2680_v15  ;;  %v3873_v21 = vpop.f32.mrb[8].mxu0  ;;  %2827 = vadd.xlane.f32.xlu1 %v2826_v6  ;;  %v2750_v59 = vmax.f32 %v2718_v28, 0.0 }
 0x1e6   : > { %v3905_v12 = vadd.f32 %v3873_v21, %v3703_v60  ;;  %v2541_v29 = vpop.f32.mrb[9].mxu0  ;;  %2821 = vadd.xlane.f32.xlu0 %v2820_v41  ;;  %v2791_v20 = vmul.f32 %v5185_v19, %v2752_v27  ;;  %v2753_v14 = vmax.f32 %v2721_v49, 0.0 }
 0x1e7   : > { %v3906_v43 = vadd.f32 %v2541_v29, %v5153_v26  ;;  %v3874_v11 = vpop.f32.mrb[10].mxu0  ;;  %v2751_v62 = vmax.f32 %v2719_v17, 0.0  ;;  %v2789_v63 = vmul.f32 %v5185_v19, %v2750_v59 }
 0x1e8   : > { %v2685_v35 = vmul.f32 %v3905_v12, %v5170_v18  ;;  %v3907_v51 = vadd.f32 %v3874_v11, %v5155_v47  ;;  %v2544_v16 = vpop.f32.mrb[11].mxu0  ;;  %v2835_v8 = vsel %vm512_vm3, %v2791_v20, 0.0  ;;  %v2792_v13 = vmul.f32 %v5185_v19, %v2753_v14 }
 0x1e9   : > { %v2683_v60 = vmul.f32 %v3906_v43, %v5170_v18  ;;  %v3908_v38 = vadd.f32 %v2544_v16, %v5157_v33  ;;  %v2790_v47 = vmul.f32 %v5185_v19, %v2751_v62  ;;  %v2829_v44 = vsel %vm512_vm3, %v2789_v63, 0.0 }
 0x1ea   : > { %v2724_v36 = vadd.f32 %v5175_v25, %v2685_v35  ;;  %v2686_v26 = vmul.f32 %v3907_v51, %v5170_v18  ;;  %2836 = vadd.xlane.f32.xlu0 %v2835_v8  ;;  %v2838_v30 = vsel %vm512_vm3, %v2792_v13, 0.0 }
 0x1eb   : > { %v2722_v7 = vadd.f32 %v5175_v25, %v2683_v60  ;;  %v2684_v37 = vmul.f32 %v3908_v38, %v5170_v18  ;;  %2839 = vadd.xlane.f32.xlu1 %v2838_v30  ;;  %v2832_v9 = vsel %vm512_vm3, %v2790_v47, 0.0 }
 0x1ec   : > { %v2725_v22 = vadd.f32 %v5175_v25, %v2686_v26  ;;  %v2756_v31 = vmax.f32 %v2724_v36, 0.0 }
 0x1ed   : > { %v2723_v33 = vadd.f32 %v5175_v25, %v2684_v37  ;;  %v3877_v39 = vpop.f32.mrb[12].mxu0  ;;  %v2754_v48 = vmax.f32 %v2722_v7, 0.0 }
 0x1ee   : > { %v3909_v2 = vadd.f32 %v3877_v39, %v5159_v53  ;;  %v2557_v55 = vpop.f32.mrb[13].mxu0  ;;  %2830 = vadd.xlane.f32.xlu0 %v2829_v44  ;;  %v2795_v24 = vmul.f32 %v5185_v19, %v2756_v31  ;;  %v2757_v45 = vmax.f32 %v2725_v22, 0.0 }
 0x1ef   : > { %v3910_v1 = vadd.f32 %v2557_v55, %v5161_v5  ;;  %v3878_v10 = vpop.f32.mrb[14].mxu0  ;;  %2833 = vadd.xlane.f32.xlu1 %v2832_v9  ;;  %v2755_v52 = vmax.f32 %v2723_v33, 0.0  ;;  %v2793_v50 = vmul.f32 %v5185_v19, %v2754_v48 }
 0x1f0   : > { %v2689_v34 = vmul.f32 %v3909_v2, %v5170_v18  ;;  %v3911_v3 = vadd.f32 %v3878_v10, %v5163_v42  ;;  %v2560_v46 = vpop.f32.mrb[15].mxu0  ;;  %v2847_v32 = vsel %vm512_vm3, %v2795_v24, 0.0  ;;  %v2796_v53 = vmul.f32 %v5185_v19, %v2757_v45 }
 0x1f1   : > { %v2687_v0 = vmul.f32 %v3910_v1, %v5170_v18  ;;  %v3912_v4 = vadd.f32 %v2560_v46, %v5165_v40  ;;  %v2794_v42 = vmul.f32 %v5185_v19, %v2755_v52  ;;  %v2841_v27 = vsel %vm512_vm3, %v2793_v50, 0.0 }
 0x1f2   : > { %v2728_v5 = vadd.f32 %v5175_v25, %v2689_v34  ;;  %v2690_v54 = vmul.f32 %v3911_v3, %v5170_v18  ;;  %2848 = vadd.xlane.f32.xlu0 %v2847_v32  ;;  %v2850_v58 = vsel %vm512_vm3, %v2796_v53, 0.0  ;;  %v3745_v56 = vpop.f32.mrb[16].mxu1 }
 0x1f3   : > { %v2726_v61 = vadd.f32 %v5175_v25, %v2687_v0  ;;  %v2688_v57 = vmul.f32 %v3912_v4, %v5170_v18  ;;  %2851 = vadd.xlane.f32.xlu1 %v2850_v58  ;;  %v1653_v23 = vpop.f32.mrb[17].mxu1  ;;  %v2844_v12 = vsel %vm512_vm3, %v2794_v42, 0.0 }
 0x1f4   : > { %v2729_v40 = vadd.f32 %v5175_v25, %v2690_v54  ;;  %v3746_v28 = vpop.f32.mrb[18].mxu1  ;;  %v2760_v15 = vmax.f32 %v2728_v5, 0.0 }
 0x1f5   : > { %v2727_v49 = vadd.f32 %v5175_v25, %v2688_v57  ;;  %v3881_v6 = vpop.f32.mrb[16].mxu0  ;;  %v1656_v17 = vpop.f32.mrb[19].mxu1  ;;  %v2758_v21 = vmax.f32 %v2726_v61, 0.0 }
 0x1f6   : > { %v3913_v41 = vadd.f32 %v3881_v6, %v3745_v56  ;;  %v2573_v59 = vpop.f32.mrb[17].mxu0  ;;  %2842 = vadd.xlane.f32.xlu0 %v2841_v27  ;;  %v2799_v29 = vmul.f32 %v5185_v19, %v2760_v15  ;;  %v2761_v20 = vmax.f32 %v2729_v40, 0.0 }
 0x1f7   : > { %v3914_v14 = vadd.f32 %v2573_v59, %v1653_v23  ;;  %v3882_v43 = vpop.f32.mrb[18].mxu0  ;;  %2845 = vadd.xlane.f32.xlu1 %v2844_v12  ;;  %v2759_v11 = vmax.f32 %v2727_v49, 0.0  ;;  %v2797_v38 = vmul.f32 %v5185_v19, %v2758_v21 }
 0x1f8   : > { %v2693_v62 = vmul.f32 %v3913_v41, %v5170_v18  ;;  %v3915_v35 = vadd.f32 %v3882_v43, %v3746_v28  ;;  %v2576_v51 = vpop.f32.mrb[19].mxu0  ;;  %v2859_v16 = vsel %vm512_vm3, %v2799_v29, 0.0  ;;  %v2800_v8 = vmul.f32 %v5185_v19, %v2761_v20 }
 0x1f9   : > { %v2691_v13 = vmul.f32 %v3914_v14, %v5170_v18  ;;  %v3916_v60 = vadd.f32 %v2576_v51, %v1656_v17  ;;  %v2798_v47 = vmul.f32 %v5185_v19, %v2759_v11  ;;  %v2853_v2 = vsel %vm512_vm3, %v2797_v38, 0.0 }
 0x1fa   : > { %v2732_v63 = vadd.f32 %v5175_v25, %v2693_v62  ;;  %v2694_v36 = vmul.f32 %v3915_v35, %v5170_v18  ;;  %2860 = vadd.xlane.f32.xlu0 %v2859_v16  ;;  %v2862_v26 = vsel %vm512_vm3, %v2800_v8, 0.0  ;;  %v3749_v30 = vpop.f32.mrb[20].mxu1 }
 0x1fb   : > { %v2730_v7 = vadd.f32 %v5175_v25, %v2691_v13  ;;  %v2692_v37 = vmul.f32 %v3916_v60, %v5170_v18  ;;  %2863 = vadd.xlane.f32.xlu1 %v2862_v26  ;;  %v1669_v22 = vpop.f32.mrb[21].mxu1  ;;  %v2856_v1 = vsel %vm512_vm3, %v2798_v47, 0.0 }
 0x1fc   : > { %v2733_v31 = vadd.f32 %v5175_v25, %v2694_v36  ;;  %v3750_v33 = vpop.f32.mrb[22].mxu1  ;;  %v2764_v39 = vmax.f32 %v2732_v63, 0.0 }
 0x1fd   : > { %v2731_v44 = vadd.f32 %v5175_v25, %v2692_v37  ;;  %v3885_v48 = vpop.f32.mrb[20].mxu0  ;;  %v1672_v55 = vpop.f32.mrb[23].mxu1  ;;  %v2762_v9 = vmax.f32 %v2730_v7, 0.0 }
 0x1fe   : > { %v3917_v24 = vadd.f32 %v3885_v48, %v3749_v30  ;;  %v2589_v45 = vpop.f32.mrb[21].mxu0  ;;  %2854 = vadd.xlane.f32.xlu0 %v2853_v2  ;;  %v2803_v10 = vmul.f32 %v5185_v19, %v2764_v39  ;;  %v2765_v52 = vmax.f32 %v2733_v31, 0.0 }
 0x1ff   : > { %v3918_v34 = vadd.f32 %v2589_v45, %v1669_v22  ;;  %v3886_v3 = vpop.f32.mrb[22].mxu0  ;;  %2857 = vadd.xlane.f32.xlu1 %v2856_v1  ;;  %v2763_v46 = vmax.f32 %v2731_v44, 0.0  ;;  %v2801_v58 = vmul.f32 %v5185_v19, %v2762_v9 }
 0x200   : > { %v2697_v32 = vmul.f32 %v3917_v24, %v5170_v18  ;;  %v3919_v53 = vadd.f32 %v3886_v3, %v3750_v33  ;;  %v2592_v0 = vpop.f32.mrb[23].mxu0  ;;  %v2871_v4 = vsel %vm512_vm3, %v2803_v10, 0.0  ;;  %v2804_v50 = vmul.f32 %v5185_v19, %v2765_v52 }
 0x201   : > { %v2695_v5 = vmul.f32 %v3918_v34, %v5170_v18  ;;  %v3920_v54 = vadd.f32 %v2592_v0, %v1672_v55  ;;  %v2802_v23 = vmul.f32 %v5185_v19, %v2763_v46  ;;  %v2865_v41 = vsel %vm512_vm3, %v2801_v58, 0.0 }
 0x202   : > { %v2736_v56 = vadd.f32 %v5175_v25, %v2697_v32  ;;  %v2698_v42 = vmul.f32 %v3919_v53, %v5170_v18  ;;  %2872 = vadd.xlane.f32.xlu0 %v2871_v4  ;;  %v2874_v61 = vsel %vm512_vm3, %v2804_v50, 0.0  ;;  %v3753_v57 = vpop.f32.mrb[24].mxu1 }
 0x203   : > { %v2734_v40 = vadd.f32 %v5175_v25, %v2695_v5  ;;  %v2696_v28 = vmul.f32 %v3920_v54, %v5170_v18  ;;  %2875 = vadd.xlane.f32.xlu1 %v2874_v61  ;;  %v1685_v15 = vpop.f32.mrb[25].mxu1  ;;  %v2868_v14 = vsel %vm512_vm3, %v2802_v23, 0.0 }
 0x204   : > { %v2737_v49 = vadd.f32 %v5175_v25, %v2698_v42  ;;  %v3754_v6 = vpop.f32.mrb[26].mxu1  ;;  %v2768_v27 = vmax.f32 %v2736_v56, 0.0 }
 0x205   : > { %v2735_v17 = vadd.f32 %v5175_v25, %v2696_v28  ;;  %v3889_v21 = vpop.f32.mrb[24].mxu0  ;;  %v1688_v59 = vpop.f32.mrb[27].mxu1  ;;  %v2766_v12 = vmax.f32 %v2734_v40, 0.0 }
 0x206   : > { %v3921_v29 = vadd.f32 %v3889_v21, %v3753_v57  ;;  %v2605_v20 = vpop.f32.mrb[25].mxu0  ;;  %2866 = vadd.xlane.f32.xlu0 %v2865_v41  ;;  %v2807_v43 = vmul.f32 %v5185_v19, %v2768_v27  ;;  %v2769_v11 = vmax.f32 %v2737_v49, 0.0 }
 0x207   : > { %v3922_v62 = vadd.f32 %v2605_v20, %v1685_v15  ;;  %v3890_v35 = vpop.f32.mrb[26].mxu0  ;;  %2869 = vadd.xlane.f32.xlu1 %v2868_v14  ;;  %v2767_v51 = vmax.f32 %v2735_v17, 0.0  ;;  %v2805_v26 = vmul.f32 %v5185_v19, %v2766_v12 }
 0x208   : > { %v2701_v16 = vmul.f32 %v3921_v29, %v5170_v18  ;;  %v3923_v8 = vadd.f32 %v3890_v35, %v3754_v6  ;;  %v2608_v13 = vpop.f32.mrb[27].mxu0  ;;  %v2883_v60 = vsel %vm512_vm3, %v2807_v43, 0.0  ;;  %v2808_v38 = vmul.f32 %v5185_v19, %v2769_v11 }
 0x209   : > { %v2699_v63 = vmul.f32 %v3922_v62, %v5170_v18  ;;  %v3924_v36 = vadd.f32 %v2608_v13, %v1688_v59  ;;  %v2806_v22 = vmul.f32 %v5185_v19, %v2767_v51  ;;  %v2877_v24 = vsel %vm512_vm3, %v2805_v26, 0.0 }
 0x20a   : > { %v2740_v30 = vadd.f32 %v5175_v25, %v2701_v16  ;;  %v2702_v47 = vmul.f32 %v3923_v8, %v5170_v18  ;;  %2884 = vadd.xlane.f32.xlu0 %v2883_v60  ;;  %v2886_v7 = vsel %vm512_vm3, %v2808_v38, 0.0  ;;  %v3757_v37 = vpop.f32.mrb[28].mxu1  ;;  %v2945_v8 = vlaneseq }
 0x20b   : > { %v2738_v31 = vadd.f32 %v5175_v25, %v2699_v63  ;;  %v2700_v33 = vmul.f32 %v3924_v36, %v5170_v18  ;;  %2887 = vadd.xlane.f32.xlu1 %v2886_v7  ;;  %v1701_v39 = vpop.f32.mrb[29].mxu1  ;;  %v2880_v34 = vsel %vm512_vm3, %v2806_v22, 0.0 }
 0x20c   : > { %v2741_v44 = vadd.f32 %v5175_v25, %v2702_v47  ;;  %v3758_v48 = vpop.f32.mrb[30].mxu1  ;;  %v2772_v2 = vmax.f32 %v2740_v30, 0.0  ;;  %v2946_v38 = vand.u32 127, %v2945_v8  ;;  %v2948_v30 = vshrl.u32 %v2945_v8, 7 }
 0x20d   : > { %v2739_v55 = vadd.f32 %v5175_v25, %v2700_v33  ;;  %v3893_v9 = vpop.f32.mrb[28].mxu0  ;;  %v1704_v45 = vpop.f32.mrb[31].mxu1  ;;  %v2770_v1 = vmax.f32 %v2738_v31, 0.0 }
 0x20e   : > { %v3925_v10 = vadd.f32 %v3893_v9, %v3757_v37  ;;  %v2621_v52 = vpop.f32.mrb[29].mxu0  ;;  %2878 = vadd.xlane.f32.xlu0 %v2877_v24  ;;  %v2811_v3 = vmul.f32 %v5185_v19, %v2772_v2  ;;  %v2773_v46 = vmax.f32 %v2741_v44, 0.0  ;;  %v2951_v36 = vadd.s32 4294967288, %v2946_v38 }
 0x20f   : > { %v3926_v32 = vadd.f32 %v2621_v52, %v1701_v39  ;;  %v3894_v53 = vpop.f32.mrb[30].mxu0  ;;  %2881 = vadd.xlane.f32.xlu1 %v2880_v34  ;;  %v2771_v0 = vmax.f32 %v2739_v55, 0.0  ;;  %v2809_v61 = vmul.f32 %v5185_v19, %v2770_v1  ;;  %v5319_v37 = vsub.s32 %v2946_v38, %v2948_v30 }
 0x210   : > { %v2705_v4 = vmul.f32 %v3925_v10, %v5170_v18  ;;  %v3927_v50 = vadd.f32 %v3894_v53, %v3758_v48  ;;  %v2624_v5 = vpop.f32.mrb[31].mxu0  ;;  %v2895_v54 = vsel %vm512_vm3, %v2811_v3, 0.0  ;;  %v2812_v58 = vmul.f32 %v5185_v19, %v2773_v46 }
 0x211   : > { %v2703_v56 = vmul.f32 %v3926_v32, %v5170_v18  ;;  %v3928_v42 = vadd.f32 %v2624_v5, %v1704_v45  ;;  %v2810_v28 = vmul.f32 %v5185_v19, %v2771_v0  ;;  %v2889_v17 = vsel %vm512_vm3, %v2809_v61, 0.0 }
 0x212   : > { %v2744_v57 = vadd.f32 %v5175_v25, %v2705_v4  ;;  %v2706_v23 = vmul.f32 %v3927_v50, %v5170_v18  ;;  %2896 = vadd.xlane.f32.xlu0 %v2895_v54  ;;  %v2898_v40 = vsel %vm512_vm3, %v2812_v58, 0.0  ;;  %v5317_v7 = vsub.s32 %v2951_v36, %v2948_v30 }
 0x213   : > { %v2742_v15 = vadd.f32 %v5175_v25, %v2703_v56  ;;  %v2704_v49 = vmul.f32 %v3928_v42, %v5170_v18  ;;  %2899 = vadd.xlane.f32.xlu1 %v2898_v40  ;;  %v2892_v59 = vsel %vm512_vm3, %v2810_v28, 0.0 }
 0x214   : > { %v2745_v6 = vadd.f32 %v5175_v25, %v2706_v23  ;;  %v2776_v41 = vmax.f32 %v2744_v57, 0.0 }
 0x215   : > { %v2743_v27 = vadd.f32 %v5175_v25, %v2704_v49  ;;  %v2774_v21 = vmax.f32 %v2742_v15, 0.0 }
 0x216   : > { %2890 = vadd.xlane.f32.xlu0 %v2889_v17  ;;  %v2777_v20 = vmax.f32 %v2745_v6, 0.0  ;;  %v2815_v43 = vmul.f32 %v5185_v19, %v2776_v41 }
 0x217   : > { %2893 = vadd.xlane.f32.xlu1 %v2892_v59  ;;  %v2813_v12 = vmul.f32 %v5185_v19, %v2774_v21  ;;  %v2775_v29 = vmax.f32 %v2743_v27, 0.0 }
 0x218   : > { %v2816_v11 = vmul.f32 %v5185_v19, %v2777_v20  ;;  %v2907_v62 = vsel %vm512_vm3, %v2815_v43, 0.0 }
 0x219   : > { %v2901_v14 = vsel %vm512_vm3, %v2813_v12, 0.0  ;;  %v2814_v18 = vmul.f32 %v5185_v19, %v2775_v29 }
 0x21a   : > { %2902 = vadd.xlane.f32.xlu0 %v2901_v14  ;;  %v2910_v35 = vsel %vm512_vm3, %v2816_v11, 0.0 }
 0x21b   : > { %v2904_v25 = vsel %vm512_vm3, %v2814_v18, 0.0 }
 0x21c   : > { %2905 = vadd.xlane.f32.xlu1 %v2904_v25 }
 0x21e   : > { %2908 = vadd.xlane.f32.xlu0 %v2907_v62 }
 0x220   : > { %2911 = vadd.xlane.f32.xlu1 %v2910_v35 }
 0x26e   : > { %v2825_v51 = vpop.xlane.xlu1 %2824 }
 0x26f   : > { %v2819_v16 = vpop.xlane.xlu0 %2818  ;;  %v2961_v2 = vrot.slane %v2825_v51, %v5319_v37 }
 0x270   : > { %v2950_v55 = vrot.slane %v2819_v16, %v5319_v37 }
 0x272   : > { %v2828_v60 = vpop.xlane.xlu1 %2827 }
 0x273   : > { %v2822_v13 = vpop.xlane.xlu0 %2821  ;;  %v2965_v31 = vrot.slane %v2828_v60, %v5317_v7 }
 0x274   : > { %v2955_v33 = vrot.slane %v2822_v13, %v5317_v7 }
 0x275   : > { %v2966_v24 = vsel %vm2956_vm4, %v2965_v31, %v2961_v2 }
 0x276   : > { %v2957_v45 = vsel %vm2956_vm4, %v2955_v33, %v2950_v55 }
 0x277   : > { %v2837_v63 = vpop.xlane.xlu0 %2836  ;;  %v3094_v32 = vsel %vm3093_vm5, %v2966_v24, %v2957_v45 }
 0x278   : > { %v2840_v26 = vpop.xlane.xlu1 %2839  ;;  %v2979_v3 = vrot.slane %v2837_v63, %v5319_v37 }
 0x279   : > { %v2983_v46 = vrot.slane %v2840_v26, %v5317_v7 }
 0x27b   : > { %v2831_v47 = vpop.xlane.xlu0 %2830  ;;  %v2984_v5 = vsel %vm2956_vm4, %v2983_v46, %v2979_v3 }
 0x27c   : > { %v2834_v19 = vpop.xlane.xlu1 %2833  ;;  %v2970_v44 = vrot.slane %v2831_v47, %v5319_v37 }
 0x27d   : > { %v2974_v48 = vrot.slane %v2834_v19, %v5317_v7 }
 0x27f   : > { %v2849_v22 = vpop.xlane.xlu0 %2848  ;;  %v2975_v10 = vsel %vm2956_vm4, %v2974_v48, %v2970_v44 }
 0x280   : > { %v2852_v39 = vpop.xlane.xlu1 %2851  ;;  %v3096_v0 = vsel %vm3095_vm6, %v2975_v10, %v3094_v32  ;;  %v2997_v54 = vrot.slane %v2849_v22, %v5319_v37 }
 0x281   : > { %v3001_v58 = vrot.slane %v2852_v39, %v5317_v7  ;;  %v3098_v56 = vsel %vm3097_vm7, %v2984_v5, %v3096_v0 }
 0x283   : > { %v2843_v9 = vpop.xlane.xlu0 %2842  ;;  %v3002_v49 = vsel %vm2956_vm4, %v3001_v58, %v2997_v54 }
 0x284   : > { %v2846_v1 = vpop.xlane.xlu1 %2845  ;;  %v2988_v52 = vrot.slane %v2843_v9, %v5319_v37 }
 0x285   : > { %v2992_v34 = vrot.slane %v2846_v1, %v5317_v7 }
 0x287   : > { %v2861_v53 = vpop.xlane.xlu0 %2860  ;;  %v2993_v50 = vsel %vm2956_vm4, %v2992_v34, %v2988_v52 }
 0x288   : > { %v2864_v4 = vpop.xlane.xlu1 %2863  ;;  %v3100_v61 = vsel %vm3099_vm8, %v2993_v50, %v3098_v56  ;;  %v3015_v57 = vrot.slane %v2861_v53, %v5319_v37 }
 0x289   : > { %v3019_v23 = vrot.slane %v2864_v4, %v5317_v7  ;;  %v3102_v6 = vsel %vm3101_vm9, %v3002_v49, %v3100_v61 }
 0x28b   : > { %v2855_v42 = vpop.xlane.xlu0 %2854  ;;  %v3020_v21 = vsel %vm2956_vm4, %v3019_v23, %v3015_v57 }
 0x28c   : > { %v3006_v40 = vrot.slane %v2855_v42, %v5319_v37  ;;  %v2858_v28 = vpop.xlane.xlu1 %2857 }
 0x28d   : > { %v3010_v15 = vrot.slane %v2858_v28, %v5317_v7 }
 0x28f   : > { %v3011_v27 = vsel %vm2956_vm4, %v3010_v15, %v3006_v40  ;;  %v2873_v17 = vpop.xlane.xlu0 %2872 }
 0x290   : > { %v3104_v41 = vsel %vm3103_vm10, %v3011_v27, %v3102_v6  ;;  %v2876_v59 = vpop.xlane.xlu1 %2875  ;;  %v3033_v13 = vrot.slane %v2873_v17, %v5319_v37 }
 0x291   : > { %v3106_v12 = vsel %vm3105_vm11, %v3020_v21, %v3104_v41  ;;  %v3037_v60 = vrot.slane %v2876_v59, %v5317_v7 }
 0x292   : > { %3117 = vst.msk [vmem:[%s5351_s28] sm:$0xff] %vm3116_vm12, %v3106_v12 }
 0x293   : > { %v2867_v29 = vpop.xlane.xlu0 %2866  ;;  %v3038_v19 = vsel %vm2956_vm4, %v3037_v60, %v3033_v13 }
 0x294   : > { %v2870_v20 = vpop.xlane.xlu1 %2869  ;;  %v3024_v62 = vrot.slane %v2867_v29, %v5319_v37 }
 0x295   : > { %v3028_v35 = vrot.slane %v2870_v20, %v5317_v7 }
 0x297   : > { %v2885_v14 = vpop.xlane.xlu0 %2884  ;;  %v3029_v63 = vsel %vm2956_vm4, %v3028_v35, %v3024_v62 }
 0x298   : > { %v2888_v18 = vpop.xlane.xlu1 %2887  ;;  %v3051_v22 = vrot.slane %v2885_v14, %v5319_v37  ;;  %v3107_v33 = vsel %vm3093_vm5, %v3038_v19, %v3029_v63 }
 0x299   : > { %v3055_v31 = vrot.slane %v2888_v18, %v5317_v7 }
 0x29b   : > { %v2879_v43 = vpop.xlane.xlu0 %2878  ;;  %v3056_v55 = vsel %vm2956_vm4, %v3055_v31, %v3051_v22 }
 0x29c   : > { %v2882_v25 = vpop.xlane.xlu1 %2881  ;;  %v3042_v16 = vrot.slane %v2879_v43, %v5319_v37 }
 0x29d   : > { %v3046_v8 = vrot.slane %v2882_v25, %v5317_v7 }
 0x29f   : > { %v2897_v11 = vpop.xlane.xlu0 %2896  ;;  %v3047_v26 = vsel %vm2956_vm4, %v3046_v8, %v3042_v16 }
 0x2a0   : > { %v2900_v51 = vpop.xlane.xlu1 %2899  ;;  %v3108_v44 = vsel %vm3095_vm6, %v3047_v26, %v3107_v33  ;;  %v3069_v9 = vrot.slane %v2897_v11, %v5319_v37 }
 0x2a1   : > { %v3073_v24 = vrot.slane %v2900_v51, %v5317_v7  ;;  %v3109_v1 = vsel %vm3097_vm7, %v3056_v55, %v3108_v44 }
 0x2a3   : > { %v2891_v38 = vpop.xlane.xlu0 %2890  ;;  %v3074_v32 = vsel %vm2956_vm4, %v3073_v24, %v3069_v9 }
 0x2a4   : > { %v2894_v36 = vpop.xlane.xlu1 %2893  ;;  %v3060_v30 = vrot.slane %v2891_v38, %v5319_v37 }
 0x2a5   : > { %v3064_v47 = vrot.slane %v2894_v36, %v5317_v7 }
 0x2a7   : > { %v2903_v39 = vpop.xlane.xlu0 %2902  ;;  %v3065_v48 = vsel %vm2956_vm4, %v3064_v47, %v3060_v30 }
 0x2a8   : > { %v3078_v10 = vrot.slane %v2903_v39, %v5319_v37  ;;  %v3110_v34 = vsel %vm3099_vm8, %v3065_v48, %v3109_v1 }
 0x2a9   : > { %v2906_v2 = vpop.xlane.xlu1 %2905  ;;  %v3111_v4 = vsel %vm3101_vm9, %v3074_v32, %v3110_v34 }
 0x2aa   : > { %v3082_v45 = vrot.slane %v2906_v2, %v5317_v7 }
 0x2ab   : > { %v2909_v52 = vpop.xlane.xlu0 %2908 }
 0x2ac   : > { %v3083_v3 = vsel %vm2956_vm4, %v3082_v45, %v3078_v10  ;;  %v3087_v53 = vrot.slane %v2909_v52, %v5319_v37 }
 0x2ad   : > { %v2912_v46 = vpop.xlane.xlu1 %2911  ;;  %v3112_v50 = vsel %vm3103_vm10, %v3083_v3, %v3111_v4 }
 0x2ae   : > { %v3091_v0 = vrot.slane %v2912_v46, %v5317_v7 }
 0x2b0   : > { %v3092_v5 = vsel %vm2956_vm4, %v3091_v0, %v3087_v53 }
 0x2b1   : > { %v3113_v54 = vsel %vm3105_vm11, %v3092_v5, %v3112_v50 }
 0x2b2   : > { %3118 = vst.msk [vmem:[%s5351_s28 + $0x8] sm:$0xff] %vm3116_vm12, %v3113_v54 }
 0x2b3 PF: > { %s15_s18 = sadd.s32 1, %s4226_s18  }
 0x2b4   : > { %p12_p4 = scmp.ge.s32.totalorder %s15_s18, 4  }
 0x2b6   :  { %14 = sbr.rel (!%p12_p4) target bundleno = 1 (0x1), region = 78 }

// kernel: bottleneck_forward.13
= control target key start
LH: loop header
LB: loop body
LE: loop exit
PB: predicated region body
PF: predicated region fallthrough
CT: control target
= control target key end

     0   :  { %s4109_s15 = smov 0   ;;  %s5172_s0 = inlined_call_operand.vmem [shape: bf16[2,24,24,4], index: 0, kind: input, shape index: {}]   ;;  %s5173_s1 = inlined_call_operand.vmem [shape: bf16[9,4,4], index: 1, kind: input, shape index: {}]   ;;  %s5174_s2 = inlined_call_operand.vmem [shape: f32[1,4], index: 2, kind: input, shape index: {}]   ;;  %s5175_s3 = inlined_call_operand.vmem [shape: f32[1,4], index: 3, kind: input, shape index: {}]   ;;  %s5176_s4 = inlined_call_operand.vmem [shape: bf16[2,16,16,4], index: 4, kind: output, shape index: {}]  }
   0x1 LB: > { %s2967_s16 = sadd.s32 4294967295, %s4082_s15   ;;  %p2971_p0 = scmp.ge.s32.totalorder %s4082_s15, 1  ;;  %s4082_s15 = sphi %s4109_s15, %s14_s15  }
   0x2   : > { %p162_p1 = scmp.lt.s32.totalorder %s4082_s15, 3 }
   0x4   : > { %p163_p2 = pnand %p2971_p0, %p162_p1 }
   0x6   : > { %166 = sbr.rel (%p163_p2) target bundleno = 540 (0x21c), region = 36 }
   0xd   : > { %vm320_vm0 = vcmask 1041408   ;;  %v2991_v0 = vld [vmem:[%s5173_s1 + $0x2] sm:$0x3]  ;;  %v4123_v1 = vld [vmem:[%s5173_s1 + $0x8] sm:$0x3]  ;;  %p188_p3 = scmp.lt.s32.totalorder %s2967_s16, 1 }
   0xe   : > { %4009 = vmatprep.subr.msk.bf16.mxu1 %vm320_vm0, %v2991_v0  ;;  %4013 = vmatprep.subr.msk.bf16.mxu0 %vm320_vm0, %v4123_v1  ;;  %v536_v2 = vsel %vm320_vm0, %v2991_v0, 0  ;;  %v4131_v3 = vsel %vm320_vm0, %v4123_v1, 0  ;;  %v271_v4 = vld [vmem:[%s5173_s1] sm:$0x3]  ;;  %v3135_v5 = vld [vmem:[%s5173_s1 + $0xa] sm:$0x3] }
   0xf   : > { %5190 = vst [vmem:[#allocation2_spill] sm:$0xff] %v4131_v3  ;;  %3446 = vmatpush3.bf16.msra.mxu1 %v536_v2  ;;  %3582 = vmatpush3.bf16.msra.mxu0 %v4131_v3  ;;  %s5221_s16 = smov (!%p188_p3, %s2967_s16), 1  ;;  %vm321_vm1 = vcmask 1045508   ;;  %vm485_vm3 = vcmask 31744   ;;  %v796_v18 = vsel %vm320_vm0, %v271_v4, 0  ;;  %v4192_v27 = vsel %vm320_vm0, %v3135_v5, 0 }
  0x10   : > { %4010 = vmatprep.subr.msk.bf16.mxu1 %vm320_vm0, %v271_v4  ;;  %4015 = vmatprep.subr.msk.bf16.mxu0 %vm320_vm0, %v3135_v5  ;;  %s4019_s25 = smul.u32 288, %s5221_s16  ;;  %vm4146_vm2 = vmor %vm320_vm0, %vm321_vm1  ;;  %v4252_v57 = vld [vmem:[%s5173_s1 + $0x4] sm:$0x3]  ;;  %s3259_s19 = sshll.u32 %s5221_s16, 7  ;;  %vm2879_vm4 = vcmask 27648  }
  0x11   : > { %s5039_s22 = scalar_lea.vmem %s5176_s4, %s3259_s19 }
  0x12   : > { %s4153_s28 = scalar_lea.vmem %s5172_s0, %s4019_s25 }
  0x13   : > { %v4156_v7 = vld [vmem:[%s4153_s28] sm:$0xf]  ;;  %v4159_v8 = vld [vmem:[%s4153_s28 + $0x4] sm:$0xf]  ;;  %v4162_v9 = vld [vmem:[%s4153_s28 + $0x8] sm:$0xf] }
  0x14   : > { %v2975_v10 = vrot.slane %v4156_v7, 10  ;;  %v325_v11 = vrot.slane %v4159_v8, 6  ;;  %v328_v12 = vrot.slane %v4162_v9, 6  ;;  %v211_v13 = vld [vmem:[%s4153_s28 + $0x30] sm:$0xf] }
  0x15   : > { %v4171_v15 = vld [vmem:[%s4153_s28 + $0x34] sm:$0xf]  ;;  %v4174_v16 = vld [vmem:[%s4153_s28 + $0x38] sm:$0xf]  ;;  %v2979_v17 = vrot.slane %v211_v13, 10 }
  0x16   : > { %v326_v19 = vsel %vm4146_vm2, %v2975_v10, %v325_v11  ;;  %v327_v20 = vrot.slane %v325_v11, 4  ;;  %v353_v21 = vrot.slane %v4171_v15, 6  ;;  %v356_v22 = vrot.slane %v4174_v16, 6  ;;  %v4182_v23 = vld [vmem:[%s4153_s28 + $0xc] sm:$0xf] }
  0x17   : > { %v4185_v24 = vld [vmem:[%s4153_s28 + $0x10] sm:$0xf]  ;;  %v4188_v25 = vld [vmem:[%s4153_s28 + $0x14] sm:$0xf]  ;;  %v2976_v26 = vrot.slane %v4182_v23, 10  ;;  %v4195_v28 = vcombine.low %v211_v13, %v4171_v15 }
  0x18   : > { %v329_v29 = vsel %vm4146_vm2, %v327_v20, %v328_v12  ;;  %v354_v30 = vsel %vm4146_vm2, %v2979_v17, %v353_v21  ;;  %v355_v31 = vrot.slane %v353_v21, 4  ;;  %v332_v32 = vrot.slane %v4185_v24, 6  ;;  %v4203_v33 = vld [vmem:[%s4153_s28 + $0x3c] sm:$0xf]  ;;  %v4206_v34 = vld [vmem:[%s4153_s28 + $0x40] sm:$0xf] }
  0x19   : > { %v2992_v35 = vcombine.low %v326_v19, %v329_v29  ;;  %v335_v36 = vrot.slane %v4188_v25, 6  ;;  %v4214_v39 = vld [vmem:[%s4153_s28 + $0x44] sm:$0xf]  ;;  %v4217_v40 = vld [vmem:[%s4153_s28 + $0x18] sm:$0xf]  ;;  %v2980_v44 = vrot.slane %v4203_v33, 10 }
  0x1a   : > { %v357_v41 = vsel %vm4146_vm2, %v355_v31, %v356_v22  ;;  %v333_v42 = vsel %vm4146_vm2, %v2976_v26, %v332_v32  ;;  %v334_v43 = vrot.slane %v332_v32, 4  ;;  %v4225_v45 = vld [vmem:[%s4153_s28 + $0x1c] sm:$0xf]  ;;  %v4228_v46 = vld [vmem:[%s4153_s28 + $0x20] sm:$0xf]  ;;  %v360_v48 = vrot.slane %v4206_v34, 6 }
  0x1b   : > { %3447 = vmatprep.mubr.msk.bf16.mxu1 %vm485_vm3, %v2992_v35  ;;  %v4231_v47 = vcombine.low %v354_v30, %v357_v41  ;;  %v363_v49 = vrot.slane %v4214_v39, 6  ;;  %v4236_v50 = vld [vmem:[%s4153_s28 + $0x48] sm:$0xf]  ;;  %v4239_v51 = vld [vmem:[%s4153_s28 + $0x4c] sm:$0xf]  ;;  %v2977_v53 = vrot.slane %v4217_v40, 10  ;;  %v4481_v3 = vcombine.low %v4206_v34, %v4214_v39 }
  0x1c   : > { %v336_v52 = vsel %vm4146_vm2, %v334_v43, %v335_v36  ;;  %v339_v54 = vrot.slane %v4225_v45, 6  ;;  %v342_v55 = vrot.slane %v4228_v46, 6  ;;  %v4247_v56 = vld [vmem:[%s4153_s28 + $0x50] sm:$0xf]  ;;  %v361_v59 = vsel %vm4146_vm2, %v2980_v44, %v360_v48  ;;  %v4260_v62 = vld [vmem:[%s4153_s28 + $0x24] sm:$0xf] }
  0x1d   : > { %3583 = vmatprep.mubr.msk.bf16.mxu0 %vm485_vm3, %v4231_v47  ;;  %v2993_v58 = vcombine.low %v333_v42, %v336_v52  ;;  %v362_v60 = vrot.slane %v360_v48, 4  ;;  %v2981_v61 = vrot.slane %v4236_v50, 10  ;;  %v4263_v63 = vld [vmem:[%s4153_s28 + $0x28] sm:$0xf]  ;;  %v367_v4 = vrot.slane %v4239_v51, 6 }
  0x1e   : > { %v340_v0 = vsel %vm4146_vm2, %v2977_v53, %v339_v54  ;;  %v341_v2 = vrot.slane %v339_v54, 4  ;;  %v370_v5 = vrot.slane %v4247_v56, 6  ;;  %v4270_v10 = vld [vmem:[%s4153_s28 + $0x2c] sm:$0xf]  ;;  %v2978_v12 = vrot.slane %v4260_v62, 10 }
  0x1f   : > { %3448 = vmatmul.mubr.msk.bf16.vlgmr.msra.gmra.mrb[0].mxu1 %vm485_vm3, %v2993_v58  ;;  %v364_v11 = vsel %vm4146_vm2, %v362_v60, %v363_v49  ;;  %v346_v13 = vrot.slane %v4263_v63, 6  ;;  %v349_v17 = vrot.slane %v4270_v10, 6  ;;  %v4279_v19 = vld [vmem:[%s4153_s28 + $0x54] sm:$0xf]  ;;  %v4284_v20 = vld [vmem:[%s5173_s1 + $0xc] sm:$0x3]  ;;  %v368_v26 = vsel %vm4146_vm2, %v2981_v61, %v367_v4 }
  0x20   : > { %3480 = vmatpush3.bf16.msra.mxu1 %v796_v18  ;;  %v4286_v21 = vcombine.low %v361_v59, %v364_v11  ;;  %v343_v22 = vsel %vm4146_vm2, %v341_v2, %v342_v55  ;;  %v369_v29 = vrot.slane %v367_v4, 4  ;;  %v4293_v30 = vld [vmem:[%s4153_s28 + $0x58] sm:$0xf]  ;;  %v4296_v31 = vld [vmem:[%s4153_s28 + $0x5c] sm:$0xf]  ;;  %v2982_v18 = vrot.slane %v4279_v19, 10 }
  0x21   : > { %v2994_v32 = vcombine.low %v340_v0, %v343_v22  ;;  %v347_v35 = vsel %vm4146_vm2, %v2978_v12, %v346_v13  ;;  %v348_v36 = vrot.slane %v346_v13, 4  ;;  %v4302_v41 = vld [vmem:[%s4153_s28 + $0x60] sm:$0xf]  ;;  %v4305_v42 = vld [vmem:[%s4153_s28 + $0x64] sm:$0xf]  ;;  %4011 = vmatprep.subr.msk.bf16.mxu1 %vm320_vm0, %v4252_v57  ;;  %v374_v44 = vrot.slane %v4293_v30, 6 }
  0x22   : > { %3584 = vmatmul.mubr.msk.bf16.vlgmr.msra.gmra.mrb[0].mxu0 %vm485_vm3, %v4286_v21  ;;  %v371_v43 = vsel %vm4146_vm2, %v369_v29, %v370_v5  ;;  %v377_v48 = vrot.slane %v4296_v31, 6  ;;  %v4316_v49 = vld [vmem:[%s4153_s28 + $0x68] sm:$0xf]  ;;  %v2983_v52 = vrot.slane %v4302_v41, 10  ;;  %v381_v55 = vrot.slane %v4305_v42, 6 }
  0x23   : > { %3616 = vmatpush3.bf16.msra.mxu0 %v4192_v27  ;;  %3451 = vmatprep.mubr.msk.bf16.mxu1 %vm485_vm3, %v2994_v32  ;;  %v2998_v53 = vcombine.low %v368_v26, %v371_v43  ;;  %v350_v54 = vsel %vm4146_vm2, %v348_v36, %v349_v17  ;;  %v384_v58 = vrot.slane %v4316_v49, 6  ;;  %v4326_v59 = vld [vmem:[%s4153_s28 + $0x6c] sm:$0xf]  ;;  %v4329_v60 = vld [vmem:[%s4153_s28 + $0x70] sm:$0xf]  ;;  %v375_v27 = vsel %vm4146_vm2, %v2982_v18, %v374_v44 }
  0x24   : > { %v2995_v61 = vcombine.low %v347_v35, %v350_v54  ;;  %v376_v0 = vrot.slane %v374_v44, 4  ;;  %v4334_v2 = vld [vmem:[%s4153_s28 + $0x74] sm:$0xf]  ;;  %4016 = vmatprep.subr.msk.bf16.mxu0 %vm320_vm0, %v4284_v20  ;;  %v382_v4 = vsel %vm4146_vm2, %v2983_v52, %v381_v55  ;;  %v383_v5 = vrot.slane %v381_v55, 4  ;;  %v229_v12 = vld [vmem:[%s4153_s28 + $0x78] sm:$0xf] }
  0x25   : > { %3587 = vmatprep.mubr.msk.bf16.mxu0 %vm485_vm3, %v2998_v53  ;;  %v388_v11 = vrot.slane %v4329_v60, 6  ;;  %v4344_v13 = vld [vmem:[%s4153_s28 + $0x7c] sm:$0xf]  ;;  %v2984_v22 = vrot.slane %v4326_v59, 10  ;;  %v4350_v26 = vld [vmem:[%s4153_s28 + $0x80] sm:$0xf] }
  0x26   : > { %v378_v17 = vsel %vm4146_vm2, %v376_v0, %v377_v48  ;;  %v395_v29 = vrot.slane %v4344_v13, 6  ;;  %v385_v35 = vsel %vm4146_vm2, %v383_v5, %v384_v58  ;;  %v391_v18 = vrot.slane %v4334_v2, 6  ;;  %v4363_v54 = vld [vmem:[%s4153_s28 + $0x88] sm:$0xf]  ;;  %v232_v0 = vld [vmem:[%s4153_s28 + $0x84] sm:$0xf] }
  0x27   : > { %3452 = vmatmul.mubr.msk.bf16.gmra.mrb[4].mxu1 %vm485_vm3, %v2995_v61  ;;  %v2999_v32 = vcombine.low %v375_v27, %v378_v17  ;;  %v390_v36 = vrot.slane %v388_v11, 4  ;;  %v4359_v43 = vcombine.low %v382_v4, %v385_v35  ;;  %v2985_v44 = vrot.slane %v229_v12, 10  ;;  %v4379_v4 = vld [vmem:[%s4153_s28 + $0x8c] sm:$0xf]  ;;  %v4499_v39 = vld [vmem:[%s4153_s28 + $0xa4] sm:$0xf] }
  0x28   : > { %3455 = vmatprep.mubr.msk.bf16.mxu1 %vm485_vm3, %v4231_v47  ;;  %v397_v48 = vrot.slane %v395_v29, 4  ;;  %v398_v52 = vrot.slane %v4350_v26, 6  ;;  %v389_v55 = vsel %vm4146_vm2, %v2984_v22, %v388_v11  ;;  %v402_v47 = vrot.slane %v4363_v54, 6 }
  0x29   : > { %5193 = vst [vmem:[#allocation3_spill] sm:$0xff] %v4359_v43  ;;  %v392_v58 = vsel %vm4146_vm2, %v390_v36, %v391_v18  ;;  %v396_v61 = vsel %vm4146_vm2, %v2985_v44, %v395_v29  ;;  %v2986_v17 = vrot.slane %v232_v0, 10  ;;  %v405_v35 = vrot.slane %v4379_v4, 6  ;;  %v4404_v44 = vld [vmem:[%s4153_s28 + $0x94] sm:$0xf] }
  0x2a   : > { %3588 = vmatmul.mubr.msk.bf16.gmra.mrb[4].mxu0 %vm485_vm3, %v2999_v32  ;;  %v399_v27 = vsel %vm4146_vm2, %v397_v48, %v398_v52  ;;  %v4381_v5 = vcombine.low %v389_v55, %v392_v58  ;;  %v404_v22 = vrot.slane %v402_v47, 4  ;;  %v4408_v48 = vcombine.low %v4203_v33, %v4206_v34  ;;  %v235_v58 = vld [vmem:[%s4153_s28 + $0x90] sm:$0xf]  ;;  %v4424_v33 = vld [vmem:[%s4153_s28 + $0xa0] sm:$0xf] }
  0x2b   : > { %3591 = vmatprep.mubr.msk.bf16.mxu0 %vm485_vm3, %v4359_v43  ;;  %v4385_v11 = vcombine.low %v396_v61, %v399_v27  ;;  %v4413_v52 = vcombine.low %v4171_v15, %v4174_v16  ;;  %v4417_v55 = vcombine.low %v4236_v50, %v4239_v51  ;;  %v409_v61 = vrot.slane %v4404_v44, 6  ;;  %v241_v15 = vld [vmem:[%s4153_s28 + $0xa8] sm:$0xf]  ;;  %v4433_v16 = vld [vmem:[%s4153_s28 + $0xac] sm:$0xf] }
  0x2c   : > { %5194 = vst [vmem:[#allocation4_spill] sm:$0xff] %v4381_v5  ;;  %v406_v29 = vsel %vm4146_vm2, %v404_v22, %v405_v35  ;;  %v4437_v50 = vcombine.low %v4302_v41, %v4305_v42  ;;  %v4441_v27 = vcombine.low %v4326_v59, %v4329_v60  ;;  %v244_v22 = vld [vmem:[%s4153_s28 + $0xb4] sm:$0xf]  ;;  %v4453_v35 = vld [vmem:[%s4153_s28 + $0xb8] sm:$0xf]  ;;  %v4459_v41 = vcombine.low %v235_v58, %v4404_v44 }
  0x2d   : > { %5195 = vst [vmem:[#allocation5_spill] sm:$0xff] %v4385_v11  ;;  %v411_v36 = vrot.slane %v409_v61, 4  ;;  %v416_v38 = vrot.slane %v4424_v33, 6 }
  0x2f   : > { %3456 = vmatmul.mubr.msk.bf16.gmra.mrb[8].mxu1 %vm485_vm3, %v4286_v21  ;;  %v403_v21 = vsel %vm4146_vm2, %v2986_v17, %v402_v47  ;;  %v238_v47 = vld [vmem:[%s4153_s28 + $0x9c] sm:$0xf]  ;;  %v4444_v17 = vcombine.low %v229_v12, %v4344_v13  ;;  %v4465_v12 = vcombine.low %v241_v15, %v4433_v16 }
  0x30   : > { %3459 = vmatprep.mubr.msk.bf16.mxu1 %vm485_vm3, %v2998_v53  ;;  %v4401_v18 = vcombine.low %v403_v21, %v406_v29  ;;  %v4456_v21 = vcombine.low %v232_v0, %v4363_v54  ;;  %v4462_v59 = vcombine.low %v238_v47, %v4424_v33  ;;  %v4470_v29 = vcombine.low %v244_v22, %v4453_v35 }
  0x31   : > { %v2987_v53 = vrot.slane %v235_v58, 10  ;;  %v4487_v0 = vcombine.low %v4239_v51, %v4247_v56  ;;  %v1974_v58 = vsel %vm320_vm0, %v4284_v20, 0  ;;  %v4505_v51 = vld [vmem:[%s5173_s1 + $0xe] sm:$0x3]  ;;  %v4510_v56 = vld [vmem:[%s4153_s28 + $0xb0] sm:$0xf] }
  0x32   : > { %3592 = vmatmul.mubr.msk.bf16.gmra.mrb[8].mxu0 %vm485_vm3, %v4381_v5  ;;  %5196 = vst [vmem:[#allocation6_spill] sm:$0xff] %v4401_v18 }
  0x33   : > { %3595 = vmatprep.mubr.msk.bf16.mxu0 %vm485_vm3, %v4385_v11  ;;  %v410_v14 = vsel %vm4146_vm2, %v2987_v53, %v409_v61  ;;  %v419_v53 = vrot.slane %v4499_v39, 6  ;;  %v2989_v61 = vrot.slane %v241_v15, 10 }
  0x37   : > { %3460 = vmatmul.mubr.msk.bf16.gmra.mrb[12].mxu1 %vm485_vm3, %v2999_v32  ;;  %v4428_v32 = vcombine.low %v4279_v19, %v4293_v30  ;;  %v4449_v19 = vld [vmem:[%s4153_s28 + $0x98] sm:$0xf] }
  0x38   : > { %3463 = vmatprep.mubr.msk.bf16.mxu1 %vm485_vm3, %v4359_v43  ;;  %v412_v37 = vrot.slane %v4449_v19, 6  ;;  %v426_v43 = vrot.slane %v4510_v56, 6 }
  0x3a   : > { %3596 = vmatmul.mubr.msk.bf16.gmra.mrb[12].mxu0 %vm485_vm3, %v4401_v18  ;;  %v413_v34 = vsel %vm4146_vm2, %v411_v36, %v412_v37  ;;  %v2988_v37 = vrot.slane %v238_v47, 10  ;;  %v418_v36 = vrot.slane %v416_v38, 4 }
  0x3b   : > { %3617 = vmatprep.mubr.msk.bf16.mxu0 %vm485_vm3, %v4413_v52  ;;  %v4514_v20 = vcombine.low %v410_v14, %v413_v34  ;;  %v4528_v14 = vcombine.low %v4305_v42, %v4316_v49  ;;  %v430_v34 = vrot.slane %v4453_v35, 6  ;;  %v2990_v49 = vrot.slane %v244_v22, 10 }
  0x3c   : > { %v417_v47 = vsel %vm4146_vm2, %v2988_v37, %v416_v38  ;;  %v420_v15 = vsel %vm4146_vm2, %v418_v36, %v419_v53 }
  0x3d   : > { %v4548_v38 = vcombine.low %v417_v47, %v420_v15  ;;  %v432_v37 = vrot.slane %v430_v34, 4  ;;  %v431_v22 = vsel %vm4146_vm2, %v2990_v49, %v430_v34  ;;  %v4591_v47 = vcombine.low %v4404_v44, %v4449_v19  ;;  %v249_v15 = vld [vmem:[%s4153_s28 + $0xc8] sm:$0xf]  ;;  %v4606_v49 = vld [vmem:[%s4153_s28 + $0xcc] sm:$0xf] }
  0x3e   : > { %v5200_v34 = vcombine.low %v4156_v7, %v4159_v8 }
  0x3f   : > { %3464 = vmatmul.mubr.msk.bf16.gmra.mrb[16].mxu1 %vm485_vm3, %v4381_v5  ;;  %v423_v5 = vrot.slane %v4433_v16, 6  ;;  %5197 = vst [vmem:[#allocation7_spill] sm:$0xff] %v4548_v38 }
  0x40   : > { %3467 = vmatprep.mubr.msk.bf16.mxu1 %vm485_vm3, %v4385_v11 }
  0x41   : > { %v425_v11 = vrot.slane %v423_v5, 4 }
  0x42   : > { %3618 = vmatmul.mubr.msk.bf16.vlgmr.msra.gmra.mrb[0].mxu0 %vm485_vm3, %v4481_v3 }
  0x43   : > { %3650 = vmatpush3.bf16.msra.mxu0 %v1974_v58  ;;  %3621 = vmatprep.mubr.msk.bf16.mxu0 %vm485_vm3, %v4487_v0  ;;  %v4522_v58 = vcombine.low %v4293_v30, %v4296_v31  ;;  %v424_v30 = vsel %vm4146_vm2, %v2989_v61, %v423_v5  ;;  %v427_v31 = vsel %vm4146_vm2, %v425_v11, %v426_v43 }
  0x44   : > { %4017 = vmatprep.subr.msk.bf16.mxu0 %vm320_vm0, %v4505_v51  ;;  %v4550_v42 = vcombine.low %v424_v30, %v427_v31  ;;  %v4555_v43 = vcombine.low %v4329_v60, %v4334_v2  ;;  %v4561_v11 = vcombine.low %v4344_v13, %v4350_v26  ;;  %v4576_v2 = vld [vmem:[%s4153_s28 + $0xc4] sm:$0xf]  ;;  %v4579_v13 = vld [vmem:[%s4153_s28 + $0xc0] sm:$0xf]  ;;  %v4583_v26 = vcombine.low %v4363_v54, %v4379_v4  ;;  %v4599_v4 = vld [vmem:[%s4153_s28 + $0xd0] sm:$0xf] }
  0x45   : > { %v1473_v53 = vrot.slane %v4576_v2, 6  ;;  %v3110_v61 = vrot.slane %v4579_v13, 10  ;;  %v1476_v54 = vrot.slane %v249_v15, 6  ;;  %v1480_v30 = vrot.slane %v4599_v4, 6  ;;  %v252_v31 = vld [vmem:[%s4153_s28 + $0xd4] sm:$0xf] }
  0x46   : > { %5198 = vst [vmem:[#allocation8_spill] sm:$0xff] %v4550_v42  ;;  %v1483_v7 = vrot.slane %v252_v31, 6 }
  0x47   : > { %3468 = vmatmul.mubr.msk.bf16.gmra.mrb[20].mxu1 %vm485_vm3, %v4401_v18  ;;  %v4542_v18 = vld [vmem:[%s4153_s28 + $0xbc] sm:$0xf]  ;;  %v1474_v44 = vsel %vm4146_vm2, %v3110_v61, %v1473_v53  ;;  %v1475_v19 = vrot.slane %v1473_v53, 4  ;;  %v1482_v53 = vrot.slane %v1480_v30, 4 }
  0x48   : > { %3471 = vmatprep.mubr.msk.bf16.mxu1 %vm485_vm3, %v4514_v20  ;;  %v433_v5 = vrot.slane %v4542_v18, 6 }
  0x4a   : > { %3622 = vmatmul.mubr.msk.bf16.gmra.mrb[4].mxu0 %vm485_vm3, %v4522_v58  ;;  %v434_v36 = vsel %vm4146_vm2, %v432_v37, %v433_v5  ;;  %v3111_v37 = vrot.slane %v4606_v49, 10  ;;  %v1477_v5 = vsel %vm4146_vm2, %v1475_v19, %v1476_v54  ;;  %v4633_v54 = vld [vmem:[%s5173_s1 + $0x6] sm:$0x3] }
  0x4b   : > { %3625 = vmatprep.mubr.msk.bf16.mxu0 %vm485_vm3, %v4528_v14  ;;  %v4573_v60 = vcombine.low %v431_v22, %v434_v36  ;;  %v1042_v22 = vsel %vm320_vm0, %v4252_v57, 0  ;;  %v4618_v36 = vld [vmem:[%s4153_s28 + $0xdc] sm:$0xf]  ;;  %v4623_v61 = vcombine.low %v1474_v44, %v1477_v5  ;;  %v5202_v44 = vcombine.low %v4182_v23, %v4185_v24 }
  0x4c   : > { %v1481_v19 = vsel %vm4146_vm2, %v3111_v37, %v1480_v30  ;;  %v1484_v5 = vsel %vm4146_vm2, %v1482_v53, %v1483_v7  ;;  %v256_v30 = vld [vmem:[%s4153_s28 + $0xe4] sm:$0xf] }
  0x4d   : > { %5199 = vst [vmem:[#allocation9_spill] sm:$0xff] %v4573_v60  ;;  %5201 = vst [vmem:[#allocation10_spill] sm:$0xff] %v4623_v61  ;;  %v5203_v61 = vcombine.low %v4217_v40, %v4225_v45 }
  0x4f   : > { %3472 = vmatmul.mubr.msk.bf16.gmra.mrb[24].mxu1 %vm485_vm3, %v4548_v38  ;;  %v4654_v38 = vld [vmem:[%s4153_s28 + $0xe8] sm:$0xf] }
  0x50   : > { %3475 = vmatprep.mubr.msk.bf16.mxu1 %vm485_vm3, %v4550_v42  ;;  %v1487_v42 = vrot.slane %v4618_v36, 6 }
  0x52   : > { %3626 = vmatmul.mubr.msk.bf16.gmra.mrb[8].mxu0 %vm485_vm3, %v4555_v43  ;;  %v1489_v7 = vrot.slane %v1487_v42, 4 }
  0x53   : > { %3629 = vmatprep.mubr.msk.bf16.mxu0 %vm485_vm3, %v4561_v11 }
  0x57   : > { %3476 = vmatmul.mubr.msk.bf16.gmra.mrb[28].mxu1 %vm485_vm3, %v4573_v60  ;;  %v4627_v60 = vcombine.low %v4424_v33, %v4499_v39  ;;  %v4642_v33 = vcombine.low %v4433_v16, %v4510_v56  ;;  %v255_v39 = vld [vmem:[%s4153_s28 + $0xe0] sm:$0xf]  ;;  %v1494_v16 = vrot.slane %v4654_v38, 6  ;;  %v258_v56 = vld [vmem:[%s4153_s28 + $0xec] sm:$0xf] }
  0x58   : > { %3481 = vmatprep.mubr.msk.bf16.mxu1 %vm485_vm3, %v5200_v34  ;;  %v4621_v34 = vld [vmem:[%s4153_s28 + $0xd8] sm:$0xf]  ;;  %v1490_v23 = vrot.slane %v255_v39, 6  ;;  %v1497_v37 = vrot.slane %v258_v56, 6 }
  0x59   : > { %v3112_v57 = vrot.slane %v4621_v34, 10 }
  0x5a   : > { %3630 = vmatmul.mubr.msk.bf16.gmra.mrb[12].mxu0 %vm485_vm3, %v4583_v26 }
  0x5b   : > { %3633 = vmatprep.mubr.msk.bf16.mxu0 %vm485_vm3, %v4591_v47  ;;  %v1488_v40 = vsel %vm4146_vm2, %v3112_v57, %v1487_v42  ;;  %v4682_v42 = vcombine.low %v4576_v2, %v249_v15  ;;  %v2228_v15 = vsel %vm320_vm0, %v4505_v51, 0  ;;  %v4755_v51 = vcombine.low %v4579_v13, %v4576_v2 }
  0x5c   : > { %v5207_v2 = vcombine.low %v4185_v24, %v4188_v25  ;;  %v259_v24 = vld [vmem:[%s4153_s28 + $0xf0] sm:$0xf]  ;;  %v4791_v25 = vld [vmem:[%s4153_s28 + $0xf4] sm:$0xf]  ;;  %v4794_v13 = vcombine.low %v256_v30, %v4654_v38 }
  0x5f   : > { %3482 = vmatmul.mubr.msk.bf16.vlgmr.msra.gmra.mrb[0].mxu1 %vm485_vm3, %v5202_v44  ;;  %v4656_v44 = vcombine.low %v1481_v19, %v1484_v5  ;;  %v1496_v19 = vrot.slane %v1494_v16, 4  ;;  %v4675_v5 = vcombine.low %v4453_v35, %v4542_v18  ;;  %v4702_v18 = vcombine.low %v4618_v36, %v255_v39 }
  0x60   : > { %3514 = vmatpush3.bf16.msra.mxu1 %v1042_v22  ;;  %3485 = vmatprep.mubr.msk.bf16.mxu1 %vm485_vm3, %v5203_v61  ;;  %v3113_v22 = vrot.slane %v256_v30, 10  ;;  %v1491_v61 = vsel %vm4146_vm2, %v1489_v7, %v1490_v23  ;;  %v4711_v35 = vcombine.low %v4654_v38, %v258_v56  ;;  %v5206_v39 = vcombine.low %v4159_v8, %v4162_v9  ;;  %v4810_v38 = vld [vmem:[%s4153_s28 + $0x100] sm:$0xf]  ;;  %v5214_v30 = vld [vmem:[#allocation7_spill] sm:$0xff]  ;;  %v5215_v7 = vld [vmem:[#allocation8_spill] sm:$0xff] }
  0x61   : > { %5204 = vst [vmem:[#allocation11_spill] sm:$0xff] %v4656_v44  ;;  %4012 = vmatprep.subr.msk.bf16.mxu1 %vm320_vm0, %v4633_v54  ;;  %v4671_v53 = vcombine.low %v1488_v40, %v1491_v61  ;;  %v5205_v44 = vcombine.low %v4260_v62, %v4263_v63  ;;  %v1498_v23 = vsel %vm4146_vm2, %v1496_v19, %v1497_v37  ;;  %v5213_v56 = vld [vmem:[#allocation6_spill] sm:$0xff]  ;;  %v5216_v37 = vld [vmem:[#allocation9_spill] sm:$0xff]  ;;  %v2175_v61 = vrot.slane %v4791_v25, 6 }
  0x62   : > { %3634 = vmatmul.mubr.msk.bf16.gmra.mrb[16].mxu0 %vm485_vm3, %v4627_v60  ;;  %v1495_v57 = vsel %vm4146_vm2, %v3113_v22, %v1494_v16  ;;  %v4697_v62 = vcombine.low %v4599_v4, %v252_v31  ;;  %v3202_v31 = vld [vmem:[%s5173_s1 + $0x10] sm:$0x3]  ;;  %v4769_v16 = vcombine.low %v4606_v49, %v4599_v4  ;;  %v4777_v8 = vcombine.low %v4621_v34, %v4618_v36  ;;  %v4813_v4 = vld [vmem:[%s4153_s28 + $0x108] sm:$0xf]  ;;  %v4829_v49 = vld [vmem:[%s4153_s28 + $0x114] sm:$0xf] }
  0x63   : > { %3637 = vmatprep.mubr.msk.bf16.mxu0 %vm485_vm3, %v4642_v33  ;;  %v4690_v40 = vcombine.low %v1495_v57, %v1498_v23  ;;  %v5208_v9 = vcombine.low %v4225_v45, %v4228_v46  ;;  %v5209_v45 = vcombine.low %v4263_v63, %v4270_v10  ;;  %v4807_v46 = vld [vmem:[%s4153_s28 + $0xfc] sm:$0xf]  ;;  %v4816_v63 = vld [vmem:[%s4153_s28 + $0x10c] sm:$0xf]  ;;  %v4832_v36 = vld [vmem:[%s4153_s28 + $0x118] sm:$0xf] }
  0x64   : > { %v3158_v10 = vcombine.low %v4807_v46, %v4810_v38  ;;  %v3160_v34 = vcombine.low %v4829_v49, %v4832_v36  ;;  %v5217_v22 = vld [vmem:[#allocation10_spill] sm:$0xff]  ;;  %v4878_v19 = vld [vmem:[%s4153_s28 + $0xf8] sm:$0xf]  ;;  %v3177_v57 = vrot.slane %v259_v24, 10 }
  0x65   : > { %v5218_v23 = vld [vmem:[#allocation2_spill] sm:$0xff]  ;;  %v3203_v6 = vcombine.low %v4791_v25, %v4878_v19 }
  0x67   : > { %3486 = vmatmul.mubr.msk.bf16.gmra.mrb[4].mxu1 %vm485_vm3, %v5205_v44  ;;  %v1272_v44 = vsel %vm320_vm0, %v4633_v54, 0  ;;  %v5211_v54 = vld [vmem:[#allocation4_spill] sm:$0xff] }
  0x68   : > { %3489 = vmatprep.mubr.msk.bf16.mxu1 %vm485_vm3, %v4195_v28 }
  0x6a   : > { %3638 = vmatmul.mubr.msk.bf16.gmra.mrb[20].mxu0 %vm485_vm3, %v4675_v5 }
  0x6b   : > { %3641 = vmatprep.mubr.msk.bf16.mxu0 %vm485_vm3, %v4682_v42 }
  0x6f   : > { %3490 = vmatmul.mubr.msk.bf16.gmra.mrb[8].mxu1 %vm485_vm3, %v4408_v48 }
  0x70   : > { %3493 = vmatprep.mubr.msk.bf16.mxu1 %vm485_vm3, %v4417_v55 }
  0x72   : > { %3642 = vmatmul.mubr.msk.bf16.gmra.mrb[24].mxu0 %vm485_vm3, %v4697_v62 }
  0x73   : > { %3645 = vmatprep.mubr.msk.bf16.mxu0 %vm485_vm3, %v4702_v18 }
  0x77   : > { %3494 = vmatmul.mubr.msk.bf16.gmra.mrb[12].mxu1 %vm485_vm3, %v4428_v32 }
  0x78   : > { %3497 = vmatprep.mubr.msk.bf16.mxu1 %vm485_vm3, %v4437_v50 }
  0x7a   : > { %3646 = vmatmul.mubr.msk.bf16.gmra.mrb[28].mxu0 %vm485_vm3, %v4711_v35 }
  0x7b   : > { %3651 = vmatprep.mubr.msk.bf16.mxu0 %vm485_vm3, %v4437_v50 }
  0x7f   : > { %3498 = vmatmul.mubr.msk.bf16.gmra.mrb[16].mxu1 %vm485_vm3, %v4441_v27 }
  0x80   : > { %3501 = vmatprep.mubr.msk.bf16.mxu1 %vm485_vm3, %v4444_v17 }
  0x82   : > { %3652 = vmatmul.mubr.msk.bf16.vlgmr.msra.gmra.mrb[0].mxu0 %vm485_vm3, %v4441_v27 }
  0x83   : > { %3684 = vmatpush3.bf16.msra.mxu0 %v2228_v15  ;;  %3655 = vmatprep.mubr.msk.bf16.mxu0 %vm485_vm3, %v4444_v17  ;;  %v2178_v15 = vrot.slane %v4878_v19, 6 }
  0x84   : > { %4018 = vmatprep.subr.msk.bf16.mxu0 %vm320_vm0, %v3202_v31 }
  0x87   : > { %3502 = vmatmul.mubr.msk.bf16.gmra.mrb[20].mxu1 %vm485_vm3, %v4456_v21 }
  0x88   : > { %3505 = vmatprep.mubr.msk.bf16.mxu1 %vm485_vm3, %v4459_v41 }
  0x8a   : > { %3656 = vmatmul.mubr.msk.bf16.gmra.mrb[4].mxu0 %vm485_vm3, %v4456_v21 }
  0x8b   : > { %3659 = vmatprep.mubr.msk.bf16.mxu0 %vm485_vm3, %v4459_v41 }
  0x8f   : > { %3506 = vmatmul.mubr.msk.bf16.gmra.mrb[24].mxu1 %vm485_vm3, %v4462_v59 }
  0x90   : > { %3509 = vmatprep.mubr.msk.bf16.mxu1 %vm485_vm3, %v4465_v12 }
  0x92   : > { %3660 = vmatmul.mubr.msk.bf16.gmra.mrb[8].mxu0 %vm485_vm3, %v4462_v59 }
  0x93   : > { %3663 = vmatprep.mubr.msk.bf16.mxu0 %vm485_vm3, %v4465_v12 }
  0x97   : > { %3510 = vmatmul.mubr.msk.bf16.gmra.mrb[28].mxu1 %vm485_vm3, %v4470_v29 }
  0x98   : > { %3515 = vmatprep.mubr.msk.bf16.mxu1 %vm485_vm3, %v5206_v39  ;;  %v2182_v39 = vrot.slane %v4810_v38, 6 }
  0x9a   : > { %3664 = vmatmul.mubr.msk.bf16.gmra.mrb[12].mxu0 %vm485_vm3, %v4470_v29 }
  0x9b   : > { %3667 = vmatprep.mubr.msk.bf16.mxu0 %vm485_vm3, %v4755_v51 }
  0x9f   : > { %3516 = vmatmul.mubr.msk.bf16.vlgmr.msra.gmra.mrb[0].mxu1 %vm485_vm3, %v5207_v2 }
  0xa0   : > { %3548 = vmatpush3.bf16.msra.mxu1 %v1272_v44  ;;  %3519 = vmatprep.mubr.msk.bf16.mxu1 %vm485_vm3, %v5208_v9  ;;  %v2189_v44 = vrot.slane %v4816_v63, 6  ;;  %v4900_v9 = vld [vmem:[%s4153_s28 + $0x110] sm:$0xf] }
  0xa1   : > { %4014 = vmatprep.subr.msk.bf16.mxu1 %vm320_vm0, %v4123_v1  ;;  %v3157_v1 = vcombine.low %v259_v24, %v4791_v25  ;;  %v3178_v24 = vrot.slane %v4807_v46, 10  ;;  %v2196_v46 = vrot.slane %v4832_v36, 6 }
  0xa2   : > { %3668 = vmatmul.mubr.msk.bf16.gmra.mrb[16].mxu0 %vm485_vm3, %v4769_v16 }
  0xa3   : > { %3671 = vmatprep.mubr.msk.bf16.mxu0 %vm485_vm3, %v4777_v8 }
  0xa7   : > { %3520 = vmatmul.mubr.msk.bf16.gmra.mrb[4].mxu1 %vm485_vm3, %v5209_v45 }
  0xa8   : > { %3523 = vmatprep.mubr.msk.bf16.mxu1 %vm485_vm3, %v4413_v52  ;;  %v3159_v52 = vcombine.low %v4813_v4, %v4816_v63 }
  0xaa   : > { %3672 = vmatmul.mubr.msk.bf16.gmra.mrb[20].mxu0 %vm485_vm3, %v4794_v13 }
  0xab   : > { %3675 = vmatprep.mubr.msk.bf16.mxu0 %vm485_vm3, %v3157_v1  ;;  %v2184_v1 = vrot.slane %v2182_v39, 4 }
  0xaf   : > { %3524 = vmatmul.mubr.msk.bf16.gmra.mrb[8].mxu1 %vm485_vm3, %v4481_v3  ;;  %v5210_v3 = vld [vmem:[#allocation3_spill] sm:$0xff] }
  0xb0   : > { %3527 = vmatprep.mubr.msk.bf16.mxu1 %vm485_vm3, %v4487_v0  ;;  %v2446_v0 = vsel %vm320_vm0, %v3202_v31, 0  ;;  %v5219_v31 = vld [vmem:[#allocation11_spill] sm:$0xff] }
  0xb2   : > { %3676 = vmatmul.mubr.msk.bf16.gmra.mrb[24].mxu0 %vm485_vm3, %v3158_v10 }
  0xb3   : > { %3679 = vmatprep.mubr.msk.bf16.mxu0 %vm485_vm3, %v3159_v52  ;;  %v3179_v52 = vrot.slane %v4813_v4, 10 }
  0xb5   : > { %v2190_v4 = vsel %vm4146_vm2, %v3179_v52, %v2189_v44 }
  0xb7   : > { %3528 = vmatmul.mubr.msk.bf16.gmra.mrb[12].mxu1 %vm485_vm3, %v4522_v58  ;;  %v5212_v58 = vld [vmem:[#allocation5_spill] sm:$0xff] }
  0xb8   : > { %3531 = vmatprep.mubr.msk.bf16.mxu1 %vm485_vm3, %v4528_v14 }
  0xba   : > { %3680 = vmatmul.mubr.msk.bf16.gmra.mrb[28].mxu0 %vm485_vm3, %v3160_v34  ;;  %v2191_v34 = vrot.slane %v2189_v44, 4 }
  0xbb   : > { %3685 = vmatprep.mubr.msk.bf16.mxu0 %vm485_vm3, %v5210_v3  ;;  %v2192_v3 = vrot.slane %v4900_v9, 6 }
  0xbf   : > { %3532 = vmatmul.mubr.msk.bf16.gmra.mrb[16].mxu1 %vm485_vm3, %v4555_v43 }
  0xc0   : > { %3535 = vmatprep.mubr.msk.bf16.mxu1 %vm485_vm3, %v4561_v11 }
  0xc2   : > { %3686 = vmatmul.mubr.msk.bf16.vlgmr.msra.gmra.mrb[0].mxu0 %vm485_vm3, %v5211_v54  ;;  %v270_v54 = vld [vmem:[%s4153_s28 + $0x11c] sm:$0xf] }
  0xc3   : > { %3718 = vmatpush3.bf16.msra.mxu0 %v2446_v0  ;;  %3689 = vmatprep.mubr.msk.bf16.mxu0 %vm485_vm3, %v5212_v58 }
  0xc7   : > { %3536 = vmatmul.mubr.msk.bf16.gmra.mrb[20].mxu1 %vm485_vm3, %v4583_v26 }
  0xc8   : > { %3539 = vmatprep.mubr.msk.bf16.mxu1 %vm485_vm3, %v4591_v47 }
  0xca   : > { %3690 = vmatmul.mubr.msk.bf16.gmra.mrb[4].mxu0 %vm485_vm3, %v5213_v56  ;;  %v3180_v56 = vrot.slane %v4829_v49, 10 }
  0xcb   : > { %3693 = vmatprep.mubr.msk.bf16.mxu0 %vm485_vm3, %v4514_v20 }
  0xcf   : > { %3540 = vmatmul.mubr.msk.bf16.gmra.mrb[24].mxu1 %vm485_vm3, %v4627_v60 }
  0xd0   : > { %3543 = vmatprep.mubr.msk.bf16.mxu1 %vm485_vm3, %v4642_v33 }
  0xd2   : > { %3694 = vmatmul.mubr.msk.bf16.gmra.mrb[8].mxu0 %vm485_vm3, %v5214_v30 }
  0xd3   : > { %3697 = vmatprep.mubr.msk.bf16.mxu0 %vm485_vm3, %v5215_v7 }
  0xd7   : > { %3544 = vmatmul.mubr.msk.bf16.gmra.mrb[28].mxu1 %vm485_vm3, %v4675_v5 }
  0xd8   : > { %3549 = vmatprep.mubr.msk.bf16.mxu1 %vm485_vm3, %v4195_v28  ;;  %v2177_v28 = vrot.slane %v2175_v61, 4 }
  0xda   : > { %3698 = vmatmul.mubr.msk.bf16.gmra.mrb[12].mxu0 %vm485_vm3, %v5216_v37  ;;  %v2179_v2 = vsel %vm4146_vm2, %v2177_v28, %v2178_v15  ;;  %v2197_v28 = vsel %vm4146_vm2, %v3180_v56, %v2196_v46 }
  0xdb   : > { %3701 = vmatprep.mubr.msk.bf16.mxu0 %vm485_vm3, %v5217_v22 }
  0xdf   : > { %3550 = vmatmul.mubr.msk.bf16.vlgmr.msra.gmra.mrb[0].mxu1 %vm485_vm3, %v4408_v48  ;;  %v2176_v48 = vsel %vm4146_vm2, %v3177_v57, %v2175_v61  ;;  %v2198_v57 = vrot.slane %v2196_v46, 4 }
  0xe0   : > { %3752 = vmatpush3.bf16.msra.mxu1 %v5218_v23  ;;  %3553 = vmatprep.mubr.msk.bf16.mxu1 %vm485_vm3, %v4417_v55  ;;  %v4897_v55 = vld [vmem:[%s4153_s28 + $0x104] sm:$0xf]  ;;  %v3182_v45 = vcombine.low %v2176_v48, %v2179_v2  ;;  %v2199_v23 = vrot.slane %v270_v54, 6 }
  0xe1   : > { %v2185_v10 = vrot.slane %v4897_v55, 6 }
  0xe2   : > { %3702 = vmatmul.mubr.msk.bf16.gmra.mrb[16].mxu0 %vm485_vm3, %v5219_v31  ;;  %v2200_v15 = vsel %vm4146_vm2, %v2198_v57, %v2199_v23 }
  0xe3   : > { %3705 = vmatprep.mubr.msk.bf16.mxu0 %vm485_vm3, %v4671_v53  ;;  %v2186_v0 = vsel %vm4146_vm2, %v2184_v1, %v2185_v10  ;;  %v3185_v49 = vcombine.low %v2197_v28, %v2200_v15 }
  0xe7   : > { %3554 = vmatmul.mubr.msk.bf16.gmra.mrb[4].mxu1 %vm485_vm3, %v4428_v32  ;;  %v2183_v32 = vsel %vm4146_vm2, %v3178_v24, %v2182_v39 }
  0xe8   : > { %3557 = vmatprep.mubr.msk.bf16.mxu1 %vm485_vm3, %v4437_v50  ;;  %v2193_v50 = vsel %vm4146_vm2, %v2191_v34, %v2192_v3  ;;  %v3183_v58 = vcombine.low %v2183_v32, %v2186_v0 }
  0xe9   : > { %v3184_v61 = vcombine.low %v2190_v4, %v2193_v50 }
  0xea   : > { %3706 = vmatmul.mubr.msk.bf16.gmra.mrb[20].mxu0 %vm485_vm3, %v4690_v40 }
  0xeb   : > { %3709 = vmatprep.mubr.msk.bf16.mxu0 %vm485_vm3, %v3182_v45 }
  0xef   : > { %3558 = vmatmul.mubr.msk.bf16.gmra.mrb[8].mxu1 %vm485_vm3, %v4441_v27  ;;  %v3204_v27 = vcombine.low %v4810_v38, %v4897_v55 }
  0xf0   : > { %3561 = vmatprep.mubr.msk.bf16.mxu1 %vm485_vm3, %v4444_v17  ;;  %v3205_v17 = vcombine.low %v4816_v63, %v4900_v9 }
  0xf2   : > { %3710 = vmatmul.mubr.msk.bf16.gmra.mrb[24].mxu0 %vm485_vm3, %v3183_v58 }
  0xf3   : > { %3713 = vmatprep.mubr.msk.bf16.mxu0 %vm485_vm3, %v3184_v61 }
  0xf7   : > { %3562 = vmatmul.mubr.msk.bf16.gmra.mrb[12].mxu1 %vm485_vm3, %v4456_v21  ;;  %v3206_v21 = vcombine.low %v4832_v36, %v270_v54 }
  0xf8   : > { %3565 = vmatprep.mubr.msk.bf16.mxu1 %vm485_vm3, %v4459_v41 }
  0xfa   : > { %3714 = vmatmul.mubr.msk.bf16.gmra.mrb[28].mxu0 %vm485_vm3, %v3185_v49 }
  0xfb   : > { %3719 = vmatprep.mubr.msk.bf16.mxu0 %vm485_vm3, %v4528_v14 }
  0xff   : > { %3566 = vmatmul.mubr.msk.bf16.gmra.mrb[16].mxu1 %vm485_vm3, %v4462_v59 }
 0x100   : > { %3569 = vmatprep.mubr.msk.bf16.mxu1 %vm485_vm3, %v4465_v12 }
 0x102   : > { %3720 = vmatmul.mubr.msk.bf16.vlgmr.msra.gmra.mrb[0].mxu0 %vm485_vm3, %v4555_v43 }
 0x103   : > { %3723 = vmatprep.mubr.msk.bf16.mxu0 %vm485_vm3, %v4561_v11 }
 0x107   : > { %3570 = vmatmul.mubr.msk.bf16.gmra.mrb[20].mxu1 %vm485_vm3, %v4470_v29 }
 0x108   : > { %3573 = vmatprep.mubr.msk.bf16.mxu1 %vm485_vm3, %v4755_v51 }
 0x10a   : > { %3724 = vmatmul.mubr.msk.bf16.gmra.mrb[4].mxu0 %vm485_vm3, %v4583_v26 }
 0x10b   : > { %3727 = vmatprep.mubr.msk.bf16.mxu0 %vm485_vm3, %v4591_v47 }
 0x10f   : > { %3574 = vmatmul.mubr.msk.bf16.gmra.mrb[24].mxu1 %vm485_vm3, %v4769_v16  ;;  %v5026_v16 = vld [vmem:[%s5175_s3] ss:$0 sm:$0xff] }
 0x110   : > { %3577 = vmatprep.mubr.msk.bf16.mxu1 %vm485_vm3, %v4777_v8 }
 0x112   : > { %3728 = vmatmul.mubr.msk.bf16.gmra.mrb[8].mxu0 %vm485_vm3, %v4627_v60 }
 0x113   : > { %3731 = vmatprep.mubr.msk.bf16.mxu0 %vm485_vm3, %v4642_v33 }
 0x117   : > { %3578 = vmatmul.mubr.msk.bf16.gmra.mrb[28].mxu1 %vm485_vm3, %v4794_v13 }
 0x118   : > { %3599 = vmatprep.mubr.msk.bf16.mxu1 %vm485_vm3, %v4514_v20 }
 0x11a   : > { %3732 = vmatmul.mubr.msk.bf16.gmra.mrb[12].mxu0 %vm485_vm3, %v4675_v5 }
 0x11b   : > { %3735 = vmatprep.mubr.msk.bf16.mxu0 %vm485_vm3, %v4682_v42 }
 0x11f   : > { %3600 = vmatmul.mubr.msk.bf16.vlgmr.msra.gmra.mrb[16].mxu1 %vm485_vm3, %v5214_v30 }
 0x120   : > { %3603 = vmatprep.mubr.msk.bf16.mxu1 %vm485_vm3, %v5215_v7 }
 0x122   : > { %3736 = vmatmul.mubr.msk.bf16.gmra.mrb[16].mxu0 %vm485_vm3, %v4697_v62 }
 0x123   : > { %3739 = vmatprep.mubr.msk.bf16.mxu0 %vm485_vm3, %v4702_v18  ;;  %v5021_v18 = vld [vmem:[%s5174_s2] ss:$0 sm:$0xff] }
 0x127   : > { %3604 = vmatmul.mubr.msk.bf16.gmra.mrb[20].mxu1 %vm485_vm3, %v5216_v37 }
 0x128   : > { %3607 = vmatprep.mubr.msk.bf16.mxu1 %vm485_vm3, %v5217_v22 }
 0x12a   : > { %3740 = vmatmul.mubr.msk.bf16.gmra.mrb[20].mxu0 %vm485_vm3, %v4711_v35 }
 0x12b   : > { %3743 = vmatprep.mubr.msk.bf16.mxu0 %vm485_vm3, %v3203_v6 }
 0x12f   : > { %3608 = vmatmul.mubr.msk.bf16.gmra.mrb[24].mxu1 %vm485_vm3, %v5219_v31 }
 0x130   : > { %3611 = vmatprep.mubr.msk.bf16.mxu1 %vm485_vm3, %v4671_v53 }
 0x132   : > { %3744 = vmatmul.mubr.msk.bf16.gmra.mrb[24].mxu0 %vm485_vm3, %v3204_v27 }
 0x133   : > { %3747 = vmatprep.mubr.msk.bf16.mxu0 %vm485_vm3, %v3205_v17 }
 0x137   : > { %3612 = vmatmul.mubr.msk.bf16.gmra.mrb[28].mxu1 %vm485_vm3, %v4690_v40 }
 0x13a   : > { %3748 = vmatmul.mubr.msk.bf16.gmra.mrb[28].mxu0 %vm485_vm3, %v3206_v21 }
 0x1b2   : > { %v3551_v41 = vpop.f32.mrb[0].mxu1 }
 0x1b3   : > { %v1308_v59 = vpop.f32.mrb[1].mxu1 }
 0x1b4   : > { %v3552_v12 = vpop.f32.mrb[2].mxu1 }
 0x1b5   : > { %v1311_v29 = vpop.f32.mrb[3].mxu1 }
 0x1ba   : > { %v3555_v20 = vpop.f32.mrb[4].mxu1 }
 0x1bb   : > { %v1324_v14 = vpop.f32.mrb[5].mxu1 }
 0x1bc   : > { %v3556_v43 = vpop.f32.mrb[6].mxu1 }
 0x1bd   : > { %v1327_v11 = vpop.f32.mrb[7].mxu1 }
 0x1c2   : > { %v3559_v60 = vpop.f32.mrb[8].mxu1 }
 0x1c3   : > { %v5004_v26 = vpop.f32.mrb[9].mxu1 }
 0x1c4   : > { %v5006_v47 = vpop.f32.mrb[10].mxu1 }
 0x1c5   : > { %v5008_v33 = vpop.f32.mrb[11].mxu1 }
 0x1ca   : > { %v5010_v53 = vpop.f32.mrb[12].mxu1 }
 0x1cb   : > { %v5012_v5 = vpop.f32.mrb[13].mxu1 }
 0x1cc   : > { %v5014_v42 = vpop.f32.mrb[14].mxu1 }
 0x1cd   : > { %v5016_v40 = vpop.f32.mrb[15].mxu1 }
 0x1d5   : > { %v3721_v62 = vpop.f32.mrb[0].mxu0 }
 0x1d6   : > { %v3753_v35 = vadd.f32 %v3721_v62, %v3551_v41  ;;  %v2482_v51 = vpop.f32.mrb[1].mxu0 }
 0x1d7   : > { %v3754_v8 = vadd.f32 %v2482_v51, %v1308_v59  ;;  %v3722_v25 = vpop.f32.mrb[2].mxu0 }
 0x1d8   : > { %v2650_v13 = vmul.f32 %v3753_v35, %v5021_v18  ;;  %v3755_v38 = vadd.f32 %v3722_v25, %v3552_v12  ;;  %v2485_v63 = vpop.f32.mrb[3].mxu0 }
 0x1d9   : > { %v2648_v36 = vmul.f32 %v3754_v8, %v5021_v18  ;;  %v3756_v30 = vadd.f32 %v2485_v63, %v1311_v29 }
 0x1da   : > { %v2689_v7 = vadd.f32 %v5026_v16, %v2650_v13  ;;  %v2651_v37 = vmul.f32 %v3755_v38, %v5021_v18 }
 0x1db   : > { %v2687_v22 = vadd.f32 %v5026_v16, %v2648_v36  ;;  %v2649_v19 = vmul.f32 %v3756_v30, %v5021_v18 }
 0x1dc   : > { %v2721_v31 = vmax.f32 %v2689_v7, 0.0  ;;  %v2690_v39 = vadd.f32 %v5026_v16, %v2651_v37 }
 0x1dd   : > { %v2719_v44 = vmax.f32 %v2687_v22, 0.0  ;;  %v2688_v48 = vadd.f32 %v5026_v16, %v2649_v19  ;;  %v3725_v2 = vpop.f32.mrb[4].mxu0 }
 0x1de   : > { %v3262_v55 = vpack.c.bf16 %v2721_v31, %v2721_v31  ;;  %v2722_v9 = vmax.f32 %v2690_v39, 0.0  ;;  %v3757_v24 = vadd.f32 %v3725_v2, %v3555_v20  ;;  %v2498_v45 = vpop.f32.mrb[5].mxu0 }
 0x1df   : > { %v3260_v1 = vpack.c.bf16 %v2719_v44, %v2719_v44  ;;  %v2720_v10 = vmax.f32 %v2688_v48, 0.0  ;;  %v3758_v52 = vadd.f32 %v2498_v45, %v1324_v14  ;;  %v3726_v34 = vpop.f32.mrb[6].mxu0 }
 0x1e0   : > { %2882 = vst.msk [vmem:[%s5039_s22 + $0x8] sm:$0xf] %vm2879_vm4, %v3262_v55  ;;  %v3263_v3 = vpack.c.bf16 %v2722_v9, %v2722_v9  ;;  %v2654_v46 = vmul.f32 %v3757_v24, %v5021_v18  ;;  %v3759_v32 = vadd.f32 %v3726_v34, %v3556_v43  ;;  %v2501_v0 = vpop.f32.mrb[7].mxu0 }
 0x1e1   : > { %2880 = vst.msk [vmem:[%s5039_s22] sm:$0xf] %vm2879_vm4, %v3260_v1  ;;  %v3261_v4 = vpack.c.bf16 %v2720_v10, %v2720_v10  ;;  %v2652_v50 = vmul.f32 %v3758_v52, %v5021_v18  ;;  %v3760_v54 = vadd.f32 %v2501_v0, %v1327_v11 }
 0x1e2   : > { %2883 = vst.msk [vmem:[%s5039_s22 + $0xc] sm:$0xf] %vm2879_vm4, %v3263_v3  ;;  %v2693_v58 = vadd.f32 %v5026_v16, %v2654_v46  ;;  %v2655_v56 = vmul.f32 %v3759_v32, %v5021_v18 }
 0x1e3   : > { %2881 = vst.msk [vmem:[%s5039_s22 + $0x4] sm:$0xf] %vm2879_vm4, %v3261_v4  ;;  %v2691_v61 = vadd.f32 %v5026_v16, %v2652_v50  ;;  %v2653_v57 = vmul.f32 %v3760_v54, %v5021_v18 }
 0x1e4   : > { %v2725_v23 = vmax.f32 %v2693_v58, 0.0  ;;  %v2694_v28 = vadd.f32 %v5026_v16, %v2655_v56 }
 0x1e5   : > { %v2723_v15 = vmax.f32 %v2691_v61, 0.0  ;;  %v2692_v49 = vadd.f32 %v5026_v16, %v2653_v57  ;;  %v3729_v6 = vpop.f32.mrb[8].mxu0 }
 0x1e6   : > { %v3266_v27 = vpack.c.bf16 %v2725_v23, %v2725_v23  ;;  %v2726_v17 = vmax.f32 %v2694_v28, 0.0  ;;  %v3761_v21 = vadd.f32 %v3729_v6, %v3559_v60  ;;  %v2514_v41 = vpop.f32.mrb[9].mxu0 }
 0x1e7   : > { %v3264_v59 = vpack.c.bf16 %v2723_v15, %v2723_v15  ;;  %v2724_v12 = vmax.f32 %v2692_v49, 0.0  ;;  %v3762_v29 = vadd.f32 %v2514_v41, %v5004_v26  ;;  %v3730_v20 = vpop.f32.mrb[10].mxu0 }
 0x1e8   : > { %2886 = vst.msk [vmem:[%s5039_s22 + $0x18] sm:$0xf] %vm2879_vm4, %v3266_v27  ;;  %v3267_v14 = vpack.c.bf16 %v2726_v17, %v2726_v17  ;;  %v2658_v43 = vmul.f32 %v3761_v21, %v5021_v18  ;;  %v3763_v11 = vadd.f32 %v3730_v20, %v5006_v47  ;;  %v2517_v62 = vpop.f32.mrb[11].mxu0 }
 0x1e9   : > { %2884 = vst.msk [vmem:[%s5039_s22 + $0x10] sm:$0xf] %vm2879_vm4, %v3264_v59  ;;  %v3265_v35 = vpack.c.bf16 %v2724_v12, %v2724_v12  ;;  %v2656_v60 = vmul.f32 %v3762_v29, %v5021_v18  ;;  %v3764_v51 = vadd.f32 %v2517_v62, %v5008_v33 }
 0x1ea   : > { %2887 = vst.msk [vmem:[%s5039_s22 + $0x1c] sm:$0xf] %vm2879_vm4, %v3267_v14  ;;  %v2697_v26 = vadd.f32 %v5026_v16, %v2658_v43  ;;  %v2659_v8 = vmul.f32 %v3763_v11, %v5021_v18 }
 0x1eb   : > { %2885 = vst.msk [vmem:[%s5039_s22 + $0x14] sm:$0xf] %vm2879_vm4, %v3265_v35  ;;  %v2695_v25 = vadd.f32 %v5026_v16, %v2656_v60  ;;  %v2657_v47 = vmul.f32 %v3764_v51, %v5021_v18 }
 0x1ec   : > { %v2729_v13 = vmax.f32 %v2697_v26, 0.0  ;;  %v2698_v38 = vadd.f32 %v5026_v16, %v2659_v8 }
 0x1ed   : > { %v2727_v63 = vmax.f32 %v2695_v25, 0.0  ;;  %v2696_v33 = vadd.f32 %v5026_v16, %v2657_v47  ;;  %v3733_v36 = vpop.f32.mrb[12].mxu0 }
 0x1ee   : > { %v3270_v30 = vpack.c.bf16 %v2729_v13, %v2729_v13  ;;  %v2730_v7 = vmax.f32 %v2698_v38, 0.0  ;;  %v3765_v37 = vadd.f32 %v3733_v36, %v5010_v53  ;;  %v2530_v22 = vpop.f32.mrb[13].mxu0 }
 0x1ef   : > { %v3268_v19 = vpack.c.bf16 %v2727_v63, %v2727_v63  ;;  %v2728_v31 = vmax.f32 %v2696_v33, 0.0  ;;  %v3766_v39 = vadd.f32 %v2530_v22, %v5012_v5  ;;  %v3734_v44 = vpop.f32.mrb[14].mxu0 }
 0x1f0   : > { %2890 = vst.msk [vmem:[%s5039_s22 + $0x28] sm:$0xf] %vm2879_vm4, %v3270_v30  ;;  %v3271_v48 = vpack.c.bf16 %v2730_v7, %v2730_v7  ;;  %v2662_v2 = vmul.f32 %v3765_v37, %v5021_v18  ;;  %v3767_v55 = vadd.f32 %v3734_v44, %v5014_v42  ;;  %v2533_v9 = vpop.f32.mrb[15].mxu0 }
 0x1f1   : > { %2888 = vst.msk [vmem:[%s5039_s22 + $0x20] sm:$0xf] %vm2879_vm4, %v3268_v19  ;;  %v3269_v24 = vpack.c.bf16 %v2728_v31, %v2728_v31  ;;  %v2660_v53 = vmul.f32 %v3766_v39, %v5021_v18  ;;  %v3768_v45 = vadd.f32 %v2533_v9, %v5016_v40 }
 0x1f2   : > { %2891 = vst.msk [vmem:[%s5039_s22 + $0x2c] sm:$0xf] %vm2879_vm4, %v3271_v48  ;;  %v2701_v5 = vadd.f32 %v5026_v16, %v2662_v2  ;;  %v2663_v1 = vmul.f32 %v3767_v55, %v5021_v18  ;;  %v3601_v10 = vpop.f32.mrb[16].mxu1 }
 0x1f3   : > { %2889 = vst.msk [vmem:[%s5039_s22 + $0x24] sm:$0xf] %vm2879_vm4, %v3269_v24  ;;  %v2699_v52 = vadd.f32 %v5026_v16, %v2660_v53  ;;  %v2661_v42 = vmul.f32 %v3768_v45, %v5021_v18  ;;  %v1626_v34 = vpop.f32.mrb[17].mxu1 }
 0x1f4   : > { %v2733_v3 = vmax.f32 %v2701_v5, 0.0  ;;  %v2702_v46 = vadd.f32 %v5026_v16, %v2663_v1  ;;  %v3602_v32 = vpop.f32.mrb[18].mxu1 }
 0x1f5   : > { %v2731_v40 = vmax.f32 %v2699_v52, 0.0  ;;  %v2700_v0 = vadd.f32 %v5026_v16, %v2661_v42  ;;  %v3737_v4 = vpop.f32.mrb[16].mxu0  ;;  %v1629_v50 = vpop.f32.mrb[19].mxu1 }
 0x1f6   : > { %v3274_v54 = vpack.c.bf16 %v2733_v3, %v2733_v3  ;;  %v2734_v58 = vmax.f32 %v2702_v46, 0.0  ;;  %v3769_v56 = vadd.f32 %v3737_v4, %v3601_v10  ;;  %v2546_v61 = vpop.f32.mrb[17].mxu0 }
 0x1f7   : > { %v3272_v57 = vpack.c.bf16 %v2731_v40, %v2731_v40  ;;  %v2732_v23 = vmax.f32 %v2700_v0, 0.0  ;;  %v3770_v28 = vadd.f32 %v2546_v61, %v1626_v34  ;;  %v3738_v15 = vpop.f32.mrb[18].mxu0 }
 0x1f8   : > { %2894 = vst.msk [vmem:[%s5039_s22 + $0x38] sm:$0xf] %vm2879_vm4, %v3274_v54  ;;  %v3275_v49 = vpack.c.bf16 %v2734_v58, %v2734_v58  ;;  %v2666_v6 = vmul.f32 %v3769_v56, %v5021_v18  ;;  %v3771_v27 = vadd.f32 %v3738_v15, %v3602_v32  ;;  %v2549_v17 = vpop.f32.mrb[19].mxu0 }
 0x1f9   : > { %2892 = vst.msk [vmem:[%s5039_s22 + $0x30] sm:$0xf] %vm2879_vm4, %v3272_v57  ;;  %v3273_v21 = vpack.c.bf16 %v2732_v23, %v2732_v23  ;;  %v2664_v41 = vmul.f32 %v3770_v28, %v5021_v18  ;;  %v3772_v59 = vadd.f32 %v2549_v17, %v1629_v50 }
 0x1fa   : > { %2895 = vst.msk [vmem:[%s5039_s22 + $0x3c] sm:$0xf] %vm2879_vm4, %v3275_v49  ;;  %v2705_v12 = vadd.f32 %v5026_v16, %v2666_v6  ;;  %v2667_v29 = vmul.f32 %v3771_v27, %v5021_v18  ;;  %v3605_v20 = vpop.f32.mrb[20].mxu1 }
 0x1fb   : > { %2893 = vst.msk [vmem:[%s5039_s22 + $0x34] sm:$0xf] %vm2879_vm4, %v3273_v21  ;;  %v2703_v14 = vadd.f32 %v5026_v16, %v2664_v41  ;;  %v2665_v43 = vmul.f32 %v3772_v59, %v5021_v18  ;;  %v1642_v11 = vpop.f32.mrb[21].mxu1 }
 0x1fc   : > { %v2737_v62 = vmax.f32 %v2705_v12, 0.0  ;;  %v2706_v35 = vadd.f32 %v5026_v16, %v2667_v29  ;;  %v3606_v60 = vpop.f32.mrb[22].mxu1 }
 0x1fd   : > { %v2735_v51 = vmax.f32 %v2703_v14, 0.0  ;;  %v2704_v26 = vadd.f32 %v5026_v16, %v2665_v43  ;;  %v3741_v8 = vpop.f32.mrb[20].mxu0  ;;  %v1645_v25 = vpop.f32.mrb[23].mxu1 }
 0x1fe   : > { %v3278_v47 = vpack.c.bf16 %v2737_v62, %v2737_v62  ;;  %v2738_v13 = vmax.f32 %v2706_v35, 0.0  ;;  %v3773_v38 = vadd.f32 %v3741_v8, %v3605_v20  ;;  %v2562_v63 = vpop.f32.mrb[21].mxu0 }
 0x1ff   : > { %v3276_v33 = vpack.c.bf16 %v2735_v51, %v2735_v51  ;;  %v2736_v36 = vmax.f32 %v2704_v26, 0.0  ;;  %v3774_v30 = vadd.f32 %v2562_v63, %v1642_v11  ;;  %v3742_v7 = vpop.f32.mrb[22].mxu0 }
 0x200   : > { %2898 = vst.msk [vmem:[%s5039_s22 + $0x48] sm:$0xf] %vm2879_vm4, %v3278_v47  ;;  %v3279_v37 = vpack.c.bf16 %v2738_v13, %v2738_v13  ;;  %v2670_v22 = vmul.f32 %v3773_v38, %v5021_v18  ;;  %v3775_v19 = vadd.f32 %v3742_v7, %v3606_v60  ;;  %v2565_v31 = vpop.f32.mrb[23].mxu0 }
 0x201   : > { %2896 = vst.msk [vmem:[%s5039_s22 + $0x40] sm:$0xf] %vm2879_vm4, %v3276_v33  ;;  %v3277_v39 = vpack.c.bf16 %v2736_v36, %v2736_v36  ;;  %v2668_v44 = vmul.f32 %v3774_v30, %v5021_v18  ;;  %v3776_v48 = vadd.f32 %v2565_v31, %v1645_v25 }
 0x202   : > { %2899 = vst.msk [vmem:[%s5039_s22 + $0x4c] sm:$0xf] %vm2879_vm4, %v3279_v37  ;;  %v2709_v2 = vadd.f32 %v5026_v16, %v2670_v22  ;;  %v2671_v55 = vmul.f32 %v3775_v19, %v5021_v18  ;;  %v3609_v9 = vpop.f32.mrb[24].mxu1 }
 0x203   : > { %2897 = vst.msk [vmem:[%s5039_s22 + $0x44] sm:$0xf] %vm2879_vm4, %v3277_v39  ;;  %v2707_v24 = vadd.f32 %v5026_v16, %v2668_v44  ;;  %v2669_v53 = vmul.f32 %v3776_v48, %v5021_v18  ;;  %v1658_v45 = vpop.f32.mrb[25].mxu1 }
 0x204   : > { %v2741_v5 = vmax.f32 %v2709_v2, 0.0  ;;  %v2710_v1 = vadd.f32 %v5026_v16, %v2671_v55  ;;  %v3610_v10 = vpop.f32.mrb[26].mxu1 }
 0x205   : > { %v2739_v52 = vmax.f32 %v2707_v24, 0.0  ;;  %v2708_v42 = vadd.f32 %v5026_v16, %v2669_v53  ;;  %v3745_v34 = vpop.f32.mrb[24].mxu0  ;;  %v1661_v3 = vpop.f32.mrb[27].mxu1 }
 0x206   : > { %v3282_v46 = vpack.c.bf16 %v2741_v5, %v2741_v5  ;;  %v2742_v32 = vmax.f32 %v2710_v1, 0.0  ;;  %v3777_v40 = vadd.f32 %v3745_v34, %v3609_v9  ;;  %v2578_v0 = vpop.f32.mrb[25].mxu0 }
 0x207   : > { %v3280_v4 = vpack.c.bf16 %v2739_v52, %v2739_v52  ;;  %v2740_v50 = vmax.f32 %v2708_v42, 0.0  ;;  %v3778_v54 = vadd.f32 %v2578_v0, %v1658_v45  ;;  %v3746_v58 = vpop.f32.mrb[26].mxu0 }
 0x208   : > { %2902 = vst.msk [vmem:[%s5039_s22 + $0x58] sm:$0xf] %vm2879_vm4, %v3282_v46  ;;  %v3283_v56 = vpack.c.bf16 %v2742_v32, %v2742_v32  ;;  %v2674_v61 = vmul.f32 %v3777_v40, %v5021_v18  ;;  %v3779_v57 = vadd.f32 %v3746_v58, %v3610_v10  ;;  %v2581_v23 = vpop.f32.mrb[27].mxu0 }
 0x209   : > { %2900 = vst.msk [vmem:[%s5039_s22 + $0x50] sm:$0xf] %vm2879_vm4, %v3280_v4  ;;  %v3281_v28 = vpack.c.bf16 %v2740_v50, %v2740_v50  ;;  %v2672_v15 = vmul.f32 %v3778_v54, %v5021_v18  ;;  %v3780_v49 = vadd.f32 %v2581_v23, %v1661_v3 }
 0x20a   : > { %2903 = vst.msk [vmem:[%s5039_s22 + $0x5c] sm:$0xf] %vm2879_vm4, %v3283_v56  ;;  %v2713_v6 = vadd.f32 %v5026_v16, %v2674_v61  ;;  %v2675_v27 = vmul.f32 %v3779_v57, %v5021_v18  ;;  %v3613_v17 = vpop.f32.mrb[28].mxu1 }
 0x20b   : > { %2901 = vst.msk [vmem:[%s5039_s22 + $0x54] sm:$0xf] %vm2879_vm4, %v3281_v28  ;;  %v2711_v21 = vadd.f32 %v5026_v16, %v2672_v15  ;;  %v2673_v41 = vmul.f32 %v3780_v49, %v5021_v18  ;;  %v1674_v59 = vpop.f32.mrb[29].mxu1 }
 0x20c   : > { %v2745_v12 = vmax.f32 %v2713_v6, 0.0  ;;  %v2714_v29 = vadd.f32 %v5026_v16, %v2675_v27  ;;  %v3614_v20 = vpop.f32.mrb[30].mxu1 }
 0x20d   : > { %v2743_v14 = vmax.f32 %v2711_v21, 0.0  ;;  %v2712_v43 = vadd.f32 %v5026_v16, %v2673_v41  ;;  %v3749_v11 = vpop.f32.mrb[28].mxu0  ;;  %v1677_v62 = vpop.f32.mrb[31].mxu1 }
 0x20e   : > { %v3286_v35 = vpack.c.bf16 %v2745_v12, %v2745_v12  ;;  %v2746_v60 = vmax.f32 %v2714_v29, 0.0  ;;  %v3781_v51 = vadd.f32 %v3749_v11, %v3613_v17  ;;  %v2594_v26 = vpop.f32.mrb[29].mxu0 }
 0x20f   : > { %v3284_v8 = vpack.c.bf16 %v2743_v14, %v2743_v14  ;;  %v2744_v25 = vmax.f32 %v2712_v43, 0.0  ;;  %v3782_v47 = vadd.f32 %v2594_v26, %v1674_v59  ;;  %v3750_v13 = vpop.f32.mrb[30].mxu0 }
 0x210   : > { %2906 = vst.msk [vmem:[%s5039_s22 + $0x68] sm:$0xf] %vm2879_vm4, %v3286_v35  ;;  %v3287_v38 = vpack.c.bf16 %v2746_v60, %v2746_v60  ;;  %v2678_v63 = vmul.f32 %v3781_v51, %v5021_v18  ;;  %v3783_v33 = vadd.f32 %v3750_v13, %v3614_v20  ;;  %v2597_v36 = vpop.f32.mrb[31].mxu0 }
 0x211   : > { %2904 = vst.msk [vmem:[%s5039_s22 + $0x60] sm:$0xf] %vm2879_vm4, %v3284_v8  ;;  %v3285_v30 = vpack.c.bf16 %v2744_v25, %v2744_v25  ;;  %v2676_v7 = vmul.f32 %v3782_v47, %v5021_v18  ;;  %v3784_v37 = vadd.f32 %v2597_v36, %v1677_v62 }
 0x212   : > { %2907 = vst.msk [vmem:[%s5039_s22 + $0x6c] sm:$0xf] %vm2879_vm4, %v3287_v38  ;;  %v2717_v22 = vadd.f32 %v5026_v16, %v2678_v63  ;;  %v2679_v19 = vmul.f32 %v3783_v33, %v5021_v18 }
 0x213   : > { %2905 = vst.msk [vmem:[%s5039_s22 + $0x64] sm:$0xf] %vm2879_vm4, %v3285_v30  ;;  %v2715_v31 = vadd.f32 %v5026_v16, %v2676_v7  ;;  %v2677_v39 = vmul.f32 %v3784_v37, %v5021_v18 }
 0x214   : > { %v2749_v44 = vmax.f32 %v2717_v22, 0.0  ;;  %v2718_v48 = vadd.f32 %v5026_v16, %v2679_v19 }
 0x215   : > { %v2747_v2 = vmax.f32 %v2715_v31, 0.0  ;;  %v2716_v55 = vadd.f32 %v5026_v16, %v2677_v39 }
 0x216   : > { %v3290_v9 = vpack.c.bf16 %v2749_v44, %v2749_v44  ;;  %v2750_v24 = vmax.f32 %v2718_v48, 0.0 }
 0x217   : > { %v3288_v53 = vpack.c.bf16 %v2747_v2, %v2747_v2  ;;  %v2748_v45 = vmax.f32 %v2716_v55, 0.0 }
 0x218   : > { %2910 = vst.msk [vmem:[%s5039_s22 + $0x78] sm:$0xf] %vm2879_vm4, %v3290_v9  ;;  %v3291_v5 = vpack.c.bf16 %v2750_v24, %v2750_v24 }
 0x219   : > { %2908 = vst.msk [vmem:[%s5039_s22 + $0x70] sm:$0xf] %vm2879_vm4, %v3288_v53  ;;  %v3289_v1 = vpack.c.bf16 %v2748_v45, %v2748_v45 }
 0x21a   : > { %2911 = vst.msk [vmem:[%s5039_s22 + $0x7c] sm:$0xf] %vm2879_vm4, %v3291_v5 }
 0x21b   : > { %2909 = vst.msk [vmem:[%s5039_s22 + $0x74] sm:$0xf] %vm2879_vm4, %v3289_v1 }
 0x21c PF: > { %s14_s15 = sadd.s32 1, %s4082_s15  }
 0x21d   : > { %p11_p4 = scmp.ge.s32.totalorder %s14_s15, 4  }
 0x21f   :  { %13 = sbr.rel (!%p11_p4) target bundleno = 1 (0x1), region = 74 }

</bundles_post_ra>
